<compile_context>
chip_gen: v6e
topology: v6e:2x2x1
jax: 0.10.0
libtpu: 0.0.40
codegen_flags: <defaults>
</compile_context>

<pallas_src>
import jax
import jax.numpy as jnp
from jax.experimental import pallas as pl
from jax.experimental.pallas import tpu as pltpu

D_IN = 28 * 28          # 784
H1, H2, H3 = 1024, 512, 256
OUT_LANES = 128         # lane-dense output block width


def _leaky_relu(x, slope=0.2):
    return jnp.where(x > 0, x, slope * x)


def gan_disc_kernel(x_ref,
                    w1_ref, b1_ref,
                    w2_ref, b2_ref,
                    w3_ref, b3_ref,
                    w4_ref, b4_ref,
                    o_ref):
    # Layer 1: (tm, 784) bf16 @ (784, 1024) bf16 -> f32
    h = jnp.dot(x_ref[...], w1_ref[...], preferred_element_type=jnp.float32)
    h = _leaky_relu(h + b1_ref[...])
    # Layer 2: (tm, 1024) @ (1024, 512)
    h = jnp.dot(h.astype(jnp.bfloat16), w2_ref[...],
                preferred_element_type=jnp.float32)
    h = _leaky_relu(h + b2_ref[...])
    # Layer 3: (tm, 512) @ (512, 256)
    h = jnp.dot(h.astype(jnp.bfloat16), w3_ref[...],
                preferred_element_type=jnp.float32)
    h = _leaky_relu(h + b3_ref[...])                      # (tm, 256) f32
    # Layer 4: (tm, 256) @ (256, 128) -- w4 replicated across 128 lanes, so the
    # MXU directly produces the lane-dense output block (no XLU reduce needed).
    logits = jnp.dot(h.astype(jnp.bfloat16), w4_ref[...],
                     preferred_element_type=jnp.float32)
    logits = logits + b4_ref[...]                         # (tm, 128) f32
    # Clip so exp(-logits) can never overflow to inf before the approx recip.
    logits = jnp.clip(logits, -30.0, 30.0)
    probs = pl.reciprocal(1.0 + jnp.exp(-logits), approx=True)
    o_ref[...] = probs.astype(o_ref.dtype)                # bf16 lane-dense store


def prepare_params(params):
    """One-time conversion of f32 params into kernel-ready operands.

    Hoisted out of the per-call wrapper so each forward does not re-run the
    f32 -> bf16 weight casts (they roughly doubled weight traffic before).
    """
    return dict(
        w1=params["w1"].astype(jnp.bfloat16),                       # (784, 1024)
        w2=params["w2"].astype(jnp.bfloat16),                       # (1024, 512)
        w3=params["w3"].astype(jnp.bfloat16),                       # (512, 256)
        # (256, 1) replicated across 128 output columns for the lane-dense
        # layer-4 MXU matmul.
        w4=jnp.tile(params["w4"].astype(jnp.bfloat16), (1, OUT_LANES)),
        b1=params["b1"], b2=params["b2"], b3=params["b3"],           # f32
        b4=params["b4"],                                             # (1, 1) f32
    )


def gan_discriminator(x, kp, *, tm=None):
    """x: (B, 784) float32. kp: output of prepare_params().

    Returns (B, 1) float32 sigmoid probabilities.
    """
    B, D = x.shape
    assert D == D_IN

    # Batch tile: amortize per-grid-step overhead at large B; 128 floor keeps
    # MXU rows filled. No forced second tile on single-TC chips.
    if tm is None:
        tm = 512 if B >= 2048 else (256 if B >= 512 else 128)
    B_pad = ((B + tm - 1) // tm) * tm
    num_tiles = B_pad // tm

    x_p = x.astype(jnp.bfloat16)
    if B_pad != B:
        x_p = jnp.pad(x_p, ((0, B_pad - B), (0, 0)))

    # Constant operands: index_map never changes -> single-buffer them.
    def const(shape):
        return pl.BlockSpec(shape, lambda i: (0,) * len(shape),
                            pipeline_mode=pl.Buffered(1))

    out = pl.pallas_call(
        gan_disc_kernel,
        out_shape=jax.ShapeDtypeStruct((B_pad, OUT_LANES), jnp.bfloat16),
        grid_spec=pltpu.PrefetchScalarGridSpec(
            num_scalar_prefetch=0,
            grid=(num_tiles,),
            in_specs=[
                pl.BlockSpec((tm, D_IN), lambda i: (i, 0)),   # x tile over batch
                const(kp["w1"].shape), const(kp["b1"].shape),
                const(kp["w2"].shape), const(kp["b2"].shape),
                const(kp["w3"].shape), const(kp["b3"].shape),
                const(kp["w4"].shape), const(kp["b4"].shape),
            ],
            out_specs=pl.BlockSpec((tm, OUT_LANES), lambda i: (i, 0)),
        ),
        compiler_params=pltpu.CompilerParams(
            # TODO(synk): on v7x, evaluate pltpu.CORE_PARALLEL (or an explicit
            # 2-way core_map batch split) once B is large enough that compute
            # outweighs the per-core duplicated ~3 MiB weight DMA.
            dimension_semantics=("parallel",),
            vmem_limit_bytes=32 * 1024 * 1024,
        ),
    )(x_p, kp["w1"], kp["b1"], kp["w2"], kp["b2"], kp["w3"], kp["b3"],
      kp["w4"], kp["b4"])

    return out[:B, :1].astype(jnp.float32)


def init_params(key):
    """Deterministic synthetic init (matches nn.Linear shapes, (in, out) layout)."""
    dims = [(D_IN, H1), (H1, H2), (H2, H3), (H3, 1)]
    params = {}
    for idx, (din, dout) in enumerate(dims, start=1):
        key, kw, kb = jax.random.split(key, 3)
        bound = 1.0 / jnp.sqrt(din)
        params[f"w{idx}"] = jax.random.uniform(
            kw, (din, dout), jnp.float32, minval=-bound, maxval=bound)
        params[f"b{idx}"] = jax.random.uniform(
            kb, (1, dout), jnp.float32, minval=-bound, maxval=bound)
    return params


def reference_forward(x, params):
    """Plain-JAX reference mirroring the kernel's bf16-weight / f32-accum math."""
    h = x.astype(jnp.float32)
    for idx in range(1, 4):
        w = params[f"w{idx}"].astype(jnp.bfloat16).astype(jnp.float32)
        z = jnp.dot(h.astype(jnp.bfloat16).astype(jnp.float32), w) + params[f"b{idx}"]
        h = jnp.where(z > 0, z, 0.2 * z)
    w4 = params["w4"].astype(jnp.bfloat16).astype(jnp.float32)
    logits = jnp.dot(h.astype(jnp.bfloat16).astype(jnp.float32), w4) + params["b4"]
    return jax.nn.sigmoid(logits)


if __name__ == "__main__":
    key = jax.random.PRNGKey(0)
    kp_key, kx = jax.random.split(key)
    params = init_params(kp_key)
    kparams = prepare_params(params)   # one-time bf16 conversion (hoisted)

    B = 64  # small demo batch; pads to a single tm=128 tile
    x = jax.random.normal(kx, (B, D_IN), jnp.float32)

    out = gan_discriminator(x, kparams)
    out = jax.block_until_ready(out)

    ref = reference_forward(x, params)
    assert out.shape == (B, 1)
    # Tolerance covers bf16 output quantization (~2e-3) + approx reciprocal.
    assert jnp.allclose(out, ref, atol=8e-3, rtol=8e-3), "mismatch vs reference"

    print("KERNEL_OK")
</pallas_src>

<mosaic_0001>
module attributes {stable_mosaic.version = 11 : i64} {
  func.func @gan_disc_kernel(%arg0: i32, %arg1: memref<128x784xbf16, #tpu.memory_space<vmem>>, %arg2: memref<784x1024xbf16, #tpu.memory_space<vmem>>, %arg3: memref<1x1024xf32, #tpu.memory_space<vmem>>, %arg4: memref<1024x512xbf16, #tpu.memory_space<vmem>>, %arg5: memref<1x512xf32, #tpu.memory_space<vmem>>, %arg6: memref<512x256xbf16, #tpu.memory_space<vmem>>, %arg7: memref<1x256xf32, #tpu.memory_space<vmem>>, %arg8: memref<256x128xbf16, #tpu.memory_space<vmem>>, %arg9: memref<1x1xf32, #tpu.memory_space<vmem>>, %arg10: memref<128x128xbf16, #tpu.memory_space<vmem>>) attributes {dimension_semantics = [#tpu.dimension_semantics<parallel>], iteration_bounds = array<i64: 1>, scalar_prefetch = 0 : i64, scratch_operands = 0 : i64, tpu.core_type = #tpu.core_type<tc>, window_params = [{transform_indices = @transform_0, window_bounds = array<i64: 128, 784>}, {pipeline_mode = #tpu.pipeline_mode<synchronous>, transform_indices = @transform_1, window_bounds = array<i64: 784, 1024>}, {pipeline_mode = #tpu.pipeline_mode<synchronous>, transform_indices = @transform_2, window_bounds = array<i64: 1, 1024>}, {pipeline_mode = #tpu.pipeline_mode<synchronous>, transform_indices = @transform_3, window_bounds = array<i64: 1024, 512>}, {pipeline_mode = #tpu.pipeline_mode<synchronous>, transform_indices = @transform_4, window_bounds = array<i64: 1, 512>}, {pipeline_mode = #tpu.pipeline_mode<synchronous>, transform_indices = @transform_5, window_bounds = array<i64: 512, 256>}, {pipeline_mode = #tpu.pipeline_mode<synchronous>, transform_indices = @transform_6, window_bounds = array<i64: 1, 256>}, {pipeline_mode = #tpu.pipeline_mode<synchronous>, transform_indices = @transform_7, window_bounds = array<i64: 256, 128>}, {pipeline_mode = #tpu.pipeline_mode<synchronous>, transform_indices = @transform_8, window_bounds = array<i64: 1, 1>}, {transform_indices = @transform_9, window_bounds = array<i64: 128, 128>}]} {
    %c0 = arith.constant 0 : index
    %c0_0 = arith.constant 0 : index
    %0 = vector.load %arg1[%c0, %c0_0] : memref<128x784xbf16, #tpu.memory_space<vmem>>, vector<128x784xbf16>
    %c0_1 = arith.constant 0 : index
    %c0_2 = arith.constant 0 : index
    %1 = vector.load %arg2[%c0_1, %c0_2] : memref<784x1024xbf16, #tpu.memory_space<vmem>>, vector<784x1024xbf16>
    %cst = arith.constant dense<0.000000e+00> : vector<128x1024xf32>
    %2 = tpu.matmul %0, %1, %cst {dimension_numbers = #tpu.dot_dimension_numbers<[1], [0], [0], [1], [0, 0, 1, 1], [], []>} : vector<128x784xbf16>, vector<784x1024xbf16>, vector<128x1024xf32> -> vector<128x1024xf32>
    %c0_3 = arith.constant 0 : index
    %c0_4 = arith.constant 0 : index
    %3 = vector.load %arg3[%c0_3, %c0_4] : memref<1x1024xf32, #tpu.memory_space<vmem>>, vector<1x1024xf32>
    %4 = vector.broadcast %3 : vector<1x1024xf32> to vector<128x1024xf32>
    %5 = arith.addf %2, %4 : vector<128x1024xf32>
    %cst_5 = arith.constant 0.000000e+00 : f32
    %6 = vector.broadcast %cst_5 : f32 to vector<128x1024xf32>
    %7 = arith.cmpf ogt, %5, %6 : vector<128x1024xf32>
    %cst_6 = arith.constant 2.000000e-01 : f32
    %8 = vector.broadcast %cst_6 : f32 to vector<128x1024xf32>
    %9 = arith.mulf %8, %5 : vector<128x1024xf32>
    %10 = arith.select %7, %5, %9 : vector<128x1024xi1>, vector<128x1024xf32>
    %11 = arith.truncf %10 : vector<128x1024xf32> to vector<128x1024xbf16>
    %c0_7 = arith.constant 0 : index
    %c0_8 = arith.constant 0 : index
    %12 = vector.load %arg4[%c0_7, %c0_8] : memref<1024x512xbf16, #tpu.memory_space<vmem>>, vector<1024x512xbf16>
    %cst_9 = arith.constant dense<0.000000e+00> : vector<128x512xf32>
    %13 = tpu.matmul %11, %12, %cst_9 {dimension_numbers = #tpu.dot_dimension_numbers<[1], [0], [0], [1], [0, 0, 1, 1], [], []>} : vector<128x1024xbf16>, vector<1024x512xbf16>, vector<128x512xf32> -> vector<128x512xf32>
    %c0_10 = arith.constant 0 : index
    %c0_11 = arith.constant 0 : index
    %14 = vector.load %arg5[%c0_10, %c0_11] : memref<1x512xf32, #tpu.memory_space<vmem>>, vector<1x512xf32>
    %15 = vector.broadcast %14 : vector<1x512xf32> to vector<128x512xf32>
    %16 = arith.addf %13, %15 : vector<128x512xf32>
    %cst_12 = arith.constant 0.000000e+00 : f32
    %17 = vector.broadcast %cst_12 : f32 to vector<128x512xf32>
    %18 = arith.cmpf ogt, %16, %17 : vector<128x512xf32>
    %cst_13 = arith.constant 2.000000e-01 : f32
    %19 = vector.broadcast %cst_13 : f32 to vector<128x512xf32>
    %20 = arith.mulf %19, %16 : vector<128x512xf32>
    %21 = arith.select %18, %16, %20 : vector<128x512xi1>, vector<128x512xf32>
    %22 = arith.truncf %21 : vector<128x512xf32> to vector<128x512xbf16>
    %c0_14 = arith.constant 0 : index
    %c0_15 = arith.constant 0 : index
    %23 = vector.load %arg6[%c0_14, %c0_15] : memref<512x256xbf16, #tpu.memory_space<vmem>>, vector<512x256xbf16>
    %cst_16 = arith.constant dense<0.000000e+00> : vector<128x256xf32>
    %24 = tpu.matmul %22, %23, %cst_16 {dimension_numbers = #tpu.dot_dimension_numbers<[1], [0], [0], [1], [0, 0, 1, 1], [], []>} : vector<128x512xbf16>, vector<512x256xbf16>, vector<128x256xf32> -> vector<128x256xf32>
    %c0_17 = arith.constant 0 : index
    %c0_18 = arith.constant 0 : index
    %25 = vector.load %arg7[%c0_17, %c0_18] : memref<1x256xf32, #tpu.memory_space<vmem>>, vector<1x256xf32>
    %26 = vector.broadcast %25 : vector<1x256xf32> to vector<128x256xf32>
    %27 = arith.addf %24, %26 : vector<128x256xf32>
    %cst_19 = arith.constant 0.000000e+00 : f32
    %28 = vector.broadcast %cst_19 : f32 to vector<128x256xf32>
    %29 = arith.cmpf ogt, %27, %28 : vector<128x256xf32>
    %cst_20 = arith.constant 2.000000e-01 : f32
    %30 = vector.broadcast %cst_20 : f32 to vector<128x256xf32>
    %31 = arith.mulf %30, %27 : vector<128x256xf32>
    %32 = arith.select %29, %27, %31 : vector<128x256xi1>, vector<128x256xf32>
    %33 = arith.truncf %32 : vector<128x256xf32> to vector<128x256xbf16>
    %c0_21 = arith.constant 0 : index
    %c0_22 = arith.constant 0 : index
    %34 = vector.load %arg8[%c0_21, %c0_22] : memref<256x128xbf16, #tpu.memory_space<vmem>>, vector<256x128xbf16>
    %cst_23 = arith.constant dense<0.000000e+00> : vector<128x128xf32>
    %35 = tpu.matmul %33, %34, %cst_23 {dimension_numbers = #tpu.dot_dimension_numbers<[1], [0], [0], [1], [0, 0, 1, 1], [], []>} : vector<128x256xbf16>, vector<256x128xbf16>, vector<128x128xf32> -> vector<128x128xf32>
    %c0_24 = arith.constant 0 : index
    %c0_25 = arith.constant 0 : index
    %36 = vector.load %arg9[%c0_24, %c0_25] : memref<1x1xf32, #tpu.memory_space<vmem>>, vector<1x1xf32>
    %37 = vector.broadcast %36 : vector<1x1xf32> to vector<128x128xf32>
    %38 = arith.addf %35, %37 : vector<128x128xf32>
    %cst_26 = arith.constant -3.000000e+01 : f32
    %cst_27 = arith.constant 3.000000e+01 : f32
    %39 = vector.broadcast %cst_26 : f32 to vector<128x128xf32>
    %40 = arith.maximumf %39, %38 : vector<128x128xf32>
    %41 = vector.broadcast %cst_27 : f32 to vector<128x128xf32>
    %42 = arith.minimumf %41, %40 : vector<128x128xf32>
    %cst_28 = arith.constant 0.000000e+00 : f32
    %43 = vector.broadcast %cst_28 : f32 to vector<128x128xf32>
    %44 = arith.subf %43, %42 : vector<128x128xf32>
    %45 = math.exp %44 : vector<128x128xf32>
    %cst_29 = arith.constant 1.000000e+00 : f32
    %46 = vector.broadcast %cst_29 : f32 to vector<128x128xf32>
    %47 = arith.addf %46, %45 : vector<128x128xf32>
    %48 = tpu.reciprocal %47 {approx = true} : vector<128x128xf32> -> vector<128x128xf32>
    %49 = arith.truncf %48 : vector<128x128xf32> to vector<128x128xbf16>
    %c0_30 = arith.constant 0 : index
    %c0_31 = arith.constant 0 : index
    %50 = vector.load %arg10[%c0_30, %c0_31] : memref<128x128xbf16, #tpu.memory_space<vmem>>, vector<128x128xbf16>
    tpu.vector_store %arg10[%c0_30, %c0_31], %49 {strides = array<i32>} : memref<128x128xbf16, #tpu.memory_space<vmem>>, vector<128x128xbf16>,
    return
  }
  func.func @transform_0(%arg0: i32) -> (i32, i32) {
    %c0_i32 = arith.constant 0 : i32
    %c0_i32_0 = arith.constant 0 : i32
    return %arg0, %c0_i32 : i32, i32
  }
  func.func @transform_1(%arg0: i32) -> (i32, i32) {
    %c0_i32 = arith.constant 0 : i32
    %c0_i32_0 = arith.constant 0 : i32
    %c0_i32_1 = arith.constant 0 : i32
    return %c0_i32, %c0_i32_0 : i32, i32
  }
  func.func @transform_2(%arg0: i32) -> (i32, i32) {
    %c0_i32 = arith.constant 0 : i32
    %c0_i32_0 = arith.constant 0 : i32
    %c0_i32_1 = arith.constant 0 : i32
    return %c0_i32, %c0_i32_0 : i32, i32
  }
  func.func @transform_3(%arg0: i32) -> (i32, i32) {
    %c0_i32 = arith.constant 0 : i32
    %c0_i32_0 = arith.constant 0 : i32
    %c0_i32_1 = arith.constant 0 : i32
    return %c0_i32, %c0_i32_0 : i32, i32
  }
  func.func @transform_4(%arg0: i32) -> (i32, i32) {
    %c0_i32 = arith.constant 0 : i32
    %c0_i32_0 = arith.constant 0 : i32
    %c0_i32_1 = arith.constant 0 : i32
    return %c0_i32, %c0_i32_0 : i32, i32
  }
  func.func @transform_5(%arg0: i32) -> (i32, i32) {
    %c0_i32 = arith.constant 0 : i32
    %c0_i32_0 = arith.constant 0 : i32
    %c0_i32_1 = arith.constant 0 : i32
    return %c0_i32, %c0_i32_0 : i32, i32
  }
  func.func @transform_6(%arg0: i32) -> (i32, i32) {
    %c0_i32 = arith.constant 0 : i32
    %c0_i32_0 = arith.constant 0 : i32
    %c0_i32_1 = arith.constant 0 : i32
    return %c0_i32, %c0_i32_0 : i32, i32
  }
  func.func @transform_7(%arg0: i32) -> (i32, i32) {
    %c0_i32 = arith.constant 0 : i32
    %c0_i32_0 = arith.constant 0 : i32
    %c0_i32_1 = arith.constant 0 : i32
    return %c0_i32, %c0_i32_0 : i32, i32
  }
  func.func @transform_8(%arg0: i32) -> (i32, i32) {
    %c0_i32 = arith.constant 0 : i32
    %c0_i32_0 = arith.constant 0 : i32
    %c0_i32_1 = arith.constant 0 : i32
    return %c0_i32, %c0_i32_0 : i32, i32
  }
  func.func @transform_9(%arg0: i32) -> (i32, i32) {
    %c0_i32 = arith.constant 0 : i32
    %c0_i32_0 = arith.constant 0 : i32
    return %arg0, %c0_i32 : i32, i32
  }
}

</mosaic_0001>

<bundles_post_ra>
// kernel: tpu_custom_call.1
= control target key start
LH: loop header
LB: loop body
LE: loop exit
PB: predicated region body
PF: predicated region fallthrough
CT: control target
= control target key end

     0   :  { %s13666_s0 = inlined_call_operand.vmem [shape: bf16[128,784], index: 0, kind: input, shape index: {}]   ;;  %s13667_s1 = inlined_call_operand.hbm [shape: bf16[784,1024], index: 1, kind: input, shape index: {}]   ;;  %s13668_s2 = inlined_call_operand.hbm [shape: f32[1,1024], index: 2, kind: input, shape index: {}]   ;;  %s13669_s3 = inlined_call_operand.hbm [shape: bf16[1024,512], index: 3, kind: input, shape index: {}]   ;;  %s13670_s4 = inlined_call_operand.hbm [shape: f32[1,512], index: 4, kind: input, shape index: {}]   ;;  %s13671_s5 = inlined_call_operand.hbm [shape: bf16[512,256], index: 5, kind: input, shape index: {}]   ;;  %s13672_s6 = inlined_call_operand.hbm [shape: f32[1,256], index: 6, kind: input, shape index: {}]   ;;  %s13673_s7 = inlined_call_operand.hbm [shape: bf16[256,128], index: 7, kind: input, shape index: {}]   ;;  %s13674_s8 = inlined_call_operand.<no memory space> [shape: f32[1,1], index: 8, kind: input, shape index: {}]   ;;  %s13675_s9 = inlined_call_operand.hbm [shape: bf16[128,128], index: 9, kind: output, shape index: {}]  }
   0x1   :  { %v14_v0 = vstv %s13674_s8 }
   0x2   :  { %15 = vst [vmem:[#allocation2] sm:$0x1] %v14_v0 }
   0x3   :  { %16 = vsyncpa [#allocation4], 0 }
   0x4   :  { %17 = vsyncpa [#allocation7], 0 }
   0x5   :  { %18 = vsyncpa [#allocation10], 0 }
   0x6   :  { %19 = vsyncpa [#allocation13], 0 }
   0x7   :  { %20 = vsyncpa [#allocation5], 0  ;;  %s11003_s11 = smov [#allocation6]   ;;  %s11004_s13 = smov [#allocation9]  }
   0x8   :  { %s41_s12 = sshll.u32 %s11003_s11, 4  ;;  %s63_s14 = sshll.u32 %s11004_s13, 4  ;;  %s42_s12 = int_to_ptr.vmem [resolvable:$true] %s41_s12  ;;  %s64_s14 = int_to_ptr.vmem [resolvable:$true] %s63_s14 }
   0x9   :  { %s10841_s15 = scalar_lea.vmem %s42_s12, 128  ;;  %p10846_p1 = scmp.lt.s32.totalorder %s42_s12, %s42_s12 }
   0xa   :  { %p10842_p0 = scmp.ne.s32.totalorder %s42_s12, %s10841_s15  ;;  %p10847_p2 = scmp.lt.s32.totalorder %s10841_s15, %s10841_s15 }
   0xc   :  { %p10848_p3 = por %p10847_p2, %p10846_p1 }
   0xe   :  { %p10849_p4 = pnand %p10848_p3, %p10842_p0 }
  0x10   :  { %10852 = shalt.err (!%p10849_p4)
}
  0x11   :  { %44 = dma.hbm_to_vmem [thread:$0]  %s13668_s2, 128, %s42_s12, [#allocation7]  }
  0x12   :  { %s10861_s17 = scalar_lea.vmem %s64_s14, 64  ;;  %p10866_p6 = scmp.lt.s32.totalorder %s64_s14, %s64_s14 }
  0x13   :  { %p10862_p5 = scmp.ne.s32.totalorder %s64_s14, %s10861_s17  ;;  %p10867_p7 = scmp.lt.s32.totalorder %s10861_s17, %s10861_s17 }
  0x15   :  { %p10868_p8 = por %p10867_p7, %p10866_p6 }
  0x17   :  { %p10869_p9 = pnand %p10868_p8, %p10862_p5 }
  0x19   :  { %10872 = shalt.err (!%p10869_p9)
}
  0x1a   :  { %66 = dma.hbm_to_vmem [thread:$0]  %s13670_s4, 64, %s64_s14, [#allocation10]  }
  0x1b   :  { %s11005_s20 = smov [#allocation12]   ;;  %s11006_s22 = smov [#allocation3]  }
  0x1c   :  { %s85_s21 = sshll.u32 %s11005_s20, 4  ;;  %s28_s23 = sshll.u32 %s11006_s22, 4  ;;  %s86_s21 = int_to_ptr.vmem [resolvable:$true] %s85_s21  ;;  %s29_s23 = int_to_ptr.vmem [resolvable:$true] %s28_s23 }
  0x1d   :  { %s10881_s24 = scalar_lea.vmem %s86_s21, 32  ;;  %p10886_p11 = scmp.lt.s32.totalorder %s86_s21, %s86_s21 }
  0x1e   :  { %p10882_p10 = scmp.ne.s32.totalorder %s86_s21, %s10881_s24  ;;  %p10887_p12 = scmp.lt.s32.totalorder %s10881_s24, %s10881_s24 }
  0x20   :  { %p10888_p13 = por %p10887_p12, %p10886_p11 }
  0x22   :  { %p10889_p0 = pnand %p10888_p13, %p10882_p10 }
  0x24   :  { %10892 = shalt.err (!%p10889_p0)
}
  0x25   :  { %88 = dma.hbm_to_vmem [thread:$0]  %s13672_s6, 32, %s86_s21, [#allocation13]  }
  0x26   :  { %s10901_s26 = scalar_lea.vmem %s29_s23, 50176  ;;  %p10906_p2 = scmp.lt.s32.totalorder %s29_s23, %s29_s23 }
  0x27   :  { %p10902_p1 = scmp.ne.s32.totalorder %s29_s23, %s10901_s26  ;;  %p10907_p3 = scmp.lt.s32.totalorder %s10901_s26, %s10901_s26 }
  0x29   :  { %p10908_p4 = por %p10907_p3, %p10906_p2 }
  0x2b   :  { %p10909_p5 = pnand %p10908_p4, %p10902_p1 }
  0x2d   :  { %10912 = shalt.err (!%p10909_p5)
}
  0x2e   :  { %s11007_s4 = smov 512   ;;  %s11008_s27 = smov 32  }
  0x2f   :  { %34 = dma.hbm_to_vmem [thread:$0]  %s13667_s1, 50176, %s29_s23, [#allocation4], %s11007_s4, %s11007_s4, %s11008_s27  }
  0x30   :  { %s11009_s30 = smov [#allocation8]  }
  0x31   :  { %s50_s10 = sshll.u32 %s11009_s30, 4  ;;  %s51_s10 = int_to_ptr.vmem [resolvable:$true] %s50_s10 }
  0x32   :  { %s10921_s11 = scalar_lea.vmem %s51_s10, 32768  ;;  %p10926_p7 = scmp.lt.s32.totalorder %s51_s10, %s51_s10 }
  0x33   :  { %p10922_p6 = scmp.ne.s32.totalorder %s51_s10, %s10921_s11  ;;  %p10927_p8 = scmp.lt.s32.totalorder %s10921_s11, %s10921_s11 }
  0x35   :  { %p10928_p9 = por %p10927_p8, %p10926_p7 }
  0x37   :  { %p10929_p10 = pnand %p10928_p9, %p10922_p6 }
  0x39   :  { %10932 = shalt.err (!%p10929_p10)
}
  0x3a   :  { %s11010_s6 = smov 256   ;;  %s11011_s12 = smov 16  }
  0x3b   :  { %56 = dma.hbm_to_vmem [thread:$0]  %s13669_s3, 32768, %s51_s10, [#allocation7], %s11010_s6, %s11010_s6, %s11011_s12  }
  0x3c   :  { %s11012_s15 = smov [#allocation11]  }
  0x3d   :  { %s72_s8 = sshll.u32 %s11012_s15, 4  ;;  %s73_s8 = int_to_ptr.vmem [resolvable:$true] %s72_s8 }
  0x3e   :  { %s10941_s1 = scalar_lea.vmem %s73_s8, 8192  ;;  %p10946_p12 = scmp.lt.s32.totalorder %s73_s8, %s73_s8 }
  0x3f   :  { %p10942_p11 = scmp.ne.s32.totalorder %s73_s8, %s10941_s1  ;;  %p10947_p13 = scmp.lt.s32.totalorder %s10941_s1, %s10941_s1 }
  0x41   :  { %p10948_p0 = por %p10947_p13, %p10946_p12 }
  0x43   :  { %p10949_p1 = pnand %p10948_p0, %p10942_p11 }
  0x45   :  { %10952 = shalt.err (!%p10949_p1)
}
  0x46   :  { %s11013_s16 = smov 128   ;;  %s11014_s17 = smov 8  }
  0x47   :  { %78 = dma.hbm_to_vmem [thread:$0]  %s13671_s5, 8192, %s73_s8, [#allocation10], %s11013_s16, %s11013_s16, %s11014_s17  }
  0x48   :  { %s11015_s20 = smov [#allocation14]  }
  0x49   :  { %s94_s21 = sshll.u32 %s11015_s20, 4  ;;  %s95_s21 = int_to_ptr.vmem [resolvable:$true] %s94_s21 }
  0x4a   :  { %s10961_s3 = scalar_lea.vmem %s95_s21, 2048  ;;  %p10966_p3 = scmp.lt.s32.totalorder %s95_s21, %s95_s21 }
  0x4b   :  { %p10962_p2 = scmp.ne.s32.totalorder %s95_s21, %s10961_s3  ;;  %p10967_p4 = scmp.lt.s32.totalorder %s10961_s3, %s10961_s3 }
  0x4d   :  { %p10968_p5 = por %p10967_p4, %p10966_p3 }
  0x4f   :  { %p10969_p6 = pnand %p10968_p5, %p10962_p2 }
  0x51   :  { %10972 = shalt.err (!%p10969_p6)
}
  0x52   :  { %s11016_s22 = smov 64   ;;  %s11017_s23 = smov 4  }
  0x53   :  { %100 = dma.hbm_to_vmem [thread:$0]  %s13673_s7, 2048, %s95_s21, [#allocation13], %s11016_s22, %s11016_s22, %s11017_s23  }
  0x54   :  { %10993 = dma.done.wait [#allocation4], 50176  }
  0x55   :  { %10994 = vsyncadd [#allocation4], 4294917120 }
  0x56   :  { %10995 = dma.done.wait [#allocation7], 32896  }
  0x57   :  { %10996 = vsyncadd [#allocation7], 4294934400 }
  0x58   :  { %10997 = dma.done.wait [#allocation10], 8256  }
  0x59   :  { %10998 = vsyncadd [#allocation10], 4294959040 }
  0x5a   :  { %10999 = dma.done.wait [#allocation13], 2080  }
  0x5b   :  { %11000 = vsyncadd [#allocation13], 4294965216  ;;  %v245_v1 = vld [vmem:[#allocation3 + $0x1c0] sm:$0xff]  ;;  %v13678_v9 = vmov 0   ;;  %vm2863_vm0 = vcmask 130048  }
  0x5c   :  { %v249_v2 = vld [vmem:[#allocation3 + $0x1e0] sm:$0xff]  ;;  %10020 = vset.pattern.permute.xlu0 %v13678_v9 }
  0x5d   :  { %v373_v3 = vld [vmem:[#allocation3 + $0x5c0] sm:$0xff]  ;;  %v9124_v4 = vcombine.high %v245_v1, %v249_v2  ;;  %v9123_v6 = vcombine.low %v245_v1, %v249_v2 }
  0x5e   :  { %v377_v5 = vld [vmem:[#allocation3 + $0x5e0] sm:$0xff] }
  0x5f   :  { %v237_v7 = vld [vmem:[#allocation3 + $0x180] sm:$0xff]  ;;  %v9252_v10 = vcombine.high %v373_v3, %v377_v5  ;;  %v9251_v11 = vcombine.low %v373_v3, %v377_v5  ;;  %2888 = vmatprep.subr.bf16.mxu0 %v9124_v4 }
  0x60   :  { %v241_v8 = vld [vmem:[#allocation3 + $0x1a0] sm:$0xff]  ;;  %2889 = vmatpush1.bf16.msra.mxu0 %v9123_v6 }
  0x61   :  { %v9116_v12 = vcombine.high %v237_v7, %v241_v8  ;;  %v365_v13 = vld [vmem:[#allocation3 + $0x580] sm:$0xff]  ;;  %3001 = vmatprep.subr.bf16.mxu1 %v9252_v10  ;;  %v9115_v20 = vcombine.low %v237_v7, %v241_v8 }
  0x62   :  { %v369_v14 = vld [vmem:[#allocation3 + $0x5a0] sm:$0xff]  ;;  %3002 = vmatpush1.bf16.msra.mxu1 %v9251_v11 }
  0x63   :  { %v229_v15 = vld [vmem:[#allocation3 + $0x140] sm:$0xff]  ;;  %v9244_v16 = vcombine.high %v365_v13, %v369_v14  ;;  %2890 = vmatprep.subr.bf16.mxu0 %v9116_v12  ;;  %v9243_v21 = vcombine.low %v365_v13, %v369_v14 }
  0x64   :  { %v233_v17 = vld [vmem:[#allocation3 + $0x160] sm:$0xff]  ;;  %2891 = vmatpush1.bf16.msra.mxu0 %v9115_v20 }
  0x65   :  { %v357_v18 = vld [vmem:[#allocation3 + $0x540] sm:$0xff]  ;;  %v9108_v22 = vcombine.high %v229_v15, %v233_v17  ;;  %3003 = vmatprep.subr.bf16.mxu1 %v9244_v16  ;;  %v9107_v28 = vcombine.low %v229_v15, %v233_v17 }
  0x66   :  { %v361_v19 = vld [vmem:[#allocation3 + $0x560] sm:$0xff]  ;;  %3004 = vmatpush1.bf16.msra.mxu1 %v9243_v21 }
  0x67   :  { %v9236_v23 = vcombine.high %v357_v18, %v361_v19  ;;  %v221_v24 = vld [vmem:[#allocation3 + $0x100] sm:$0xff]  ;;  %2892 = vmatprep.subr.bf16.mxu0 %v9108_v22  ;;  %v9235_v29 = vcombine.low %v357_v18, %v361_v19 }
  0x68   :  { %v225_v25 = vld [vmem:[#allocation3 + $0x120] sm:$0xff]  ;;  %2893 = vmatpush1.bf16.msra.mxu0 %v9107_v28 }
  0x69   :  { %v349_v26 = vld [vmem:[#allocation3 + $0x500] sm:$0xff]  ;;  %v9100_v30 = vcombine.high %v221_v24, %v225_v25  ;;  %3005 = vmatprep.subr.bf16.mxu1 %v9236_v23  ;;  %v9099_v36 = vcombine.low %v221_v24, %v225_v25 }
  0x6a   :  { %v353_v27 = vld [vmem:[#allocation3 + $0x520] sm:$0xff]  ;;  %3006 = vmatpush1.bf16.msra.mxu1 %v9235_v29 }
  0x6b   :  { %v9228_v31 = vcombine.high %v349_v26, %v353_v27  ;;  %v213_v32 = vld [vmem:[#allocation3 + $0xc0] sm:$0xff]  ;;  %2894 = vmatprep.subr.bf16.mxu0 %v9100_v30  ;;  %v9227_v37 = vcombine.low %v349_v26, %v353_v27 }
  0x6c   :  { %v217_v33 = vld [vmem:[#allocation3 + $0xe0] sm:$0xff]  ;;  %2895 = vmatpush1.bf16.msra.mxu0 %v9099_v36 }
  0x6d   :  { %v341_v34 = vld [vmem:[#allocation3 + $0x4c0] sm:$0xff]  ;;  %v9092_v38 = vcombine.high %v213_v32, %v217_v33  ;;  %3007 = vmatprep.subr.bf16.mxu1 %v9228_v31  ;;  %v9091_v44 = vcombine.low %v213_v32, %v217_v33 }
  0x6e   :  { %v345_v35 = vld [vmem:[#allocation3 + $0x4e0] sm:$0xff]  ;;  %3008 = vmatpush1.bf16.msra.mxu1 %v9227_v37 }
  0x6f   :  { %v9220_v39 = vcombine.high %v341_v34, %v345_v35  ;;  %v205_v40 = vld [vmem:[#allocation3 + $0x80] sm:$0xff]  ;;  %2896 = vmatprep.subr.bf16.mxu0 %v9092_v38  ;;  %v9219_v45 = vcombine.low %v341_v34, %v345_v35 }
  0x70   :  { %v209_v41 = vld [vmem:[#allocation3 + $0xa0] sm:$0xff]  ;;  %2897 = vmatpush1.bf16.msra.mxu0 %v9091_v44 }
  0x71   :  { %v333_v42 = vld [vmem:[#allocation3 + $0x480] sm:$0xff]  ;;  %v9084_v46 = vcombine.high %v205_v40, %v209_v41  ;;  %3009 = vmatprep.subr.bf16.mxu1 %v9220_v39  ;;  %v9083_v52 = vcombine.low %v205_v40, %v209_v41 }
  0x72   :  { %v337_v43 = vld [vmem:[#allocation3 + $0x4a0] sm:$0xff]  ;;  %3010 = vmatpush1.bf16.msra.mxu1 %v9219_v45 }
  0x73   :  { %v9212_v47 = vcombine.high %v333_v42, %v337_v43  ;;  %v197_v48 = vld [vmem:[#allocation3 + $0x40] sm:$0xff]  ;;  %2898 = vmatprep.subr.bf16.mxu0 %v9084_v46  ;;  %v9211_v54 = vcombine.low %v333_v42, %v337_v43 }
  0x74   :  { %v201_v49 = vld [vmem:[#allocation3 + $0x60] sm:$0xff]  ;;  %2899 = vmatpush1.bf16.msra.mxu0 %v9083_v52 }
  0x75   :  { %v325_v50 = vld [vmem:[#allocation3 + $0x440] sm:$0xff]  ;;  %v9076_v55 = vcombine.high %v197_v48, %v201_v49  ;;  %3011 = vmatprep.subr.bf16.mxu1 %v9212_v47  ;;  %v9075_v62 = vcombine.low %v197_v48, %v201_v49 }
  0x76   :  { %v329_v51 = vld [vmem:[#allocation3 + $0x460] sm:$0xff]  ;;  %3012 = vmatpush1.bf16.msra.mxu1 %v9211_v54 }
  0x77   :  { %v189_v53 = vld [vmem:[#allocation3] sm:$0xff]  ;;  %v9204_v57 = vcombine.high %v325_v50, %v329_v51  ;;  %2900 = vmatprep.subr.bf16.mxu0 %v9076_v55  ;;  %v9203_v63 = vcombine.low %v325_v50, %v329_v51 }
  0x78   :  { %v193_v56 = vld [vmem:[#allocation3 + $0x20] sm:$0xff]  ;;  %2901 = vmatpush1.bf16.msra.mxu0 %v9075_v62 }
  0x79   :  { %v10021_v58 = vld [vmem:[%s13666_s0 + $0x4] ss:$28 sps:$4 sm:$0xff]   ;;  %v10023_v61 = vld [vmem:[%s13666_s0 + $0xc] ss:$28 sps:$4 sm:$0xff]   ;;  %v9068_v0 = vcombine.high %v189_v53, %v193_v56  ;;  %3013 = vmatprep.subr.bf16.mxu1 %v9204_v57  ;;  %v9067_v6 = vcombine.low %v189_v53, %v193_v56 }
  0x7a   :  { %v317_v59 = vld [vmem:[#allocation3 + $0x400] sm:$0xff]  ;;  %2920 = vmatprep.mubr.bf16.mxu0 %v10021_v58  ;;  %3033 = vmatprep.mubr.bf16.mxu1 %v10023_v61 }
  0x7b   :  { %v321_v60 = vld [vmem:[#allocation3 + $0x420] sm:$0xff]  ;;  %3014 = vmatpush1.bf16.msra.mxu1 %v9203_v63  ;;  %2902 = vmatprep.subr.bf16.mxu0 %v9068_v0 }
  0x7c   :  { %v309_v1 = vld [vmem:[#allocation3 + $0x3c0] sm:$0xff]  ;;  %v9196_v3 = vcombine.high %v317_v59, %v321_v60  ;;  %v9195_v7 = vcombine.low %v317_v59, %v321_v60  ;;  %2903 = vmatpush1.bf16.msra.mxu0 %v9067_v6 }
  0x7d   :  { %v313_v2 = vld [vmem:[#allocation3 + $0x3e0] sm:$0xff] }
  0x7e   :  { %v437_v4 = vld [vmem:[#allocation3 + $0x7c0] sm:$0xff]  ;;  %v9188_v8 = vcombine.high %v309_v1, %v313_v2  ;;  %3015 = vmatprep.subr.bf16.mxu1 %v9196_v3  ;;  %v9187_v15 = vcombine.low %v309_v1, %v313_v2 }
  0x7f   :  { %v441_v5 = vld [vmem:[#allocation3 + $0x7e0] sm:$0xff]  ;;  %3016 = vmatpush1.bf16.msra.mxu1 %v9195_v7 }
  0x80   :  { %v301_v10 = vld [vmem:[#allocation3 + $0x380] sm:$0xff]  ;;  %v9316_v12 = vcombine.high %v437_v4, %v441_v5  ;;  %2904 = vmatprep.subr.bf16.mxu0 %v9188_v8  ;;  %v9315_v16 = vcombine.low %v437_v4, %v441_v5 }
  0x81   :  { %v305_v11 = vld [vmem:[#allocation3 + $0x3a0] sm:$0xff]  ;;  %2905 = vmatpush2.bf16.msra.mxu0 %v9187_v15 }
  0x82   :  { %v429_v13 = vld [vmem:[#allocation3 + $0x780] sm:$0xff]  ;;  %v9180_v17 = vcombine.high %v301_v10, %v305_v11  ;;  %3017 = vmatprep.subr.bf16.mxu1 %v9316_v12  ;;  %v9179_v23 = vcombine.low %v301_v10, %v305_v11 }
  0x83   :  { %v433_v14 = vld [vmem:[#allocation3 + $0x7a0] sm:$0xff]  ;;  %3018 = vmatpush2.bf16.msra.mxu1 %v9315_v16  ;;  %v11110_v16 = vld [vmem:[#allocation3 + $0x5c8] sm:$0xff] }
  0x84   :  { %v293_v18 = vld [vmem:[#allocation3 + $0x340] sm:$0xff]  ;;  %v9308_v20 = vcombine.high %v429_v13, %v433_v14  ;;  %2906 = vmatprep.subr.bf16.mxu0 %v9180_v17  ;;  %v9307_v24 = vcombine.low %v429_v13, %v433_v14 }
  0x85   :  { %v297_v19 = vld [vmem:[#allocation3 + $0x360] sm:$0xff]  ;;  %2907 = vmatpush2.bf16.msra.mxu0 %v9179_v23 }
  0x86   :  { %v421_v21 = vld [vmem:[#allocation3 + $0x740] sm:$0xff]  ;;  %v9172_v25 = vcombine.high %v293_v18, %v297_v19  ;;  %3019 = vmatprep.subr.bf16.mxu1 %v9308_v20  ;;  %v9171_v31 = vcombine.low %v293_v18, %v297_v19  ;;  %v11112_v18 = vld [vmem:[#allocation3 + $0x5e8] sm:$0xff] }
  0x87   :  { %v425_v22 = vld [vmem:[#allocation3 + $0x760] sm:$0xff]  ;;  %3020 = vmatpush2.bf16.msra.mxu1 %v9307_v24 }
  0x88   :  { %v285_v26 = vld [vmem:[#allocation3 + $0x300] sm:$0xff]  ;;  %v9300_v28 = vcombine.high %v421_v21, %v425_v22  ;;  %2908 = vmatprep.subr.bf16.mxu0 %v9172_v25  ;;  %v9299_v32 = vcombine.low %v421_v21, %v425_v22  ;;  %v10027_v21 = vld [vmem:[%s13666_s0 + $0x3c] ss:$28 sps:$4 sm:$0xff]   ;;  %v9254_v25 = vcombine.high %v11110_v16, %v11112_v18 }
  0x89   :  { %v289_v27 = vld [vmem:[#allocation3 + $0x320] sm:$0xff]  ;;  %2909 = vmatpush2.bf16.msra.mxu0 %v9171_v31 }
  0x8a   :  { %v413_v29 = vld [vmem:[#allocation3 + $0x700] sm:$0xff]  ;;  %v9164_v33 = vcombine.high %v285_v26, %v289_v27  ;;  %3021 = vmatprep.subr.bf16.mxu1 %v9300_v28  ;;  %v9163_v39 = vcombine.low %v285_v26, %v289_v27 }
  0x8b   :  { %v417_v30 = vld [vmem:[#allocation3 + $0x720] sm:$0xff]  ;;  %3022 = vmatpush2.bf16.msra.mxu1 %v9299_v32 }
  0x8c   :  { %v277_v34 = vld [vmem:[#allocation3 + $0x2c0] sm:$0xff]  ;;  %v9292_v36 = vcombine.high %v413_v29, %v417_v30  ;;  %2910 = vmatprep.subr.bf16.mxu0 %v9164_v33  ;;  %v9291_v40 = vcombine.low %v413_v29, %v417_v30  ;;  %v10031_v30 = vld [vmem:[%s13666_s0 + $0x38] ss:$28 sps:$4 sm:$0xff]  }
  0x8d   :  { %v281_v35 = vld [vmem:[#allocation3 + $0x2e0] sm:$0xff]  ;;  %2911 = vmatpush2.bf16.msra.mxu0 %v9163_v39 }
  0x8e   :  { %v405_v37 = vld [vmem:[#allocation3 + $0x6c0] sm:$0xff]  ;;  %v9156_v41 = vcombine.high %v277_v34, %v281_v35  ;;  %3023 = vmatprep.subr.bf16.mxu1 %v9292_v36  ;;  %v9155_v47 = vcombine.low %v277_v34, %v281_v35  ;;  %v10033_v34 = vld [vmem:[%s13666_s0 + $0x74] ss:$28 sps:$4 sm:$0xff]   ;;  %v10035_v35 = vld [vmem:[%s13666_s0 + $0x7c] ss:$28 sps:$4 sm:$0xff]  }
  0x8f   :  { %v409_v38 = vld [vmem:[#allocation3 + $0x6e0] sm:$0xff]  ;;  %3024 = vmatpush2.bf16.msra.mxu1 %v9291_v40 }
  0x90   :  { %v269_v42 = vld [vmem:[#allocation3 + $0x280] sm:$0xff]  ;;  %v9284_v44 = vcombine.high %v405_v37, %v409_v38  ;;  %2912 = vmatprep.subr.bf16.mxu0 %v9156_v41  ;;  %v9283_v48 = vcombine.low %v405_v37, %v409_v38 }
  0x91   :  { %v273_v43 = vld [vmem:[#allocation3 + $0x2a0] sm:$0xff]  ;;  %2913 = vmatpush2.bf16.msra.mxu0 %v9155_v47  ;;  %v10041_v47 = vld [vmem:[%s13666_s0 + $0xb4] ss:$28 sps:$4 sm:$0xff]  }
  0x92   :  { %v397_v45 = vld [vmem:[#allocation3 + $0x680] sm:$0xff]  ;;  %v9148_v49 = vcombine.high %v269_v42, %v273_v43  ;;  %3025 = vmatprep.subr.bf16.mxu1 %v9284_v44  ;;  %v9147_v55 = vcombine.low %v269_v42, %v273_v43  ;;  %v10037_v42 = vld [vmem:[%s13666_s0 + $0x70] ss:$28 sps:$4 sm:$0xff]   ;;  %v10038_v43 = vld [vmem:[%s13666_s0 + $0x78] ss:$28 sps:$4 sm:$0xff]  }
  0x93   :  { %v401_v46 = vld [vmem:[#allocation3 + $0x6a0] sm:$0xff]  ;;  %3026 = vmatpush2.bf16.msra.mxu1 %v9283_v48 }
  0x94   :  { %v261_v50 = vld [vmem:[#allocation3 + $0x240] sm:$0xff]  ;;  %v9276_v52 = vcombine.high %v397_v45, %v401_v46  ;;  %2914 = vmatprep.subr.bf16.mxu0 %v9148_v49  ;;  %v9275_v56 = vcombine.low %v397_v45, %v401_v46 }
  0x95   :  { %v265_v51 = vld [vmem:[#allocation3 + $0x260] sm:$0xff]  ;;  %2915 = vmatpush2.bf16.msra.mxu0 %v9147_v55  ;;  %v10044_v55 = vld [vmem:[%s13666_s0 + $0xb0] ss:$28 sps:$4 sm:$0xff]  }
  0x96   :  { %v389_v53 = vld [vmem:[#allocation3 + $0x640] sm:$0xff]  ;;  %v9140_v57 = vcombine.high %v261_v50, %v265_v51  ;;  %3027 = vmatprep.subr.bf16.mxu1 %v9276_v52  ;;  %v9139_v63 = vcombine.low %v261_v50, %v265_v51 }
  0x97   :  { %v393_v54 = vld [vmem:[#allocation3 + $0x660] sm:$0xff]  ;;  %3028 = vmatpush2.bf16.msra.mxu1 %v9275_v56 }
  0x98   :  { %v253_v58 = vld [vmem:[#allocation3 + $0x200] sm:$0xff]  ;;  %v9268_v60 = vcombine.high %v389_v53, %v393_v54  ;;  %2916 = vmatprep.subr.bf16.mxu0 %v9140_v57  ;;  %v9267_v0 = vcombine.low %v389_v53, %v393_v54 }
  0x99   :  { %v257_v59 = vld [vmem:[#allocation3 + $0x220] sm:$0xff]  ;;  %2917 = vmatpush2.bf16.msra.mxu0 %v9139_v63 }
  0x9a   :  { %v381_v61 = vld [vmem:[#allocation3 + $0x600] sm:$0xff]  ;;  %v9132_v1 = vcombine.high %v253_v58, %v257_v59  ;;  %3029 = vmatprep.subr.bf16.mxu1 %v9268_v60  ;;  %v9131_v7 = vcombine.low %v253_v58, %v257_v59 }
  0x9b   :  { %v385_v62 = vld [vmem:[#allocation3 + $0x620] sm:$0xff]  ;;  %3030 = vmatpush2.bf16.msra.mxu1 %v9267_v0 }
  0x9c   :  { %v9260_v2 = vcombine.high %v381_v61, %v385_v62  ;;  %v501_v3 = vld [vmem:[#allocation3 + $0x9c0] sm:$0xff]  ;;  %2918 = vmatprep.subr.bf16.mxu0 %v9132_v1  ;;  %v9259_v8 = vcombine.low %v381_v61, %v385_v62 }
  0x9d   :  { %v505_v4 = vld [vmem:[#allocation3 + $0x9e0] sm:$0xff]  ;;  %2919 = vmatpush2.bf16.msra.mxu0 %v9131_v7 }
  0x9e   :  { %v573_v5 = vld [vmem:[#allocation3 + $0xc00] sm:$0xff]  ;;  %v9380_v10 = vcombine.high %v501_v3, %v505_v4  ;;  %3031 = vmatprep.subr.bf16.mxu1 %v9260_v2  ;;  %v9379_v17 = vcombine.low %v501_v3, %v505_v4 }
  0x9f   :  { %v577_v6 = vld [vmem:[#allocation3 + $0xc20] sm:$0xff]  ;;  %3032 = vmatpush2.bf16.msra.mxu1 %v9259_v8 }
  0xa0   :  { %v9452_v11 = vcombine.high %v573_v5, %v577_v6  ;;  %v493_v12 = vld [vmem:[#allocation3 + $0x980] sm:$0xff]  ;;  %3114 = vmatprep.subr.bf16.mxu0 %v9380_v10  ;;  %v9451_v19 = vcombine.low %v573_v5, %v577_v6  ;;  %v10051_v6 = vld [vmem:[%s13666_s0 + $0x11c] ss:$28 sps:$4 sm:$0xff]  }
  0xa1   :  { %v497_v13 = vld [vmem:[#allocation3 + $0x9a0] sm:$0xff] }
  0xa2   :  { %v10025_v14 = vld [vmem:[%s13666_s0] ss:$28 sps:$4 sm:$0xff]   ;;  %v10026_v15 = vld [vmem:[%s13666_s0 + $0x8] ss:$28 sps:$4 sm:$0xff]   ;;  %v9372_v20 = vcombine.high %v493_v12, %v497_v13  ;;  %3241 = vmatprep.subr.bf16.mxu1 %v9452_v11  ;;  %v9371_v26 = vcombine.low %v493_v12, %v497_v13  ;;  %v10055_v13 = vld [vmem:[%s13666_s0 + $0x118] ss:$28 sps:$4 sm:$0xff]  }
  0xa3   :  { %v10029_v22 = vld [vmem:[%s13666_s0 + $0x44] ss:$28 sps:$4 sm:$0xff]   ;;  %2921 = vmatmul.mubr.bf16.vlgmr.msra.gmra.mxu0 %v10025_v14  ;;  %3034 = vmatmul.mubr.bf16.vlgmr.msra.gmra.mxu1 %v10026_v15  ;;  %v10039_v46 = vld [vmem:[%s13666_s0 + $0xac] ss:$28 sps:$4 sm:$0xff]  }
  0xa4   :  { %v485_v23 = vld [vmem:[#allocation3 + $0x940] sm:$0xff]  ;;  %3115 = vmatpush1.bf16.msra.mxu0 %v9379_v17  ;;  %3242 = vmatpush1.bf16.msra.mxu1 %v9451_v19  ;;  %v10057_v19 = vld [vmem:[%s13666_s0 + $0x154] ss:$28 sps:$4 sm:$0xff]  }
  0xa5   :  { %v489_v24 = vld [vmem:[#allocation3 + $0x960] sm:$0xff]  ;;  %3116 = vmatprep.subr.bf16.mxu0 %v9372_v20  ;;  %2930 = vmatprep.mubr.bf16.mxu0 %v10027_v21  ;;  %v10059_v21 = vld [vmem:[%s13666_s0 + $0x15c] ss:$28 sps:$4 sm:$0xff]  }
  0xa6   :  { %v9364_v27 = vcombine.high %v485_v23, %v489_v24  ;;  %v477_v28 = vld [vmem:[#allocation3 + $0x900] sm:$0xff]  ;;  %3043 = vmatprep.mubr.bf16.mxu1 %v10029_v22  ;;  %3453 = vmatprep.subr.bf16.mxu1 %v9254_v25  ;;  %v9363_v32 = vcombine.low %v485_v23, %v489_v24 }
  0xa7   :  { %v481_v29 = vld [vmem:[#allocation3 + $0x920] sm:$0xff] }
  0xa8   :  { %3117 = vmatpush1.bf16.msra.mxu0 %v9371_v26  ;;  %v10032_v31 = vld [vmem:[%s13666_s0 + $0x40] ss:$28 sps:$4 sm:$0xff]   ;;  %v9356_v33 = vcombine.high %v477_v28, %v481_v29  ;;  %v9355_v38 = vcombine.low %v477_v28, %v481_v29  ;;  %v10043_v54 = vld [vmem:[%s13666_s0 + $0xa8] ss:$28 sps:$4 sm:$0xff]   ;;  %v10061_v28 = vld [vmem:[%s13666_s0 + $0x150] ss:$28 sps:$4 sm:$0xff]  }
  0xa9   :  { %3118 = vmatprep.subr.bf16.mxu0 %v9364_v27  ;;  %v469_v36 = vld [vmem:[#allocation3 + $0x8c0] sm:$0xff] }
  0xaa   :  { %v473_v37 = vld [vmem:[#allocation3 + $0x8e0] sm:$0xff] }
  0xab   :  { %2931 = vmatmul.mubr.bf16.gmra.mxu0 %v10031_v30  ;;  %3044 = vmatmul.mubr.bf16.gmra.mxu1 %v10032_v31  ;;  %v9348_v39 = vcombine.high %v469_v36, %v473_v37  ;;  %v461_v40 = vld [vmem:[#allocation3 + $0x880] sm:$0xff]  ;;  %v9347_v44 = vcombine.low %v469_v36, %v473_v37  ;;  %v10062_v30 = vld [vmem:[%s13666_s0 + $0x158] ss:$28 sps:$4 sm:$0xff]  }
  0xac   :  { %3119 = vmatpush1.bf16.msra.mxu0 %v9363_v32  ;;  %2940 = vmatprep.mubr.bf16.mxu0 %v10033_v34  ;;  %v465_v41 = vld [vmem:[#allocation3 + $0x8a0] sm:$0xff] }
  0xad   :  { %3120 = vmatprep.subr.bf16.mxu0 %v9356_v33  ;;  %3053 = vmatprep.mubr.bf16.mxu1 %v10035_v35  ;;  %v9340_v45 = vcombine.high %v461_v40, %v465_v41  ;;  %v453_v48 = vld [vmem:[#allocation3 + $0x840] sm:$0xff]  ;;  %v9339_v50 = vcombine.low %v461_v40, %v465_v41  ;;  %v10065_v33 = vld [vmem:[%s13666_s0 + $0x194] ss:$28 sps:$4 sm:$0xff]  }
  0xae   :  { %v457_v49 = vld [vmem:[#allocation3 + $0x860] sm:$0xff] }
  0xaf   :  { %v9332_v51 = vcombine.high %v453_v48, %v457_v49  ;;  %v445_v52 = vld [vmem:[#allocation3 + $0x800] sm:$0xff]  ;;  %v9331_v56 = vcombine.low %v453_v48, %v457_v49  ;;  %v238_v49 = vld [vmem:[#allocation3 + $0x188] sm:$0xff] }
  0xb0   :  { %3121 = vmatpush1.bf16.msra.mxu0 %v9355_v38  ;;  %v449_v53 = vld [vmem:[#allocation3 + $0x820] sm:$0xff] }
  0xb1   :  { %3122 = vmatprep.subr.bf16.mxu0 %v9348_v39  ;;  %v10045_v57 = vld [vmem:[%s13666_s0 + $0xe4] ss:$28 sps:$4 sm:$0xff]   ;;  %v10047_v58 = vld [vmem:[%s13666_s0 + $0xec] ss:$28 sps:$4 sm:$0xff]   ;;  %v9324_v59 = vcombine.high %v445_v52, %v449_v53  ;;  %v9323_v62 = vcombine.low %v445_v52, %v449_v53 }
  0xb2   :  { %v565_v60 = vld [vmem:[#allocation3 + $0xbc0] sm:$0xff]  ;;  %v366_v53 = vld [vmem:[#allocation3 + $0x588] sm:$0xff] }
  0xb3   :  { %2941 = vmatmul.mubr.bf16.gmra.mxu0 %v10037_v42  ;;  %3054 = vmatmul.mubr.bf16.gmra.mxu1 %v10038_v43  ;;  %v569_v61 = vld [vmem:[#allocation3 + $0xbe0] sm:$0xff]  ;;  %v10068_v42 = vld [vmem:[%s13666_s0 + $0x190] ss:$28 sps:$4 sm:$0xff]  }
  0xb4   :  { %3123 = vmatpush1.bf16.msra.mxu0 %v9347_v44  ;;  %2950 = vmatprep.mubr.bf16.mxu0 %v10039_v46  ;;  %v9444_v63 = vcombine.high %v565_v60, %v569_v61  ;;  %v557_v0 = vld [vmem:[#allocation3 + $0xb80] sm:$0xff]  ;;  %v9443_v4 = vcombine.low %v565_v60, %v569_v61  ;;  %v10071_v43 = vld [vmem:[%s13666_s0 + $0x14] ss:$28 sps:$4 sm:$0xff]  }
  0xb5   :  { %3124 = vmatprep.subr.bf16.mxu0 %v9340_v45  ;;  %3063 = vmatprep.mubr.bf16.mxu1 %v10041_v47  ;;  %v561_v1 = vld [vmem:[#allocation3 + $0xba0] sm:$0xff]  ;;  %v246_v46 = vld [vmem:[#allocation3 + $0x1c8] sm:$0xff] }
  0xb6   :  { %v10049_v2 = vld [vmem:[%s13666_s0 + $0xe0] ss:$28 sps:$4 sm:$0xff]   ;;  %v10050_v3 = vld [vmem:[%s13666_s0 + $0xe8] ss:$28 sps:$4 sm:$0xff]   ;;  %v9436_v5 = vcombine.high %v557_v0, %v561_v1  ;;  %v9435_v11 = vcombine.low %v557_v0, %v561_v1 }
  0xb7   :  { %v10053_v7 = vld [vmem:[%s13666_s0 + $0x124] ss:$28 sps:$4 sm:$0xff]   ;;  %v10063_v31 = vld [vmem:[%s13666_s0 + $0x18c] ss:$28 sps:$4 sm:$0xff]  }
  0xb8   :  { %3125 = vmatpush1.bf16.msra.mxu0 %v9339_v50  ;;  %v549_v8 = vld [vmem:[#allocation3 + $0xb40] sm:$0xff]  ;;  %v250_v47 = vld [vmem:[#allocation3 + $0x1e8] sm:$0xff] }
  0xb9   :  { %3126 = vmatprep.subr.bf16.mxu0 %v9332_v51  ;;  %v553_v10 = vld [vmem:[#allocation3 + $0xb60] sm:$0xff]  ;;  %v242_v50 = vld [vmem:[#allocation3 + $0x1a8] sm:$0xff]  ;;  %v9126_v52 = vcombine.high %v246_v46, %v250_v47 }
  0xba   :  { %v541_v12 = vld [vmem:[#allocation3 + $0xb00] sm:$0xff]  ;;  %v9428_v14 = vcombine.high %v549_v8, %v553_v10  ;;  %v9427_v20 = vcombine.low %v549_v8, %v553_v10  ;;  %v10069_v51 = vld [vmem:[%s13666_s0 + $0x10] ss:$28 sps:$4 sm:$0xff]   ;;  %v9117_v1 = vcombine.low %v238_v49, %v242_v50 }
  0xbb   :  { %2951 = vmatmul.mubr.bf16.gmra.mxu0 %v10043_v54  ;;  %3064 = vmatmul.mubr.bf16.gmra.mxu1 %v10044_v55  ;;  %v545_v15 = vld [vmem:[#allocation3 + $0xb20] sm:$0xff]  ;;  %v370_v54 = vld [vmem:[#allocation3 + $0x5a8] sm:$0xff]  ;;  %v10072_v55 = vld [vmem:[%s13666_s0 + $0x18] ss:$28 sps:$4 sm:$0xff]  }
  0xbc   :  { %3127 = vmatpush1.bf16.msra.mxu0 %v9331_v56  ;;  %2960 = vmatprep.mubr.bf16.mxu0 %v10045_v57  ;;  %v10056_v17 = vld [vmem:[%s13666_s0 + $0x120] ss:$28 sps:$4 sm:$0xff]   ;;  %v9420_v22 = vcombine.high %v541_v12, %v545_v15  ;;  %v9419_v25 = vcombine.low %v541_v12, %v545_v15  ;;  %v10067_v40 = vld [vmem:[%s13666_s0 + $0x188] ss:$28 sps:$4 sm:$0xff]   ;;  %v9125_v56 = vcombine.low %v246_v46, %v250_v47 }
  0xbd   :  { %3128 = vmatprep.subr.bf16.mxu0 %v9324_v59  ;;  %3073 = vmatprep.mubr.bf16.mxu1 %v10047_v58  ;;  %v533_v23 = vld [vmem:[#allocation3 + $0xac0] sm:$0xff]  ;;  %v9253_v58 = vcombine.low %v11110_v16, %v11112_v18  ;;  %v9118_v59 = vcombine.high %v238_v49, %v242_v50  ;;  %v230_v60 = vld [vmem:[#allocation3 + $0x148] sm:$0xff] }
  0xbe   :  { %v537_v24 = vld [vmem:[#allocation3 + $0xae0] sm:$0xff]  ;;  %v234_v61 = vld [vmem:[#allocation3 + $0x168] sm:$0xff] }
  0xbf   :  { %v525_v26 = vld [vmem:[#allocation3 + $0xa80] sm:$0xff]  ;;  %v9412_v29 = vcombine.high %v533_v23, %v537_v24  ;;  %v9411_v32 = vcombine.low %v533_v23, %v537_v24  ;;  %v362_v0 = vld [vmem:[#allocation3 + $0x568] sm:$0xff]  ;;  %v9109_v10 = vcombine.low %v230_v60, %v234_v61 }
  0xc0   :  { %3129 = vmatpush1.bf16.msra.mxu0 %v9323_v62  ;;  %v529_v27 = vld [vmem:[#allocation3 + $0xaa0] sm:$0xff]  ;;  %v358_v62 = vld [vmem:[#allocation3 + $0x548] sm:$0xff] }
  0xc1   :  { %3130 = vmatprep.subr.bf16.mxu0 %v9444_v63  ;;  %v9404_v34 = vcombine.high %v525_v26, %v529_v27  ;;  %v517_v35 = vld [vmem:[#allocation3 + $0xa40] sm:$0xff]  ;;  %v9403_v37 = vcombine.low %v525_v26, %v529_v27  ;;  %v9246_v63 = vcombine.high %v366_v53, %v370_v54  ;;  %v222_v16 = vld [vmem:[#allocation3 + $0x108] sm:$0xff]  ;;  %v9237_v12 = vcombine.low %v358_v62, %v362_v0 }
  0xc2   :  { %v521_v36 = vld [vmem:[#allocation3 + $0xa60] sm:$0xff]  ;;  %v226_v18 = vld [vmem:[#allocation3 + $0x128] sm:$0xff] }
  0xc3   :  { %2961 = vmatmul.mubr.bf16.gmra.mxu0 %v10049_v2  ;;  %3074 = vmatmul.mubr.bf16.gmra.mxu1 %v10050_v3  ;;  %v509_v38 = vld [vmem:[#allocation3 + $0xa00] sm:$0xff]  ;;  %v9396_v41 = vcombine.high %v517_v35, %v521_v36  ;;  %v9395_v44 = vcombine.low %v517_v35, %v521_v36  ;;  %v9245_v2 = vcombine.low %v366_v53, %v370_v54  ;;  %v354_v8 = vld [vmem:[#allocation3 + $0x528] sm:$0xff] }
  0xc4   :  { %3131 = vmatpush2.bf16.msra.mxu0 %v9443_v4  ;;  %2970 = vmatprep.mubr.bf16.mxu0 %v10051_v6  ;;  %v513_v39 = vld [vmem:[#allocation3 + $0xa20] sm:$0xff]  ;;  %v9110_v4 = vcombine.high %v230_v60, %v234_v61  ;;  %v10076_v6 = vld [vmem:[%s13666_s0 + $0x50] ss:$28 sps:$4 sm:$0xff]  }
  0xc5   :  { %3132 = vmatprep.subr.bf16.mxu0 %v9436_v5  ;;  %3083 = vmatprep.mubr.bf16.mxu1 %v10053_v7  ;;  %v9388_v45 = vcombine.high %v509_v38, %v513_v39  ;;  %v9387_v48 = vcombine.low %v509_v38, %v513_v39  ;;  %v10073_v57 = vld [vmem:[%s13666_s0 + $0x4c] ss:$28 sps:$4 sm:$0xff]   ;;  %v9238_v7 = vcombine.high %v358_v62, %v362_v0  ;;  %v10079_v23 = vld [vmem:[%s13666_s0 + $0x80] ss:$28 sps:$4 sm:$0xff]  }
  0xc6   :  { %v10075_v3 = vld [vmem:[%s13666_s0 + $0x48] ss:$28 sps:$4 sm:$0xff]   ;;  %v10084_v47 = vld [vmem:[%s13666_s0 + $0xc0] ss:$28 sps:$4 sm:$0xff]   ;;  %v10087_v61 = vld [vmem:[%s13666_s0 + $0xf0] ss:$28 sps:$4 sm:$0xff]  }
  0xc7   :  { %v350_v5 = vld [vmem:[#allocation3 + $0x508] sm:$0xff] }
  0xc8   :  { %3133 = vmatpush2.bf16.msra.mxu0 %v9435_v11  ;;  %v10077_v11 = vld [vmem:[%s13666_s0 + $0x84] ss:$28 sps:$4 sm:$0xff]   ;;  %v218_v15 = vld [vmem:[#allocation3 + $0xe8] sm:$0xff] }
  0xc9   :  { %3134 = vmatprep.subr.bf16.mxu0 %v9428_v14  ;;  %v214_v14 = vld [vmem:[#allocation3 + $0xc8] sm:$0xff] }
  0xca   :  { %v9094_v24 = vcombine.high %v214_v14, %v218_v15  ;;  %v210_v26 = vld [vmem:[#allocation3 + $0xa8] sm:$0xff] }
  0xcb   :  { %2971 = vmatmul.mubr.bf16.gmra.mxu0 %v10055_v13  ;;  %3084 = vmatmul.mubr.bf16.gmra.mxu1 %v10056_v17  ;;  %v9102_v13 = vcombine.high %v222_v16, %v226_v18  ;;  %v342_v17 = vld [vmem:[#allocation3 + $0x4c8] sm:$0xff] }
  0xcc   :  { %3135 = vmatpush2.bf16.msra.mxu0 %v9427_v20  ;;  %2980 = vmatprep.mubr.bf16.mxu0 %v10057_v19  ;;  %v9230_v19 = vcombine.high %v350_v5, %v354_v8  ;;  %v346_v20 = vld [vmem:[#allocation3 + $0x4e8] sm:$0xff] }
  0xcd   :  { %3136 = vmatprep.subr.bf16.mxu0 %v9420_v22  ;;  %3093 = vmatprep.mubr.bf16.mxu1 %v10059_v21  ;;  %v9101_v21 = vcombine.low %v222_v16, %v226_v18  ;;  %v9229_v22 = vcombine.low %v350_v5, %v354_v8  ;;  %v334_v27 = vld [vmem:[#allocation3 + $0x488] sm:$0xff] }
  0xce   :  { %v198_v35 = vld [vmem:[#allocation3 + $0x48] sm:$0xff] }
  0xcf   :  { %v202_v36 = vld [vmem:[#allocation3 + $0x68] sm:$0xff] }
  0xd0   :  { %3137 = vmatpush2.bf16.msra.mxu0 %v9419_v25  ;;  %v206_v25 = vld [vmem:[#allocation3 + $0x88] sm:$0xff]  ;;  %v9077_v50 = vcombine.low %v198_v35, %v202_v36 }
  0xd1   :  { %3138 = vmatprep.subr.bf16.mxu0 %v9412_v29  ;;  %v9222_v29 = vcombine.high %v342_v17, %v346_v20  ;;  %v330_v39 = vld [vmem:[#allocation3 + $0x468] sm:$0xff] }
  0xd2   :  { %v318_v46 = vld [vmem:[#allocation3 + $0x408] sm:$0xff] }
  0xd3   :  { %2981 = vmatmul.mubr.bf16.gmra.mxu0 %v10061_v28  ;;  %3094 = vmatmul.mubr.bf16.gmra.mxu1 %v10062_v30  ;;  %v10080_v28 = vld [vmem:[%s13666_s0 + $0x88] ss:$28 sps:$4 sm:$0xff]  }
  0xd4   :  { %3139 = vmatpush2.bf16.msra.mxu0 %v9411_v32  ;;  %2990 = vmatprep.mubr.bf16.mxu0 %v10063_v31  ;;  %v338_v30 = vld [vmem:[#allocation3 + $0x4a8] sm:$0xff]  ;;  %v9093_v31 = vcombine.low %v214_v14, %v218_v15  ;;  %v10081_v32 = vld [vmem:[%s13666_s0 + $0xbc] ss:$28 sps:$4 sm:$0xff]  }
  0xd5   :  { %3140 = vmatprep.subr.bf16.mxu0 %v9404_v34  ;;  %3103 = vmatprep.mubr.bf16.mxu1 %v10065_v33  ;;  %v9221_v33 = vcombine.low %v342_v17, %v346_v20  ;;  %v9086_v34 = vcombine.high %v206_v25, %v210_v26  ;;  %v9214_v38 = vcombine.high %v334_v27, %v338_v30  ;;  %v322_v49 = vld [vmem:[#allocation3 + $0x428] sm:$0xff] }
  0xd6   :  { %v310_v54 = vld [vmem:[#allocation3 + $0x3c8] sm:$0xff]  ;;  %v9197_v60 = vcombine.low %v318_v46, %v322_v49 }
  0xd7   :  { %v306_v0 = vld [vmem:[#allocation3 + $0x3a8] sm:$0xff] }
  0xd8   :  { %3141 = vmatpush2.bf16.msra.mxu0 %v9403_v37  ;;  %v326_v37 = vld [vmem:[#allocation3 + $0x448] sm:$0xff] }
  0xd9   :  { %3142 = vmatprep.subr.bf16.mxu0 %v9396_v41  ;;  %v9213_v41 = vcombine.low %v334_v27, %v338_v30  ;;  %v10089_v18 = vld [vmem:[%s13666_s0 + $0x12c] ss:$28 sps:$4 sm:$0xff]  }
  0xda   :  { %v298_v8 = vld [vmem:[#allocation3 + $0x368] sm:$0xff] }
  0xdb   :  { %2991 = vmatmul.mubr.bf16.gmra.mxu0 %v10067_v40  ;;  %3104 = vmatmul.mubr.bf16.gmra.mxu1 %v10068_v42  ;;  %v9085_v40 = vcombine.low %v206_v25, %v210_v26  ;;  %v10083_v42 = vld [vmem:[%s13666_s0 + $0xb8] ss:$28 sps:$4 sm:$0xff]   ;;  %v10091_v15 = vld [vmem:[%s13666_s0 + $0x128] ss:$28 sps:$4 sm:$0xff]  }
  0xdc   :  { %3143 = vmatpush2.bf16.msra.mxu0 %v9395_v44  ;;  %3146 = vmatprep.mubr.bf16.mxu0 %v10071_v43  ;;  %v9078_v43 = vcombine.high %v198_v35, %v202_v36  ;;  %v190_v44 = vld [vmem:[#allocation3 + $0x8] sm:$0xff]  ;;  %v10093_v26 = vld [vmem:[%s13666_s0 + $0x164] ss:$28 sps:$4 sm:$0xff]  }
  0xdd   :  { %3144 = vmatprep.subr.bf16.mxu0 %v9388_v45  ;;  %3259 = vmatprep.mubr.bf16.mxu1 %v13678_v9  ;;  %v194_v45 = vld [vmem:[#allocation3 + $0x28] sm:$0xff]  ;;  %v10095_v36 = vld [vmem:[%s13666_s0 + $0x160] ss:$28 sps:$4 sm:$0xff]  }
  0xde   :  { %v9070_v53 = vcombine.high %v190_v44, %v194_v45  ;;  %v290_v20 = vld [vmem:[#allocation3 + $0x328] sm:$0xff] }
  0xdf   :  { %v282_v30 = vld [vmem:[#allocation3 + $0x2e8] sm:$0xff] }
  0xe0   :  { %3145 = vmatpush2.bf16.msra.mxu0 %v9387_v48  ;;  %v9206_v48 = vcombine.high %v326_v37, %v330_v39 }
  0xe1   :  { %3340 = vmatprep.subr.bf16.mxu0 %v9126_v52  ;;  %v9205_v52 = vcombine.low %v326_v37, %v330_v39  ;;  %v274_v39 = vld [vmem:[#allocation3 + $0x2a8] sm:$0xff] }
  0xe3   :  { %3147 = vmatmul.mubr.bf16.vlgmr.msra.gmra.mxu0 %v10069_v51  ;;  %9459 = vmatmul.mubr.msk.bf16.vlgmr.msra.gmra.mxu1 %vm2863_vm0, %v10072_v55  ;;  %v10085_v51 = vld [vmem:[%s13666_s0 + $0xf4] ss:$28 sps:$4 sm:$0xff]  }
  0xe4   :  { %3341 = vmatpush1.bf16.msra.mxu0 %v9125_v56  ;;  %3454 = vmatpush1.bf16.msra.mxu1 %v9253_v58  ;;  %v314_v55 = vld [vmem:[#allocation3 + $0x3e8] sm:$0xff] }
  0xe5   :  { %3342 = vmatprep.subr.bf16.mxu0 %v9118_v59  ;;  %3455 = vmatprep.subr.bf16.mxu1 %v9246_v63  ;;  %v438_v56 = vld [vmem:[#allocation3 + $0x7c8] sm:$0xff]  ;;  %v9069_v59 = vcombine.low %v190_v44, %v194_v45  ;;  %v9190_v62 = vcombine.high %v310_v54, %v314_v55  ;;  %v9189_v16 = vcombine.low %v310_v54, %v314_v55  ;;  %v10097_v45 = vld [vmem:[%s13666_s0 + $0x19c] ss:$28 sps:$4 sm:$0xff]  }
  0xe6   :  { %3156 = vmatprep.mubr.bf16.mxu0 %v10073_v57  ;;  %3269 = vmatprep.mubr.bf16.mxu1 %v13678_v9  ;;  %v9198_v57 = vcombine.high %v318_v46, %v322_v49  ;;  %v442_v58 = vld [vmem:[#allocation3 + $0x7e8] sm:$0xff]  ;;  %v10099_v55 = vld [vmem:[%s13666_s0 + $0x198] ss:$28 sps:$4 sm:$0xff]  }
  0xe7   :  { %v302_v63 = vld [vmem:[#allocation3 + $0x388] sm:$0xff]  ;;  %v9317_v5 = vcombine.low %v438_v56, %v442_v58 }
  0xe8   :  { %3343 = vmatpush1.bf16.msra.mxu0 %v9117_v1  ;;  %3456 = vmatpush1.bf16.msra.mxu1 %v9245_v2  ;;  %v430_v1 = vld [vmem:[#allocation3 + $0x788] sm:$0xff]  ;;  %v10088_v2 = vld [vmem:[%s13666_s0 + $0xf8] ss:$28 sps:$4 sm:$0xff]  }
  0xe9   :  { %3344 = vmatprep.subr.bf16.mxu0 %v9110_v4  ;;  %3457 = vmatprep.subr.bf16.mxu1 %v9238_v7  ;;  %v434_v4 = vld [vmem:[#allocation3 + $0x7a8] sm:$0xff] }
  0xea   :  { %v294_v7 = vld [vmem:[#allocation3 + $0x348] sm:$0xff]  ;;  %v9309_v14 = vcombine.low %v430_v1, %v434_v4 }
  0xeb   :  { %3157 = vmatmul.mubr.bf16.gmra.mxu0 %v10075_v3  ;;  %9460 = vmatmul.mubr.msk.bf16.gmra.mxu1 %vm2863_vm0, %v10076_v6  ;;  %v9318_v3 = vcombine.high %v438_v56, %v442_v58  ;;  %v9182_v6 = vcombine.high %v302_v63, %v306_v0  ;;  %v9174_v17 = vcombine.high %v294_v7, %v298_v8  ;;  %v266_v49 = vld [vmem:[#allocation3 + $0x268] sm:$0xff] }
  0xec   :  { %3345 = vmatpush1.bf16.msra.mxu0 %v9109_v10  ;;  %3458 = vmatpush1.bf16.msra.mxu1 %v9237_v12  ;;  %v422_v10 = vld [vmem:[#allocation3 + $0x748] sm:$0xff]  ;;  %v9173_v25 = vcombine.low %v294_v7, %v298_v8 }
  0xed   :  { %3346 = vmatprep.subr.bf16.mxu0 %v9102_v13  ;;  %3459 = vmatprep.subr.bf16.mxu1 %v9230_v19  ;;  %v426_v12 = vld [vmem:[#allocation3 + $0x768] sm:$0xff]  ;;  %v9181_v13 = vcombine.low %v302_v63, %v306_v0 }
  0xee   :  { %3166 = vmatprep.mubr.bf16.mxu0 %v10077_v11  ;;  %3279 = vmatprep.mubr.bf16.mxu1 %v13678_v9  ;;  %v9310_v11 = vcombine.high %v430_v1, %v434_v4  ;;  %v286_v19 = vld [vmem:[#allocation3 + $0x308] sm:$0xff]  ;;  %v9301_v27 = vcombine.low %v422_v10, %v426_v12 }
  0xef   :  { %v258_v58 = vld [vmem:[#allocation3 + $0x228] sm:$0xff] }
  0xf0   :  { %3347 = vmatpush1.bf16.msra.mxu0 %v9101_v21  ;;  %3460 = vmatpush1.bf16.msra.mxu1 %v9229_v22  ;;  %v414_v21 = vld [vmem:[#allocation3 + $0x708] sm:$0xff] }
  0xf1   :  { %3348 = vmatprep.subr.bf16.mxu0 %v9094_v24  ;;  %3461 = vmatprep.subr.bf16.mxu1 %v9222_v29  ;;  %v10092_v22 = vld [vmem:[%s13666_s0 + $0x130] ss:$28 sps:$4 sm:$0xff]  }
  0xf2   :  { %v418_v24 = vld [vmem:[#allocation3 + $0x728] sm:$0xff] }
  0xf3   :  { %3167 = vmatmul.mubr.bf16.gmra.mxu0 %v10079_v23  ;;  %9461 = vmatmul.mubr.msk.bf16.gmra.mxu1 %vm2863_vm0, %v10080_v28  ;;  %v9302_v23 = vcombine.high %v422_v10, %v426_v12  ;;  %v9166_v28 = vcombine.high %v286_v19, %v290_v20  ;;  %v278_v29 = vld [vmem:[#allocation3 + $0x2c8] sm:$0xff]  ;;  %v9293_v35 = vcombine.low %v414_v21, %v418_v24 }
  0xf4   :  { %3349 = vmatpush1.bf16.msra.mxu0 %v9093_v31  ;;  %3462 = vmatpush1.bf16.msra.mxu1 %v9221_v33  ;;  %v406_v31 = vld [vmem:[#allocation3 + $0x6c8] sm:$0xff]  ;;  %v9158_v37 = vcombine.high %v278_v29, %v282_v30  ;;  %v9157_v44 = vcombine.low %v278_v29, %v282_v30  ;;  %v10665_v30 = vld [vmem:[%s13666_s0 + $0x3c] ss:$28 sps:$4 sm:$0xff]  }
  0xf5   :  { %3350 = vmatprep.subr.bf16.mxu0 %v9086_v34  ;;  %3463 = vmatprep.subr.bf16.mxu1 %v9214_v38  ;;  %v410_v33 = vld [vmem:[#allocation3 + $0x6e8] sm:$0xff]  ;;  %v9165_v34 = vcombine.low %v286_v19, %v290_v20 }
  0xf6   :  { %3176 = vmatprep.mubr.bf16.mxu0 %v10081_v32  ;;  %3289 = vmatprep.mubr.bf16.mxu1 %v13678_v9  ;;  %v9294_v32 = vcombine.high %v414_v21, %v418_v24  ;;  %v270_v38 = vld [vmem:[#allocation3 + $0x288] sm:$0xff]  ;;  %v9285_v46 = vcombine.low %v406_v31, %v410_v33 }
  0xf7   :  { %v574_v4 = vld [vmem:[#allocation3 + $0xc08] sm:$0xff] }
  0xf8   :  { %3351 = vmatpush1.bf16.msra.mxu0 %v9085_v40  ;;  %3464 = vmatpush1.bf16.msra.mxu1 %v9213_v41  ;;  %v398_v40 = vld [vmem:[#allocation3 + $0x688] sm:$0xff] }
  0xf9   :  { %3352 = vmatprep.subr.bf16.mxu0 %v9078_v43  ;;  %3465 = vmatprep.subr.bf16.mxu1 %v9206_v48  ;;  %v10096_v41 = vld [vmem:[%s13666_s0 + $0x168] ss:$28 sps:$4 sm:$0xff]  }
  0xfa   :  { %v402_v43 = vld [vmem:[#allocation3 + $0x6a8] sm:$0xff] }
  0xfb   :  { %3177 = vmatmul.mubr.bf16.gmra.mxu0 %v10083_v42  ;;  %9462 = vmatmul.mubr.msk.bf16.gmra.mxu1 %vm2863_vm0, %v10084_v47  ;;  %v9286_v42 = vcombine.high %v406_v31, %v410_v33  ;;  %v9150_v47 = vcombine.high %v270_v38, %v274_v39  ;;  %v262_v48 = vld [vmem:[#allocation3 + $0x248] sm:$0xff]  ;;  %v9277_v54 = vcombine.low %v398_v40, %v402_v43  ;;  %v10666_v31 = vld [vmem:[%s13666_s0 + $0x44] ss:$28 sps:$4 sm:$0xff]  }
  0xfc   :  { %3353 = vmatpush1.bf16.msra.mxu0 %v9077_v50  ;;  %3466 = vmatpush1.bf16.msra.mxu1 %v9205_v52  ;;  %v390_v50 = vld [vmem:[#allocation3 + $0x648] sm:$0xff]  ;;  %v9142_v56 = vcombine.high %v262_v48, %v266_v49  ;;  %v9141_v63 = vcombine.low %v262_v48, %v266_v49  ;;  %v10672_v49 = vld [vmem:[%s13666_s0 + $0x78] ss:$28 sps:$4 sm:$0xff]  }
  0xfd   :  { %3354 = vmatprep.subr.bf16.mxu0 %v9070_v53  ;;  %3467 = vmatprep.subr.bf16.mxu1 %v9198_v57  ;;  %v394_v52 = vld [vmem:[#allocation3 + $0x668] sm:$0xff]  ;;  %v9149_v53 = vcombine.low %v270_v38, %v274_v39 }
  0xfe   :  { %3186 = vmatprep.mubr.bf16.mxu0 %v10085_v51  ;;  %3299 = vmatprep.mubr.bf16.mxu1 %v13678_v9  ;;  %v9278_v51 = vcombine.high %v398_v40, %v402_v43  ;;  %v254_v57 = vld [vmem:[#allocation3 + $0x208] sm:$0xff]  ;;  %v9269_v0 = vcombine.low %v390_v50, %v394_v52  ;;  %v10670_v43 = vld [vmem:[%s13666_s0 + $0x7c] ss:$28 sps:$4 sm:$0xff]  }
  0xff   :  { %v9134_v1 = vcombine.high %v254_v57, %v258_v58  ;;  %v494_v8 = vld [vmem:[#allocation3 + $0x988] sm:$0xff] }
 0x100   :  { %3355 = vmatpush1.bf16.msra.mxu0 %v9069_v59  ;;  %3468 = vmatpush1.bf16.msra.mxu1 %v9197_v60  ;;  %v382_v59 = vld [vmem:[#allocation3 + $0x608] sm:$0xff]  ;;  %v10100_v60 = vld [vmem:[%s13666_s0 + $0x1a0] ss:$28 sps:$4 sm:$0xff]  }
 0x101   :  { %3356 = vmatprep.subr.bf16.mxu0 %v9190_v62  ;;  %3469 = vmatprep.subr.bf16.mxu1 %v9318_v3  ;;  %v386_v62 = vld [vmem:[#allocation3 + $0x628] sm:$0xff] }
 0x102   :  { %v506_v3 = vld [vmem:[#allocation3 + $0x9e8] sm:$0xff] }
 0x103   :  { %3187 = vmatmul.mubr.bf16.gmra.mxu0 %v10087_v61  ;;  %9463 = vmatmul.mubr.msk.bf16.gmra.mxu1 %vm2863_vm0, %v10088_v2  ;;  %v9270_v61 = vcombine.high %v390_v50, %v394_v52  ;;  %v502_v2 = vld [vmem:[#allocation3 + $0x9c8] sm:$0xff] }
 0x104   :  { %3357 = vmatpush2.bf16.msra.mxu0 %v9189_v16  ;;  %3470 = vmatpush2.bf16.msra.mxu1 %v9317_v5  ;;  %v9262_v16 = vcombine.high %v382_v59, %v386_v62  ;;  %v9133_v5 = vcombine.low %v254_v57, %v258_v58  ;;  %v9382_v7 = vcombine.high %v502_v2, %v506_v3  ;;  %v498_v10 = vld [vmem:[#allocation3 + $0x9a8] sm:$0xff] }
 0x105   :  { %3358 = vmatprep.subr.bf16.mxu0 %v9182_v6  ;;  %3471 = vmatprep.subr.bf16.mxu1 %v9310_v11  ;;  %v9261_v6 = vcombine.low %v382_v59, %v386_v62  ;;  %v10661_v11 = vld [vmem:[%s13666_s0 + $0x4] ss:$28 sps:$4 sm:$0xff]   ;;  %v9374_v20 = vcombine.high %v494_v8, %v498_v10  ;;  %v486_v21 = vld [vmem:[#allocation3 + $0x948] sm:$0xff] }
 0x106   :  { %3196 = vmatprep.mubr.bf16.mxu0 %v10089_v18  ;;  %3309 = vmatprep.mubr.bf16.mxu1 %v13678_v9  ;;  %v578_v18 = vld [vmem:[#allocation3 + $0xc28] sm:$0xff] }
 0x107   :  { %v9454_v12 = vcombine.high %v574_v4, %v578_v18  ;;  %v9453_v19 = vcombine.low %v574_v4, %v578_v18  ;;  %v482_v29 = vld [vmem:[#allocation3 + $0x928] sm:$0xff] }
 0x108   :  { %3359 = vmatpush2.bf16.msra.mxu0 %v9181_v13  ;;  %3472 = vmatpush2.bf16.msra.mxu1 %v9309_v14  ;;  %v11293_v13 = vld [vmem:[#allocation3 + $0x5d0] sm:$0xff]  ;;  %v566_v58 = vld [vmem:[#allocation3 + $0xbc8] sm:$0xff] }
 0x109   :  { %3360 = vmatprep.subr.bf16.mxu0 %v9174_v17  ;;  %3473 = vmatprep.subr.bf16.mxu1 %v9302_v23  ;;  %v11295_v14 = vld [vmem:[#allocation3 + $0x5f0] sm:$0xff]  ;;  %v9381_v17 = vcombine.low %v502_v2, %v506_v3  ;;  %v10663_v23 = vld [vmem:[%s13666_s0] ss:$28 sps:$4 sm:$0xff]   ;;  %v570_v59 = vld [vmem:[#allocation3 + $0xbe8] sm:$0xff] }
 0x10a   :  { %v9256_v24 = vcombine.high %v11293_v13, %v11295_v14  ;;  %v10669_v39 = vld [vmem:[%s13666_s0 + $0x74] ss:$28 sps:$4 sm:$0xff]   ;;  %v10678_v3 = vld [vmem:[%s13666_s0 + $0xec] ss:$28 sps:$4 sm:$0xff]   ;;  %v9445_v4 = vcombine.low %v566_v58, %v570_v59 }
 0x10b   :  { %3197 = vmatmul.mubr.bf16.gmra.mxu0 %v10091_v15  ;;  %9464 = vmatmul.mubr.msk.bf16.gmra.mxu1 %vm2863_vm0, %v10092_v22  ;;  %v10662_v15 = vld [vmem:[%s13666_s0 + $0xc] ss:$28 sps:$4 sm:$0xff]  }
 0x10c   :  { %3361 = vmatpush2.bf16.msra.mxu0 %v9173_v25  ;;  %3474 = vmatpush2.bf16.msra.mxu1 %v9301_v27  ;;  %v490_v22 = vld [vmem:[#allocation3 + $0x968] sm:$0xff] }
 0x10d   :  { %3362 = vmatprep.subr.bf16.mxu0 %v9166_v28  ;;  %3475 = vmatprep.subr.bf16.mxu1 %v9294_v32  ;;  %v10664_v25 = vld [vmem:[%s13666_s0 + $0x8] ss:$28 sps:$4 sm:$0xff]   ;;  %v9366_v27 = vcombine.high %v486_v21, %v490_v22  ;;  %v9365_v32 = vcombine.low %v486_v21, %v490_v22  ;;  %v10671_v48 = vld [vmem:[%s13666_s0 + $0x70] ss:$28 sps:$4 sm:$0xff]  }
 0x10e   :  { %3206 = vmatprep.mubr.bf16.mxu0 %v10093_v26  ;;  %3319 = vmatprep.mubr.bf16.mxu1 %v13678_v9  ;;  %v9373_v26 = vcombine.low %v494_v8, %v498_v10  ;;  %v478_v28 = vld [vmem:[#allocation3 + $0x908] sm:$0xff]  ;;  %v10681_v10 = vld [vmem:[%s13666_s0 + $0x11c] ss:$28 sps:$4 sm:$0xff]  }
 0x10f   :  { %v9358_v33 = vcombine.high %v478_v28, %v482_v29  ;;  %v9357_v38 = vcombine.low %v478_v28, %v482_v29  ;;  %v562_v2 = vld [vmem:[#allocation3 + $0xba8] sm:$0xff] }
 0x110   :  { %3363 = vmatpush2.bf16.msra.mxu0 %v9165_v34  ;;  %3476 = vmatpush2.bf16.msra.mxu1 %v9293_v35  ;;  %v470_v34 = vld [vmem:[#allocation3 + $0x8c8] sm:$0xff] }
 0x111   :  { %3364 = vmatprep.subr.bf16.mxu0 %v9158_v37  ;;  %3477 = vmatprep.subr.bf16.mxu1 %v9286_v42  ;;  %v474_v35 = vld [vmem:[#allocation3 + $0x8e8] sm:$0xff]  ;;  %v10668_v37 = vld [vmem:[%s13666_s0 + $0x40] ss:$28 sps:$4 sm:$0xff]  }
 0x112   :  { %v9350_v40 = vcombine.high %v470_v34, %v474_v35  ;;  %v466_v42 = vld [vmem:[#allocation3 + $0x8a8] sm:$0xff] }
 0x113   :  { %3207 = vmatmul.mubr.bf16.gmra.mxu0 %v10095_v36  ;;  %9465 = vmatmul.mubr.msk.bf16.gmra.mxu1 %vm2863_vm0, %v10096_v41  ;;  %v10667_v36 = vld [vmem:[%s13666_s0 + $0x38] ss:$28 sps:$4 sm:$0xff]   ;;  %v462_v41 = vld [vmem:[#allocation3 + $0x888] sm:$0xff] }
 0x114   :  { %3365 = vmatpush2.bf16.msra.mxu0 %v9157_v44  ;;  %3478 = vmatpush2.bf16.msra.mxu1 %v9285_v46  ;;  %v9349_v44 = vcombine.low %v470_v34, %v474_v35  ;;  %v454_v46 = vld [vmem:[#allocation3 + $0x848] sm:$0xff]  ;;  %v9341_v50 = vcombine.low %v462_v41, %v466_v42  ;;  %v583_v35 = vlaneseq }
 0x115   :  { %3366 = vmatprep.subr.bf16.mxu0 %v9150_v47  ;;  %3479 = vmatprep.subr.bf16.mxu1 %v9278_v51  ;;  %v458_v47 = vld [vmem:[#allocation3 + $0x868] sm:$0xff] }
 0x116   :  { %3216 = vmatprep.mubr.bf16.mxu0 %v10097_v45  ;;  %3329 = vmatprep.mubr.bf16.mxu1 %v13678_v9  ;;  %v9342_v45 = vcombine.high %v462_v41, %v466_v42  ;;  %v10673_v51 = vld [vmem:[%s13666_s0 + $0xac] ss:$28 sps:$4 sm:$0xff]   ;;  %v9334_v52 = vcombine.high %v454_v46, %v458_v47 }
 0x117   :  { %v550_v18 = vld [vmem:[#allocation3 + $0xb48] sm:$0xff] }
 0x118   :  { %3367 = vmatpush2.bf16.msra.mxu0 %v9149_v53  ;;  %3480 = vmatpush2.bf16.msra.mxu1 %v9277_v54  ;;  %v446_v53 = vld [vmem:[#allocation3 + $0x808] sm:$0xff] }
 0x119   :  { %3368 = vmatprep.subr.bf16.mxu0 %v9142_v56  ;;  %3481 = vmatprep.subr.bf16.mxu1 %v9270_v61  ;;  %v450_v54 = vld [vmem:[#allocation3 + $0x828] sm:$0xff]  ;;  %v9333_v56 = vcombine.low %v454_v46, %v458_v47 }
 0x11a   :  { %v9326_v57 = vcombine.high %v446_v53, %v450_v54  ;;  %v10676_v61 = vld [vmem:[%s13666_s0 + $0xb0] ss:$28 sps:$4 sm:$0xff]   ;;  %v9325_v62 = vcombine.low %v446_v53, %v450_v54 }
 0x11b   :  { %3217 = vmatmul.mubr.bf16.gmra.mxu0 %v10099_v55  ;;  %9466 = vmatmul.mubr.msk.bf16.gmra.mxu1 %vm2863_vm0, %v10100_v60  ;;  %v10674_v55 = vld [vmem:[%s13666_s0 + $0xb4] ss:$28 sps:$4 sm:$0xff]   ;;  %v10675_v60 = vld [vmem:[%s13666_s0 + $0xa8] ss:$28 sps:$4 sm:$0xff]  }
 0x11c   :  { %3369 = vmatpush2.bf16.msra.mxu0 %v9141_v63  ;;  %3482 = vmatpush2.bf16.msra.mxu1 %v9269_v0  ;;  %v10677_v63 = vld [vmem:[%s13666_s0 + $0xe4] ss:$28 sps:$4 sm:$0xff]   ;;  %v9446_v0 = vcombine.high %v566_v58, %v570_v59  ;;  %v534_v21 = vld [vmem:[#allocation3 + $0xac8] sm:$0xff]  ;;  %v239_v54 = vld [vmem:[#allocation3 + $0x190] sm:$0xff] }
 0x11d   :  { %3370 = vmatprep.subr.bf16.mxu0 %v9134_v1  ;;  %3483 = vmatprep.subr.bf16.mxu1 %v9262_v16  ;;  %v558_v1 = vld [vmem:[#allocation3 + $0xb88] sm:$0xff]  ;;  %v243_v58 = vld [vmem:[#allocation3 + $0x1b0] sm:$0xff] }
 0x11e   :  { %3372 = vmatprep.mubr.bf16.mxu0 %v10661_v11  ;;  %3485 = vmatprep.mubr.bf16.mxu1 %v10662_v15  ;;  %v9438_v16 = vcombine.high %v558_v1, %v562_v2  ;;  %v9437_v8 = vcombine.low %v558_v1, %v562_v2  ;;  %v546_v15 = vld [vmem:[#allocation3 + $0xb28] sm:$0xff]  ;;  %v367_v59 = vld [vmem:[#allocation3 + $0x590] sm:$0xff] }
 0x11f   :  { %v538_v22 = vld [vmem:[#allocation3 + $0xae8] sm:$0xff] }
 0x120   :  { %3371 = vmatpush2.bf16.msra.mxu0 %v9133_v5  ;;  %3484 = vmatpush2.bf16.msra.mxu1 %v9261_v6  ;;  %v554_v5 = vld [vmem:[#allocation3 + $0xb68] sm:$0xff]  ;;  %v10679_v6 = vld [vmem:[%s13666_s0 + $0xe0] ss:$28 sps:$4 sm:$0xff]  }
 0x121   :  { %3566 = vmatprep.subr.bf16.mxu0 %v9382_v7  ;;  %3693 = vmatprep.subr.bf16.mxu1 %v9454_v12  ;;  %v10680_v7 = vld [vmem:[%s13666_s0 + $0xe8] ss:$28 sps:$4 sm:$0xff]   ;;  %v9430_v11 = vcombine.high %v550_v18, %v554_v5 }
 0x122   :  { %v542_v12 = vld [vmem:[#allocation3 + $0xb08] sm:$0xff] }
 0x123   :  { %3373 = vmatmul.mubr.bf16.vlgmr.msra.gmra.mxu0 %v10663_v23  ;;  %3486 = vmatmul.mubr.bf16.vlgmr.msra.gmra.mxu1 %v10664_v25  ;;  %v10683_v23 = vld [vmem:[%s13666_s0 + $0x118] ss:$28 sps:$4 sm:$0xff]   ;;  %v9421_v25 = vcombine.low %v542_v12, %v546_v15  ;;  %v526_v28 = vld [vmem:[#allocation3 + $0xa88] sm:$0xff] }
 0x124   :  { %3567 = vmatpush1.bf16.msra.mxu0 %v9381_v17  ;;  %3694 = vmatpush1.bf16.msra.mxu1 %v9453_v19  ;;  %v10682_v17 = vld [vmem:[%s13666_s0 + $0x124] ss:$28 sps:$4 sm:$0xff]   ;;  %v9429_v19 = vcombine.low %v550_v18, %v554_v5  ;;  %v530_v29 = vld [vmem:[#allocation3 + $0xaa8] sm:$0xff]  ;;  %v359_v5 = vld [vmem:[#allocation3 + $0x550] sm:$0xff] }
 0x125   :  { %3568 = vmatprep.subr.bf16.mxu0 %v9374_v20  ;;  %3382 = vmatprep.mubr.bf16.mxu0 %v10665_v30  ;;  %v9422_v20 = vcombine.high %v542_v12, %v546_v15  ;;  %v10686_v30 = vld [vmem:[%s13666_s0 + $0x15c] ss:$28 sps:$4 sm:$0xff]   ;;  %v522_v34 = vld [vmem:[#allocation3 + $0xa68] sm:$0xff] }
 0x126   :  { %3495 = vmatprep.mubr.bf16.mxu1 %v10666_v31  ;;  %3905 = vmatprep.subr.bf16.mxu1 %v9256_v24  ;;  %v10684_v24 = vld [vmem:[%s13666_s0 + $0x120] ss:$28 sps:$4 sm:$0xff]   ;;  %v9413_v31 = vcombine.low %v534_v21, %v538_v22  ;;  %v510_v41 = vld [vmem:[#allocation3 + $0xa08] sm:$0xff] }
 0x127   :  { %v514_v42 = vld [vmem:[#allocation3 + $0xa28] sm:$0xff] }
 0x128   :  { %3569 = vmatpush1.bf16.msra.mxu0 %v9373_v26  ;;  %v10685_v26 = vld [vmem:[%s13666_s0 + $0x154] ss:$28 sps:$4 sm:$0xff]   ;;  %v9390_v46 = vcombine.high %v510_v41, %v514_v42  ;;  %v9389_v53 = vcombine.low %v510_v41, %v514_v42  ;;  %v10697_v41 = vld [vmem:[%s13666_s0 + $0x48] ss:$28 sps:$4 sm:$0xff]  }
 0x129   :  { %3570 = vmatprep.subr.bf16.mxu0 %v9366_v27  ;;  %v9414_v27 = vcombine.high %v534_v21, %v538_v22  ;;  %v10694_v18 = vld [vmem:[%s13666_s0 + $0x10] ss:$28 sps:$4 sm:$0xff]  }
 0x12a   :  { %v223_v22 = vld [vmem:[#allocation3 + $0x110] sm:$0xff] }
 0x12b   :  { %3383 = vmatmul.mubr.bf16.gmra.mxu0 %v10667_v36  ;;  %3496 = vmatmul.mubr.bf16.gmra.mxu1 %v10668_v37  ;;  %v10687_v36 = vld [vmem:[%s13666_s0 + $0x150] ss:$28 sps:$4 sm:$0xff]   ;;  %v10688_v37 = vld [vmem:[%s13666_s0 + $0x158] ss:$28 sps:$4 sm:$0xff]  }
 0x12c   :  { %3571 = vmatpush1.bf16.msra.mxu0 %v9365_v32  ;;  %3392 = vmatprep.mubr.bf16.mxu0 %v10669_v39  ;;  %v9406_v32 = vcombine.high %v526_v28, %v530_v29  ;;  %v10689_v39 = vld [vmem:[%s13666_s0 + $0x18c] ss:$28 sps:$4 sm:$0xff]   ;;  %v343_v42 = vld [vmem:[#allocation3 + $0x4d0] sm:$0xff] }
 0x12d   :  { %3572 = vmatprep.subr.bf16.mxu0 %v9358_v33  ;;  %3505 = vmatprep.mubr.bf16.mxu1 %v10670_v43  ;;  %v518_v33 = vld [vmem:[#allocation3 + $0xa48] sm:$0xff]  ;;  %v11383_v43 = vshrl.u32 %v583_v35, 7 }
 0x12f   :  { %13730 = vst [vmem:[#allocation21_spill] sm:$0xff] %v11383_v43  ;;  %v11389_v47 = vsub.s32 0, %v11383_v43 }
 0x130   :  { %3573 = vmatpush1.bf16.msra.mxu0 %v9357_v38  ;;  %v9405_v38 = vcombine.low %v526_v28, %v530_v29 }
 0x131   :  { %3574 = vmatprep.subr.bf16.mxu0 %v9350_v40  ;;  %v9398_v40 = vcombine.high %v518_v33, %v522_v34  ;;  %13731 = vst [vmem:[#allocation22_spill] sm:$0xff] %v11389_v47 }
 0x133   :  { %3393 = vmatmul.mubr.bf16.gmra.mxu0 %v10671_v48  ;;  %3506 = vmatmul.mubr.bf16.gmra.mxu1 %v10672_v49  ;;  %v247_v48 = vld [vmem:[#allocation3 + $0x1d0] sm:$0xff] }
 0x134   :  { %3575 = vmatpush1.bf16.msra.mxu0 %v9349_v44  ;;  %3402 = vmatprep.mubr.bf16.mxu0 %v10673_v51  ;;  %v10690_v44 = vld [vmem:[%s13666_s0 + $0x194] ss:$28 sps:$4 sm:$0xff]   ;;  %v581_v51 = vld [vmem:[#allocation6] sm:$0xff] }
 0x135   :  { %3576 = vmatprep.subr.bf16.mxu0 %v9342_v45  ;;  %3515 = vmatprep.mubr.bf16.mxu1 %v10674_v55  ;;  %v9397_v45 = vcombine.low %v518_v33, %v522_v34  ;;  %v251_v49 = vld [vmem:[#allocation3 + $0x1f0] sm:$0xff] }
 0x136   :  { %v10693_v55 = vld [vmem:[%s13666_s0 + $0x14] ss:$28 sps:$4 sm:$0xff]  }
 0x138   :  { %3577 = vmatpush1.bf16.msra.mxu0 %v9341_v50  ;;  %v10691_v50 = vld [vmem:[%s13666_s0 + $0x188] ss:$28 sps:$4 sm:$0xff]  }
 0x139   :  { %3578 = vmatprep.subr.bf16.mxu0 %v9334_v52  ;;  %v10692_v52 = vld [vmem:[%s13666_s0 + $0x190] ss:$28 sps:$4 sm:$0xff]  }
 0x13b   :  { %3403 = vmatmul.mubr.bf16.gmra.mxu0 %v10675_v60  ;;  %3516 = vmatmul.mubr.bf16.gmra.mxu1 %v10676_v61  ;;  %v371_v60 = vld [vmem:[#allocation3 + $0x5b0] sm:$0xff]  ;;  %v11405_v61 = vrot.slane %v581_v51, %v11389_v47 }
 0x13c   :  { %3579 = vmatpush1.bf16.msra.mxu0 %v9333_v56  ;;  %3412 = vmatprep.mubr.bf16.mxu0 %v10677_v63  ;;  %v9128_v56 = vcombine.high %v247_v48, %v251_v49  ;;  %v9255_v63 = vcombine.low %v11293_v13, %v11295_v14  ;;  %v9248_v2 = vcombine.high %v367_v59, %v371_v60  ;;  %v10695_v13 = vld [vmem:[%s13666_s0 + $0x18] ss:$28 sps:$4 sm:$0xff]  }
 0x13d   :  { %3580 = vmatprep.subr.bf16.mxu0 %v9326_v57  ;;  %3525 = vmatprep.mubr.bf16.mxu1 %v10678_v3  ;;  %v11401_v57 = vsub.s32 1, %v11383_v43  ;;  %v231_v3 = vld [vmem:[#allocation3 + $0x150] sm:$0xff]  ;;  %v9119_v14 = vcombine.low %v239_v54, %v243_v58 }
 0x13f   :  { %13732 = vst [vmem:[#allocation23_spill] sm:$0xff] %v11401_v57  ;;  %v11410_v1 = vrot.slane %v581_v51, %v11401_v57  ;;  %v280_v57 = vld [vmem:[#allocation3 + $0x2d8] sm:$0xff] }
 0x140   :  { %3581 = vmatpush1.bf16.msra.mxu0 %v9325_v62  ;;  %v9127_v62 = vcombine.low %v247_v48, %v251_v49  ;;  %v10698_v49 = vld [vmem:[%s13666_s0 + $0x50] ss:$28 sps:$4 sm:$0xff]  }
 0x141   :  { %3582 = vmatprep.subr.bf16.mxu0 %v9446_v0  ;;  %v9120_v0 = vcombine.high %v239_v54, %v243_v58  ;;  %v10699_v58 = vld [vmem:[%s13666_s0 + $0x84] ss:$28 sps:$4 sm:$0xff]  }
 0x143   :  { %3413 = vmatmul.mubr.bf16.gmra.mxu0 %v10679_v6  ;;  %3526 = vmatmul.mubr.bf16.gmra.mxu1 %v10680_v7  ;;  %v363_v6 = vld [vmem:[#allocation3 + $0x570] sm:$0xff] }
 0x144   :  { %3583 = vmatpush2.bf16.msra.mxu0 %v9445_v4  ;;  %3422 = vmatprep.mubr.bf16.mxu0 %v10681_v10  ;;  %v235_v4 = vld [vmem:[#allocation3 + $0x170] sm:$0xff]  ;;  %v9240_v21 = vcombine.high %v359_v5, %v363_v6 }
 0x145   :  { %3584 = vmatprep.subr.bf16.mxu0 %v9438_v16  ;;  %3535 = vmatprep.mubr.bf16.mxu1 %v10682_v17  ;;  %v9112_v12 = vcombine.high %v231_v3, %v235_v4 }
 0x148   :  { %3585 = vmatpush2.bf16.msra.mxu0 %v9437_v8 }
 0x149   :  { %3586 = vmatprep.subr.bf16.mxu0 %v9430_v11  ;;  %v9247_v11 = vcombine.low %v367_v59, %v371_v60  ;;  %v207_v60 = vld [vmem:[#allocation3 + $0x90] sm:$0xff] }
 0x14b   :  { %3423 = vmatmul.mubr.bf16.gmra.mxu0 %v10683_v23  ;;  %3536 = vmatmul.mubr.bf16.gmra.mxu1 %v10684_v24  ;;  %v227_v23 = vld [vmem:[#allocation3 + $0x130] sm:$0xff] }
 0x14c   :  { %3587 = vmatpush2.bf16.msra.mxu0 %v9429_v19  ;;  %3432 = vmatprep.mubr.bf16.mxu0 %v10685_v26  ;;  %v355_v26 = vld [vmem:[#allocation3 + $0x530] sm:$0xff]  ;;  %v9104_v33 = vcombine.high %v223_v22, %v227_v23 }
 0x14d   :  { %3588 = vmatprep.subr.bf16.mxu0 %v9422_v20  ;;  %3545 = vmatprep.mubr.bf16.mxu1 %v10686_v30  ;;  %v10696_v20 = vld [vmem:[%s13666_s0 + $0x4c] ss:$28 sps:$4 sm:$0xff]   ;;  %v9111_v30 = vcombine.low %v231_v3, %v235_v4 }
 0x150   :  { %3589 = vmatpush2.bf16.msra.mxu0 %v9421_v25  ;;  %v351_v25 = vld [vmem:[#allocation3 + $0x510] sm:$0xff] }
 0x151   :  { %3590 = vmatprep.subr.bf16.mxu0 %v9414_v27 }
 0x153   :  { %3433 = vmatmul.mubr.bf16.gmra.mxu0 %v10687_v36  ;;  %3546 = vmatmul.mubr.bf16.gmra.mxu1 %v10688_v37  ;;  %v9232_v37 = vcombine.high %v351_v25, %v355_v26 }
 0x154   :  { %3591 = vmatpush2.bf16.msra.mxu0 %v9413_v31  ;;  %3442 = vmatprep.mubr.bf16.mxu0 %v10689_v39  ;;  %v219_v39 = vld [vmem:[#allocation3 + $0xf0] sm:$0xff] }
 0x155   :  { %3592 = vmatprep.subr.bf16.mxu0 %v9406_v32  ;;  %3555 = vmatprep.mubr.bf16.mxu1 %v10690_v44  ;;  %v9239_v32 = vcombine.low %v359_v5, %v363_v6  ;;  %v347_v44 = vld [vmem:[#allocation3 + $0x4f0] sm:$0xff] }
 0x156   :  { %v9224_v59 = vcombine.high %v343_v42, %v347_v44  ;;  %v9223_v6 = vcombine.low %v343_v42, %v347_v44 }
 0x158   :  { %3593 = vmatpush2.bf16.msra.mxu0 %v9405_v38  ;;  %v215_v38 = vld [vmem:[#allocation3 + $0xd0] sm:$0xff] }
 0x159   :  { %3594 = vmatprep.subr.bf16.mxu0 %v9398_v40 }
 0x15b   :  { %3443 = vmatmul.mubr.bf16.gmra.mxu0 %v10691_v50  ;;  %3556 = vmatmul.mubr.bf16.gmra.mxu1 %v10692_v52  ;;  %v9103_v50 = vcombine.low %v223_v22, %v227_v23  ;;  %v9231_v52 = vcombine.low %v351_v25, %v355_v26  ;;  %v10701_v25 = vld [vmem:[%s13666_s0 + $0x88] ss:$28 sps:$4 sm:$0xff]  }
 0x15c   :  { %3595 = vmatpush2.bf16.msra.mxu0 %v9397_v45  ;;  %3598 = vmatprep.mubr.bf16.mxu0 %v10693_v55 }
 0x15d   :  { %3596 = vmatprep.subr.bf16.mxu0 %v9390_v46  ;;  %3711 = vmatprep.mubr.bf16.mxu1 %v13678_v9 }
 0x160   :  { %3597 = vmatpush2.bf16.msra.mxu0 %v9389_v53  ;;  %v9096_v53 = vcombine.high %v215_v38, %v219_v39 }
 0x161   :  { %3792 = vmatprep.subr.bf16.mxu0 %v9128_v56 }
 0x163   :  { %v2922_v16 = vpop.f32.mrf.mxu0  ;;  %3599 = vmatmul.mubr.bf16.vlgmr.msra.gmra.mxu0 %v10694_v18  ;;  %v3035_v8 = vpop.f32.mrf.mxu1  ;;  %9467 = vmatmul.mubr.msk.bf16.vlgmr.msra.gmra.mxu1 %vm2863_vm0, %v10695_v13  ;;  %v9095_v18 = vcombine.low %v215_v38, %v219_v39  ;;  %v195_v38 = vld [vmem:[#allocation3 + $0x30] sm:$0xff] }
 0x164   :  { %v2923_v7 = vadd.f32 %v2922_v16, %v11405_v61  ;;  %3793 = vmatpush1.bf16.msra.mxu0 %v9127_v62  ;;  %3906 = vmatpush1.bf16.msra.mxu1 %v9255_v63  ;;  %v211_v62 = vld [vmem:[#allocation3 + $0xb0] sm:$0xff] }
 0x165   :  { %v2924_v10 = vpop.f32.mrf.mxu0  ;;  %3794 = vmatprep.subr.bf16.mxu0 %v9120_v0  ;;  %v3037_v19 = vpop.f32.mrf.mxu1  ;;  %3907 = vmatprep.subr.bf16.mxu1 %v9248_v2  ;;  %v335_v0 = vld [vmem:[#allocation3 + $0x490] sm:$0xff]  ;;  %v9087_v26 = vcombine.low %v207_v60, %v211_v62 }
 0x166   :  { %v11420_v15 = vadd.f32 %v3035_v8, %v2923_v7  ;;  %v2925_v17 = vadd.f32 %v2924_v10, %v11410_v1  ;;  %3608 = vmatprep.mubr.bf16.mxu0 %v10696_v20  ;;  %3721 = vmatprep.mubr.bf16.mxu1 %v13678_v9  ;;  %v339_v2 = vld [vmem:[#allocation3 + $0x4b0] sm:$0xff]  ;;  %v9088_v7 = vcombine.high %v207_v60, %v211_v62 }
 0x167   :  { %v2926_v24 = vpop.f32.mrf.mxu0  ;;  %v3039_v29 = vpop.f32.mrf.mxu1  ;;  %v9216_v10 = vcombine.high %v335_v0, %v339_v2  ;;  %v327_v20 = vld [vmem:[#allocation3 + $0x450] sm:$0xff] }
 0x168   :  { %v11427_v27 = vadd.f32 %v3037_v19, %v2925_v17  ;;  %v2927_v28 = vadd.f32 %v2926_v24, %v11405_v61  ;;  %3795 = vmatpush1.bf16.msra.mxu0 %v9119_v14  ;;  %3908 = vmatpush1.bf16.msra.mxu1 %v9247_v11  ;;  %v199_v11 = vld [vmem:[#allocation3 + $0x50] sm:$0xff]  ;;  %v10700_v19 = vld [vmem:[%s13666_s0 + $0x80] ss:$28 sps:$4 sm:$0xff]  }
 0x169   :  { %v2928_v31 = vpop.f32.mrf.mxu0  ;;  %3796 = vmatprep.subr.bf16.mxu0 %v9112_v12  ;;  %v3041_v36 = vpop.f32.mrf.mxu1  ;;  %3909 = vmatprep.subr.bf16.mxu1 %v9240_v21  ;;  %v203_v12 = vld [vmem:[#allocation3 + $0x70] sm:$0xff] }
 0x16a   :  { %v11430_v34 = vadd.f32 %v3039_v29, %v2927_v28  ;;  %v2929_v35 = vadd.f32 %v2928_v31, %v11410_v1  ;;  %v331_v21 = vld [vmem:[#allocation3 + $0x470] sm:$0xff]  ;;  %v9215_v29 = vcombine.low %v335_v0, %v339_v2 }
 0x16b   :  { %v2932_v40 = vpop.f32.mrf.mxu0  ;;  %3609 = vmatmul.mubr.bf16.gmra.mxu0 %v10697_v41  ;;  %v3045_v48 = vpop.f32.mrf.mxu1  ;;  %9468 = vmatmul.mubr.msk.bf16.gmra.mxu1 %vm2863_vm0, %v10698_v49  ;;  %v323_v41 = vld [vmem:[#allocation3 + $0x430] sm:$0xff] }
 0x16c   :  { %v11436_v45 = vadd.f32 %v3041_v36, %v2929_v35  ;;  %v2933_v46 = vadd.f32 %v2932_v40, %v11405_v61  ;;  %3797 = vmatpush1.bf16.msra.mxu0 %v9111_v30  ;;  %3910 = vmatpush1.bf16.msra.mxu1 %v9239_v32  ;;  %v9080_v30 = vcombine.high %v199_v11, %v203_v12  ;;  %v10702_v35 = vld [vmem:[%s13666_s0 + $0xbc] ss:$28 sps:$4 sm:$0xff]  }
 0x16d   :  { %v2934_v51 = vpop.f32.mrf.mxu0  ;;  %3798 = vmatprep.subr.bf16.mxu0 %v9104_v33  ;;  %v3047_v56 = vpop.f32.mrf.mxu1  ;;  %3911 = vmatprep.subr.bf16.mxu1 %v9232_v37  ;;  %v9208_v36 = vcombine.high %v327_v20, %v331_v21  ;;  %v191_v37 = vld [vmem:[#allocation3 + $0x10] sm:$0xff] }
 0x16e   :  { %v11443_v54 = vadd.f32 %v3045_v48, %v2933_v46  ;;  %v2935_v55 = vadd.f32 %v2934_v51, %v11410_v1  ;;  %3618 = vmatprep.mubr.bf16.mxu0 %v10699_v58  ;;  %3731 = vmatprep.mubr.bf16.mxu1 %v13678_v9  ;;  %v319_v40 = vld [vmem:[#allocation3 + $0x410] sm:$0xff]  ;;  %v9079_v48 = vcombine.low %v199_v11, %v203_v12 }
 0x16f   :  { %v2936_v63 = vpop.f32.mrf.mxu0  ;;  %v3049_v16 = vpop.f32.mrf.mxu1  ;;  %v9072_v51 = vcombine.high %v191_v37, %v195_v38  ;;  %v311_v58 = vld [vmem:[#allocation3 + $0x3d0] sm:$0xff] }
 0x170   :  { %v11450_v3 = vadd.f32 %v3047_v56, %v2935_v55  ;;  %v2937_v4 = vadd.f32 %v2936_v63, %v11405_v61  ;;  %3799 = vmatpush1.bf16.msra.mxu0 %v9103_v50  ;;  %3912 = vmatpush1.bf16.msra.mxu1 %v9231_v52  ;;  %v9207_v50 = vcombine.low %v327_v20, %v331_v21  ;;  %v10703_v62 = vld [vmem:[%s13666_s0 + $0xb8] ss:$28 sps:$4 sm:$0xff]  }
 0x171   :  { %v2938_v5 = vpop.f32.mrf.mxu0  ;;  %3800 = vmatprep.subr.bf16.mxu0 %v9096_v53  ;;  %v3051_v14 = vpop.f32.mrf.mxu1  ;;  %3913 = vmatprep.subr.bf16.mxu1 %v9224_v59  ;;  %v9200_v56 = vcombine.high %v319_v40, %v323_v41  ;;  %v315_v59 = vld [vmem:[#allocation3 + $0x3f0] sm:$0xff] }
 0x172   :  { %v11453_v8 = vadd.f32 %v3049_v16, %v2937_v4  ;;  %v2939_v13 = vadd.f32 %v2938_v5, %v11410_v1  ;;  %v439_v63 = vld [vmem:[#allocation3 + $0x7d0] sm:$0xff]  ;;  %v9071_v5 = vcombine.low %v191_v37, %v195_v38 }
 0x173   :  { %v2942_v17 = vpop.f32.mrf.mxu0  ;;  %3619 = vmatmul.mubr.bf16.gmra.mxu0 %v10700_v19  ;;  %v3055_v24 = vpop.f32.mrf.mxu1  ;;  %9469 = vmatmul.mubr.msk.bf16.gmra.mxu1 %vm2863_vm0, %v10701_v25  ;;  %v443_v0 = vld [vmem:[#allocation3 + $0x7f0] sm:$0xff] }
 0x174   :  { %v11459_v22 = vadd.f32 %v3051_v14, %v2939_v13  ;;  %v2943_v23 = vadd.f32 %v2942_v17, %v11405_v61  ;;  %3801 = vmatpush1.bf16.msra.mxu0 %v9095_v18  ;;  %3914 = vmatpush1.bf16.msra.mxu1 %v9223_v6  ;;  %v10704_v18 = vld [vmem:[%s13666_s0 + $0xc0] ss:$28 sps:$4 sm:$0xff]   ;;  %v9192_v13 = vcombine.high %v311_v58, %v315_v59  ;;  %v10705_v12 = vld [vmem:[%s13666_s0 + $0xf4] ss:$28 sps:$4 sm:$0xff]  }
 0x175   :  { %v2944_v28 = vpop.f32.mrf.mxu0  ;;  %3802 = vmatprep.subr.bf16.mxu0 %v9088_v7  ;;  %v3057_v33 = vpop.f32.mrf.mxu1  ;;  %3915 = vmatprep.subr.bf16.mxu1 %v9216_v10  ;;  %v9199_v7 = vcombine.low %v319_v40, %v323_v41  ;;  %v9320_v17 = vcombine.high %v439_v63, %v443_v0  ;;  %v303_v19 = vld [vmem:[#allocation3 + $0x390] sm:$0xff] }
 0x176   :  { %v11466_v31 = vadd.f32 %v3055_v24, %v2943_v23  ;;  %v2945_v32 = vadd.f32 %v2944_v28, %v11410_v1  ;;  %3628 = vmatprep.mubr.bf16.mxu0 %v10702_v35  ;;  %3741 = vmatprep.mubr.bf16.mxu1 %v13678_v9  ;;  %v307_v20 = vld [vmem:[#allocation3 + $0x3b0] sm:$0xff] }
 0x177   :  { %v2946_v39 = vpop.f32.mrf.mxu0  ;;  %v3059_v46 = vpop.f32.mrf.mxu1  ;;  %v431_v23 = vld [vmem:[#allocation3 + $0x790] sm:$0xff] }
 0x178   :  { %v11473_v42 = vadd.f32 %v3057_v33, %v2945_v32  ;;  %v2947_v44 = vadd.f32 %v2946_v39, %v11405_v61  ;;  %3803 = vmatpush1.bf16.msra.mxu0 %v9087_v26  ;;  %3916 = vmatpush1.bf16.msra.mxu1 %v9215_v29  ;;  %v435_v24 = vld [vmem:[#allocation3 + $0x7b0] sm:$0xff]  ;;  %v9191_v29 = vcombine.low %v311_v58, %v315_v59 }
 0x179   :  { %v2948_v49 = vpop.f32.mrf.mxu0  ;;  %3804 = vmatprep.subr.bf16.mxu0 %v9080_v30  ;;  %v3061_v55 = vpop.f32.mrf.mxu1  ;;  %3917 = vmatprep.subr.bf16.mxu1 %v9208_v36  ;;  %v9319_v32 = vcombine.low %v439_v63, %v443_v0  ;;  %v9184_v33 = vcombine.high %v303_v19, %v307_v20  ;;  %v9312_v38 = vcombine.high %v431_v23, %v435_v24  ;;  %v295_v39 = vld [vmem:[#allocation3 + $0x350] sm:$0xff]  ;;  %v10708_v0 = vld [vmem:[%s13666_s0 + $0x12c] ss:$28 sps:$4 sm:$0xff]  }
 0x17a   :  { %v11476_v52 = vadd.f32 %v3059_v46, %v2947_v44  ;;  %v2949_v53 = vadd.f32 %v2948_v49, %v11410_v1  ;;  %v299_v40 = vld [vmem:[#allocation3 + $0x370] sm:$0xff]  ;;  %v9311_v58 = vcombine.low %v431_v23, %v435_v24 }
 0x17b   :  { %v2952_v60 = vpop.f32.mrf.mxu0  ;;  %3629 = vmatmul.mubr.bf16.gmra.mxu0 %v10703_v62  ;;  %v3065_v16 = vpop.f32.mrf.mxu1  ;;  %9470 = vmatmul.mubr.msk.bf16.gmra.mxu1 %vm2863_vm0, %v10704_v18  ;;  %v10706_v44 = vld [vmem:[%s13666_s0 + $0xf0] ss:$28 sps:$4 sm:$0xff]   ;;  %v9176_v59 = vcombine.high %v295_v39, %v299_v40 }
 0x17c   :  { %v11482_v2 = vadd.f32 %v3061_v55, %v2949_v53  ;;  %v2953_v4 = vadd.f32 %v2952_v60, %v11405_v61  ;;  %3805 = vmatpush1.bf16.msra.mxu0 %v9079_v48  ;;  %3918 = vmatpush1.bf16.msra.mxu1 %v9207_v50  ;;  %v423_v46 = vld [vmem:[#allocation3 + $0x750] sm:$0xff]  ;;  %v9183_v55 = vcombine.low %v303_v19, %v307_v20 }
 0x17d   :  { %v2954_v6 = vpop.f32.mrf.mxu0  ;;  %3806 = vmatprep.subr.bf16.mxu0 %v9072_v51  ;;  %v3067_v11 = vpop.f32.mrf.mxu1  ;;  %3919 = vmatprep.subr.bf16.mxu1 %v9200_v56  ;;  %v427_v48 = vld [vmem:[#allocation3 + $0x770] sm:$0xff] }
 0x17e   :  { %v11489_v14 = vadd.f32 %v3065_v16, %v2953_v4  ;;  %v2955_v10 = vadd.f32 %v2954_v6, %v11410_v1  ;;  %3638 = vmatprep.mubr.bf16.mxu0 %v10705_v12  ;;  %3751 = vmatprep.mubr.bf16.mxu1 %v13678_v9  ;;  %v10707_v53 = vld [vmem:[%s13666_s0 + $0xf8] ss:$28 sps:$4 sm:$0xff]   ;;  %v9304_v4 = vcombine.high %v423_v46, %v427_v48 }
 0x17f   :  { %v2956_v21 = vpop.f32.mrf.mxu0  ;;  %v3069_v28 = vpop.f32.mrf.mxu1  ;;  %v287_v16 = vld [vmem:[#allocation3 + $0x310] sm:$0xff]  ;;  %v9175_v12 = vcombine.low %v295_v39, %v299_v40  ;;  %v9303_v19 = vcombine.low %v423_v46, %v427_v48 }
 0x180   :  { %v11496_v25 = vadd.f32 %v3067_v11, %v2955_v10  ;;  %v2957_v26 = vadd.f32 %v2956_v21, %v11405_v61  ;;  %3807 = vmatpush1.bf16.msra.mxu0 %v9071_v5  ;;  %3920 = vmatpush1.bf16.msra.mxu1 %v9199_v7  ;;  %v291_v18 = vld [vmem:[#allocation3 + $0x330] sm:$0xff] }
 0x181   :  { %v2958_v30 = vpop.f32.mrf.mxu0  ;;  %3808 = vmatprep.subr.bf16.mxu0 %v9192_v13  ;;  %v3071_v37 = vpop.f32.mrf.mxu1  ;;  %3921 = vmatprep.subr.bf16.mxu1 %v9320_v17  ;;  %v415_v6 = vld [vmem:[#allocation3 + $0x710] sm:$0xff]  ;;  %v9168_v20 = vcombine.high %v287_v16, %v291_v18 }
 0x182   :  { %v11499_v35 = vadd.f32 %v3069_v28, %v2957_v26  ;;  %v2959_v36 = vadd.f32 %v2958_v30, %v11410_v1  ;;  %v419_v7 = vld [vmem:[#allocation3 + $0x730] sm:$0xff] }
 0x183   :  { %v2962_v41 = vpop.f32.mrf.mxu0  ;;  %3639 = vmatmul.mubr.bf16.gmra.mxu0 %v10706_v44  ;;  %v3075_v51 = vpop.f32.mrf.mxu1  ;;  %9471 = vmatmul.mubr.msk.bf16.gmra.mxu1 %vm2863_vm0, %v10707_v53  ;;  %v9296_v26 = vcombine.high %v415_v6, %v419_v7  ;;  %v279_v28 = vld [vmem:[#allocation3 + $0x2d0] sm:$0xff]  ;;  %v9295_v46 = vcombine.low %v415_v6, %v419_v7 }
 0x184   :  { %v11505_v49 = vadd.f32 %v3071_v37, %v2959_v36  ;;  %v2963_v50 = vadd.f32 %v2962_v41, %v11405_v61  ;;  %3809 = vmatpush2.bf16.msra.mxu0 %v9191_v29  ;;  %3922 = vmatpush2.bf16.msra.mxu1 %v9319_v32  ;;  %v283_v29 = vld [vmem:[#allocation3 + $0x2f0] sm:$0xff]  ;;  %v10709_v32 = vld [vmem:[%s13666_s0 + $0x128] ss:$28 sps:$4 sm:$0xff]   ;;  %v9167_v41 = vcombine.low %v287_v16, %v291_v18 }
 0x185   :  { %v2964_v56 = vpop.f32.mrf.mxu0  ;;  %3810 = vmatprep.subr.bf16.mxu0 %v9184_v33  ;;  %v3077_v63 = vpop.f32.mrf.mxu1  ;;  %3923 = vmatprep.subr.bf16.mxu1 %v9312_v38  ;;  %v407_v33 = vld [vmem:[#allocation3 + $0x6d0] sm:$0xff]  ;;  %v9160_v48 = vcombine.high %v279_v28, %v283_v29 }
 0x186   :  { %v11512_v60 = vadd.f32 %v3075_v51, %v2963_v50  ;;  %v2965_v62 = vadd.f32 %v2964_v56, %v11410_v1  ;;  %3648 = vmatprep.mubr.bf16.mxu0 %v10708_v0  ;;  %3761 = vmatprep.mubr.bf16.mxu1 %v13678_v9  ;;  %v411_v36 = vld [vmem:[#allocation3 + $0x6f0] sm:$0xff] }
 0x187   :  { %v2966_v5 = vpop.f32.mrf.mxu0  ;;  %v3079_v11 = vpop.f32.mrf.mxu1  ;;  %v10710_v40 = vld [vmem:[%s13666_s0 + $0x130] ss:$28 sps:$4 sm:$0xff]   ;;  %v9288_v56 = vcombine.high %v407_v33, %v411_v36  ;;  %v9287_v7 = vcombine.low %v407_v33, %v411_v36  ;;  %v10713_v36 = vld [vmem:[%s13666_s0 + $0x168] ss:$28 sps:$4 sm:$0xff]  }
 0x188   :  { %v11519_v13 = vadd.f32 %v3077_v63, %v2965_v62  ;;  %v2967_v10 = vadd.f32 %v2966_v5, %v11405_v61  ;;  %3811 = vmatpush2.bf16.msra.mxu0 %v9183_v55  ;;  %3924 = vmatpush2.bf16.msra.mxu1 %v9311_v58  ;;  %v10711_v55 = vld [vmem:[%s13666_s0 + $0x164] ss:$28 sps:$4 sm:$0xff]   ;;  %v271_v58 = vld [vmem:[#allocation3 + $0x290] sm:$0xff]  ;;  %v9159_v5 = vcombine.low %v279_v28, %v283_v29 }
 0x189   :  { %v2968_v17 = vpop.f32.mrf.mxu0  ;;  %3812 = vmatprep.subr.bf16.mxu0 %v9176_v59  ;;  %v3081_v24 = vpop.f32.mrf.mxu1  ;;  %3925 = vmatprep.subr.bf16.mxu1 %v9304_v4  ;;  %v275_v59 = vld [vmem:[#allocation3 + $0x2b0] sm:$0xff] }
 0x18a   :  { %v11522_v21 = vadd.f32 %v3079_v11, %v2967_v10  ;;  %v2969_v23 = vadd.f32 %v2968_v17, %v11410_v1  ;;  %v399_v63 = vld [vmem:[#allocation3 + $0x690] sm:$0xff]  ;;  %v9152_v10 = vcombine.high %v271_v58, %v275_v59 }
 0x18b   :  { %v2972_v30 = vpop.f32.mrf.mxu0  ;;  %3649 = vmatmul.mubr.bf16.gmra.mxu0 %v10709_v32  ;;  %v3085_v39 = vpop.f32.mrf.mxu1  ;;  %9472 = vmatmul.mubr.msk.bf16.gmra.mxu1 %vm2863_vm0, %v10710_v40  ;;  %v403_v0 = vld [vmem:[#allocation3 + $0x6b0] sm:$0xff] }
 0x18c   :  { %v11528_v37 = vadd.f32 %v3081_v24, %v2969_v23  ;;  %v2973_v38 = vadd.f32 %v2972_v30, %v11405_v61  ;;  %3813 = vmatpush2.bf16.msra.mxu0 %v9175_v12  ;;  %3926 = vmatpush2.bf16.msra.mxu1 %v9303_v19  ;;  %v9280_v19 = vcombine.high %v399_v63, %v403_v0  ;;  %v267_v23 = vld [vmem:[#allocation3 + $0x270] sm:$0xff] }
 0x18d   :  { %v2974_v44 = vpop.f32.mrf.mxu0  ;;  %3814 = vmatprep.subr.bf16.mxu0 %v9168_v20  ;;  %v3087_v53 = vpop.f32.mrf.mxu1  ;;  %3927 = vmatprep.subr.bf16.mxu1 %v9296_v26  ;;  %v263_v20 = vld [vmem:[#allocation3 + $0x250] sm:$0xff]  ;;  %v10712_v26 = vld [vmem:[%s13666_s0 + $0x160] ss:$28 sps:$4 sm:$0xff]   ;;  %v9279_v40 = vcombine.low %v399_v63, %v403_v0 }
 0x18e   :  { %v11535_v50 = vadd.f32 %v3085_v39, %v2973_v38  ;;  %v2975_v51 = vadd.f32 %v2974_v44, %v11410_v1  ;;  %3658 = vmatprep.mubr.bf16.mxu0 %v10711_v55  ;;  %3771 = vmatprep.mubr.bf16.mxu1 %v13678_v9  ;;  %v391_v28 = vld [vmem:[#allocation3 + $0x650] sm:$0xff]  ;;  %v9151_v38 = vcombine.low %v271_v58, %v275_v59 }
 0x18f   :  { %v2976_v62 = vpop.f32.mrf.mxu0  ;;  %v3089_v18 = vpop.f32.mrf.mxu1  ;;  %v395_v29 = vld [vmem:[#allocation3 + $0x670] sm:$0xff] }
 0x190   :  { %v11542_v4 = vadd.f32 %v3087_v53, %v2975_v51  ;;  %v2977_v16 = vadd.f32 %v2976_v62, %v11405_v61  ;;  %3815 = vmatpush2.bf16.msra.mxu0 %v9167_v41  ;;  %3928 = vmatpush2.bf16.msra.mxu1 %v9295_v46  ;;  %v9144_v41 = vcombine.high %v263_v20, %v267_v23  ;;  %v10714_v51 = vld [vmem:[%s13666_s0 + $0x19c] ss:$28 sps:$4 sm:$0xff]  }
 0x191   :  { %v2978_v6 = vpop.f32.mrf.mxu0  ;;  %3816 = vmatprep.subr.bf16.mxu0 %v9160_v48  ;;  %v3091_v17 = vpop.f32.mrf.mxu1  ;;  %3929 = vmatprep.subr.bf16.mxu1 %v9288_v56  ;;  %v9272_v53 = vcombine.high %v391_v28, %v395_v29  ;;  %v255_v55 = vld [vmem:[#allocation3 + $0x210] sm:$0xff] }
 0x192   :  { %v11545_v11 = vadd.f32 %v3089_v18, %v2977_v16  ;;  %v2979_v12 = vadd.f32 %v2978_v6, %v11410_v1  ;;  %v259_v56 = vld [vmem:[#allocation3 + $0x230] sm:$0xff]  ;;  %v9143_v18 = vcombine.low %v263_v20, %v267_v23  ;;  %v9271_v6 = vcombine.low %v391_v28, %v395_v29 }
 0x193   :  { %v2982_v24 = vpop.f32.mrf.mxu0  ;;  %3659 = vmatmul.mubr.bf16.gmra.mxu0 %v10712_v26  ;;  %v3095_v33 = vpop.f32.mrf.mxu1  ;;  %9473 = vmatmul.mubr.msk.bf16.gmra.mxu1 %vm2863_vm0, %v10713_v36  ;;  %v383_v59 = vld [vmem:[#allocation3 + $0x610] sm:$0xff] }
 0x194   :  { %v11551_v30 = vadd.f32 %v3091_v17, %v2979_v12  ;;  %v2983_v32 = vadd.f32 %v2982_v24, %v11405_v61  ;;  %3817 = vmatpush2.bf16.msra.mxu0 %v9159_v5  ;;  %3930 = vmatpush2.bf16.msra.mxu1 %v9287_v7  ;;  %v387_v62 = vld [vmem:[#allocation3 + $0x630] sm:$0xff]  ;;  %v9136_v7 = vcombine.high %v255_v55, %v259_v56 }
 0x195   :  { %v2984_v39 = vpop.f32.mrf.mxu0  ;;  %3818 = vmatprep.subr.bf16.mxu0 %v9152_v10  ;;  %v3097_v48 = vpop.f32.mrf.mxu1  ;;  %3931 = vmatprep.subr.bf16.mxu1 %v9280_v19  ;;  %v9264_v19 = vcombine.high %v383_v59, %v387_v62  ;;  %v503_v24 = vld [vmem:[#allocation3 + $0x9d0] sm:$0xff] }
 0x196   :  { %v11558_v44 = vadd.f32 %v3095_v33, %v2983_v32  ;;  %v2985_v46 = vadd.f32 %v2984_v39, %v11410_v1  ;;  %3668 = vmatprep.mubr.bf16.mxu0 %v10714_v51  ;;  %3781 = vmatprep.mubr.bf16.mxu1 %v13678_v9  ;;  %v507_v26 = vld [vmem:[#allocation3 + $0x9f0] sm:$0xff]  ;;  %v9135_v39 = vcombine.low %v255_v55, %v259_v56  ;;  %v10718_v56 = vld [vmem:[%s13666_s0 + $0xc] ss:$28 sps:$4 sm:$0xff]  }
 0x197   :  { %v2986_v58 = vpop.f32.mrf.mxu0  ;;  %v3099_v16 = vpop.f32.mrf.mxu1  ;;  %v10715_v33 = vld [vmem:[%s13666_s0 + $0x198] ss:$28 sps:$4 sm:$0xff]  }
 0x198   :  { %v11565_v63 = vadd.f32 %v3097_v48, %v2985_v46  ;;  %v2987_v0 = vadd.f32 %v2986_v58, %v11405_v61  ;;  %3819 = vmatpush2.bf16.msra.mxu0 %v9151_v38  ;;  %3932 = vmatpush2.bf16.msra.mxu1 %v9279_v40  ;;  %v575_v20 = vld [vmem:[#allocation3 + $0xc10] sm:$0xff]  ;;  %v10716_v38 = vld [vmem:[%s13666_s0 + $0x1a0] ss:$28 sps:$4 sm:$0xff]   ;;  %v9384_v46 = vcombine.high %v503_v24, %v507_v26 }
 0x199   :  { %v2988_v5 = vpop.f32.mrf.mxu0  ;;  %3820 = vmatprep.subr.bf16.mxu0 %v9144_v41  ;;  %v3101_v17 = vpop.f32.mrf.mxu1  ;;  %3933 = vmatprep.subr.bf16.mxu1 %v9272_v53  ;;  %v579_v23 = vld [vmem:[#allocation3 + $0xc30] sm:$0xff]  ;;  %v9263_v41 = vcombine.low %v383_v59, %v387_v62  ;;  %v10717_v58 = vld [vmem:[%s13666_s0 + $0x4] ss:$28 sps:$4 sm:$0xff]  }
 0x19a   :  { %v11568_v10 = vadd.f32 %v3099_v16, %v2987_v0  ;;  %v2989_v12 = vadd.f32 %v2988_v5, %v11410_v1  ;;  %v9456_v0 = vcombine.high %v575_v20, %v579_v23  ;;  %v495_v16 = vld [vmem:[#allocation3 + $0x990] sm:$0xff] }
 0x19b   :  { %v2992_v32 = vpop.f32.mrf.mxu0  ;;  %3669 = vmatmul.mubr.bf16.gmra.mxu0 %v10715_v33  ;;  %v3105_v29 = vpop.f32.mrf.mxu1  ;;  %9474 = vmatmul.mubr.msk.bf16.gmra.mxu1 %vm2863_vm0, %v10716_v38  ;;  %v487_v38 = vld [vmem:[#allocation3 + $0x950] sm:$0xff] }
 0x19c   :  { %v11574_v36 = vadd.f32 %v3101_v17, %v2989_v12  ;;  %v2993_v28 = vadd.f32 %v2992_v32, %v11405_v61  ;;  %3821 = vmatpush2.bf16.msra.mxu0 %v9143_v18  ;;  %3934 = vmatpush2.bf16.msra.mxu1 %v9271_v6  ;;  %v499_v18 = vld [vmem:[#allocation3 + $0x9b0] sm:$0xff]  ;;  %v9383_v6 = vcombine.low %v503_v24, %v507_v26  ;;  %v11595_v12 = vld [vmem:[#allocation3 + $0x5f8] sm:$0xff] }
 0x19d   :  { %v2994_v40 = vpop.f32.mrf.mxu0  ;;  %3822 = vmatprep.subr.bf16.mxu0 %v9136_v7  ;;  %v3107_v53 = vpop.f32.mrf.mxu1  ;;  %3935 = vmatprep.subr.bf16.mxu1 %v9264_v19  ;;  %v11593_v7 = vld [vmem:[#allocation3 + $0x5d8] sm:$0xff]  ;;  %v9455_v19 = vcombine.low %v575_v20, %v579_v23  ;;  %v9376_v32 = vcombine.high %v495_v16, %v499_v18 }
 0x19e   :  { %v11581_v48 = vadd.f32 %v3105_v29, %v2993_v28  ;;  %v2995_v51 = vadd.f32 %v2994_v40, %v11410_v1  ;;  %3824 = vmatprep.mubr.bf16.mxu0 %v10717_v58  ;;  %3937 = vmatprep.mubr.bf16.mxu1 %v10718_v56  ;;  %v10719_v24 = vld [vmem:[%s13666_s0] ss:$28 sps:$4 sm:$0xff]   ;;  %v9258_v26 = vcombine.high %v11593_v7, %v11595_v12  ;;  %v479_v56 = vld [vmem:[#allocation3 + $0x910] sm:$0xff] }
 0x19f   :  { %v2996_v55 = vpop.f32.mrf.mxu0  ;;  %v3109_v5 = vpop.f32.mrf.mxu1 }
 0x1a0   :  { %v11590_v59 = vadd.f32 %v3107_v53, %v2995_v51  ;;  %v2997_v62 = vadd.f32 %v2996_v55, %v11405_v61  ;;  %3823 = vmatpush2.bf16.msra.mxu0 %v9135_v39  ;;  %3936 = vmatpush2.bf16.msra.mxu1 %v9263_v41  ;;  %v491_v61 = vld [vmem:[#allocation3 + $0x970] sm:$0xff]  ;;  %v9375_v41 = vcombine.low %v495_v16, %v499_v18  ;;  %v10722_v55 = vld [vmem:[%s13666_s0 + $0x44] ss:$28 sps:$4 sm:$0xff]  }
 0x1a1   :  { %v2998_v17 = vpop.f32.mrf.mxu0  ;;  %4018 = vmatprep.subr.bf16.mxu0 %v9384_v46  ;;  %v3111_v29 = vpop.f32.mrf.mxu1  ;;  %4145 = vmatprep.subr.bf16.mxu1 %v9456_v0  ;;  %v9368_v51 = vcombine.high %v487_v38, %v491_v61  ;;  %v483_v16 = vld [vmem:[#allocation3 + $0x930] sm:$0xff] }
 0x1a2   :  { %v11597_v33 = vadd.f32 %v3109_v5, %v2997_v62  ;;  %v2999_v28 = vadd.f32 %v2998_v17, %v11410_v1  ;;  %v10720_v1 = vld [vmem:[%s13666_s0 + $0x8] ss:$28 sps:$4 sm:$0xff]  }
 0x1a3   :  { %v3148_v40 = vpop.f32.mrf.mxu0  ;;  %3825 = vmatmul.mubr.bf16.vlgmr.msra.gmra.mxu0 %v10719_v24  ;;  %v3261_v23 = vpop.f32.mrf.mxu1  ;;  %3938 = vmatmul.mubr.bf16.vlgmr.msra.gmra.mxu1 %v10720_v1  ;;  %v475_v24 = vld [vmem:[#allocation3 + $0x8f0] sm:$0xff]  ;;  %v10724_v1 = vld [vmem:[%s13666_s0 + $0x40] ss:$28 sps:$4 sm:$0xff]  }
 0x1a4   :  { %v11605_v39 = vadd.f32 %v3111_v29, %v2999_v28  ;;  %v3149_v20 = vadd.f32 %v3148_v40, %v11420_v15  ;;  %4019 = vmatpush1.bf16.msra.mxu0 %v9383_v6  ;;  %4146 = vmatpush1.bf16.msra.mxu1 %v9455_v19  ;;  %v10721_v15 = vld [vmem:[%s13666_s0 + $0x3c] ss:$28 sps:$4 sm:$0xff]   ;;  %v9367_v6 = vcombine.low %v487_v38, %v491_v61 }
 0x1a5   :  { %v3150_v46 = vpop.f32.mrf.mxu0  ;;  %4020 = vmatprep.subr.bf16.mxu0 %v9376_v32  ;;  %v3263_v0 = vpop.f32.mrf.mxu1  ;;  %3834 = vmatprep.mubr.bf16.mxu0 %v10721_v15  ;;  %v9360_v32 = vcombine.high %v479_v56, %v483_v16  ;;  %v471_v40 = vld [vmem:[#allocation3 + $0x8d0] sm:$0xff] }
 0x1a6   :  { %v3262_v53 = vadd.f32 %v3261_v23, %v3149_v20  ;;  %v3151_v58 = vadd.f32 %v3150_v46, %v11427_v27  ;;  %3947 = vmatprep.mubr.bf16.mxu1 %v10722_v55  ;;  %4357 = vmatprep.subr.bf16.mxu1 %v9258_v26  ;;  %v10723_v26 = vld [vmem:[%s13666_s0 + $0x38] ss:$28 sps:$4 sm:$0xff]  }
 0x1a7   :  { %v3152_v18 = vpop.f32.mrf.mxu0  ;;  %v3265_v27 = vpop.f32.mrf.mxu1 }
 0x1a8   :  { %v11618_v62 = vadd.f32 %v3263_v0, %v3151_v58  ;;  %v3153_v5 = vadd.f32 %v3152_v18, %v11430_v34  ;;  %4021 = vmatpush1.bf16.msra.mxu0 %v9375_v41  ;;  %v4824_v17 = vmul.f32 0.2, %v3262_v53  ;;  %vm4696_vm1 = vcmp.gt.f32.partialorder %v3262_v53, 0.0  ;;  %v10725_v58 = vld [vmem:[%s13666_s0 + $0x74] ss:$28 sps:$4 sm:$0xff]  }
 0x1a9   :  { %v3154_v19 = vpop.f32.mrf.mxu0  ;;  %4022 = vmatprep.subr.bf16.mxu0 %v9368_v51  ;;  %v3267_v29 = vpop.f32.mrf.mxu1  ;;  %v9359_v41 = vcombine.low %v479_v56, %v483_v16  ;;  %v9352_v0 = vcombine.high %v471_v40, %v475_v24  ;;  %v463_v56 = vld [vmem:[#allocation3 + $0x890] sm:$0xff] }
 0x1aa   :  { %v3266_v28 = vadd.f32 %v3265_v27, %v3153_v5  ;;  %v3155_v20 = vadd.f32 %v3154_v19, %v11436_v45  ;;  %v4952_v45 = vsel %vm4696_vm1, %v3262_v53, %v4824_v17  ;;  %v10726_v53 = vld [vmem:[%s13666_s0 + $0x7c] ss:$28 sps:$4 sm:$0xff]   ;;  %vm4697_vm3 = vcmp.gt.f32.partialorder %v11618_v62, 0.0 }
 0x1ab   :  { %v3158_v23 = vpop.f32.mrf.mxu0  ;;  %3835 = vmatmul.mubr.bf16.gmra.mxu0 %v10723_v26  ;;  %v3271_v61 = vpop.f32.mrf.mxu1  ;;  %3948 = vmatmul.mubr.bf16.gmra.mxu1 %v10724_v1  ;;  %v467_v16 = vld [vmem:[#allocation3 + $0x8b0] sm:$0xff] }
 0x1ac   :  { %vm4704_vm2 = vcmp.gt.f32.partialorder %v3266_v28, 0.0  ;;  %v4832_v34 = vmul.f32 0.2, %v3266_v28  ;;  %v3159_v38 = vadd.f32 %v3158_v23, %v11443_v54  ;;  %4023 = vmatpush1.bf16.msra.mxu0 %v9367_v6  ;;  %v3268_v46 = vadd.f32 %v3267_v29, %v3155_v20  ;;  %3844 = vmatprep.mubr.bf16.mxu0 %v10725_v58  ;;  %v11647_v1 = vld [vmem:[#allocation3 + $0x870] sm:$0xff] }
 0x1ad   :  { %v3160_v51 = vpop.f32.mrf.mxu0  ;;  %4024 = vmatprep.subr.bf16.mxu0 %v9360_v32  ;;  %v4825_v54 = vmul.f32 0.2, %v11618_v62  ;;  %v3273_v5 = vpop.f32.mrf.mxu1  ;;  %3957 = vmatprep.mubr.bf16.mxu1 %v10726_v53  ;;  %v9344_v23 = vcombine.high %v463_v56, %v467_v16 }
 0x1ae   :  { %v4960_v15 = vsel %vm4704_vm2, %v3266_v28, %v4832_v34  ;;  %v3272_v55 = vadd.f32 %v3271_v61, %v3159_v38  ;;  %v3161_v18 = vadd.f32 %v3160_v51, %v11450_v3  ;;  %vm4705_vm4 = vcmp.gt.f32.partialorder %v3268_v46, 0.0  ;;  %v11645_v61 = vld [vmem:[#allocation3 + $0x850] sm:$0xff] }
 0x1af   :  { %v11640_v27 = vpack.c.bf16 %v4960_v15, %v4952_v45  ;;  %v4833_v6 = vmul.f32 0.2, %v3268_v46  ;;  %v3162_v17 = vpop.f32.mrf.mxu0  ;;  %v3275_v3 = vpop.f32.mrf.mxu1  ;;  %v9351_v28 = vcombine.low %v471_v40, %v475_v24  ;;  %v4953_v45 = vsel %vm4697_vm3, %v11618_v62, %v4825_v54  ;;  %v10727_v40 = vld [vmem:[%s13666_s0 + $0x70] ss:$28 sps:$4 sm:$0xff]  }
 0x1b0   :  { %v11642_v19 = vadd.f32 %v3273_v5, %v3161_v18  ;;  %v3163_v32 = vadd.f32 %v3162_v17, %v11453_v8  ;;  %4025 = vmatpush1.bf16.msra.mxu0 %v9359_v41  ;;  %v4840_v29 = vmul.f32 0.2, %v3272_v55  ;;  %vm4712_vm5 = vcmp.gt.f32.partialorder %v3272_v55, 0.0  ;;  %v10729_v18 = vld [vmem:[%s13666_s0 + $0xac] ss:$28 sps:$4 sm:$0xff]   ;;  %v447_v17 = vld [vmem:[#allocation3 + $0x810] sm:$0xff] }
 0x1b1   :  { %v3164_v20 = vpop.f32.mrf.mxu0  ;;  %4026 = vmatprep.subr.bf16.mxu0 %v9352_v0  ;;  %v4961_v26 = vsel %vm4705_vm4, %v3268_v46, %v4833_v6  ;;  %v3277_v38 = vpop.f32.mrf.mxu1  ;;  %v10728_v0 = vld [vmem:[%s13666_s0 + $0x78] ss:$28 sps:$4 sm:$0xff]  }
 0x1b2   :  { %v3276_v34 = vadd.f32 %v3275_v3, %v3163_v32  ;;  %v3165_v8 = vadd.f32 %v3164_v20, %v11459_v22  ;;  %v11656_v24 = vpack.c.bf16 %v4961_v26, %v4953_v45  ;;  %v9343_v22 = vcombine.low %v463_v56, %v467_v16  ;;  %v451_v32 = vld [vmem:[#allocation3 + $0x830] sm:$0xff] }
 0x1b3   :  { %v3168_v41 = vpop.f32.mrf.mxu0  ;;  %3845 = vmatmul.mubr.bf16.gmra.mxu0 %v10727_v40  ;;  %v3281_v58 = vpop.f32.mrf.mxu1  ;;  %3958 = vmatmul.mubr.bf16.gmra.mxu1 %v10728_v0  ;;  %v4968_v62 = vsel %vm4712_vm5, %v3272_v55, %v4840_v29  ;;  %v4841_v5 = vmul.f32 0.2, %v11642_v19  ;;  %v10730_v55 = vld [vmem:[%s13666_s0 + $0xb4] ss:$28 sps:$4 sm:$0xff]   ;;  %vm4713_vm7 = vcmp.gt.f32.partialorder %v11642_v19, 0.0  ;;  %v9335_v26 = vcombine.low %v11645_v61, %v11647_v1 }
 0x1b4   :  { %13733 = vst [vmem:[#allocation24_spill] sm:$0xff] %v11656_v24  ;;  %vm4720_vm6 = vcmp.gt.f32.partialorder %v3276_v34, 0.0  ;;  %v4848_v46 = vmul.f32 0.2, %v3276_v34  ;;  %v3169_v51 = vadd.f32 %v3168_v41, %v11466_v31  ;;  %4027 = vmatpush1.bf16.msra.mxu0 %v9351_v28  ;;  %v3278_v54 = vadd.f32 %v3277_v38, %v3165_v8  ;;  %3854 = vmatprep.mubr.bf16.mxu0 %v10729_v18 }
 0x1b5   :  { %v3170_v15 = vpop.f32.mrf.mxu0  ;;  %4028 = vmatprep.subr.bf16.mxu0 %v9344_v23  ;;  %v9336_v31 = vcombine.high %v11645_v61, %v11647_v1  ;;  %v3283_v16 = vpop.f32.mrf.mxu1  ;;  %3967 = vmatprep.mubr.bf16.mxu1 %v10730_v55  ;;  %v9328_v45 = vcombine.high %v447_v17, %v451_v32  ;;  %v10731_v61 = vld [vmem:[%s13666_s0 + $0xa8] ss:$28 sps:$4 sm:$0xff]  }
 0x1b6   :  { %v4976_v53 = vsel %vm4720_vm6, %v3276_v34, %v4848_v46  ;;  %v3282_v6 = vadd.f32 %v3281_v58, %v3169_v51  ;;  %v3171_v56 = vadd.f32 %v3170_v15, %v11473_v42  ;;  %vm4721_vm8 = vcmp.gt.f32.partialorder %v3278_v54, 0.0  ;;  %v11682_v46 = vld [vmem:[#allocation3 + $0xbd0] sm:$0xff] }
 0x1b7   :  { %v11675_v3 = vpack.c.bf16 %v4976_v53, %v4968_v62  ;;  %v4849_v28 = vmul.f32 0.2, %v3278_v54  ;;  %v3172_v29 = vpop.f32.mrf.mxu0  ;;  %v3285_v42 = vpop.f32.mrf.mxu1  ;;  %v11684_v51 = vld [vmem:[#allocation3 + $0xbf0] sm:$0xff] }
 0x1b8   :  { %v11677_v20 = vadd.f32 %v3283_v16, %v3171_v56  ;;  %v3173_v23 = vadd.f32 %v3172_v29, %v11476_v52  ;;  %4029 = vmatpush1.bf16.msra.mxu0 %v9343_v22  ;;  %v4856_v34 = vmul.f32 0.2, %v3282_v6  ;;  %vm4728_vm9 = vcmp.gt.f32.partialorder %v3282_v6, 0.0  ;;  %v10732_v15 = vld [vmem:[%s13666_s0 + $0xb0] ss:$28 sps:$4 sm:$0xff]  }
 0x1b9   :  { %v3174_v38 = vpop.f32.mrf.mxu0  ;;  %4030 = vmatprep.subr.bf16.mxu0 %v9336_v31  ;;  %v4977_v8 = vsel %vm4721_vm8, %v3278_v54, %v4849_v28  ;;  %v3287_v40 = vpop.f32.mrf.mxu1  ;;  %v4969_v52 = vsel %vm4713_vm7, %v11642_v19, %v4841_v5  ;;  %v10733_v5 = vld [vmem:[%s13666_s0 + $0xe4] ss:$28 sps:$4 sm:$0xff]   ;;  %v563_v28 = vld [vmem:[#allocation3 + $0xbb0] sm:$0xff] }
 0x1ba   :  { %v3286_v41 = vadd.f32 %v3285_v42, %v3173_v23  ;;  %v3175_v58 = vadd.f32 %v3174_v38, %v11482_v2  ;;  %v11693_v1 = vpack.c.bf16 %v4977_v8, %v4969_v52  ;;  %v9327_v2 = vcombine.low %v447_v17, %v451_v32  ;;  %v559_v32 = vld [vmem:[#allocation3 + $0xb90] sm:$0xff] }
 0x1bb   :  { %v3178_v0 = vpop.f32.mrf.mxu0  ;;  %3855 = vmatmul.mubr.bf16.gmra.mxu0 %v10731_v61  ;;  %v3291_v54 = vpop.f32.mrf.mxu1  ;;  %3968 = vmatmul.mubr.bf16.gmra.mxu1 %v10732_v15  ;;  %v4984_v19 = vsel %vm4728_vm9, %v3282_v6, %v4856_v34  ;;  %v4857_v53 = vmul.f32 0.2, %v11677_v20  ;;  %v10734_v6 = vld [vmem:[%s13666_s0 + $0xec] ss:$28 sps:$4 sm:$0xff]   ;;  %vm4729_vm11 = vcmp.gt.f32.partialorder %v11677_v20, 0.0  ;;  %v9447_v38 = vcombine.low %v11682_v46, %v11684_v51  ;;  %v11721_v61 = vld [vmem:[#allocation3 + $0xb70] sm:$0xff] }
 0x1bc   :  { %vm4736_vm10 = vcmp.gt.f32.partialorder %v3286_v41, 0.0  ;;  %v4864_v22 = vmul.f32 0.2, %v3286_v41  ;;  %v3179_v62 = vadd.f32 %v3178_v0, %v11489_v14  ;;  %4031 = vmatpush1.bf16.msra.mxu0 %v9335_v26  ;;  %v3288_v18 = vadd.f32 %v3287_v40, %v3175_v58  ;;  %3864 = vmatprep.mubr.bf16.mxu0 %v10733_v5  ;;  %v11719_v0 = vld [vmem:[#allocation3 + $0xb50] sm:$0xff] }
 0x1bd   :  { %v3180_v31 = vpop.f32.mrf.mxu0  ;;  %4032 = vmatprep.subr.bf16.mxu0 %v9328_v45  ;;  %v9448_v14 = vcombine.high %v11682_v46, %v11684_v51  ;;  %v3293_v17 = vpop.f32.mrf.mxu1  ;;  %3977 = vmatprep.mubr.bf16.mxu1 %v10734_v6  ;;  %v10735_v46 = vld [vmem:[%s13666_s0 + $0xe0] ss:$28 sps:$4 sm:$0xff]   ;;  %v543_v6 = vld [vmem:[#allocation3 + $0xb10] sm:$0xff] }
 0x1be   :  { %v4992_v56 = vsel %vm4736_vm10, %v3286_v41, %v4864_v22  ;;  %v3292_v16 = vadd.f32 %v3291_v54, %v3179_v62  ;;  %v3181_v55 = vadd.f32 %v3180_v31, %v11496_v25  ;;  %vm4737_vm12 = vcmp.gt.f32.partialorder %v3288_v18, 0.0  ;;  %v10737_v5 = vld [vmem:[%s13666_s0 + $0x11c] ss:$28 sps:$4 sm:$0xff]  }
 0x1bf   :  { %v11712_v29 = vpack.c.bf16 %v4992_v56, %v4984_v19  ;;  %v4865_v23 = vmul.f32 0.2, %v3288_v18  ;;  %v3182_v42 = vpop.f32.mrf.mxu0  ;;  %v3295_v25 = vpop.f32.mrf.mxu1  ;;  %v9440_v41 = vcombine.high %v559_v32, %v563_v28  ;;  %v10736_v19 = vld [vmem:[%s13666_s0 + $0xe8] ss:$28 sps:$4 sm:$0xff]  }
 0x1c0   :  { %v11714_v26 = vadd.f32 %v3293_v17, %v3181_v55  ;;  %v3183_v34 = vadd.f32 %v3182_v42, %v11499_v35  ;;  %4033 = vmatpush1.bf16.msra.mxu0 %v9327_v2  ;;  %v4872_v45 = vmul.f32 0.2, %v3292_v16  ;;  %vm4744_vm13 = vcmp.gt.f32.partialorder %v3292_v16, 0.0 }
 0x1c1   :  { %v3184_v8 = vpop.f32.mrf.mxu0  ;;  %4034 = vmatprep.subr.bf16.mxu0 %v9448_v14  ;;  %v4993_v40 = vsel %vm4737_vm12, %v3288_v18, %v4865_v23  ;;  %v3297_v58 = vpop.f32.mrf.mxu1  ;;  %v4985_v35 = vsel %vm4729_vm11, %v11677_v20, %v4857_v53 }
 0x1c2   :  { %v3296_v52 = vadd.f32 %v3295_v25, %v3183_v34  ;;  %v3185_v22 = vadd.f32 %v3184_v8, %v11505_v49  ;;  %v11730_v51 = vpack.c.bf16 %v4993_v40, %v4985_v35  ;;  %v9439_v49 = vcombine.low %v559_v32, %v563_v28  ;;  %v547_v32 = vld [vmem:[#allocation3 + $0xb30] sm:$0xff] }
 0x1c3   :  { %v3188_v62 = vpop.f32.mrf.mxu0  ;;  %3865 = vmatmul.mubr.bf16.gmra.mxu0 %v10735_v46  ;;  %v3301_v2 = vpop.f32.mrf.mxu1  ;;  %3978 = vmatmul.mubr.bf16.gmra.mxu1 %v10736_v19  ;;  %v5000_v20 = vsel %vm4744_vm13, %v3292_v16, %v4872_v45  ;;  %v4873_v14 = vmul.f32 0.2, %v11714_v26  ;;  %v10738_v16 = vld [vmem:[%s13666_s0 + $0x124] ss:$28 sps:$4 sm:$0xff]   ;;  %vm4745_vm15 = vcmp.gt.f32.partialorder %v11714_v26, 0.0  ;;  %v11756_v35 = vld [vmem:[#allocation3 + $0xad0] sm:$0xff] }
 0x1c4   :  { %vm4752_vm14 = vcmp.gt.f32.partialorder %v3296_v52, 0.0  ;;  %v4880_v54 = vmul.f32 0.2, %v3296_v52  ;;  %v3189_v15 = vadd.f32 %v3188_v62, %v11512_v60  ;;  %4035 = vmatpush2.bf16.msra.mxu0 %v9447_v38  ;;  %v3298_v18 = vadd.f32 %v3297_v58, %v3185_v22  ;;  %3874 = vmatprep.mubr.bf16.mxu0 %v10737_v5  ;;  %v11758_v22 = vld [vmem:[#allocation3 + $0xaf0] sm:$0xff]  ;;  %v10740_v19 = vld [vmem:[%s13666_s0 + $0x120] ss:$28 sps:$4 sm:$0xff]  }
 0x1c5   :  { %v3190_v31 = vpop.f32.mrf.mxu0  ;;  %4036 = vmatprep.subr.bf16.mxu0 %v9440_v41  ;;  %v9432_v60 = vcombine.high %v11719_v0, %v11721_v61  ;;  %v3303_v17 = vpop.f32.mrf.mxu1  ;;  %3987 = vmatprep.mubr.bf16.mxu1 %v10738_v16  ;;  %v9431_v38 = vcombine.low %v11719_v0, %v11721_v61  ;;  %v9424_v41 = vcombine.high %v543_v6, %v547_v32  ;;  %v10739_v0 = vld [vmem:[%s13666_s0 + $0x118] ss:$28 sps:$4 sm:$0xff]  }
 0x1c6   :  { %v5008_v53 = vsel %vm4752_vm14, %v3296_v52, %v4880_v54  ;;  %v3302_v56 = vadd.f32 %v3301_v2, %v3189_v15  ;;  %v3191_v55 = vadd.f32 %v3190_v31, %v11519_v13  ;;  %vm4753_vm1 = vcmp.gt.f32.partialorder %v3298_v18, 0.0 }
 0x1c7   :  { %v11749_v28 = vpack.c.bf16 %v5008_v53, %v5000_v20  ;;  %v4881_v23 = vmul.f32 0.2, %v3298_v18  ;;  %v3192_v42 = vpop.f32.mrf.mxu0  ;;  %v3305_v13 = vpop.f32.mrf.mxu1 }
 0x1c8   :  { %v11751_v34 = vadd.f32 %v3303_v17, %v3191_v55  ;;  %v3193_v25 = vadd.f32 %v3192_v42, %v11522_v21  ;;  %4037 = vmatpush2.bf16.msra.mxu0 %v9439_v49  ;;  %v4888_v45 = vmul.f32 0.2, %v3302_v56  ;;  %vm4760_vm2 = vcmp.gt.f32.partialorder %v3302_v56, 0.0  ;;  %v527_v55 = vld [vmem:[#allocation3 + $0xa90] sm:$0xff] }
 0x1c9   :  { %13734 = vst [vmem:[#allocation25_spill] sm:$0xff] %v11749_v28  ;;  %v3194_v8 = vpop.f32.mrf.mxu0  ;;  %4038 = vmatprep.subr.bf16.mxu0 %v9432_v60  ;;  %v5009_v40 = vsel %vm4753_vm1, %v3298_v18, %v4881_v23  ;;  %v3307_v58 = vpop.f32.mrf.mxu1  ;;  %v5001_v21 = vsel %vm4745_vm15, %v11714_v26, %v4873_v14  ;;  %v10741_v18 = vld [vmem:[%s13666_s0 + $0x154] ss:$28 sps:$4 sm:$0xff]  }
 0x1ca   :  { %v3306_v52 = vadd.f32 %v3305_v13, %v3193_v25  ;;  %v3195_v62 = vadd.f32 %v3194_v8, %v11528_v37  ;;  %v11767_v61 = vpack.c.bf16 %v5009_v40, %v5001_v21  ;;  %v9423_v37 = vcombine.low %v543_v6, %v547_v32  ;;  %v531_v17 = vld [vmem:[#allocation3 + $0xab0] sm:$0xff] }
 0x1cb   :  { %v3198_v46 = vpop.f32.mrf.mxu0  ;;  %3875 = vmatmul.mubr.bf16.gmra.mxu0 %v10739_v0  ;;  %v3311_v2 = vpop.f32.mrf.mxu1  ;;  %3988 = vmatmul.mubr.bf16.gmra.mxu1 %v10740_v19  ;;  %v5016_v26 = vsel %vm4760_vm2, %v3302_v56, %v4888_v45  ;;  %v4889_v31 = vmul.f32 0.2, %v11751_v34  ;;  %v10742_v56 = vld [vmem:[%s13666_s0 + $0x15c] ss:$28 sps:$4 sm:$0xff]   ;;  %vm4761_vm4 = vcmp.gt.f32.partialorder %v11751_v34, 0.0  ;;  %v9415_v25 = vcombine.low %v11756_v35, %v11758_v22 }
 0x1cc   :  { %13735 = vst [vmem:[#allocation26_spill] sm:$0xff] %v11767_v61  ;;  %vm4768_vm3 = vcmp.gt.f32.partialorder %v3306_v52, 0.0  ;;  %v4896_v54 = vmul.f32 0.2, %v3306_v52  ;;  %v3199_v15 = vadd.f32 %v3198_v46, %v11535_v50  ;;  %4039 = vmatpush2.bf16.msra.mxu0 %v9431_v38  ;;  %v3308_v49 = vadd.f32 %v3307_v58, %v3195_v62  ;;  %3884 = vmatprep.mubr.bf16.mxu0 %v10741_v18  ;;  %v11795_v58 = vld [vmem:[#allocation3 + $0xa70] sm:$0xff]  ;;  %v488_v61 = vld [vmem:[#allocation3 + $0x958] sm:$0xff] }
 0x1cd   :  { %v3200_v20 = vpop.f32.mrf.mxu0  ;;  %4040 = vmatprep.subr.bf16.mxu0 %v9424_v41  ;;  %v9416_v50 = vcombine.high %v11756_v35, %v11758_v22  ;;  %v3313_v53 = vpop.f32.mrf.mxu1  ;;  %3997 = vmatprep.mubr.bf16.mxu1 %v10742_v56  ;;  %v9408_v45 = vcombine.high %v527_v55, %v531_v17  ;;  %v10743_v35 = vld [vmem:[%s13666_s0 + $0x150] ss:$28 sps:$4 sm:$0xff]  }
 0x1ce   :  { %v5024_v5 = vsel %vm4768_vm3, %v3306_v52, %v4896_v54  ;;  %v3312_v60 = vadd.f32 %v3311_v2, %v3199_v15  ;;  %v3201_v14 = vadd.f32 %v3200_v20, %v11542_v4  ;;  %vm4769_vm5 = vcmp.gt.f32.partialorder %v3308_v49, 0.0  ;;  %v11793_v52 = vld [vmem:[#allocation3 + $0xa50] sm:$0xff] }
 0x1cf   :  { %v11786_v16 = vpack.c.bf16 %v5024_v5, %v5016_v26  ;;  %v4897_v6 = vmul.f32 0.2, %v3308_v49  ;;  %v3202_v32 = vpop.f32.mrf.mxu0  ;;  %v3315_v4 = vpop.f32.mrf.mxu1  ;;  %v10744_v15 = vld [vmem:[%s13666_s0 + $0x158] ss:$28 sps:$4 sm:$0xff]  }
 0x1d0   :  { %v11788_v23 = vadd.f32 %v3313_v53, %v3201_v14  ;;  %v3203_v42 = vadd.f32 %v3202_v32, %v11545_v11  ;;  %4041 = vmatpush2.bf16.msra.mxu0 %v9423_v37  ;;  %v4904_v13 = vmul.f32 0.2, %v3312_v60  ;;  %vm4776_vm6 = vcmp.gt.f32.partialorder %v3312_v60, 0.0  ;;  %v10745_v37 = vld [vmem:[%s13666_s0 + $0x18c] ss:$28 sps:$4 sm:$0xff]   ;;  %v11822_v5 = vld [vmem:[#allocation3 + $0xa10] sm:$0xff] }
 0x1d1   :  { %13736 = vst [vmem:[#allocation27_spill] sm:$0xff] %v11786_v16  ;;  %v3204_v38 = vpop.f32.mrf.mxu0  ;;  %4042 = vmatprep.subr.bf16.mxu0 %v9416_v50  ;;  %v5025_v8 = vsel %vm4769_vm5, %v3308_v49, %v4897_v6  ;;  %v3317_v40 = vpop.f32.mrf.mxu1  ;;  %v5017_v11 = vsel %vm4761_vm4, %v11751_v34, %v4889_v31  ;;  %v10746_v31 = vld [vmem:[%s13666_s0 + $0x194] ss:$28 sps:$4 sm:$0xff]   ;;  %v9399_v6 = vcombine.low %v11793_v52, %v11795_v58 }
 0x1d2   :  { %v3316_v41 = vadd.f32 %v3315_v4, %v3203_v42  ;;  %v3205_v21 = vadd.f32 %v3204_v38, %v11551_v30  ;;  %v11804_v22 = vpack.c.bf16 %v5025_v8, %v5017_v11  ;;  %v9407_v30 = vcombine.low %v527_v55, %v531_v17  ;;  %v11839_v38 = vld [vmem:[#allocation3 + $0x1f8] sm:$0xff] }
 0x1d3   :  { %v3208_v62 = vpop.f32.mrf.mxu0  ;;  %3885 = vmatmul.mubr.bf16.gmra.mxu0 %v10743_v35  ;;  %v3321_v54 = vpop.f32.mrf.mxu1  ;;  %3998 = vmatmul.mubr.bf16.gmra.mxu1 %v10744_v15  ;;  %v5032_v34 = vsel %vm4776_vm6, %v3312_v60, %v4904_v13  ;;  %v4905_v26 = vmul.f32 0.2, %v11788_v23  ;;  %v11824_v60 = vld [vmem:[#allocation3 + $0xa30] sm:$0xff]  ;;  %vm4777_vm8 = vcmp.gt.f32.partialorder %v11788_v23, 0.0  ;;  %v11837_v13 = vld [vmem:[#allocation3 + $0x1d8] sm:$0xff] }
 0x1d4   :  { %13737 = vst [vmem:[#allocation28_spill] sm:$0xff] %v11804_v22  ;;  %vm4784_vm7 = vcmp.gt.f32.partialorder %v3316_v41, 0.0  ;;  %v4912_v46 = vmul.f32 0.2, %v3316_v41  ;;  %v3209_v0 = vadd.f32 %v3208_v62, %v11558_v44  ;;  %4043 = vmatpush2.bf16.msra.mxu0 %v9415_v25  ;;  %v3318_v2 = vadd.f32 %v3317_v40, %v3205_v21  ;;  %3894 = vmatprep.mubr.bf16.mxu0 %v10745_v37  ;;  %v504_v22 = vld [vmem:[#allocation3 + $0x9d8] sm:$0xff] }
 0x1d5   :  { %v3210_v19 = vpop.f32.mrf.mxu0  ;;  %4044 = vmatprep.subr.bf16.mxu0 %v9408_v45  ;;  %v9400_v44 = vcombine.high %v11793_v52, %v11795_v58  ;;  %v3323_v50 = vpop.f32.mrf.mxu1  ;;  %4007 = vmatprep.mubr.bf16.mxu1 %v10746_v31  ;;  %v9392_v4 = vcombine.high %v11822_v5, %v11824_v60  ;;  %v13677_v25 = vsub.s32 2, %v11383_v43  ;;  %v10747_v58 = vld [vmem:[%s13666_s0 + $0x188] ss:$28 sps:$4 sm:$0xff]   ;;  %v9391_v11 = vcombine.low %v11822_v5, %v11824_v60  ;;  %v11878_v60 = vld [vmem:[#allocation3 + $0x598] sm:$0xff] }
 0x1d6   :  { %v5040_v49 = vsel %vm4784_vm7, %v3316_v41, %v4912_v46  ;;  %v3322_v20 = vadd.f32 %v3321_v54, %v3209_v0  ;;  %v3211_v18 = vadd.f32 %v3210_v19, %v11565_v63  ;;  %vm4785_vm9 = vcmp.gt.f32.partialorder %v3318_v2, 0.0 }
 0x1d7   :  { %v11827_v14 = vpack.c.bf16 %v5040_v49, %v5032_v34  ;;  %v4913_v53 = vmul.f32 0.2, %v3318_v2  ;;  %v3212_v56 = vpop.f32.mrf.mxu0  ;;  %v3325_v17 = vpop.f32.mrf.mxu1  ;;  %v5033_v41 = vsel %vm4777_vm8, %v11788_v23, %v4905_v26  ;;  %v9130_v23 = vcombine.high %v11837_v13, %v11839_v38 }
 0x1d8   :  { %v11829_v55 = vadd.f32 %v3323_v50, %v3211_v18  ;;  %v3213_v63 = vadd.f32 %v3212_v56, %v11568_v10  ;;  %4045 = vmatpush2.bf16.msra.mxu0 %v9407_v30  ;;  %v4920_v32 = vmul.f32 0.2, %v3322_v20  ;;  %vm4792_vm10 = vcmp.gt.f32.partialorder %v3322_v20, 0.0  ;;  %v10749_v30 = vld [vmem:[%s13666_s0 + $0x14] ss:$28 sps:$4 sm:$0xff]   ;;  %v11873_v18 = vld [vmem:[#allocation3 + $0x1b8] sm:$0xff] }
 0x1d9   :  { %13738 = vst [vmem:[#allocation29_spill] sm:$0xff] %v11827_v14  ;;  %v3214_v42 = vpop.f32.mrf.mxu0  ;;  %4046 = vmatprep.subr.bf16.mxu0 %v9400_v44  ;;  %v5041_v45 = vsel %vm4785_vm9, %v3318_v2, %v4913_v53  ;;  %v3327_v8 = vpop.f32.mrf.mxu1  ;;  %v13676_v2 = vsub.s32 3, %v11383_v43  ;;  %v11880_v53 = vld [vmem:[#allocation3 + $0x5b8] sm:$0xff] }
 0x1da   :  { %v3326_v10 = vadd.f32 %v3325_v17, %v3213_v63  ;;  %v3215_v40 = vadd.f32 %v3214_v42, %v11574_v36  ;;  %v11850_v21 = vpack.c.bf16 %v5041_v45, %v5033_v41  ;;  %v10748_v36 = vld [vmem:[%s13666_s0 + $0x190] ss:$28 sps:$4 sm:$0xff]   ;;  %v5048_v0 = vsel %vm4792_vm10, %v3322_v20, %v4920_v32  ;;  %v11871_v20 = vld [vmem:[#allocation3 + $0x198] sm:$0xff] }
 0x1db   :  { %v3218_v52 = vpop.f32.mrf.mxu0  ;;  %3895 = vmatmul.mubr.bf16.gmra.mxu0 %v10747_v58  ;;  %v3331_v46 = vpop.f32.mrf.mxu1  ;;  %4008 = vmatmul.mubr.bf16.gmra.mxu1 %v10748_v36  ;;  %v4921_v19 = vmul.f32 0.2, %v11829_v55  ;;  %vm4793_vm12 = vcmp.gt.f32.partialorder %v11829_v55, 0.0  ;;  %v9129_v17 = vcombine.low %v11837_v13, %v11839_v38  ;;  %v9122_v45 = vcombine.high %v11871_v20, %v11873_v18  ;;  %v11904_v41 = vld [vmem:[#allocation3 + $0x578] sm:$0xff] }
 0x1dc   :  { %13739 = vst [vmem:[#allocation30_spill] sm:$0xff] %v11850_v21  ;;  %vm4800_vm11 = vcmp.gt.f32.partialorder %v3326_v10, 0.0  ;;  %v4928_v62 = vmul.f32 0.2, %v3326_v10  ;;  %v3219_v35 = vadd.f32 %v3218_v52, %v11581_v48  ;;  %4047 = vmatpush2.bf16.msra.mxu0 %v9399_v6  ;;  %v3328_v54 = vadd.f32 %v3327_v8, %v3215_v40  ;;  %4050 = vmatprep.mubr.bf16.mxu0 %v10749_v30  ;;  %v10750_v48 = vld [vmem:[#allocation6] sm:$0xff] }
 0x1dd   :  { %v3220_v15 = vpop.f32.mrf.mxu0  ;;  %4048 = vmatprep.subr.bf16.mxu0 %v9392_v4  ;;  %v11864_v34 = vrot.slane %v10750_v48, %v13677_v25  ;;  %v3333_v49 = vpop.f32.mrf.mxu1  ;;  %4163 = vmatprep.mubr.bf16.mxu1 %v13678_v9  ;;  %v9257_v6 = vcombine.low %v11593_v7, %v11595_v12  ;;  %v11891_v4 = vrot.slane %v10750_v48, %v13676_v2  ;;  %v11902_v12 = vld [vmem:[#allocation3 + $0x558] sm:$0xff] }
 0x1de   :  { %v5056_v37 = vsel %vm4800_vm11, %v3326_v10, %v4928_v62  ;;  %v3332_v44 = vadd.f32 %v3331_v46, %v3219_v35  ;;  %v3221_v26 = vadd.f32 %v3220_v15, %v11590_v59  ;;  %vm4801_vm13 = vcmp.gt.f32.partialorder %v3328_v54, 0.0  ;;  %v11895_v10 = vld [vmem:[#allocation3 + $0x158] sm:$0xff] }
 0x1df   :  { %v11876_v50 = vpack.c.bf16 %v5056_v37, %v5048_v0  ;;  %v4929_v31 = vmul.f32 0.2, %v3328_v54  ;;  %v3222_v5 = vpop.f32.mrf.mxu0  ;;  %v3335_v63 = vpop.f32.mrf.mxu1  ;;  %v9250_v7 = vcombine.high %v11878_v60, %v11880_v53  ;;  %v5049_v40 = vsel %vm4793_vm12, %v11829_v55, %v4921_v19 }
 0x1e0   :  { %v11882_v56 = vadd.f32 %v3333_v49, %v3221_v26  ;;  %v3223_v59 = vadd.f32 %v3222_v5, %v11597_v33  ;;  %4049 = vmatpush2.bf16.msra.mxu0 %v9391_v11  ;;  %v4936_v32 = vmul.f32 0.2, %v3332_v44  ;;  %v11897_v33 = vld [vmem:[#allocation3 + $0x178] sm:$0xff]  ;;  %vm4808_vm14 = vcmp.gt.f32.partialorder %v3332_v44, 0.0  ;;  %v10751_v11 = vld [vmem:[%s13666_s0 + $0x10] ss:$28 sps:$4 sm:$0xff]  }
 0x1e1   :  { %13740 = vst [vmem:[#allocation31_spill] sm:$0xff] %v11876_v50  ;;  %v3224_v42 = vpop.f32.mrf.mxu0  ;;  %4244 = vmatprep.subr.bf16.mxu0 %v9130_v23  ;;  %v5057_v8 = vsel %vm4801_vm13, %v3328_v54, %v4929_v31  ;;  %v3337_v38 = vpop.f32.mrf.mxu1  ;;  %v9121_v62 = vcombine.low %v11871_v20, %v11873_v18  ;;  %v9249_v35 = vcombine.low %v11878_v60, %v11880_v53  ;;  %v224_v18 = vld [vmem:[#allocation3 + $0x118] sm:$0xff] }
 0x1e2   :  { %v3336_v13 = vadd.f32 %v3335_v63, %v3223_v59  ;;  %v3225_v52 = vadd.f32 %v3224_v42, %v11605_v39  ;;  %v11917_v46 = vpack.c.bf16 %v5057_v8, %v5049_v40  ;;  %v10752_v39 = vld [vmem:[%s13666_s0 + $0x18] ss:$28 sps:$4 sm:$0xff]   ;;  %v9114_v0 = vcombine.high %v11895_v10, %v11897_v33 }
 0x1e3   :  { %v3374_v58 = vpop.f32.mrf.mxu0  ;;  %4051 = vmatmul.mubr.bf16.vlgmr.msra.gmra.mxu0 %v10751_v11  ;;  %v3487_v23 = vpop.f32.mrf.mxu1  ;;  %9475 = vmatmul.mubr.msk.bf16.vlgmr.msra.gmra.mxu1 %vm2863_vm0, %v10752_v39  ;;  %v5064_v54 = vsel %vm4808_vm14, %v3332_v44, %v4936_v32  ;;  %v4937_v15 = vmul.f32 0.2, %v11882_v56  ;;  %v9242_v19 = vcombine.high %v11902_v12, %v11904_v41  ;;  %vm4809_vm1 = vcmp.gt.f32.partialorder %v11882_v56, 0.0  ;;  %v10753_v44 = vld [vmem:[%s13666_s0 + $0x4c] ss:$28 sps:$4 sm:$0xff]   ;;  %v228_v31 = vld [vmem:[#allocation3 + $0x138] sm:$0xff] }
 0x1e4   :  { %13741 = vst [vmem:[#allocation32_spill] sm:$0xff] %v11917_v46  ;;  %vm4816_vm15 = vcmp.gt.f32.partialorder %v3336_v13, 0.0  ;;  %v4944_v36 = vmul.f32 0.2, %v3336_v13  ;;  %v3375_v55 = vadd.f32 %v3374_v58, %v11864_v34  ;;  %4245 = vmatpush1.bf16.msra.mxu0 %v9129_v17  ;;  %v3338_v30 = vadd.f32 %v3337_v38, %v3225_v52  ;;  %4358 = vmatpush1.bf16.msra.mxu1 %v9257_v6  ;;  %v352_v59 = vld [vmem:[#allocation3 + $0x518] sm:$0xff] }
 0x1e5   :  { %v3376_v48 = vpop.f32.mrf.mxu0  ;;  %4246 = vmatprep.subr.bf16.mxu0 %v9122_v45  ;;  %v3489_v20 = vpop.f32.mrf.mxu1  ;;  %4359 = vmatprep.subr.bf16.mxu1 %v9250_v7  ;;  %v356_v63 = vld [vmem:[#allocation3 + $0x538] sm:$0xff]  ;;  %v9113_v42 = vcombine.low %v11895_v10, %v11897_v33  ;;  %v9241_v45 = vcombine.low %v11902_v12, %v11904_v41  ;;  %v5065_v38 = vsel %vm4809_vm1, %v11882_v56, %v4937_v15  ;;  %v10755_v39 = vld [vmem:[%s13666_s0 + $0x50] ss:$28 sps:$4 sm:$0xff]  }
 0x1e6   :  { %v5072_v37 = vsel %vm4816_vm15, %v3336_v13, %v4944_v36  ;;  %v11932_v26 = vadd.f32 %v3487_v23, %v3375_v55  ;;  %v3377_v49 = vadd.f32 %v3376_v48, %v11891_v4  ;;  %4060 = vmatprep.mubr.bf16.mxu0 %v10753_v44  ;;  %vm4817_vm2 = vcmp.gt.f32.partialorder %v3338_v30, 0.0  ;;  %4173 = vmatprep.mubr.bf16.mxu1 %v13678_v9  ;;  %v216_v33 = vld [vmem:[#allocation3 + $0xd8] sm:$0xff] }
 0x1e7   :  { %v11938_v5 = vpack.c.bf16 %v5072_v37, %v5064_v54  ;;  %v4945_v60 = vmul.f32 0.2, %v3338_v30  ;;  %v3378_v53 = vpop.f32.mrf.mxu0  ;;  %v3491_v32 = vpop.f32.mrf.mxu1  ;;  %v9106_v13 = vcombine.high %v224_v18, %v228_v31  ;;  %v9234_v10 = vcombine.high %v352_v59, %v356_v63  ;;  %v220_v11 = vld [vmem:[#allocation3 + $0xf8] sm:$0xff] }
 0x1e8   :  { %v11941_v17 = vadd.f32 %v3489_v20, %v3377_v49  ;;  %v3379_v6 = vadd.f32 %v3378_v53, %v11864_v34  ;;  %4247 = vmatpush1.bf16.msra.mxu0 %v9121_v62  ;;  %4360 = vmatpush1.bf16.msra.mxu1 %v9249_v35  ;;  %v10754_v62 = vld [vmem:[%s13666_s0 + $0x48] ss:$28 sps:$4 sm:$0xff]   ;;  %v344_v56 = vld [vmem:[#allocation3 + $0x4d8] sm:$0xff]  ;;  %v9233_v15 = vcombine.low %v352_v59, %v356_v63 }
 0x1e9   :  { %13742 = vst [vmem:[#allocation33_spill] sm:$0xff] %v11938_v5  ;;  %v3380_v8 = vpop.f32.mrf.mxu0  ;;  %4248 = vmatprep.subr.bf16.mxu0 %v9114_v0  ;;  %v5073_v7 = vsel %vm4817_vm2, %v3338_v30, %v4945_v60  ;;  %v3493_v58 = vpop.f32.mrf.mxu1  ;;  %4361 = vmatprep.subr.bf16.mxu1 %v9242_v19  ;;  %v348_v35 = vld [vmem:[#allocation3 + $0x4f8] sm:$0xff]  ;;  %v9105_v0 = vcombine.low %v224_v18, %v228_v31 }
 0x1ea   :  { %v11952_v40 = vadd.f32 %v3491_v32, %v3379_v6  ;;  %v3381_v52 = vadd.f32 %v3380_v8, %v11891_v4  ;;  %v11955_v12 = vpack.c.bf16 %v5073_v7, %v5065_v38  ;;  %v9098_v30 = vcombine.high %v216_v33, %v220_v11  ;;  %v10756_v49 = vld [vmem:[%s13666_s0 + $0x84] ss:$28 sps:$4 sm:$0xff]  }
 0x1eb   :  { %v3384_v41 = vpop.f32.mrf.mxu0  ;;  %4061 = vmatmul.mubr.bf16.gmra.mxu0 %v10754_v62  ;;  %v3497_v23 = vpop.f32.mrf.mxu1  ;;  %9476 = vmatmul.mubr.msk.bf16.gmra.mxu1 %vm2863_vm0, %v10755_v39  ;;  %v9226_v20 = vcombine.high %v344_v56, %v348_v35  ;;  %v208_v44 = vld [vmem:[#allocation3 + $0x98] sm:$0xff]  ;;  %v9097_v32 = vcombine.low %v216_v33, %v220_v11 }
 0x1ec   :  { %13743 = vst [vmem:[#allocation34_spill] sm:$0xff] %v11955_v12  ;;  %v11960_v36 = vadd.f32 %v3493_v58, %v3381_v52  ;;  %v3385_v55 = vadd.f32 %v3384_v41, %v11864_v34  ;;  %4249 = vmatpush1.bf16.msra.mxu0 %v9113_v42  ;;  %4362 = vmatpush1.bf16.msra.mxu1 %v9241_v45  ;;  %v212_v60 = vld [vmem:[#allocation3 + $0xb8] sm:$0xff] }
 0x1ed   :  { %v3386_v54 = vpop.f32.mrf.mxu0  ;;  %4250 = vmatprep.subr.bf16.mxu0 %v9106_v13  ;;  %v3499_v37 = vpop.f32.mrf.mxu1  ;;  %4363 = vmatprep.subr.bf16.mxu1 %v9234_v10  ;;  %v336_v31 = vld [vmem:[#allocation3 + $0x498] sm:$0xff]  ;;  %v9225_v45 = vcombine.low %v344_v56, %v348_v35  ;;  %v9090_v8 = vcombine.high %v208_v44, %v212_v60  ;;  %v9089_v39 = vcombine.low %v208_v44, %v212_v60 }
 0x1ee   :  { %v11967_v48 = vadd.f32 %v3497_v23, %v3385_v55  ;;  %v3387_v19 = vadd.f32 %v3386_v54, %v11891_v4  ;;  %4070 = vmatprep.mubr.bf16.mxu0 %v10756_v49  ;;  %4183 = vmatprep.mubr.bf16.mxu1 %v13678_v9  ;;  %v340_v53 = vld [vmem:[#allocation3 + $0x4b8] sm:$0xff]  ;;  %v10758_v23 = vld [vmem:[%s13666_s0 + $0x88] ss:$28 sps:$4 sm:$0xff]  }
 0x1ef   :  { %v3388_v18 = vpop.f32.mrf.mxu0  ;;  %v3501_v6 = vpop.f32.mrf.mxu1  ;;  %v9218_v52 = vcombine.high %v336_v31, %v340_v53  ;;  %v200_v58 = vld [vmem:[#allocation3 + $0x58] sm:$0xff]  ;;  %v9217_v54 = vcombine.low %v336_v31, %v340_v53 }
 0x1f0   :  { %v11974_v59 = vadd.f32 %v3499_v37, %v3387_v19  ;;  %v3389_v63 = vadd.f32 %v3388_v18, %v11864_v34  ;;  %4251 = vmatpush1.bf16.msra.mxu0 %v9105_v0  ;;  %4364 = vmatpush1.bf16.msra.mxu1 %v9233_v15  ;;  %v204_v10 = vld [vmem:[#allocation3 + $0x78] sm:$0xff] }
 0x1f1   :  { %v3390_v42 = vpop.f32.mrf.mxu0  ;;  %4252 = vmatprep.subr.bf16.mxu0 %v9098_v30  ;;  %v3503_v7 = vpop.f32.mrf.mxu1  ;;  %4365 = vmatprep.subr.bf16.mxu1 %v9226_v20  ;;  %v10757_v62 = vld [vmem:[%s13666_s0 + $0x80] ss:$28 sps:$4 sm:$0xff]   ;;  %v9082_v15 = vcombine.high %v200_v58, %v204_v10 }
 0x1f2   :  { %v11977_v13 = vadd.f32 %v3501_v6, %v3389_v63  ;;  %v3391_v38 = vadd.f32 %v3390_v42, %v11891_v4  ;;  %v328_v33 = vld [vmem:[#allocation3 + $0x458] sm:$0xff]  ;;  %v9081_v42 = vcombine.low %v200_v58, %v204_v10 }
 0x1f3   :  { %v3394_v41 = vpop.f32.mrf.mxu0  ;;  %4071 = vmatmul.mubr.bf16.gmra.mxu0 %v10757_v62  ;;  %v332_v11 = vld [vmem:[#allocation3 + $0x478] sm:$0xff]  ;;  %v3507_v35 = vpop.f32.mrf.mxu1  ;;  %9477 = vmatmul.mubr.msk.bf16.gmra.mxu1 %vm2863_vm0, %v10758_v23 }
 0x1f4   :  { %v11983_v55 = vadd.f32 %v3503_v7, %v3391_v38  ;;  %v3395_v56 = vadd.f32 %v3394_v41, %v11864_v34  ;;  %4253 = vmatpush1.bf16.msra.mxu0 %v9097_v32  ;;  %4366 = vmatpush1.bf16.msra.mxu1 %v9225_v45  ;;  %v10759_v49 = vld [vmem:[%s13666_s0 + $0xbc] ss:$28 sps:$4 sm:$0xff]   ;;  %v9210_v20 = vcombine.high %v328_v33, %v332_v11 }
 0x1f5   :  { %v3396_v0 = vpop.f32.mrf.mxu0  ;;  %4254 = vmatprep.subr.bf16.mxu0 %v9090_v8  ;;  %v3509_v37 = vpop.f32.mrf.mxu1  ;;  %4367 = vmatprep.subr.bf16.mxu1 %v9218_v52  ;;  %v192_v18 = vld [vmem:[#allocation3 + $0x18] sm:$0xff]  ;;  %v9209_v8 = vcombine.low %v328_v33, %v332_v11 }
 0x1f6   :  { %v11990_v30 = vadd.f32 %v3507_v35, %v3395_v56  ;;  %v3397_v19 = vadd.f32 %v3396_v0, %v11891_v4  ;;  %4080 = vmatprep.mubr.bf16.mxu0 %v10759_v49  ;;  %v196_v63 = vld [vmem:[#allocation3 + $0x38] sm:$0xff]  ;;  %4193 = vmatprep.mubr.bf16.mxu1 %v13678_v9 }
 0x1f7   :  { %v3398_v44 = vpop.f32.mrf.mxu0  ;;  %v320_v60 = vld [vmem:[#allocation3 + $0x418] sm:$0xff]  ;;  %v3511_v32 = vpop.f32.mrf.mxu1  ;;  %v9074_v38 = vcombine.high %v192_v18, %v196_v63 }
 0x1f8   :  { %v324_v31 = vld [vmem:[#allocation3 + $0x438] sm:$0xff]  ;;  %v11997_v53 = vadd.f32 %v3509_v37, %v3397_v19  ;;  %v3399_v6 = vadd.f32 %v3398_v44, %v11864_v34  ;;  %4255 = vmatpush1.bf16.msra.mxu0 %v9089_v39  ;;  %4368 = vmatpush1.bf16.msra.mxu1 %v9217_v54 }
 0x1f9   :  { %v3400_v45 = vpop.f32.mrf.mxu0  ;;  %4256 = vmatprep.subr.bf16.mxu0 %v9082_v15  ;;  %v3513_v41 = vpop.f32.mrf.mxu1  ;;  %4369 = vmatprep.subr.bf16.mxu1 %v9210_v20  ;;  %v9202_v62 = vcombine.high %v320_v60, %v324_v31  ;;  %v312_v56 = vld [vmem:[#allocation3 + $0x3d8] sm:$0xff]  ;;  %v9073_v15 = vcombine.low %v192_v18, %v196_v63  ;;  %v9201_v37 = vcombine.low %v320_v60, %v324_v31 }
 0x1fa   :  { %v12000_v7 = vadd.f32 %v3511_v32, %v3399_v6  ;;  %v3401_v52 = vadd.f32 %v3400_v45, %v11891_v4  ;;  %v316_v35 = vld [vmem:[#allocation3 + $0x3f8] sm:$0xff]  ;;  %v10762_v32 = vld [vmem:[%s13666_s0 + $0xf4] ss:$28 sps:$4 sm:$0xff]  }
 0x1fb   :  { %v3404_v23 = vpop.f32.mrf.mxu0  ;;  %v10760_v39 = vld [vmem:[%s13666_s0 + $0xb8] ss:$28 sps:$4 sm:$0xff]   ;;  %v3517_v11 = vpop.f32.mrf.mxu1  ;;  %v10761_v54 = vld [vmem:[%s13666_s0 + $0xc0] ss:$28 sps:$4 sm:$0xff]   ;;  %v9194_v49 = vcombine.high %v312_v56, %v316_v35 }
 0x1fc   :  { %4081 = vmatmul.mubr.bf16.gmra.mxu0 %v10760_v39  ;;  %v440_v58 = vld [vmem:[#allocation3 + $0x7d8] sm:$0xff]  ;;  %v12006_v0 = vadd.f32 %v3513_v41, %v3401_v52  ;;  %v3405_v33 = vadd.f32 %v3404_v23, %v11864_v34  ;;  %9478 = vmatmul.mubr.msk.bf16.gmra.mxu1 %vm2863_vm0, %v10761_v54  ;;  %v9193_v41 = vcombine.low %v312_v56, %v316_v35 }
 0x1fd   :  { %v444_v10 = vld [vmem:[#allocation3 + $0x7f8] sm:$0xff]  ;;  %4257 = vmatpush1.bf16.msra.mxu0 %v9081_v42  ;;  %4370 = vmatpush1.bf16.msra.mxu1 %v9209_v8  ;;  %v3406_v19 = vpop.f32.mrf.mxu0  ;;  %v3519_v6 = vpop.f32.mrf.mxu1 }
 0x1fe   :  { %4258 = vmatprep.subr.bf16.mxu0 %v9074_v38  ;;  %v12013_v20 = vadd.f32 %v3517_v11, %v3405_v33  ;;  %v3407_v44 = vadd.f32 %v3406_v19, %v11891_v4  ;;  %4371 = vmatprep.subr.bf16.mxu1 %v9202_v62  ;;  %v9322_v45 = vcombine.high %v440_v58, %v444_v10  ;;  %v304_v52 = vld [vmem:[#allocation3 + $0x398] sm:$0xff] }
 0x1ff   :  { %4090 = vmatprep.mubr.bf16.mxu0 %v10762_v32  ;;  %v308_v42 = vld [vmem:[#allocation3 + $0x3b8] sm:$0xff]  ;;  %v3408_v18 = vpop.f32.mrf.mxu0  ;;  %4203 = vmatprep.mubr.bf16.mxu1 %v13678_v9  ;;  %v3521_v38 = vpop.f32.mrf.mxu1  ;;  %v9321_v23 = vcombine.low %v440_v58, %v444_v10 }
 0x200   :  { %v432_v63 = vld [vmem:[#allocation3 + $0x798] sm:$0xff]  ;;  %v12020_v31 = vadd.f32 %v3519_v6, %v3407_v44  ;;  %v3409_v8 = vadd.f32 %v3408_v18, %v11864_v34  ;;  %v9186_v39 = vcombine.high %v304_v52, %v308_v42 }
 0x201   :  { %v436_v60 = vld [vmem:[#allocation3 + $0x7b8] sm:$0xff]  ;;  %4259 = vmatpush1.bf16.msra.mxu0 %v9073_v15  ;;  %4372 = vmatpush1.bf16.msra.mxu1 %v9201_v37  ;;  %v3410_v62 = vpop.f32.mrf.mxu0  ;;  %v3523_v54 = vpop.f32.mrf.mxu1  ;;  %v10763_v15 = vld [vmem:[%s13666_s0 + $0xf0] ss:$28 sps:$4 sm:$0xff]  }
 0x202   :  { %4260 = vmatprep.subr.bf16.mxu0 %v9194_v49  ;;  %v12023_v33 = vadd.f32 %v3521_v38, %v3409_v8  ;;  %v3411_v11 = vadd.f32 %v3410_v62, %v11891_v4  ;;  %4373 = vmatprep.subr.bf16.mxu1 %v9322_v45  ;;  %v9314_v19 = vcombine.high %v432_v63, %v436_v60  ;;  %v296_v32 = vld [vmem:[#allocation3 + $0x358] sm:$0xff] }
 0x203   :  { %v300_v44 = vld [vmem:[#allocation3 + $0x378] sm:$0xff]  ;;  %v3414_v6 = vpop.f32.mrf.mxu0  ;;  %v3527_v10 = vpop.f32.mrf.mxu1  ;;  %v9185_v45 = vcombine.low %v304_v52, %v308_v42  ;;  %v9313_v8 = vcombine.low %v432_v63, %v436_v60 }
 0x204   :  { %4091 = vmatmul.mubr.bf16.gmra.mxu0 %v10763_v15  ;;  %v424_v56 = vld [vmem:[#allocation3 + $0x758] sm:$0xff]  ;;  %v12029_v37 = vadd.f32 %v3523_v54, %v3411_v11  ;;  %v3415_v58 = vadd.f32 %v3414_v6, %v11864_v34  ;;  %v9178_v38 = vcombine.high %v296_v32, %v300_v44  ;;  %v10765_v6 = vld [vmem:[%s13666_s0 + $0x12c] ss:$28 sps:$4 sm:$0xff]  }
 0x205   :  { %v428_v35 = vld [vmem:[#allocation3 + $0x778] sm:$0xff]  ;;  %4261 = vmatpush2.bf16.msra.mxu0 %v9193_v41  ;;  %4374 = vmatpush2.bf16.msra.mxu1 %v9321_v23  ;;  %v3416_v18 = vpop.f32.mrf.mxu0  ;;  %v3529_v54 = vpop.f32.mrf.mxu1 }
 0x206   :  { %v10764_v49 = vld [vmem:[%s13666_s0 + $0xf8] ss:$28 sps:$4 sm:$0xff]   ;;  %4262 = vmatprep.subr.bf16.mxu0 %v9186_v39  ;;  %v12036_v62 = vadd.f32 %v3527_v10, %v3415_v58  ;;  %v3417_v11 = vadd.f32 %v3416_v18, %v11891_v4  ;;  %4375 = vmatprep.subr.bf16.mxu1 %v9314_v19  ;;  %v9306_v15 = vcombine.high %v424_v56, %v428_v35 }
 0x207   :  { %9479 = vmatmul.mubr.msk.bf16.gmra.mxu1 %vm2863_vm0, %v10764_v49  ;;  %4100 = vmatprep.mubr.bf16.mxu0 %v10765_v6  ;;  %v288_v49 = vld [vmem:[#allocation3 + $0x318] sm:$0xff]  ;;  %v3418_v52 = vpop.f32.mrf.mxu0  ;;  %v3531_v39 = vpop.f32.mrf.mxu1  ;;  %v9177_v19 = vcombine.low %v296_v32, %v300_v44  ;;  %v9305_v10 = vcombine.low %v424_v56, %v428_v35 }
 0x208   :  { %v292_v41 = vld [vmem:[#allocation3 + $0x338] sm:$0xff]  ;;  %4213 = vmatprep.mubr.bf16.mxu1 %v13678_v9  ;;  %v12043_v60 = vadd.f32 %v3529_v54, %v3417_v11  ;;  %v3419_v23 = vadd.f32 %v3418_v52, %v11864_v34 }
 0x209   :  { %v416_v42 = vld [vmem:[#allocation3 + $0x718] sm:$0xff]  ;;  %4263 = vmatpush2.bf16.msra.mxu0 %v9185_v45  ;;  %4376 = vmatpush2.bf16.msra.mxu1 %v9313_v8  ;;  %v3420_v58 = vpop.f32.mrf.mxu0  ;;  %v9170_v18 = vcombine.high %v288_v49, %v292_v41  ;;  %v3533_v25 = vpop.f32.mrf.mxu1  ;;  %v10766_v45 = vld [vmem:[%s13666_s0 + $0x128] ss:$28 sps:$4 sm:$0xff]  }
 0x20a   :  { %v420_v63 = vld [vmem:[#allocation3 + $0x738] sm:$0xff]  ;;  %4264 = vmatprep.subr.bf16.mxu0 %v9178_v38  ;;  %v12046_v6 = vadd.f32 %v3531_v39, %v3419_v23  ;;  %v3421_v2 = vadd.f32 %v3420_v58, %v11891_v4  ;;  %4377 = vmatprep.subr.bf16.mxu1 %v9306_v15  ;;  %v10767_v38 = vld [vmem:[%s13666_s0 + $0x130] ss:$28 sps:$4 sm:$0xff]   ;;  %v9169_v15 = vcombine.low %v288_v49, %v292_v41  ;;  %v13744_v41 = vmov 0  }
 0x20b   :  { %v9298_v9 = vcombine.high %v416_v42, %v420_v63  ;;  %v284_v11 = vld [vmem:[#allocation3 + $0x2f8] sm:$0xff]  ;;  %v3424_v54 = vpop.f32.mrf.mxu0  ;;  %v3537_v35 = vpop.f32.mrf.mxu1  ;;  %v9297_v23 = vcombine.low %v416_v42, %v420_v63 }
 0x20c   :  { %4101 = vmatmul.mubr.bf16.gmra.mxu0 %v10766_v45  ;;  %v408_v32 = vld [vmem:[#allocation3 + $0x6d8] sm:$0xff]  ;;  %v12052_v8 = vadd.f32 %v3533_v25, %v3421_v2  ;;  %v3425_v56 = vadd.f32 %v3424_v54, %v11864_v34  ;;  %v9162_v39 = vcombine.high %v280_v57, %v284_v11 }
 0x20d   :  { %v412_v44 = vld [vmem:[#allocation3 + $0x6f8] sm:$0xff]  ;;  %4265 = vmatpush2.bf16.msra.mxu0 %v9177_v19  ;;  %4378 = vmatpush2.bf16.msra.mxu1 %v9305_v10  ;;  %v3426_v52 = vpop.f32.mrf.mxu0  ;;  %v3539_v2 = vpop.f32.mrf.mxu1 }
 0x20e   :  { %4266 = vmatprep.subr.bf16.mxu0 %v9170_v18  ;;  %v12059_v58 = vadd.f32 %v3537_v35, %v3425_v56  ;;  %v3427_v25 = vadd.f32 %v3426_v52, %v11891_v4  ;;  %4379 = vmatprep.subr.bf16.mxu1 %v9298_v9  ;;  %v10768_v54 = vld [vmem:[%s13666_s0 + $0x164] ss:$28 sps:$4 sm:$0xff]   ;;  %v9290_v45 = vcombine.high %v408_v32, %v412_v44 }
 0x20f   :  { %9480 = vmatmul.mubr.msk.bf16.gmra.mxu1 %vm2863_vm0, %v10767_v38  ;;  %4110 = vmatprep.mubr.bf16.mxu0 %v10768_v54  ;;  %v272_v38 = vld [vmem:[#allocation3 + $0x298] sm:$0xff]  ;;  %v3428_v49 = vpop.f32.mrf.mxu0  ;;  %v3541_v56 = vpop.f32.mrf.mxu1  ;;  %v9161_v9 = vcombine.low %v280_v57, %v284_v11  ;;  %v9289_v52 = vcombine.low %v408_v32, %v412_v44 }
 0x210   :  { %v276_v19 = vld [vmem:[#allocation3 + $0x2b8] sm:$0xff]  ;;  %4223 = vmatprep.mubr.bf16.mxu1 %v13744_v41  ;;  %v12066_v63 = vadd.f32 %v3539_v2, %v3427_v25  ;;  %v3429_v18 = vadd.f32 %v3428_v49, %v11864_v34 }
 0x211   :  { %v400_v10 = vld [vmem:[#allocation3 + $0x698] sm:$0xff]  ;;  %4267 = vmatpush2.bf16.msra.mxu0 %v9169_v15  ;;  %4380 = vmatpush2.bf16.msra.mxu1 %v9297_v23  ;;  %v3430_v35 = vpop.f32.mrf.mxu0  ;;  %v9154_v54 = vcombine.high %v272_v38, %v276_v19  ;;  %v3543_v12 = vpop.f32.mrf.mxu1 }
 0x212   :  { %v404_v42 = vld [vmem:[#allocation3 + $0x6b8] sm:$0xff]  ;;  %4268 = vmatprep.subr.bf16.mxu0 %v9162_v39  ;;  %v12069_v47 = vadd.f32 %v3541_v56, %v3429_v18  ;;  %v3431_v5 = vadd.f32 %v3430_v35, %v11891_v4  ;;  %4381 = vmatprep.subr.bf16.mxu1 %v9290_v45  ;;  %v10770_v39 = vld [vmem:[%s13666_s0 + $0x168] ss:$28 sps:$4 sm:$0xff]   ;;  %v9153_v45 = vcombine.low %v272_v38, %v276_v19 }
 0x213   :  { %v9282_v50 = vcombine.high %v400_v10, %v404_v42  ;;  %v264_v46 = vld [vmem:[#allocation3 + $0x258] sm:$0xff]  ;;  %v3434_v2 = vpop.f32.mrf.mxu0  ;;  %v3547_v44 = vpop.f32.mrf.mxu1  ;;  %v9281_v18 = vcombine.low %v400_v10, %v404_v42 }
 0x214   :  { %v268_v25 = vld [vmem:[#allocation3 + $0x278] sm:$0xff]  ;;  %v12075_v23 = vadd.f32 %v3543_v12, %v3431_v5  ;;  %v3435_v32 = vadd.f32 %v3434_v2, %v11864_v34 }
 0x215   :  { %v10769_v15 = vld [vmem:[%s13666_s0 + $0x160] ss:$28 sps:$4 sm:$0xff]   ;;  %4269 = vmatpush2.bf16.msra.mxu0 %v9161_v9  ;;  %4382 = vmatpush2.bf16.msra.mxu1 %v9289_v52  ;;  %v3436_v49 = vpop.f32.mrf.mxu0  ;;  %v9146_v56 = vcombine.high %v264_v46, %v268_v25  ;;  %v3549_v12 = vpop.f32.mrf.mxu1 }
 0x216   :  { %4111 = vmatmul.mubr.bf16.gmra.mxu0 %v10769_v15  ;;  %v392_v57 = vld [vmem:[#allocation3 + $0x658] sm:$0xff]  ;;  %4270 = vmatprep.subr.bf16.mxu0 %v9154_v54  ;;  %v12082_v35 = vadd.f32 %v3547_v44, %v3435_v32  ;;  %v3437_v5 = vadd.f32 %v3436_v49, %v11891_v4 }
 0x217   :  { %v396_v11 = vld [vmem:[#allocation3 + $0x678] sm:$0xff]  ;;  %9481 = vmatmul.mubr.msk.bf16.gmra.mxu1 %vm2863_vm0, %v10770_v39  ;;  %4383 = vmatprep.subr.bf16.mxu1 %v9282_v50  ;;  %v3438_v38 = vpop.f32.mrf.mxu0  ;;  %v3551_v54 = vpop.f32.mrf.mxu1  ;;  %v9145_v50 = vcombine.low %v264_v46, %v268_v25 }
 0x218   :  { %v10771_v2 = vld [vmem:[%s13666_s0 + $0x19c] ss:$28 sps:$4 sm:$0xff]   ;;  %v9274_v15 = vcombine.high %v392_v57, %v396_v11  ;;  %4233 = vmatprep.mubr.bf16.mxu1 %v13744_v41  ;;  %v12089_v42 = vadd.f32 %v3549_v12, %v3437_v5  ;;  %v3439_v52 = vadd.f32 %v3438_v38, %v11864_v34  ;;  %v9273_v44 = vcombine.low %v392_v57, %v396_v11 }
 0x219   :  { %4120 = vmatprep.mubr.bf16.mxu0 %v10771_v2  ;;  %v256_v39 = vld [vmem:[#allocation3 + $0x218] sm:$0xff]  ;;  %4271 = vmatpush2.bf16.msra.mxu0 %v9153_v45  ;;  %v3440_v32 = vpop.f32.mrf.mxu0  ;;  %v3553_v21 = vpop.f32.mrf.mxu1 }
 0x21a   :  { %v260_v9 = vld [vmem:[#allocation3 + $0x238] sm:$0xff]  ;;  %4384 = vmatpush2.bf16.msra.mxu1 %v9281_v18  ;;  %4272 = vmatprep.subr.bf16.mxu0 %v9146_v56  ;;  %v12092_v2 = vadd.f32 %v3551_v54, %v3439_v52  ;;  %v3441_v14 = vadd.f32 %v3440_v32, %v11891_v4 }
 0x21b   :  { %v384_v19 = vld [vmem:[#allocation3 + $0x618] sm:$0xff]  ;;  %v9138_v49 = vcombine.high %v256_v39, %v260_v9  ;;  %4385 = vmatprep.subr.bf16.mxu1 %v9274_v15  ;;  %v3444_v12 = vpop.f32.mrf.mxu0  ;;  %v3557_v11 = vpop.f32.mrf.mxu1  ;;  %v9137_v15 = vcombine.low %v256_v39, %v260_v9  ;;  %v10775_v9 = vld [vmem:[%s13666_s0 + $0xc] ss:$28 sps:$4 sm:$0xff]  }
 0x21c   :  { %v388_v10 = vld [vmem:[#allocation3 + $0x638] sm:$0xff]  ;;  %v12098_v18 = vadd.f32 %v3553_v21, %v3441_v14  ;;  %v3445_v57 = vadd.f32 %v3444_v12, %v11864_v34 }
 0x21d   :  { %v9266_v16 = vcombine.high %v384_v19, %v388_v10  ;;  %v508_v5 = vld [vmem:[#allocation3 + $0x9f8] sm:$0xff]  ;;  %4273 = vmatpush2.bf16.msra.mxu0 %v9145_v50  ;;  %v3446_v38 = vpop.f32.mrf.mxu0  ;;  %v9265_v52 = vcombine.low %v384_v19, %v388_v10  ;;  %v3559_v21 = vpop.f32.mrf.mxu1 }
 0x21e   :  { %v10772_v45 = vld [vmem:[%s13666_s0 + $0x198] ss:$28 sps:$4 sm:$0xff]   ;;  %v10773_v56 = vld [vmem:[%s13666_s0 + $0x1a0] ss:$28 sps:$4 sm:$0xff]   ;;  %4386 = vmatpush2.bf16.msra.mxu1 %v9273_v44  ;;  %4274 = vmatprep.subr.bf16.mxu0 %v9138_v49  ;;  %v9386_v54 = vcombine.high %v504_v22, %v508_v5  ;;  %v12105_v32 = vadd.f32 %v3557_v11, %v3445_v57  ;;  %v3447_v14 = vadd.f32 %v3446_v38, %v11891_v4 }
 0x21f   :  { %4121 = vmatmul.mubr.bf16.gmra.mxu0 %v10772_v45  ;;  %v576_v46 = vld [vmem:[#allocation3 + $0xc18] sm:$0xff]  ;;  %9482 = vmatmul.mubr.msk.bf16.gmra.mxu1 %vm2863_vm0, %v10773_v56  ;;  %v3448_v39 = vpop.f32.mrf.mxu0  ;;  %v3561_v44 = vpop.f32.mrf.mxu1 }
 0x220   :  { %v580_v25 = vld [vmem:[#allocation3 + $0xc38] sm:$0xff]  ;;  %4387 = vmatprep.subr.bf16.mxu1 %v9266_v16  ;;  %4389 = vmatprep.mubr.bf16.mxu1 %v10775_v9  ;;  %v12114_v19 = vadd.f32 %v3559_v21, %v3447_v14  ;;  %v3449_v10 = vadd.f32 %v3448_v39, %v11864_v34  ;;  %v9385_v16 = vcombine.low %v504_v22, %v508_v5 }
 0x221   :  { %v10774_v12 = vld [vmem:[%s13666_s0 + $0x4] ss:$28 sps:$4 sm:$0xff]   ;;  %v9458_v45 = vcombine.high %v576_v46, %v580_v25  ;;  %4275 = vmatpush2.bf16.msra.mxu0 %v9137_v15  ;;  %v3450_v49 = vpop.f32.mrf.mxu0  ;;  %v9457_v57 = vcombine.low %v576_v46, %v580_v25  ;;  %v3563_v28 = vpop.f32.mrf.mxu1 }
 0x222   :  { %4276 = vmatprep.mubr.bf16.mxu0 %v10774_v12  ;;  %v496_v56 = vld [vmem:[#allocation3 + $0x998] sm:$0xff]  ;;  %4388 = vmatpush2.bf16.msra.mxu1 %v9265_v52  ;;  %v12117_v38 = vadd.f32 %v3561_v44, %v3449_v10  ;;  %v3451_v12 = vadd.f32 %v3450_v49, %v11891_v4  ;;  %v10777_v4 = vld [vmem:[%s13666_s0 + $0x8] ss:$28 sps:$4 sm:$0xff]  }
 0x223   :  { %v500_v50 = vld [vmem:[#allocation3 + $0x9b8] sm:$0xff]  ;;  %4470 = vmatprep.subr.bf16.mxu0 %v9386_v54  ;;  %4597 = vmatprep.subr.bf16.mxu1 %v9458_v45  ;;  %v3600_v14 = vpop.f32.mrf.mxu0  ;;  %v3713_v25 = vpop.f32.mrf.mxu1 }
 0x224   :  { %v9378_v11 = vcombine.high %v496_v56, %v500_v50  ;;  %v492_v9 = vld [vmem:[#allocation3 + $0x978] sm:$0xff]  ;;  %v12123_v5 = vadd.f32 %v3563_v28, %v3451_v12  ;;  %v3601_v46 = vadd.f32 %v3600_v14, %v11932_v26  ;;  %v9377_v15 = vcombine.low %v496_v56, %v500_v50 }
 0x225   :  { %v10776_v34 = vld [vmem:[%s13666_s0] ss:$28 sps:$4 sm:$0xff]   ;;  %v3602_v52 = vpop.f32.mrf.mxu0  ;;  %v9370_v54 = vcombine.high %v488_v61, %v492_v9  ;;  %v3715_v39 = vpop.f32.mrf.mxu1  ;;  %v9369_v49 = vcombine.low %v488_v61, %v492_v9 }
 0x226   :  { %v10106_v22 = vld [vmem:[#allocation8 + $0x2e4] ss:$16 sps:$4 sm:$0xff]   ;;  %v3714_v21 = vadd.f32 %v3713_v25, %v3601_v46  ;;  %v3603_v45 = vadd.f32 %v3602_v52, %v11941_v17 }
 0x227   :  { %4277 = vmatmul.mubr.bf16.vlgmr.msra.gmra.mxu0 %v10776_v34  ;;  %4390 = vmatmul.mubr.bf16.vlgmr.msra.gmra.mxu1 %v10777_v4  ;;  %v10778_v28 = vld [vmem:[%s13666_s0 + $0x3c] ss:$28 sps:$4 sm:$0xff]   ;;  %v10779_v26 = vld [vmem:[%s13666_s0 + $0x44] ss:$28 sps:$4 sm:$0xff]   ;;  %v3604_v50 = vpop.f32.mrf.mxu0  ;;  %v3717_v17 = vpop.f32.mrf.mxu1 }
 0x228   :  { %4471 = vmatpush1.bf16.msra.mxu0 %v9385_v16  ;;  %4598 = vmatpush1.bf16.msra.mxu1 %v9457_v57  ;;  %v480_v10 = vld [vmem:[#allocation3 + $0x918] sm:$0xff]  ;;  %v12136_v44 = vadd.f32 %v3715_v39, %v3603_v45  ;;  %v3605_v16 = vadd.f32 %v3604_v50, %v11952_v40  ;;  %v4826_v57 = vmul.f32 0.2, %v3714_v21  ;;  %vm4698_vm3 = vcmp.gt.f32.partialorder %v3714_v21, 0.0 }
 0x229   :  { %4472 = vmatprep.subr.bf16.mxu0 %v9378_v11  ;;  %4286 = vmatprep.mubr.bf16.mxu0 %v10778_v28  ;;  %v484_v56 = vld [vmem:[#allocation3 + $0x938] sm:$0xff]  ;;  %v3606_v11 = vpop.f32.mrf.mxu0  ;;  %v3719_v34 = vpop.f32.mrf.mxu1  ;;  %v10782_v28 = vld [vmem:[%s13666_s0 + $0x74] ss:$28 sps:$4 sm:$0xff]  }
 0x22a   :  { %4399 = vmatprep.mubr.bf16.mxu1 %v10779_v26  ;;  %6815 = vmatprep.subr.bf16.mxu1 %v10106_v22  ;;  %v9362_v12 = vcombine.high %v480_v10, %v484_v56  ;;  %v3718_v14 = vadd.f32 %v3717_v17, %v3605_v16  ;;  %v472_v46 = vld [vmem:[#allocation3 + $0x8d8] sm:$0xff]  ;;  %v3607_v4 = vadd.f32 %v3606_v11, %v11960_v36  ;;  %vm4699_vm5 = vcmp.gt.f32.partialorder %v12136_v44, 0.0 }
 0x22b   :  { %v476_v25 = vld [vmem:[#allocation3 + $0x8f8] sm:$0xff]  ;;  %v3610_v52 = vpop.f32.mrf.mxu0  ;;  %v3723_v9 = vpop.f32.mrf.mxu1  ;;  %v4954_v36 = vsel %vm4698_vm3, %v3714_v21, %v4826_v57 }
 0x22c   :  { %4473 = vmatpush1.bf16.msra.mxu0 %v9377_v15  ;;  %v10780_v22 = vld [vmem:[%s13666_s0 + $0x38] ss:$28 sps:$4 sm:$0xff]   ;;  %vm4706_vm4 = vcmp.gt.f32.partialorder %v3718_v14, 0.0  ;;  %v4834_v40 = vmul.f32 0.2, %v3718_v14  ;;  %v3611_v61 = vadd.f32 %v3610_v52, %v11967_v48  ;;  %v3720_v45 = vadd.f32 %v3719_v34, %v3607_v4 }
 0x22d   :  { %4474 = vmatprep.subr.bf16.mxu0 %v9370_v54  ;;  %v10781_v15 = vld [vmem:[%s13666_s0 + $0x40] ss:$28 sps:$4 sm:$0xff]   ;;  %v9361_v54 = vcombine.low %v480_v10, %v484_v56  ;;  %v3612_v39 = vpop.f32.mrf.mxu0  ;;  %v9354_v26 = vcombine.high %v472_v46, %v476_v25  ;;  %v4827_v48 = vmul.f32 0.2, %v12136_v44  ;;  %v9353_v4 = vcombine.low %v472_v46, %v476_v25  ;;  %v10784_v46 = vld [vmem:[%s13666_s0 + $0x70] ss:$28 sps:$4 sm:$0xff]  }
 0x22e   :  { %v4962_v50 = vsel %vm4706_vm4, %v3718_v14, %v4834_v40  ;;  %v3724_v16 = vadd.f32 %v3723_v9, %v3611_v61  ;;  %v3613_v17 = vadd.f32 %v3612_v39, %v11974_v59  ;;  %v10783_v21 = vld [vmem:[%s13666_s0 + $0x7c] ss:$28 sps:$4 sm:$0xff]   ;;  %vm4707_vm6 = vcmp.gt.f32.partialorder %v3720_v45, 0.0 }
 0x22f   :  { %4287 = vmatmul.mubr.bf16.gmra.mxu0 %v10780_v22  ;;  %4400 = vmatmul.mubr.bf16.gmra.mxu1 %v10781_v15  ;;  %v464_v10 = vld [vmem:[#allocation3 + $0x898] sm:$0xff]  ;;  %v12158_v57 = vpack.c.bf16 %v4962_v50, %v4954_v36  ;;  %v4835_v11 = vmul.f32 0.2, %v3720_v45 }
 0x230   :  { %4475 = vmatpush1.bf16.msra.mxu0 %v9369_v49  ;;  %4296 = vmatprep.mubr.bf16.mxu0 %v10782_v28  ;;  %v3725_v49 = vpop.f32.mrf.mxu1  ;;  %v468_v56 = vld [vmem:[#allocation3 + $0x8b8] sm:$0xff]  ;;  %v4842_v52 = vmul.f32 0.2, %v3724_v16  ;;  %vm4714_vm7 = vcmp.gt.f32.partialorder %v3724_v16, 0.0  ;;  %v4955_v28 = vsel %vm4699_vm5, %v12136_v44, %v4827_v48 }
 0x231   :  { %4476 = vmatprep.subr.bf16.mxu0 %v9362_v12  ;;  %4409 = vmatprep.mubr.bf16.mxu1 %v10783_v21  ;;  %13745 = vst [vmem:[#allocation35_spill] sm:$0xff] %v12158_v57  ;;  %v3614_v12 = vpop.f32.mrf.mxu0  ;;  %v12160_v34 = vadd.f32 %v3725_v49, %v3613_v17  ;;  %v9346_v40 = vcombine.high %v464_v10, %v468_v56  ;;  %v12163_v36 = vld [vmem:[#allocation3 + $0x858] sm:$0xff]  ;;  %v10786_v21 = vld [vmem:[%s13666_s0 + $0xac] ss:$28 sps:$4 sm:$0xff]  }
 0x232   :  { %v3615_v14 = vadd.f32 %v3614_v12, %v11977_v13  ;;  %v3727_v59 = vpop.f32.mrf.mxu1  ;;  %v4963_v61 = vsel %vm4707_vm6, %v3720_v45, %v4835_v11  ;;  %v12165_v39 = vld [vmem:[#allocation3 + $0x878] sm:$0xff]  ;;  %v4970_v44 = vsel %vm4714_vm7, %v3724_v16, %v4842_v52  ;;  %v10787_v16 = vld [vmem:[%s13666_s0 + $0xb4] ss:$28 sps:$4 sm:$0xff]  }
 0x233   :  { %v3616_v22 = vpop.f32.mrf.mxu0  ;;  %v12174_v25 = vpack.c.bf16 %v4963_v61, %v4955_v28  ;;  %v10785_v17 = vld [vmem:[%s13666_s0 + $0x78] ss:$28 sps:$4 sm:$0xff]   ;;  %v4843_v11 = vmul.f32 0.2, %v12160_v34  ;;  %vm4715_vm9 = vcmp.gt.f32.partialorder %v12160_v34, 0.0 }
 0x234   :  { %4477 = vmatpush1.bf16.msra.mxu0 %v9361_v54  ;;  %v3728_v9 = vadd.f32 %v3727_v59, %v3615_v14  ;;  %v3729_v15 = vpop.f32.mrf.mxu1  ;;  %v3617_v13 = vadd.f32 %v3616_v22, %v11983_v55  ;;  %v9345_v55 = vcombine.low %v464_v10, %v468_v56  ;;  %v448_v59 = vld [vmem:[#allocation3 + $0x818] sm:$0xff] }
 0x235   :  { %4478 = vmatprep.subr.bf16.mxu0 %v9354_v26  ;;  %v3620_v54 = vpop.f32.mrf.mxu0  ;;  %13746 = vst [vmem:[#allocation36_spill] sm:$0xff] %v12174_v25 }
 0x236   :  { %vm4722_vm8 = vcmp.gt.f32.partialorder %v3728_v9, 0.0  ;;  %v4850_v45 = vmul.f32 0.2, %v3728_v9  ;;  %v3621_v26 = vadd.f32 %v3620_v54, %v11990_v30  ;;  %v3733_v50 = vpop.f32.mrf.mxu1  ;;  %v3730_v48 = vadd.f32 %v3729_v15, %v3617_v13 }
 0x237   :  { %4297 = vmatmul.mubr.bf16.gmra.mxu0 %v10784_v46  ;;  %4410 = vmatmul.mubr.bf16.gmra.mxu1 %v10785_v17  ;;  %v3622_v49 = vpop.f32.mrf.mxu0  ;;  %v9338_v30 = vcombine.high %v12163_v36, %v12165_v39  ;;  %v9337_v15 = vcombine.low %v12163_v36, %v12165_v39  ;;  %v12202_v17 = vld [vmem:[#allocation3 + $0xbf8] sm:$0xff]  ;;  %v10788_v36 = vld [vmem:[%s13666_s0 + $0xa8] ss:$28 sps:$4 sm:$0xff]  }
 0x238   :  { %4479 = vmatpush1.bf16.msra.mxu0 %v9353_v4  ;;  %4306 = vmatprep.mubr.bf16.mxu0 %v10786_v21  ;;  %v4978_v12 = vsel %vm4722_vm8, %v3728_v9, %v4850_v45  ;;  %v3734_v14 = vadd.f32 %v3733_v50, %v3621_v26  ;;  %v3623_v10 = vadd.f32 %v3622_v49, %v11997_v53  ;;  %v3735_v56 = vpop.f32.mrf.mxu1  ;;  %v452_v4 = vld [vmem:[#allocation3 + $0x838] sm:$0xff]  ;;  %vm4723_vm10 = vcmp.gt.f32.partialorder %v3730_v48, 0.0 }
 0x239   :  { %4480 = vmatprep.subr.bf16.mxu0 %v9346_v40  ;;  %4419 = vmatprep.mubr.bf16.mxu1 %v10787_v16  ;;  %v12193_v52 = vpack.c.bf16 %v4978_v12, %v4970_v44  ;;  %v4851_v22 = vmul.f32 0.2, %v3730_v48  ;;  %v3624_v40 = vpop.f32.mrf.mxu0  ;;  %v9330_v54 = vcombine.high %v448_v59, %v452_v4  ;;  %v12200_v50 = vld [vmem:[#allocation3 + $0xbd8] sm:$0xff] }
 0x23a   :  { %v12195_v61 = vadd.f32 %v3735_v56, %v3623_v10  ;;  %v3625_v9 = vadd.f32 %v3624_v40, %v12000_v7  ;;  %v3737_v53 = vpop.f32.mrf.mxu1  ;;  %v4858_v28 = vmul.f32 0.2, %v3734_v14  ;;  %vm4730_vm11 = vcmp.gt.f32.partialorder %v3734_v14, 0.0  ;;  %v10790_v10 = vld [vmem:[%s13666_s0 + $0xe4] ss:$28 sps:$4 sm:$0xff]  }
 0x23b   :  { %13747 = vst [vmem:[#allocation37_spill] sm:$0xff] %v12193_v52  ;;  %v3626_v13 = vpop.f32.mrf.mxu0  ;;  %v4979_v46 = vsel %vm4723_vm10, %v3730_v48, %v4851_v22  ;;  %v4971_v7 = vsel %vm4715_vm9, %v12160_v34, %v4843_v11  ;;  %v560_v40 = vld [vmem:[#allocation3 + $0xb98] sm:$0xff] }
 0x23c   :  { %4481 = vmatpush1.bf16.msra.mxu0 %v9345_v55  ;;  %v3738_v45 = vadd.f32 %v3737_v53, %v3625_v9  ;;  %v3739_v26 = vpop.f32.mrf.mxu1  ;;  %v3627_v55 = vadd.f32 %v3626_v13, %v12006_v0  ;;  %v12211_v39 = vpack.c.bf16 %v4979_v46, %v4971_v7  ;;  %v9329_v0 = vcombine.low %v448_v59, %v452_v4  ;;  %v564_v9 = vld [vmem:[#allocation3 + $0xbb8] sm:$0xff] }
 0x23d   :  { %4482 = vmatprep.subr.bf16.mxu0 %v9338_v30  ;;  %v3630_v44 = vpop.f32.mrf.mxu0  ;;  %v10789_v30 = vld [vmem:[%s13666_s0 + $0xb0] ss:$28 sps:$4 sm:$0xff]   ;;  %v4986_v34 = vsel %vm4730_vm11, %v3734_v14, %v4858_v28  ;;  %v4859_v56 = vmul.f32 0.2, %v12195_v61  ;;  %vm4731_vm13 = vcmp.gt.f32.partialorder %v12195_v61, 0.0  ;;  %v9449_v46 = vcombine.low %v12200_v50, %v12202_v17 }
 0x23e   :  { %13748 = vst [vmem:[#allocation38_spill] sm:$0xff] %v12211_v39  ;;  %vm4738_vm12 = vcmp.gt.f32.partialorder %v3738_v45, 0.0  ;;  %v4866_v48 = vmul.f32 0.2, %v3738_v45  ;;  %v3631_v49 = vadd.f32 %v3630_v44, %v12013_v20  ;;  %v3743_v21 = vpop.f32.mrf.mxu1  ;;  %v3740_v11 = vadd.f32 %v3739_v26, %v3627_v55  ;;  %v10791_v14 = vld [vmem:[%s13666_s0 + $0xec] ss:$28 sps:$4 sm:$0xff]  }
 0x23f   :  { %4307 = vmatmul.mubr.bf16.gmra.mxu0 %v10788_v36  ;;  %4420 = vmatmul.mubr.bf16.gmra.mxu1 %v10789_v30  ;;  %v3632_v12 = vpop.f32.mrf.mxu0  ;;  %v9450_v20 = vcombine.high %v12200_v50, %v12202_v17  ;;  %v9442_v7 = vcombine.high %v560_v40, %v564_v9  ;;  %v10792_v50 = vld [vmem:[%s13666_s0 + $0xe0] ss:$28 sps:$4 sm:$0xff]  }
 0x240   :  { %4483 = vmatpush1.bf16.msra.mxu0 %v9337_v15  ;;  %4316 = vmatprep.mubr.bf16.mxu0 %v10790_v10  ;;  %v4994_v16 = vsel %vm4738_vm12, %v3738_v45, %v4866_v48  ;;  %v3744_v22 = vadd.f32 %v3743_v21, %v3631_v49  ;;  %v3633_v59 = vadd.f32 %v3632_v12, %v12020_v31  ;;  %v3745_v4 = vpop.f32.mrf.mxu1  ;;  %vm4739_vm14 = vcmp.gt.f32.partialorder %v3740_v11, 0.0  ;;  %v12237_v48 = vld [vmem:[#allocation3 + $0xb58] sm:$0xff]  ;;  %v10793_v12 = vld [vmem:[%s13666_s0 + $0xe8] ss:$28 sps:$4 sm:$0xff]  }
 0x241   :  { %4484 = vmatprep.subr.bf16.mxu0 %v9330_v54  ;;  %4429 = vmatprep.mubr.bf16.mxu1 %v10791_v14  ;;  %v12230_v53 = vpack.c.bf16 %v4994_v16, %v4986_v34  ;;  %v4867_v15 = vmul.f32 0.2, %v3740_v11  ;;  %v3634_v28 = vpop.f32.mrf.mxu0  ;;  %v12239_v49 = vld [vmem:[#allocation3 + $0xb78] sm:$0xff] }
 0x242   :  { %v12232_v13 = vadd.f32 %v3745_v4, %v3633_v59  ;;  %v3635_v54 = vadd.f32 %v3634_v28, %v12023_v33  ;;  %v3747_v31 = vpop.f32.mrf.mxu1  ;;  %v4874_v45 = vmul.f32 0.2, %v3744_v22  ;;  %vm4746_vm15 = vcmp.gt.f32.partialorder %v3744_v22, 0.0 }
 0x243   :  { %13749 = vst [vmem:[#allocation39_spill] sm:$0xff] %v12230_v53  ;;  %v3636_v26 = vpop.f32.mrf.mxu0  ;;  %v4995_v55 = vsel %vm4739_vm14, %v3740_v11, %v4867_v15  ;;  %v4987_v33 = vsel %vm4731_vm13, %v12195_v61, %v4859_v56  ;;  %v10794_v56 = vld [vmem:[%s13666_s0 + $0x11c] ss:$28 sps:$4 sm:$0xff]  }
 0x244   :  { %4485 = vmatpush1.bf16.msra.mxu0 %v9329_v0  ;;  %v3748_v44 = vadd.f32 %v3747_v31, %v3635_v54  ;;  %v3749_v36 = vpop.f32.mrf.mxu1  ;;  %v3637_v21 = vadd.f32 %v3636_v26, %v12029_v37  ;;  %v12248_v17 = vpack.c.bf16 %v4995_v55, %v4987_v33  ;;  %v9441_v37 = vcombine.low %v560_v40, %v564_v9  ;;  %v544_v9 = vld [vmem:[#allocation3 + $0xb18] sm:$0xff] }
 0x245   :  { %4486 = vmatprep.subr.bf16.mxu0 %v9450_v20  ;;  %v3640_v30 = vpop.f32.mrf.mxu0  ;;  %v5002_v61 = vsel %vm4746_vm15, %v3744_v22, %v4874_v45  ;;  %v4875_v16 = vmul.f32 0.2, %v12232_v13  ;;  %v10795_v22 = vld [vmem:[%s13666_s0 + $0x124] ss:$28 sps:$4 sm:$0xff]   ;;  %vm4747_vm2 = vcmp.gt.f32.partialorder %v12232_v13, 0.0  ;;  %v9433_v26 = vcombine.low %v12237_v48, %v12239_v49 }
 0x246   :  { %13750 = vst [vmem:[#allocation40_spill] sm:$0xff] %v12248_v17  ;;  %vm4754_vm1 = vcmp.gt.f32.partialorder %v3748_v44, 0.0  ;;  %v4882_v0 = vmul.f32 0.2, %v3748_v44  ;;  %v3641_v34 = vadd.f32 %v3640_v30, %v12036_v62  ;;  %v3753_v11 = vpop.f32.mrf.mxu1  ;;  %v3750_v10 = vadd.f32 %v3749_v36, %v3637_v21  ;;  %v548_v15 = vld [vmem:[#allocation3 + $0xb38] sm:$0xff] }
 0x247   :  { %4317 = vmatmul.mubr.bf16.gmra.mxu0 %v10792_v50  ;;  %4430 = vmatmul.mubr.bf16.gmra.mxu1 %v10793_v12  ;;  %v3642_v20 = vpop.f32.mrf.mxu0  ;;  %v9434_v62 = vcombine.high %v12237_v48, %v12239_v49  ;;  %v12274_v30 = vld [vmem:[#allocation3 + $0xad8] sm:$0xff] }
 0x248   :  { %4487 = vmatpush2.bf16.msra.mxu0 %v9449_v46  ;;  %4326 = vmatprep.mubr.bf16.mxu0 %v10794_v56  ;;  %v5010_v59 = vsel %vm4754_vm1, %v3748_v44, %v4882_v0  ;;  %v3754_v4 = vadd.f32 %v3753_v11, %v3641_v34  ;;  %v3643_v14 = vadd.f32 %v3642_v20, %v12043_v60  ;;  %v3755_v40 = vpop.f32.mrf.mxu1  ;;  %vm4755_vm3 = vcmp.gt.f32.partialorder %v3750_v10, 0.0  ;;  %v12276_v50 = vld [vmem:[#allocation3 + $0xaf8] sm:$0xff]  ;;  %v10798_v56 = vld [vmem:[%s13666_s0 + $0x154] ss:$28 sps:$4 sm:$0xff]  }
 0x249   :  { %4488 = vmatprep.subr.bf16.mxu0 %v9442_v7  ;;  %4439 = vmatprep.mubr.bf16.mxu1 %v10795_v22  ;;  %v12267_v28 = vpack.c.bf16 %v5010_v59, %v5002_v61  ;;  %v4883_v54 = vmul.f32 0.2, %v3750_v10  ;;  %v3644_v31 = vpop.f32.mrf.mxu0  ;;  %v9426_v44 = vcombine.high %v544_v9, %v548_v15  ;;  %v10796_v48 = vld [vmem:[%s13666_s0 + $0x118] ss:$28 sps:$4 sm:$0xff]   ;;  %v10797_v61 = vld [vmem:[%s13666_s0 + $0x120] ss:$28 sps:$4 sm:$0xff]  }
 0x24a   :  { %v12269_v46 = vadd.f32 %v3755_v40, %v3643_v14  ;;  %v3645_v45 = vadd.f32 %v3644_v31, %v12046_v6  ;;  %v3757_v60 = vpop.f32.mrf.mxu1  ;;  %v4890_v7 = vmul.f32 0.2, %v3754_v4  ;;  %vm4762_vm4 = vcmp.gt.f32.partialorder %v3754_v4, 0.0  ;;  %v528_v22 = vld [vmem:[#allocation3 + $0xa98] sm:$0xff] }
 0x24b   :  { %13751 = vst [vmem:[#allocation41_spill] sm:$0xff] %v12267_v28  ;;  %v3646_v55 = vpop.f32.mrf.mxu0  ;;  %v5011_v36 = vsel %vm4755_vm3, %v3750_v10, %v4883_v54  ;;  %v5003_v6 = vsel %vm4747_vm2, %v12232_v13, %v4875_v16 }
 0x24c   :  { %4489 = vmatpush2.bf16.msra.mxu0 %v9441_v37  ;;  %v3758_v33 = vadd.f32 %v3757_v60, %v3645_v45  ;;  %v3759_v21 = vpop.f32.mrf.mxu1  ;;  %v3647_v0 = vadd.f32 %v3646_v55, %v12052_v8  ;;  %v12285_v49 = vpack.c.bf16 %v5011_v36, %v5003_v6  ;;  %v9425_v8 = vcombine.low %v544_v9, %v548_v15  ;;  %v532_v9 = vld [vmem:[#allocation3 + $0xab8] sm:$0xff] }
 0x24d   :  { %4490 = vmatprep.subr.bf16.mxu0 %v9434_v62  ;;  %v3650_v34 = vpop.f32.mrf.mxu0  ;;  %v5018_v13 = vsel %vm4762_vm4, %v3754_v4, %v4890_v7  ;;  %v4891_v62 = vmul.f32 0.2, %v12269_v46  ;;  %v10799_v4 = vld [vmem:[%s13666_s0 + $0x15c] ss:$28 sps:$4 sm:$0xff]   ;;  %vm4763_vm6 = vcmp.gt.f32.partialorder %v12269_v46, 0.0 }
 0x24e   :  { %13752 = vst [vmem:[#allocation42_spill] sm:$0xff] %v12285_v49  ;;  %vm4770_vm5 = vcmp.gt.f32.partialorder %v3758_v33, 0.0  ;;  %v4898_v11 = vmul.f32 0.2, %v3758_v33  ;;  %v3651_v12 = vadd.f32 %v3650_v34, %v12059_v58  ;;  %v3763_v37 = vpop.f32.mrf.mxu1  ;;  %v3760_v10 = vadd.f32 %v3759_v21, %v3647_v0  ;;  %v12311_v6 = vld [vmem:[#allocation3 + $0xa58] sm:$0xff] }
 0x24f   :  { %4327 = vmatmul.mubr.bf16.gmra.mxu0 %v10796_v48  ;;  %4440 = vmatmul.mubr.bf16.gmra.mxu1 %v10797_v61  ;;  %v3652_v20 = vpop.f32.mrf.mxu0  ;;  %v9418_v58 = vcombine.high %v12274_v30, %v12276_v50  ;;  %v524_v0 = vld [vmem:[#allocation3 + $0xa78] sm:$0xff] }
 0x250   :  { %4491 = vmatpush2.bf16.msra.mxu0 %v9433_v26  ;;  %4336 = vmatprep.mubr.bf16.mxu0 %v10798_v56  ;;  %v5026_v16 = vsel %vm4770_vm5, %v3758_v33, %v4898_v11  ;;  %v3764_v59 = vadd.f32 %v3763_v37, %v3651_v12  ;;  %v3653_v14 = vadd.f32 %v3652_v20, %v12066_v63  ;;  %v3765_v40 = vpop.f32.mrf.mxu1  ;;  %vm4771_vm7 = vcmp.gt.f32.partialorder %v3760_v10, 0.0  ;;  %v10801_v61 = vld [vmem:[%s13666_s0 + $0x158] ss:$28 sps:$4 sm:$0xff]  }
 0x251   :  { %4492 = vmatprep.subr.bf16.mxu0 %v9426_v44  ;;  %4449 = vmatprep.mubr.bf16.mxu1 %v10799_v4  ;;  %v12304_v15 = vpack.c.bf16 %v5026_v16, %v5018_v13  ;;  %v4899_v54 = vmul.f32 0.2, %v3760_v10  ;;  %v3654_v31 = vpop.f32.mrf.mxu0  ;;  %v9417_v26 = vcombine.low %v12274_v30, %v12276_v50  ;;  %v9410_v44 = vcombine.high %v528_v22, %v532_v9  ;;  %v10800_v30 = vld [vmem:[%s13666_s0 + $0x150] ss:$28 sps:$4 sm:$0xff]  }
 0x252   :  { %v12306_v45 = vadd.f32 %v3765_v40, %v3653_v14  ;;  %v3655_v60 = vadd.f32 %v3654_v31, %v12069_v47  ;;  %v3767_v63 = vpop.f32.mrf.mxu1  ;;  %v4906_v7 = vmul.f32 0.2, %v3764_v59  ;;  %vm4778_vm8 = vcmp.gt.f32.partialorder %v3764_v59, 0.0  ;;  %v512_v14 = vld [vmem:[#allocation3 + $0xa18] sm:$0xff] }
 0x253   :  { %13753 = vst [vmem:[#allocation43_spill] sm:$0xff] %v12304_v15  ;;  %v3656_v55 = vpop.f32.mrf.mxu0  ;;  %v5027_v36 = vsel %vm4771_vm7, %v3760_v10, %v4899_v54  ;;  %v5019_v47 = vsel %vm4763_vm6, %v12269_v46, %v4891_v62  ;;  %v10802_v10 = vld [vmem:[%s13666_s0 + $0x18c] ss:$28 sps:$4 sm:$0xff]   ;;  %v516_v40 = vld [vmem:[#allocation3 + $0xa38] sm:$0xff] }
 0x254   :  { %4493 = vmatpush2.bf16.msra.mxu0 %v9425_v8  ;;  %v3768_v33 = vadd.f32 %v3767_v63, %v3655_v60  ;;  %v3769_v21 = vpop.f32.mrf.mxu1  ;;  %v3657_v34 = vadd.f32 %v3656_v55, %v12075_v23  ;;  %v12320_v50 = vpack.c.bf16 %v5027_v36, %v5019_v47  ;;  %v9409_v23 = vcombine.low %v528_v22, %v532_v9 }
 0x255   :  { %4494 = vmatprep.subr.bf16.mxu0 %v9418_v58  ;;  %v3660_v48 = vpop.f32.mrf.mxu0  ;;  %v5034_v46 = vsel %vm4778_vm8, %v3764_v59, %v4906_v7  ;;  %v4907_v20 = vmul.f32 0.2, %v12306_v45  ;;  %v10803_v59 = vld [vmem:[%s13666_s0 + $0x194] ss:$28 sps:$4 sm:$0xff]   ;;  %vm4779_vm10 = vcmp.gt.f32.partialorder %v12306_v45, 0.0  ;;  %v9401_v60 = vcombine.low %v12311_v6, %v524_v0 }
 0x256   :  { %13754 = vst [vmem:[#allocation44_spill] sm:$0xff] %v12320_v50  ;;  %vm4786_vm9 = vcmp.gt.f32.partialorder %v3768_v33, 0.0  ;;  %v4914_v11 = vmul.f32 0.2, %v3768_v33  ;;  %v3661_v12 = vadd.f32 %v3660_v48, %v12082_v35  ;;  %v3773_v37 = vpop.f32.mrf.mxu1  ;;  %v3770_v8 = vadd.f32 %v3769_v21, %v3657_v34 }
 0x257   :  { %4337 = vmatmul.mubr.bf16.gmra.mxu0 %v10800_v30  ;;  %4450 = vmatmul.mubr.bf16.gmra.mxu1 %v10801_v61  ;;  %v3662_v13 = vpop.f32.mrf.mxu0  ;;  %v9402_v35 = vcombine.high %v12311_v6, %v524_v0  ;;  %v9394_v7 = vcombine.high %v512_v14, %v516_v40  ;;  %v9393_v6 = vcombine.low %v512_v14, %v516_v40  ;;  %v10806_v61 = vld [vmem:[%s13666_s0 + $0x14] ss:$28 sps:$4 sm:$0xff]   ;;  %v10807_v14 = vld [vmem:[#allocation6] sm:$0xff] }
 0x258   :  { %4495 = vmatpush2.bf16.msra.mxu0 %v9417_v26  ;;  %4346 = vmatprep.mubr.bf16.mxu0 %v10802_v10  ;;  %v5042_v56 = vsel %vm4786_vm9, %v3768_v33, %v4914_v11  ;;  %v3774_v58 = vadd.f32 %v3773_v37, %v3661_v12  ;;  %v3663_v62 = vadd.f32 %v3662_v13, %v12089_v42  ;;  %v3775_v16 = vpop.f32.mrf.mxu1  ;;  %vm4787_vm11 = vcmp.gt.f32.partialorder %v3770_v8, 0.0 }
 0x259   :  { %4496 = vmatprep.subr.bf16.mxu0 %v9410_v44  ;;  %4459 = vmatprep.mubr.bf16.mxu1 %v10803_v59  ;;  %v12338_v4 = vpack.c.bf16 %v5042_v56, %v5034_v46  ;;  %v4915_v22 = vmul.f32 0.2, %v3770_v8  ;;  %v3664_v9 = vpop.f32.mrf.mxu0  ;;  %v5035_v33 = vsel %vm4779_vm10, %v12306_v45, %v4907_v20  ;;  %v10805_v45 = vld [vmem:[%s13666_s0 + $0x190] ss:$28 sps:$4 sm:$0xff]  }
 0x25a   :  { %v12340_v54 = vadd.f32 %v3775_v16, %v3663_v62  ;;  %v3665_v31 = vadd.f32 %v3664_v9, %v12092_v2  ;;  %v3777_v42 = vpop.f32.mrf.mxu1  ;;  %v4922_v63 = vmul.f32 0.2, %v3774_v58  ;;  %vm4794_vm12 = vcmp.gt.f32.partialorder %v3774_v58, 0.0  ;;  %v10804_v2 = vld [vmem:[%s13666_s0 + $0x188] ss:$28 sps:$4 sm:$0xff]  }
 0x25b   :  { %13755 = vst [vmem:[#allocation45_spill] sm:$0xff] %v12338_v4  ;;  %v3666_v26 = vpop.f32.mrf.mxu0  ;;  %v5043_v55 = vsel %vm4787_vm11, %v3770_v8, %v4915_v22 }
 0x25c   :  { %4497 = vmatpush2.bf16.msra.mxu0 %v9409_v23  ;;  %v3778_v44 = vadd.f32 %v3777_v42, %v3665_v31  ;;  %v3779_v36 = vpop.f32.mrf.mxu1  ;;  %v3667_v21 = vadd.f32 %v3666_v26, %v12098_v18  ;;  %v12351_v0 = vpack.c.bf16 %v5043_v55, %v5035_v33  ;;  %v601_v18 = vsub.s32 4, %v11383_v43  ;;  %v10104_v31 = vld [vmem:[#allocation8 + $0x2e0] ss:$16 sps:$4 sm:$0xff]   ;;  %v10109_v42 = vld [vmem:[#allocation8 + $0xc4] ss:$16 sps:$4 sm:$0xff]  }
 0x25d   :  { %4498 = vmatprep.subr.bf16.mxu0 %v9402_v35  ;;  %v3670_v47 = vpop.f32.mrf.mxu0  ;;  %v5050_v11 = vsel %vm4794_vm12, %v3774_v58, %v4922_v63  ;;  %v605_v23 = vsub.s32 5, %v11383_v43  ;;  %v4923_v46 = vmul.f32 0.2, %v12340_v54  ;;  %vm4795_vm14 = vcmp.gt.f32.partialorder %v12340_v54, 0.0  ;;  %v10112_v55 = vld [vmem:[#allocation8 + $0x2c4] ss:$16 sps:$4 sm:$0xff]  }
 0x25e   :  { %13756 = vst [vmem:[#allocation46_spill] sm:$0xff] %v12351_v0  ;;  %vm4802_vm13 = vcmp.gt.f32.partialorder %v3778_v44, 0.0  ;;  %v4930_v34 = vmul.f32 0.2, %v3778_v44  ;;  %v3671_v48 = vadd.f32 %v3670_v47, %v12105_v32  ;;  %v3783_v30 = vpop.f32.mrf.mxu1  ;;  %v3780_v12 = vadd.f32 %v3779_v36, %v3667_v21  ;;  %v10103_v32 = vld [vmem:[#allocation8 + $0xe4] ss:$16 sps:$4 sm:$0xff]  }
 0x25f   :  { %4347 = vmatmul.mubr.bf16.gmra.mxu0 %v10804_v2  ;;  %4460 = vmatmul.mubr.bf16.gmra.mxu1 %v10805_v45  ;;  %v3672_v37 = vpop.f32.mrf.mxu0  ;;  %v12373_v40 = vrot.slane %v10807_v14, %v601_v18  ;;  %v10808_v33 = vld [vmem:[%s13666_s0 + $0x10] ss:$28 sps:$4 sm:$0xff]  }
 0x260   :  { %4499 = vmatpush2.bf16.msra.mxu0 %v9401_v60  ;;  %4502 = vmatprep.mubr.bf16.mxu0 %v10806_v61  ;;  %v5058_v8 = vsel %vm4802_vm13, %v3778_v44, %v4930_v34  ;;  %v3784_v13 = vadd.f32 %v3783_v30, %v3671_v48  ;;  %v3673_v10 = vadd.f32 %v3672_v37, %v12114_v19  ;;  %v3785_v35 = vpop.f32.mrf.mxu1  ;;  %vm4803_vm15 = vcmp.gt.f32.partialorder %v3780_v12, 0.0  ;;  %v10101_v19 = vld [vmem:[#allocation8 + $0xe0] ss:$16 sps:$4 sm:$0xff]   ;;  %v10184_v43 = vld [vmem:[#allocation8 + $0x344] ss:$16 sps:$4 sm:$0xff]  }
 0x261   :  { %4500 = vmatprep.subr.bf16.mxu0 %v9394_v7  ;;  %4615 = vmatprep.mubr.bf16.mxu1 %v13744_v41  ;;  %v12368_v20 = vpack.c.bf16 %v5058_v8, %v5050_v11  ;;  %v4931_v56 = vmul.f32 0.2, %v3780_v12  ;;  %v3674_v58 = vpop.f32.mrf.mxu0  ;;  %v12375_v7 = vrot.slane %v10807_v14, %v605_v23  ;;  %v10809_v34 = vld [vmem:[%s13666_s0 + $0x18] ss:$28 sps:$4 sm:$0xff]   ;;  %v10115_v11 = vld [vmem:[#allocation8 + $0xa4] ss:$16 sps:$4 sm:$0xff]  }
 0x262   :  { %v12370_v62 = vadd.f32 %v3785_v35, %v3673_v10  ;;  %v3675_v16 = vadd.f32 %v3674_v58, %v12117_v38  ;;  %v3787_v59 = vpop.f32.mrf.mxu1  ;;  %v4938_v22 = vmul.f32 0.2, %v3784_v13  ;;  %vm4810_vm1 = vcmp.gt.f32.partialorder %v3784_v13, 0.0  ;;  %v10110_v18 = vld [vmem:[#allocation8 + $0x2c0] ss:$16 sps:$4 sm:$0xff]  }
 0x263   :  { %13757 = vst [vmem:[#allocation47_spill] sm:$0xff] %v12368_v20  ;;  %v3676_v9 = vpop.f32.mrf.mxu0  ;;  %v5059_v60 = vsel %vm4803_vm15, %v3780_v12, %v4931_v56  ;;  %v5051_v38 = vsel %vm4795_vm14, %v12340_v54, %v4923_v46  ;;  %v10810_v23 = vld [vmem:[%s13666_s0 + $0x4c] ss:$28 sps:$4 sm:$0xff]  }
 0x264   :  { %4501 = vmatpush2.bf16.msra.mxu0 %v9393_v6  ;;  %v3788_v63 = vadd.f32 %v3787_v59, %v3675_v16  ;;  %v3789_v26 = vpop.f32.mrf.mxu1  ;;  %v3677_v44 = vadd.f32 %v3676_v9, %v12123_v5  ;;  %v12384_v21 = vpack.c.bf16 %v5059_v60, %v5051_v38  ;;  %v10107_v5 = vld [vmem:[#allocation8 + $0xc0] ss:$16 sps:$4 sm:$0xff]   ;;  %v5066_v54 = vsel %vm4810_vm1, %v3784_v13, %v4938_v22  ;;  %v10118_v46 = vld [vmem:[#allocation8 + $0x2a4] ss:$16 sps:$4 sm:$0xff]  }
 0x265   :  { %6702 = vmatprep.subr.bf16.mxu0 %v10103_v32  ;;  %v3826_v36 = vpop.f32.mrf.mxu0  ;;  %v4939_v48 = vmul.f32 0.2, %v12370_v62  ;;  %vm4811_vm3 = vcmp.gt.f32.partialorder %v12370_v62, 0.0  ;;  %v10113_v16 = vld [vmem:[#allocation8 + $0xa0] ss:$16 sps:$4 sm:$0xff]  }
 0x266   :  { %13758 = vst [vmem:[#allocation48_spill] sm:$0xff] %v12384_v21  ;;  %vm4818_vm2 = vcmp.gt.f32.partialorder %v3788_v63, 0.0  ;;  %v4946_v47 = vmul.f32 0.2, %v3788_v63  ;;  %v3827_v2 = vadd.f32 %v3826_v36, %v12373_v40  ;;  %v3939_v6 = vpop.f32.mrf.mxu1  ;;  %v3790_v30 = vadd.f32 %v3789_v26, %v3677_v44  ;;  %v10116_v14 = vld [vmem:[#allocation8 + $0x2a0] ss:$16 sps:$4 sm:$0xff]  }
 0x267   :  { %4503 = vmatmul.mubr.bf16.vlgmr.msra.gmra.mxu0 %v10808_v33  ;;  %9483 = vmatmul.mubr.msk.bf16.vlgmr.msra.gmra.mxu1 %vm2863_vm0, %v10809_v34  ;;  %v3828_v45 = vpop.f32.mrf.mxu0  ;;  %v5067_v22 = vsel %vm4811_vm3, %v12370_v62, %v4939_v48  ;;  %v10811_v38 = vld [vmem:[%s13666_s0 + $0x48] ss:$28 sps:$4 sm:$0xff]   ;;  %v10812_v33 = vld [vmem:[%s13666_s0 + $0x50] ss:$28 sps:$4 sm:$0xff]  }
 0x268   :  { %6703 = vmatpush1.bf16.msra.mxu0 %v10101_v19  ;;  %6816 = vmatpush1.bf16.msra.mxu1 %v10104_v31  ;;  %v5074_v12 = vsel %vm4818_vm2, %v3788_v63, %v4946_v47  ;;  %v12395_v37 = vadd.f32 %v3939_v6, %v3827_v2  ;;  %v3829_v61 = vadd.f32 %v3828_v45, %v12375_v7  ;;  %v3941_v32 = vpop.f32.mrf.mxu1  ;;  %vm4819_vm4 = vcmp.gt.f32.partialorder %v3790_v30, 0.0  ;;  %v10121_v19 = vld [vmem:[#allocation8 + $0x84] ss:$16 sps:$4 sm:$0xff]   ;;  %v10119_v47 = vld [vmem:[#allocation8 + $0x80] ss:$16 sps:$4 sm:$0xff]  }
 0x269   :  { %6704 = vmatprep.subr.bf16.mxu0 %v10109_v42  ;;  %6817 = vmatprep.subr.bf16.mxu1 %v10112_v55  ;;  %v12401_v8 = vpack.c.bf16 %v5074_v12, %v5066_v54  ;;  %v4947_v13 = vmul.f32 0.2, %v3790_v30  ;;  %v3830_v10 = vpop.f32.mrf.mxu0  ;;  %v10124_v63 = vld [vmem:[#allocation8 + $0x284] ss:$16 sps:$4 sm:$0xff]   ;;  %v10122_v6 = vld [vmem:[#allocation8 + $0x280] ss:$16 sps:$4 sm:$0xff]  }
 0x26a   :  { %4512 = vmatprep.mubr.bf16.mxu0 %v10810_v23  ;;  %4625 = vmatprep.mubr.bf16.mxu1 %v13744_v41  ;;  %v12404_v35 = vadd.f32 %v3941_v32, %v3829_v61  ;;  %v3831_v56 = vadd.f32 %v3830_v10, %v12373_v40  ;;  %v3943_v58 = vpop.f32.mrf.mxu1  ;;  %v10127_v34 = vld [vmem:[#allocation8 + $0x64] ss:$16 sps:$4 sm:$0xff]   ;;  %v10125_v32 = vld [vmem:[#allocation8 + $0x60] ss:$16 sps:$4 sm:$0xff]  }
 0x26b   :  { %13759 = vst [vmem:[#allocation49_spill] sm:$0xff] %v12401_v8  ;;  %v3832_v59 = vpop.f32.mrf.mxu0  ;;  %v5075_v9 = vsel %vm4819_vm4, %v3790_v30, %v4947_v13  ;;  %v10813_v30 = vld [vmem:[%s13666_s0 + $0x84] ss:$28 sps:$4 sm:$0xff]  }
 0x26c   :  { %6705 = vmatpush1.bf16.msra.mxu0 %v10107_v5  ;;  %6818 = vmatpush1.bf16.msra.mxu1 %v10110_v18  ;;  %v12410_v31 = vadd.f32 %v3943_v58, %v3831_v56  ;;  %v3833_v42 = vadd.f32 %v3832_v59, %v12375_v7  ;;  %v3945_v60 = vpop.f32.mrf.mxu1  ;;  %v12413_v26 = vpack.c.bf16 %v5075_v9, %v5067_v22  ;;  %v10130_v45 = vld [vmem:[#allocation8 + $0x264] ss:$16 sps:$4 sm:$0xff]  }
 0x26d   :  { %6706 = vmatprep.subr.bf16.mxu0 %v10115_v11  ;;  %6819 = vmatprep.subr.bf16.mxu1 %v10118_v46  ;;  %v3836_v55 = vpop.f32.mrf.mxu0  ;;  %v10128_v46 = vld [vmem:[#allocation8 + $0x260] ss:$16 sps:$4 sm:$0xff]   ;;  %v10133_v13 = vld [vmem:[#allocation8 + $0x44] ss:$16 sps:$4 sm:$0xff]  }
 0x26e   :  { %13760 = vst [vmem:[#allocation50_spill] sm:$0xff] %v12413_v26  ;;  %v12418_v44 = vadd.f32 %v3945_v60, %v3833_v42  ;;  %v3837_v62 = vadd.f32 %v3836_v55, %v12373_v40  ;;  %v3949_v36 = vpop.f32.mrf.mxu1  ;;  %v10815_v42 = vld [vmem:[%s13666_s0 + $0x88] ss:$28 sps:$4 sm:$0xff]   ;;  %v10193_v20 = vld [vmem:[#allocation8 + $0x104] ss:$16 sps:$4 sm:$0xff]  }
 0x26f   :  { %4513 = vmatmul.mubr.bf16.gmra.mxu0 %v10811_v38  ;;  %9484 = vmatmul.mubr.msk.bf16.gmra.mxu1 %vm2863_vm0, %v10812_v33  ;;  %v3838_v2 = vpop.f32.mrf.mxu0  ;;  %v10131_v60 = vld [vmem:[#allocation8 + $0x40] ss:$16 sps:$4 sm:$0xff]   ;;  %v10139_v38 = vld [vmem:[#allocation8 + $0x24] ss:$16 sps:$4 sm:$0xff]  }
 0x270   :  { %6707 = vmatpush1.bf16.msra.mxu0 %v10113_v16  ;;  %6820 = vmatpush1.bf16.msra.mxu1 %v10116_v14  ;;  %v12425_v5 = vadd.f32 %v3949_v36, %v3837_v62  ;;  %v3839_v54 = vadd.f32 %v3838_v2, %v12375_v7  ;;  %v3951_v48 = vpop.f32.mrf.mxu1  ;;  %v10136_v16 = vld [vmem:[#allocation8 + $0x244] ss:$16 sps:$4 sm:$0xff]   ;;  %v10134_v55 = vld [vmem:[#allocation8 + $0x240] ss:$16 sps:$4 sm:$0xff]  }
 0x271   :  { %6708 = vmatprep.subr.bf16.mxu0 %v10121_v19  ;;  %6821 = vmatprep.subr.bf16.mxu1 %v10124_v63  ;;  %v3840_v18 = vpop.f32.mrf.mxu0  ;;  %v10814_v14 = vld [vmem:[%s13666_s0 + $0x80] ss:$28 sps:$4 sm:$0xff]  }
 0x272   :  { %4522 = vmatprep.mubr.bf16.mxu0 %v10813_v30  ;;  %4635 = vmatprep.mubr.bf16.mxu1 %v13744_v41  ;;  %v12432_v11 = vadd.f32 %v3951_v48, %v3839_v54  ;;  %v3841_v12 = vadd.f32 %v3840_v18, %v12373_v40  ;;  %v3953_v61 = vpop.f32.mrf.mxu1  ;;  %v10142_v2 = vld [vmem:[#allocation8 + $0x224] ss:$16 sps:$4 sm:$0xff]   ;;  %v10137_v30 = vld [vmem:[#allocation8 + $0x20] ss:$16 sps:$4 sm:$0xff]  }
 0x273   :  { %v3842_v23 = vpop.f32.mrf.mxu0  ;;  %v10140_v18 = vld [vmem:[#allocation8 + $0x220] ss:$16 sps:$4 sm:$0xff]  }
 0x274   :  { %6709 = vmatpush1.bf16.msra.mxu0 %v10119_v47  ;;  %6822 = vmatpush1.bf16.msra.mxu1 %v10122_v6  ;;  %v12435_v10 = vadd.f32 %v3953_v61, %v3841_v12  ;;  %v3843_v56 = vadd.f32 %v3842_v23, %v12375_v7  ;;  %v3955_v58 = vpop.f32.mrf.mxu1  ;;  %v10816_v47 = vld [vmem:[%s13666_s0 + $0xbc] ss:$28 sps:$4 sm:$0xff]  }
 0x275   :  { %6710 = vmatprep.subr.bf16.mxu0 %v10127_v34  ;;  %6823 = vmatprep.subr.bf16.mxu1 %v10130_v45  ;;  %v3846_v59 = vpop.f32.mrf.mxu0  ;;  %v10145_v12 = vld [vmem:[#allocation8 + $0x4] ss:$16 sps:$4 sm:$0xff]  }
 0x276   :  { %v12441_v19 = vadd.f32 %v3955_v58, %v3843_v56  ;;  %v3847_v22 = vadd.f32 %v3846_v59, %v12373_v40  ;;  %v3959_v9 = vpop.f32.mrf.mxu1  ;;  %v10817_v56 = vld [vmem:[%s13666_s0 + $0xb8] ss:$28 sps:$4 sm:$0xff]  }
 0x277   :  { %4523 = vmatmul.mubr.bf16.gmra.mxu0 %v10814_v14  ;;  %9485 = vmatmul.mubr.msk.bf16.gmra.mxu1 %vm2863_vm0, %v10815_v42  ;;  %v3848_v63 = vpop.f32.mrf.mxu0  ;;  %v10818_v14 = vld [vmem:[%s13666_s0 + $0xc0] ss:$28 sps:$4 sm:$0xff]  }
 0x278   :  { %6711 = vmatpush1.bf16.msra.mxu0 %v10125_v32  ;;  %6824 = vmatpush1.bf16.msra.mxu1 %v10128_v46  ;;  %v12448_v62 = vadd.f32 %v3959_v9, %v3847_v22  ;;  %v3849_v36 = vadd.f32 %v3848_v63, %v12375_v7  ;;  %v3961_v33 = vpop.f32.mrf.mxu1  ;;  %v10148_v46 = vld [vmem:[#allocation8 + $0x204] ss:$16 sps:$4 sm:$0xff]   ;;  %v10143_v22 = vld [vmem:[#allocation8] ss:$16 sps:$4 sm:$0xff]  }
 0x279   :  { %6712 = vmatprep.subr.bf16.mxu0 %v10133_v13  ;;  %6825 = vmatprep.subr.bf16.mxu1 %v10136_v16  ;;  %v3850_v6 = vpop.f32.mrf.mxu0  ;;  %v10146_v42 = vld [vmem:[#allocation8 + $0x200] ss:$16 sps:$4 sm:$0xff]  }
 0x27a   :  { %4532 = vmatprep.mubr.bf16.mxu0 %v10816_v47  ;;  %4645 = vmatprep.mubr.bf16.mxu1 %v13744_v41  ;;  %v12455_v34 = vadd.f32 %v3961_v33, %v3849_v36  ;;  %v3851_v54 = vadd.f32 %v3850_v6, %v12373_v40  ;;  %v3963_v48 = vpop.f32.mrf.mxu1  ;;  %v10819_v36 = vld [vmem:[%s13666_s0 + $0xf4] ss:$28 sps:$4 sm:$0xff]  }
 0x27b   :  { %v3852_v45 = vpop.f32.mrf.mxu0  ;;  %v10154_v33 = vld [vmem:[#allocation8 + $0x3e4] ss:$16 sps:$4 sm:$0xff]  }
 0x27c   :  { %6713 = vmatpush1.bf16.msra.mxu0 %v10131_v60  ;;  %6826 = vmatpush1.bf16.msra.mxu1 %v10134_v55  ;;  %v12458_v61 = vadd.f32 %v3963_v48, %v3851_v54  ;;  %v3853_v32 = vadd.f32 %v3852_v45, %v12375_v7  ;;  %v3965_v23 = vpop.f32.mrf.mxu1  ;;  %v10151_v60 = vld [vmem:[#allocation8 + $0x1e4] ss:$16 sps:$4 sm:$0xff]   ;;  %v10149_v48 = vld [vmem:[#allocation8 + $0x1e0] ss:$16 sps:$4 sm:$0xff]  }
 0x27d   :  { %6714 = vmatprep.subr.bf16.mxu0 %v10139_v38  ;;  %6827 = vmatprep.subr.bf16.mxu1 %v10142_v2  ;;  %v3856_v13 = vpop.f32.mrf.mxu0  ;;  %v10152_v45 = vld [vmem:[#allocation8 + $0x3e0] ss:$16 sps:$4 sm:$0xff]  }
 0x27e   :  { %v12464_v58 = vadd.f32 %v3965_v23, %v3853_v32  ;;  %v3857_v16 = vadd.f32 %v3856_v13, %v12373_v40  ;;  %v3969_v59 = vpop.f32.mrf.mxu1 }
 0x27f   :  { %4533 = vmatmul.mubr.bf16.gmra.mxu0 %v10817_v56  ;;  %9486 = vmatmul.mubr.msk.bf16.gmra.mxu1 %vm2863_vm0, %v10818_v14  ;;  %v3858_v9 = vpop.f32.mrf.mxu0  ;;  %v10820_v56 = vld [vmem:[%s13666_s0 + $0xf0] ss:$28 sps:$4 sm:$0xff]  }
 0x280   :  { %6715 = vmatpush1.bf16.msra.mxu0 %v10137_v30  ;;  %6828 = vmatpush1.bf16.msra.mxu1 %v10140_v18  ;;  %v12471_v63 = vadd.f32 %v3969_v59, %v3857_v16  ;;  %v3859_v55 = vadd.f32 %v3858_v9, %v12375_v7  ;;  %v3971_v38 = vpop.f32.mrf.mxu1  ;;  %v10157_v18 = vld [vmem:[#allocation8 + $0x1c4] ss:$16 sps:$4 sm:$0xff]   ;;  %v10155_v9 = vld [vmem:[#allocation8 + $0x1c0] ss:$16 sps:$4 sm:$0xff]  }
 0x281   :  { %6716 = vmatprep.subr.bf16.mxu0 %v10145_v12  ;;  %6829 = vmatprep.subr.bf16.mxu1 %v10148_v46  ;;  %v3860_v47 = vpop.f32.mrf.mxu0  ;;  %v10160_v46 = vld [vmem:[#allocation8 + $0x3c4] ss:$16 sps:$4 sm:$0xff]  }
 0x282   :  { %4542 = vmatprep.mubr.bf16.mxu0 %v10819_v36  ;;  %4655 = vmatprep.mubr.bf16.mxu1 %v13744_v41  ;;  %v12478_v2 = vadd.f32 %v3971_v38, %v3859_v55  ;;  %v3861_v6 = vadd.f32 %v3860_v47, %v12373_v40  ;;  %v3973_v54 = vpop.f32.mrf.mxu1  ;;  %v10163_v55 = vld [vmem:[#allocation8 + $0x1a4] ss:$16 sps:$4 sm:$0xff]  }
 0x283   :  { %v3862_v30 = vpop.f32.mrf.mxu0  ;;  %v10822_v47 = vld [vmem:[%s13666_s0 + $0x12c] ss:$28 sps:$4 sm:$0xff]  }
 0x284   :  { %6717 = vmatpush1.bf16.msra.mxu0 %v10143_v22  ;;  %6830 = vmatpush1.bf16.msra.mxu1 %v10146_v42  ;;  %v12481_v12 = vadd.f32 %v3973_v54, %v3861_v6  ;;  %v3863_v32 = vadd.f32 %v3862_v30, %v12375_v7  ;;  %v3975_v23 = vpop.f32.mrf.mxu1  ;;  %v10821_v22 = vld [vmem:[%s13666_s0 + $0xf8] ss:$28 sps:$4 sm:$0xff]   ;;  %v10166_v6 = vld [vmem:[#allocation8 + $0x3a4] ss:$16 sps:$4 sm:$0xff]  }
 0x285   :  { %6718 = vmatprep.subr.bf16.mxu0 %v10151_v60  ;;  %6831 = vmatprep.subr.bf16.mxu1 %v10154_v33  ;;  %v3866_v13 = vpop.f32.mrf.mxu0  ;;  %v10158_v60 = vld [vmem:[#allocation8 + $0x3c0] ss:$16 sps:$4 sm:$0xff]  }
 0x286   :  { %v12487_v16 = vadd.f32 %v3975_v23, %v3863_v32  ;;  %v3867_v59 = vadd.f32 %v3866_v13, %v12373_v40  ;;  %v3979_v14 = vpop.f32.mrf.mxu1  ;;  %v10164_v23 = vld [vmem:[#allocation8 + $0x3a0] ss:$16 sps:$4 sm:$0xff]  }
 0x287   :  { %4543 = vmatmul.mubr.bf16.gmra.mxu0 %v10820_v56  ;;  %9487 = vmatmul.mubr.msk.bf16.gmra.mxu1 %vm2863_vm0, %v10821_v22  ;;  %v3868_v42 = vpop.f32.mrf.mxu0 }
 0x288   :  { %6719 = vmatpush2.bf16.msra.mxu0 %v10149_v48  ;;  %6832 = vmatpush2.bf16.msra.mxu1 %v10152_v45  ;;  %v12494_v38 = vadd.f32 %v3979_v14, %v3867_v59  ;;  %v3869_v36 = vadd.f32 %v3868_v42, %v12375_v7  ;;  %v3981_v33 = vpop.f32.mrf.mxu1  ;;  %v10172_v14 = vld [vmem:[#allocation8 + $0x384] ss:$16 sps:$4 sm:$0xff]   ;;  %v10823_v42 = vld [vmem:[%s13666_s0 + $0x128] ss:$28 sps:$4 sm:$0xff]  }
 0x289   :  { %6720 = vmatprep.subr.bf16.mxu0 %v10157_v18  ;;  %6833 = vmatprep.subr.bf16.mxu1 %v10160_v46  ;;  %v3870_v54 = vpop.f32.mrf.mxu0  ;;  %v10161_v18 = vld [vmem:[#allocation8 + $0x1a0] ss:$16 sps:$4 sm:$0xff]   ;;  %v10169_v46 = vld [vmem:[#allocation8 + $0x184] ss:$16 sps:$4 sm:$0xff]  }
 0x28a   :  { %4552 = vmatprep.mubr.bf16.mxu0 %v10822_v47  ;;  %4665 = vmatprep.mubr.bf16.mxu1 %v13744_v41  ;;  %v12501_v48 = vadd.f32 %v3981_v33, %v3869_v36  ;;  %v3871_v30 = vadd.f32 %v3870_v54, %v12373_v40  ;;  %v3983_v45 = vpop.f32.mrf.mxu1  ;;  %v10824_v36 = vld [vmem:[%s13666_s0 + $0x130] ss:$28 sps:$4 sm:$0xff]  }
 0x28b   :  { %v3872_v32 = vpop.f32.mrf.mxu0  ;;  %v10167_v33 = vld [vmem:[#allocation8 + $0x180] ss:$16 sps:$4 sm:$0xff]   ;;  %v10175_v54 = vld [vmem:[#allocation8 + $0x164] ss:$16 sps:$4 sm:$0xff]  }
 0x28c   :  { %6721 = vmatpush2.bf16.msra.mxu0 %v10155_v9  ;;  %6834 = vmatpush2.bf16.msra.mxu1 %v10158_v60  ;;  %v12504_v13 = vadd.f32 %v3983_v45, %v3871_v30  ;;  %v3873_v56 = vadd.f32 %v3872_v32, %v12375_v7  ;;  %v3985_v59 = vpop.f32.mrf.mxu1 }
 0x28d   :  { %6722 = vmatprep.subr.bf16.mxu0 %v10163_v55  ;;  %6835 = vmatprep.subr.bf16.mxu1 %v10166_v6  ;;  %v3876_v22 = vpop.f32.mrf.mxu0  ;;  %v10170_v6 = vld [vmem:[#allocation8 + $0x380] ss:$16 sps:$4 sm:$0xff]  }
 0x28e   :  { %v12510_v9 = vadd.f32 %v3985_v59, %v3873_v56  ;;  %v3877_v60 = vadd.f32 %v3876_v22, %v12373_v40  ;;  %v3989_v55 = vpop.f32.mrf.mxu1  ;;  %v10825_v56 = vld [vmem:[%s13666_s0 + $0x164] ss:$28 sps:$4 sm:$0xff]  }
 0x28f   :  { %4553 = vmatmul.mubr.bf16.gmra.mxu0 %v10823_v42  ;;  %9488 = vmatmul.mubr.msk.bf16.gmra.mxu1 %vm2863_vm0, %v10824_v36  ;;  %v3878_v47 = vpop.f32.mrf.mxu0  ;;  %v10178_v59 = vld [vmem:[#allocation8 + $0x364] ss:$16 sps:$4 sm:$0xff]   ;;  %v10173_v42 = vld [vmem:[#allocation8 + $0x160] ss:$16 sps:$4 sm:$0xff]  }
 0x290   :  { %6723 = vmatpush2.bf16.msra.mxu0 %v10161_v18  ;;  %6836 = vmatpush2.bf16.msra.mxu1 %v10164_v23  ;;  %v12517_v30 = vadd.f32 %v3989_v55, %v3877_v60  ;;  %v3879_v45 = vadd.f32 %v3878_v47, %v12375_v7  ;;  %v3991_v32 = vpop.f32.mrf.mxu1  ;;  %v10181_v55 = vld [vmem:[#allocation8 + $0x144] ss:$16 sps:$4 sm:$0xff]  }
 0x291   :  { %6724 = vmatprep.subr.bf16.mxu0 %v10169_v46  ;;  %6837 = vmatprep.subr.bf16.mxu1 %v10172_v14  ;;  %v3880_v22 = vpop.f32.mrf.mxu0  ;;  %v10176_v14 = vld [vmem:[#allocation8 + $0x360] ss:$16 sps:$4 sm:$0xff]  }
 0x292   :  { %4562 = vmatprep.mubr.bf16.mxu0 %v10825_v56  ;;  %4675 = vmatprep.mubr.bf16.mxu1 %v13744_v41  ;;  %v12524_v18 = vadd.f32 %v3991_v32, %v3879_v45  ;;  %v3881_v23 = vadd.f32 %v3880_v22, %v12373_v40  ;;  %v3993_v46 = vpop.f32.mrf.mxu1  ;;  %v10826_v45 = vld [vmem:[%s13666_s0 + $0x160] ss:$28 sps:$4 sm:$0xff]   ;;  %v10827_v32 = vld [vmem:[%s13666_s0 + $0x168] ss:$28 sps:$4 sm:$0xff]  }
 0x293   :  { %v3882_v60 = vpop.f32.mrf.mxu0 }
 0x294   :  { %6725 = vmatpush2.bf16.msra.mxu0 %v10167_v33  ;;  %6838 = vmatpush2.bf16.msra.mxu1 %v10170_v6  ;;  %v12527_v36 = vadd.f32 %v3993_v46, %v3881_v23  ;;  %v3883_v47 = vadd.f32 %v3882_v60, %v12375_v7  ;;  %v3995_v56 = vpop.f32.mrf.mxu1  ;;  %v10182_v23 = vld [vmem:[#allocation8 + $0x340] ss:$16 sps:$4 sm:$0xff]   ;;  %v10187_v46 = vld [vmem:[#allocation8 + $0x124] ss:$16 sps:$4 sm:$0xff]  }
 0x295   :  { %6726 = vmatprep.subr.bf16.mxu0 %v10175_v54  ;;  %6839 = vmatprep.subr.bf16.mxu1 %v10178_v59  ;;  %v3886_v8 = vpop.f32.mrf.mxu0  ;;  %v10179_v59 = vld [vmem:[#allocation8 + $0x140] ss:$16 sps:$4 sm:$0xff]  }
 0x296   :  { %v12533_v33 = vadd.f32 %v3995_v56, %v3883_v47  ;;  %v3887_v6 = vadd.f32 %v3886_v8, %v12373_v40  ;;  %v3999_v54 = vpop.f32.mrf.mxu1  ;;  %v10828_v8 = vld [vmem:[%s13666_s0 + $0x19c] ss:$28 sps:$4 sm:$0xff]  }
 0x297   :  { %4563 = vmatmul.mubr.bf16.gmra.mxu0 %v10826_v45  ;;  %9489 = vmatmul.mubr.msk.bf16.gmra.mxu1 %vm2863_vm0, %v10827_v32  ;;  %v3888_v22 = vpop.f32.mrf.mxu0  ;;  %v10190_v45 = vld [vmem:[#allocation8 + $0x324] ss:$16 sps:$4 sm:$0xff]  }
 0x298   :  { %6727 = vmatpush2.bf16.msra.mxu0 %v10173_v42  ;;  %6840 = vmatpush2.bf16.msra.mxu1 %v10176_v14  ;;  %v12540_v60 = vadd.f32 %v3999_v54, %v3887_v6  ;;  %v3889_v47 = vadd.f32 %v3888_v22, %v12375_v7  ;;  %v4001_v56 = vpop.f32.mrf.mxu1  ;;  %v10185_v6 = vld [vmem:[#allocation8 + $0x120] ss:$16 sps:$4 sm:$0xff]  }
 0x299   :  { %6728 = vmatprep.subr.bf16.mxu0 %v10181_v55  ;;  %6841 = vmatprep.subr.bf16.mxu1 %v10184_v43  ;;  %v3890_v32 = vpop.f32.mrf.mxu0  ;;  %v10188_v43 = vld [vmem:[#allocation8 + $0x320] ss:$16 sps:$4 sm:$0xff]  }
 0x29a   :  { %13761 = vst [vmem:[#allocation51_spill] sm:$0xff] %v12540_v60  ;;  %4572 = vmatprep.mubr.bf16.mxu0 %v10828_v8  ;;  %4685 = vmatprep.mubr.bf16.mxu1 %v13744_v41  ;;  %v12547_v42 = vadd.f32 %v4001_v56, %v3889_v47  ;;  %v3891_v14 = vadd.f32 %v3890_v32, %v12373_v40  ;;  %v4003_v55 = vpop.f32.mrf.mxu1  ;;  %v10829_v41 = vld [vmem:[%s13666_s0 + $0x198] ss:$28 sps:$4 sm:$0xff]   ;;  %v10196_v47 = vld [vmem:[#allocation8 + $0x304] ss:$16 sps:$4 sm:$0xff]  }
 0x29b   :  { %v3892_v54 = vpop.f32.mrf.mxu0  ;;  %v10830_v56 = vld [vmem:[%s13666_s0 + $0x1a0] ss:$28 sps:$4 sm:$0xff]   ;;  %s11019_s0 = smov [#allocation15]  }
 0x29c   :  { %6729 = vmatpush2.bf16.msra.mxu0 %v10179_v59  ;;  %6842 = vmatpush2.bf16.msra.mxu1 %v10182_v23  ;;  %v12550_v22 = vadd.f32 %v4003_v55, %v3891_v14  ;;  %v3893_v26 = vadd.f32 %v3892_v54, %v12375_v7  ;;  %v4005_v8 = vpop.f32.mrf.mxu1  ;;  %v10194_v14 = vld [vmem:[#allocation8 + $0x300] ss:$16 sps:$4 sm:$0xff]   ;;  %v10199_v55 = vld [vmem:[#allocation8 + $0x4e4] ss:$16 sps:$4 sm:$0xff]   ;;  %s8996_s8 = sshll.u32 %s11019_s0, 4  ;;  %s8997_s8 = int_to_ptr.vmem [resolvable:$true] %s8996_s8 }
 0x29d   :  { %6730 = vmatprep.subr.bf16.mxu0 %v10187_v46  ;;  %6843 = vmatprep.subr.bf16.mxu1 %v10190_v45  ;;  %v3896_v60 = vpop.f32.mrf.mxu0  ;;  %v10191_v45 = vld [vmem:[#allocation8 + $0x100] ss:$16 sps:$4 sm:$0xff]   ;;  %s10973_s1 = scalar_lea.vmem %s8997_s8, 1024  ;;  %p10978_p8 = scmp.lt.s32.totalorder %s8997_s8, %s8997_s8 }
 0x29e   :  { %v12556_v59 = vadd.f32 %v4005_v8, %v3893_v26  ;;  %v3897_v23 = vadd.f32 %v3896_v60, %v12373_v40  ;;  %v4009_v46 = vpop.f32.mrf.mxu1  ;;  %v10262_v8 = vld [vmem:[#allocation8 + $0x6e4] ss:$16 sps:$4 sm:$0xff]   ;;  %p10974_p7 = scmp.ne.s32.totalorder %s8997_s8, %s10973_s1  ;;  %p10979_p9 = scmp.lt.s32.totalorder %s10973_s1, %s10973_s1 }
 0x29f   :  { %4573 = vmatmul.mubr.bf16.gmra.mxu0 %v10829_v41  ;;  %9490 = vmatmul.mubr.msk.bf16.gmra.mxu1 %vm2863_vm0, %v10830_v56  ;;  %v3898_v32 = vpop.f32.mrf.mxu0 }
 0x2a0   :  { %13762 = vst [vmem:[#allocation52_spill] sm:$0xff] %v12556_v59  ;;  %6731 = vmatpush2.bf16.msra.mxu0 %v10185_v6  ;;  %6734 = vmatprep.mubr.bf16.mxu0 %v11656_v24  ;;  %v12564_v54 = vadd.f32 %v4009_v46, %v3897_v23  ;;  %v3899_v26 = vadd.f32 %v3898_v32, %v12375_v7  ;;  %v4011_v60 = vpop.f32.mrf.mxu1  ;;  %v10197_v59 = vld [vmem:[#allocation8 + $0x4e0] ss:$16 sps:$4 sm:$0xff]   ;;  %p10980_p10 = por %p10979_p9, %p10978_p8 }
 0x2a1   :  { %6844 = vmatpush2.bf16.msra.mxu1 %v10188_v43  ;;  %6847 = vmatprep.mubr.bf16.mxu1 %v12174_v25  ;;  %v3900_v41 = vpop.f32.mrf.mxu0  ;;  %v10202_v25 = vld [vmem:[#allocation8 + $0x4c4] ss:$16 sps:$4 sm:$0xff]  }
 0x2a2   :  { %13763 = vst [vmem:[#allocation53_spill] sm:$0xff] %v12564_v54  ;;  %6732 = vmatprep.subr.bf16.mxu0 %v10193_v20  ;;  %6845 = vmatprep.subr.bf16.mxu1 %v10196_v47  ;;  %v12568_v56 = vadd.f32 %v4011_v60, %v3899_v26  ;;  %v3901_v6 = vadd.f32 %v3900_v41, %v12373_v40  ;;  %v4013_v24 = vpop.f32.mrf.mxu1  ;;  %v10260_v20 = vld [vmem:[#allocation8 + $0x6e0] ss:$16 sps:$4 sm:$0xff]   ;;  %v10268_v47 = vld [vmem:[#allocation8 + $0x6c4] ss:$16 sps:$4 sm:$0xff]   ;;  %p10981_p11 = pnand %p10980_p10, %p10974_p7 }
 0x2a3   :  { %v3902_v43 = vpop.f32.mrf.mxu0  ;;  %v10266_v41 = vld [vmem:[#allocation8 + $0x6c0] ss:$16 sps:$4 sm:$0xff]  }
 0x2a4   :  { %6733 = vmatpush2.bf16.msra.mxu0 %v10191_v45  ;;  %v12571_v23 = vadd.f32 %v4013_v24, %v3901_v6  ;;  %v3903_v46 = vadd.f32 %v3902_v43, %v12375_v7  ;;  %v4015_v32 = vpop.f32.mrf.mxu1  ;;  %v10200_v7 = vld [vmem:[#allocation8 + $0x4c0] ss:$16 sps:$4 sm:$0xff]  }
 0x2a5   :  { %6846 = vmatpush2.bf16.msra.mxu1 %v10194_v14  ;;  %6928 = vmatprep.subr.bf16.mxu0 %v10199_v55  ;;  %v4052_v54 = vpop.f32.mrf.mxu0 }
 0x2a6   :  { %7041 = vmatprep.subr.bf16.mxu1 %v10262_v8  ;;  %v12575_v26 = vadd.f32 %v4015_v32, %v3903_v46  ;;  %v4053_v40 = vadd.f32 %v4052_v54, %v12395_v37  ;;  %v4165_v45 = vpop.f32.mrf.mxu1  ;;  %v10205_v8 = vld [vmem:[#allocation8 + $0x4a4] ss:$16 sps:$4 sm:$0xff]  }
 0x2a7   :  { %6735 = vmatmul.mubr.bf16.vlgmr.msra.gmra.mxu0 %v11640_v27  ;;  %v4054_v24 = vpop.f32.mrf.mxu0  ;;  %v10274_v37 = vld [vmem:[#allocation8 + $0x6a4] ss:$16 sps:$4 sm:$0xff]  }
 0x2a8   :  { %6848 = vmatmul.mubr.bf16.vlgmr.msra.gmra.mxu1 %v12158_v57  ;;  %6744 = vmatprep.mubr.bf16.mxu0 %v11693_v1  ;;  %v4166_v14 = vadd.f32 %v4165_v45, %v4053_v40  ;;  %v4055_v55 = vadd.f32 %v4054_v24, %v12404_v35  ;;  %v4167_v60 = vpop.f32.mrf.mxu1  ;;  %v10208_v35 = vld [vmem:[#allocation8 + $0x484] ss:$16 sps:$4 sm:$0xff]  }
 0x2a9   :  { %6857 = vmatprep.mubr.bf16.mxu1 %v12211_v39  ;;  %6929 = vmatpush1.bf16.msra.mxu0 %v10197_v59  ;;  %v4056_v6 = vpop.f32.mrf.mxu0  ;;  %v10203_v59 = vld [vmem:[#allocation8 + $0x4a0] ss:$16 sps:$4 sm:$0xff]  }
 0x2aa   :  { %6930 = vmatprep.subr.bf16.mxu0 %v10202_v25  ;;  %7042 = vmatpush1.bf16.msra.mxu1 %v10260_v20  ;;  %v4057_v54 = vadd.f32 %v4056_v6, %v12410_v31  ;;  %v4169_v43 = vpop.f32.mrf.mxu1  ;;  %v4828_v46 = vmul.f32 0.2, %v4166_v14  ;;  %vm4700_vm0 = vcmp.gt.f32.partialorder %v4166_v14, 0.0  ;;  %v4168_v39 = vadd.f32 %v4167_v60, %v4055_v55  ;;  %v10272_v25 = vld [vmem:[#allocation8 + $0x6a0] ss:$16 sps:$4 sm:$0xff]  }
 0x2ab   :  { %7043 = vmatprep.subr.bf16.mxu1 %v10268_v47  ;;  %v4058_v32 = vpop.f32.mrf.mxu0  ;;  %v10280_v31 = vld [vmem:[#allocation8 + $0x684] ss:$16 sps:$4 sm:$0xff]  }
 0x2ac   :  { %v4170_v40 = vadd.f32 %v4169_v43, %v4057_v54  ;;  %v4171_v45 = vpop.f32.mrf.mxu1  ;;  %v4059_v20 = vadd.f32 %v4058_v32, %v12418_v44  ;;  %v4956_v55 = vsel %vm4700_vm0, %v4166_v14, %v4828_v46  ;;  %vm4701_vm6 = vcmp.gt.f32.partialorder %v4168_v39, 0.0 }
 0x2ad   :  { %6931 = vmatpush1.bf16.msra.mxu0 %v10200_v7  ;;  %v4062_v24 = vpop.f32.mrf.mxu0 }
 0x2ae   :  { %6932 = vmatprep.subr.bf16.mxu0 %v10205_v8  ;;  %7044 = vmatpush1.bf16.msra.mxu1 %v10266_v41  ;;  %vm4708_vm5 = vcmp.gt.f32.partialorder %v4170_v40, 0.0  ;;  %v4836_v47 = vmul.f32 0.2, %v4170_v40  ;;  %v4063_v7 = vadd.f32 %v4062_v24, %v12425_v5  ;;  %v4175_v6 = vpop.f32.mrf.mxu1  ;;  %v4172_v60 = vadd.f32 %v4171_v45, %v4059_v20  ;;  %v10206_v8 = vld [vmem:[#allocation8 + $0x480] ss:$16 sps:$4 sm:$0xff]  }
 0x2af   :  { %6745 = vmatmul.mubr.bf16.gmra.mxu0 %v11675_v3  ;;  %7045 = vmatprep.subr.bf16.mxu1 %v10274_v37  ;;  %v4064_v44 = vpop.f32.mrf.mxu0  ;;  %v4829_v41 = vmul.f32 0.2, %v4168_v39  ;;  %v10211_v5 = vld [vmem:[#allocation8 + $0x464] ss:$16 sps:$4 sm:$0xff]   ;;  %v10278_v24 = vld [vmem:[#allocation8 + $0x680] ss:$16 sps:$4 sm:$0xff]  }
 0x2b0   :  { %6858 = vmatmul.mubr.bf16.gmra.mxu1 %v12193_v52  ;;  %6754 = vmatprep.mubr.bf16.mxu0 %v11730_v51  ;;  %v4964_v37 = vsel %vm4708_vm5, %v4170_v40, %v4836_v47  ;;  %v4176_v54 = vadd.f32 %v4175_v6, %v4063_v7  ;;  %v4065_v43 = vadd.f32 %v4064_v44, %v12432_v11  ;;  %v4177_v32 = vpop.f32.mrf.mxu1  ;;  %vm4709_vm7 = vcmp.gt.f32.partialorder %v4172_v60, 0.0  ;;  %v10209_v11 = vld [vmem:[#allocation8 + $0x460] ss:$16 sps:$4 sm:$0xff]  }
 0x2b1   :  { %6867 = vmatprep.mubr.bf16.mxu1 %v12248_v17  ;;  %6933 = vmatpush1.bf16.msra.mxu0 %v10203_v59  ;;  %v12591_v52 = vpack.c.bf16 %v4964_v37, %v4956_v55  ;;  %v4837_v14 = vmul.f32 0.2, %v4172_v60  ;;  %v4066_v46 = vpop.f32.mrf.mxu0  ;;  %v10286_v59 = vld [vmem:[#allocation8 + $0x664] ss:$16 sps:$4 sm:$0xff]   ;;  %v4957_v44 = vsel %vm4701_vm6, %v4168_v39, %v4829_v41  ;;  %v10284_v37 = vld [vmem:[#allocation8 + $0x660] ss:$16 sps:$4 sm:$0xff]  }
 0x2b2   :  { %6934 = vmatprep.subr.bf16.mxu0 %v10208_v35  ;;  %7046 = vmatpush1.bf16.msra.mxu1 %v10272_v25  ;;  %v4067_v45 = vadd.f32 %v4066_v46, %v12435_v10  ;;  %v4179_v20 = vpop.f32.mrf.mxu1  ;;  %v4844_v40 = vmul.f32 0.2, %v4176_v54  ;;  %vm4716_vm8 = vcmp.gt.f32.partialorder %v4176_v54, 0.0  ;;  %v4178_v35 = vadd.f32 %v4177_v32, %v4065_v43  ;;  %v10214_v55 = vld [vmem:[#allocation8 + $0x444] ss:$16 sps:$4 sm:$0xff]  }
 0x2b3   :  { %13764 = vst [vmem:[#allocation54_spill] sm:$0xff] %v12591_v52  ;;  %7047 = vmatprep.subr.bf16.mxu1 %v10280_v31  ;;  %v4068_v47 = vpop.f32.mrf.mxu0  ;;  %v4965_v7 = vsel %vm4709_vm7, %v4172_v60, %v4837_v14 }
 0x2b4   :  { %v4180_v25 = vadd.f32 %v4179_v20, %v4067_v45  ;;  %v4181_v6 = vpop.f32.mrf.mxu1  ;;  %v4069_v31 = vadd.f32 %v4068_v47, %v12441_v19  ;;  %v12597_v10 = vpack.c.bf16 %v4965_v7, %v4957_v44  ;;  %v4972_v39 = vsel %vm4716_vm8, %v4176_v54, %v4844_v40 }
 0x2b5   :  { %6935 = vmatpush1.bf16.msra.mxu0 %v10206_v8  ;;  %v4072_v17 = vpop.f32.mrf.mxu0  ;;  %v10292_v8 = vld [vmem:[#allocation8 + $0x644] ss:$16 sps:$4 sm:$0xff]   ;;  %v4845_v14 = vmul.f32 0.2, %v4178_v35  ;;  %vm4717_vm10 = vcmp.gt.f32.partialorder %v4178_v35, 0.0 }
 0x2b6   :  { %6936 = vmatprep.subr.bf16.mxu0 %v10211_v5  ;;  %7048 = vmatpush1.bf16.msra.mxu1 %v10278_v24  ;;  %13765 = vst [vmem:[#allocation55_spill] sm:$0xff] %v12597_v10  ;;  %vm4724_vm9 = vcmp.gt.f32.partialorder %v4180_v25, 0.0  ;;  %v4852_v60 = vmul.f32 0.2, %v4180_v25  ;;  %v4073_v43 = vadd.f32 %v4072_v17, %v12448_v62  ;;  %v4185_v32 = vpop.f32.mrf.mxu1  ;;  %v13766_v5 = vld [vmem:[#allocation26_spill] sm:$0xff]  ;;  %v4182_v41 = vadd.f32 %v4181_v6, %v4069_v31 }
 0x2b7   :  { %6755 = vmatmul.mubr.bf16.gmra.mxu0 %v11712_v29  ;;  %7049 = vmatprep.subr.bf16.mxu1 %v10286_v59  ;;  %v4074_v19 = vpop.f32.mrf.mxu0  ;;  %v10212_v24 = vld [vmem:[#allocation8 + $0x440] ss:$16 sps:$4 sm:$0xff]   ;;  %v10217_v17 = vld [vmem:[#allocation8 + $0x424] ss:$16 sps:$4 sm:$0xff]  }
 0x2b8   :  { %6868 = vmatmul.mubr.bf16.gmra.mxu1 %v12230_v53  ;;  %6764 = vmatprep.mubr.bf16.mxu0 %v13766_v5  ;;  %v4980_v46 = vsel %vm4724_vm9, %v4180_v25, %v4852_v60  ;;  %v4186_v59 = vadd.f32 %v4185_v32, %v4073_v43  ;;  %v4075_v45 = vadd.f32 %v4074_v19, %v12455_v34  ;;  %v4187_v20 = vpop.f32.mrf.mxu1  ;;  %v10290_v62 = vld [vmem:[#allocation8 + $0x640] ss:$16 sps:$4 sm:$0xff]   ;;  %vm4725_vm11 = vcmp.gt.f32.partialorder %v4182_v41, 0.0  ;;  %v10220_v43 = vld [vmem:[#allocation8 + $0x404] ss:$16 sps:$4 sm:$0xff]  }
 0x2b9   :  { %6877 = vmatprep.mubr.bf16.mxu1 %v12285_v49  ;;  %6937 = vmatpush1.bf16.msra.mxu0 %v10209_v11  ;;  %v12605_v47 = vpack.c.bf16 %v4980_v46, %v4972_v39  ;;  %v4853_v54 = vmul.f32 0.2, %v4182_v41  ;;  %v4076_v40 = vpop.f32.mrf.mxu0  ;;  %v10298_v11 = vld [vmem:[#allocation8 + $0x624] ss:$16 sps:$4 sm:$0xff]   ;;  %v10215_v34 = vld [vmem:[#allocation8 + $0x420] ss:$16 sps:$4 sm:$0xff]   ;;  %v4973_v32 = vsel %vm4717_vm10, %v4178_v35, %v4845_v14 }
 0x2ba   :  { %6938 = vmatprep.subr.bf16.mxu0 %v10214_v55  ;;  %7050 = vmatpush1.bf16.msra.mxu1 %v10284_v37  ;;  %v4077_v7 = vadd.f32 %v4076_v40, %v12458_v61  ;;  %v4189_v6 = vpop.f32.mrf.mxu1  ;;  %v4860_v25 = vmul.f32 0.2, %v4186_v59  ;;  %vm4732_vm12 = vcmp.gt.f32.partialorder %v4186_v59, 0.0  ;;  %v4188_v55 = vadd.f32 %v4187_v20, %v4075_v45  ;;  %v10296_v39 = vld [vmem:[#allocation8 + $0x620] ss:$16 sps:$4 sm:$0xff]   ;;  %v13768_v61 = vld [vmem:[#allocation25_spill] sm:$0xff] }
 0x2bb   :  { %13767 = vst [vmem:[#allocation26_spill] sm:$0xff] %v12605_v47  ;;  %7051 = vmatprep.subr.bf16.mxu1 %v10292_v8  ;;  %v4078_v44 = vpop.f32.mrf.mxu0  ;;  %v4981_v31 = vsel %vm4725_vm11, %v4182_v41, %v4853_v54 }
 0x2bc   :  { %v4190_v37 = vadd.f32 %v4189_v6, %v4077_v7  ;;  %v4191_v60 = vpop.f32.mrf.mxu1  ;;  %v4079_v8 = vadd.f32 %v4078_v44, %v12464_v58  ;;  %v12611_v46 = vpack.c.bf16 %v4981_v31, %v4973_v32  ;;  %v4988_v35 = vsel %vm4732_vm12, %v4186_v59, %v4860_v25  ;;  %v10302_v44 = vld [vmem:[#allocation8 + $0x600] ss:$16 sps:$4 sm:$0xff]  }
 0x2bd   :  { %6939 = vmatpush1.bf16.msra.mxu0 %v10212_v24  ;;  %v4082_v19 = vpop.f32.mrf.mxu0  ;;  %v10304_v24 = vld [vmem:[#allocation8 + $0x604] ss:$16 sps:$4 sm:$0xff]   ;;  %v4861_v54 = vmul.f32 0.2, %v4188_v55  ;;  %vm4733_vm14 = vcmp.gt.f32.partialorder %v4188_v55, 0.0 }
 0x2be   :  { %6940 = vmatprep.subr.bf16.mxu0 %v10217_v17  ;;  %7052 = vmatpush1.bf16.msra.mxu1 %v10290_v62  ;;  %13769 = vst [vmem:[#allocation25_spill] sm:$0xff] %v12611_v46  ;;  %vm4740_vm13 = vcmp.gt.f32.partialorder %v4190_v37, 0.0  ;;  %v4868_v41 = vmul.f32 0.2, %v4190_v37  ;;  %v4083_v45 = vadd.f32 %v4082_v19, %v12471_v63  ;;  %v4195_v20 = vpop.f32.mrf.mxu1  ;;  %v13770_v17 = vld [vmem:[#allocation28_spill] sm:$0xff]  ;;  %v4192_v14 = vadd.f32 %v4191_v60, %v4079_v8 }
 0x2bf   :  { %6765 = vmatmul.mubr.bf16.gmra.mxu0 %v13768_v61  ;;  %7053 = vmatprep.subr.bf16.mxu1 %v10298_v11  ;;  %v4084_v58 = vpop.f32.mrf.mxu0  ;;  %v10218_v62 = vld [vmem:[#allocation8 + $0x400] ss:$16 sps:$4 sm:$0xff]   ;;  %v10223_v63 = vld [vmem:[#allocation8 + $0x5e4] ss:$16 sps:$4 sm:$0xff]  }
 0x2c0   :  { %6878 = vmatmul.mubr.bf16.gmra.mxu1 %v12267_v28  ;;  %6774 = vmatprep.mubr.bf16.mxu0 %v13770_v17  ;;  %v4996_v40 = vsel %vm4740_vm13, %v4190_v37, %v4868_v41  ;;  %v4196_v11 = vadd.f32 %v4195_v20, %v4083_v45  ;;  %v4085_v7 = vadd.f32 %v4084_v58, %v12478_v2  ;;  %v4197_v6 = vpop.f32.mrf.mxu1  ;;  %vm4741_vm15 = vcmp.gt.f32.partialorder %v4192_v14, 0.0  ;;  %v10221_v2 = vld [vmem:[#allocation8 + $0x5e0] ss:$16 sps:$4 sm:$0xff]   ;;  %v10226_v45 = vld [vmem:[#allocation8 + $0x5c4] ss:$16 sps:$4 sm:$0xff]  }
 0x2c1   :  { %6887 = vmatprep.mubr.bf16.mxu1 %v12320_v50  ;;  %6941 = vmatpush1.bf16.msra.mxu0 %v10215_v34  ;;  %v12619_v31 = vpack.c.bf16 %v4996_v40, %v4988_v35  ;;  %v4869_v59 = vmul.f32 0.2, %v4192_v14  ;;  %v4086_v25 = vpop.f32.mrf.mxu0  ;;  %v10310_v34 = vld [vmem:[#allocation8 + $0x7e4] ss:$16 sps:$4 sm:$0xff]   ;;  %v4989_v20 = vsel %vm4733_vm14, %v4188_v55, %v4861_v54  ;;  %v10308_v35 = vld [vmem:[#allocation8 + $0x7e0] ss:$16 sps:$4 sm:$0xff]  }
 0x2c2   :  { %6942 = vmatprep.subr.bf16.mxu0 %v10220_v43  ;;  %7054 = vmatpush1.bf16.msra.mxu1 %v10296_v39  ;;  %v4087_v60 = vadd.f32 %v4086_v25, %v12481_v12  ;;  %v4199_v32 = vpop.f32.mrf.mxu1  ;;  %v4876_v37 = vmul.f32 0.2, %v4196_v11  ;;  %vm4748_vm1 = vcmp.gt.f32.partialorder %v4196_v11, 0.0  ;;  %v4198_v43 = vadd.f32 %v4197_v6, %v4085_v7  ;;  %v13772_v12 = vld [vmem:[#allocation27_spill] sm:$0xff] }
 0x2c3   :  { %13771 = vst [vmem:[#allocation28_spill] sm:$0xff] %v12619_v31  ;;  %7055 = vmatprep.subr.bf16.mxu1 %v10304_v24  ;;  %v4088_v8 = vpop.f32.mrf.mxu0  ;;  %v4997_v19 = vsel %vm4741_vm15, %v4192_v14, %v4869_v59 }
 0x2c4   :  { %v4200_v39 = vadd.f32 %v4199_v32, %v4087_v60  ;;  %v4201_v41 = vpop.f32.mrf.mxu1  ;;  %v4089_v24 = vadd.f32 %v4088_v8, %v12487_v16  ;;  %v12625_v40 = vpack.c.bf16 %v4997_v19, %v4989_v20  ;;  %v5004_v55 = vsel %vm4748_vm1, %v4196_v11, %v4876_v37  ;;  %v10314_v8 = vld [vmem:[#allocation8 + $0x7c0] ss:$16 sps:$4 sm:$0xff]  }
 0x2c5   :  { %6943 = vmatpush1.bf16.msra.mxu0 %v10218_v62  ;;  %v4092_v58 = vpop.f32.mrf.mxu0  ;;  %v10316_v62 = vld [vmem:[#allocation8 + $0x7c4] ss:$16 sps:$4 sm:$0xff]   ;;  %v4877_v59 = vmul.f32 0.2, %v4198_v43  ;;  %vm4749_vm3 = vcmp.gt.f32.partialorder %v4198_v43, 0.0 }
 0x2c6   :  { %6944 = vmatprep.subr.bf16.mxu0 %v10223_v63  ;;  %7056 = vmatpush1.bf16.msra.mxu1 %v10302_v44  ;;  %13773 = vst [vmem:[#allocation27_spill] sm:$0xff] %v12625_v40  ;;  %vm4756_vm2 = vcmp.gt.f32.partialorder %v4200_v39, 0.0  ;;  %v4884_v14 = vmul.f32 0.2, %v4200_v39  ;;  %v4093_v7 = vadd.f32 %v4092_v58, %v12494_v38  ;;  %v13774_v63 = vld [vmem:[#allocation30_spill] sm:$0xff]  ;;  %v4202_v54 = vadd.f32 %v4201_v41, %v4089_v24 }
 0x2c7   :  { %6775 = vmatmul.mubr.bf16.gmra.mxu0 %v13772_v12  ;;  %7057 = vmatprep.subr.bf16.mxu1 %v10310_v34  ;;  %v4205_v6 = vpop.f32.mrf.mxu1  ;;  %v4094_v16 = vpop.f32.mrf.mxu0  ;;  %v10224_v44 = vld [vmem:[#allocation8 + $0x5c0] ss:$16 sps:$4 sm:$0xff]   ;;  %v10229_v38 = vld [vmem:[#allocation8 + $0x5a4] ss:$16 sps:$4 sm:$0xff]  }
 0x2c8   :  { %6888 = vmatmul.mubr.bf16.gmra.mxu1 %v12304_v15  ;;  %6784 = vmatprep.mubr.bf16.mxu0 %v13774_v63  ;;  %v5012_v25 = vsel %vm4756_vm2, %v4200_v39, %v4884_v14  ;;  %v4206_v34 = vadd.f32 %v4205_v6, %v4093_v7  ;;  %v4095_v60 = vadd.f32 %v4094_v16, %v12501_v48  ;;  %vm4757_vm4 = vcmp.gt.f32.partialorder %v4202_v54, 0.0  ;;  %v10227_v48 = vld [vmem:[#allocation8 + $0x5a0] ss:$16 sps:$4 sm:$0xff]   ;;  %v10232_v7 = vld [vmem:[#allocation8 + $0x584] ss:$16 sps:$4 sm:$0xff]  }
 0x2c9   :  { %6897 = vmatprep.mubr.bf16.mxu1 %v12351_v0  ;;  %6945 = vmatpush2.bf16.msra.mxu0 %v10221_v2  ;;  %v4207_v32 = vpop.f32.mrf.mxu1  ;;  %v12633_v19 = vpack.c.bf16 %v5012_v25, %v5004_v55  ;;  %v4885_v11 = vmul.f32 0.2, %v4202_v54  ;;  %v4096_v37 = vpop.f32.mrf.mxu0  ;;  %v10322_v2 = vld [vmem:[#allocation8 + $0x7a4] ss:$16 sps:$4 sm:$0xff]   ;;  %v5005_v6 = vsel %vm4749_vm3, %v4198_v43, %v4877_v59  ;;  %v10320_v55 = vld [vmem:[#allocation8 + $0x7a0] ss:$16 sps:$4 sm:$0xff]  }
 0x2ca   :  { %6946 = vmatprep.subr.bf16.mxu0 %v10226_v45  ;;  %7058 = vmatpush2.bf16.msra.mxu1 %v10308_v35  ;;  %v4097_v41 = vadd.f32 %v4096_v37, %v12504_v13  ;;  %v4892_v39 = vmul.f32 0.2, %v4206_v34  ;;  %vm4764_vm0 = vcmp.gt.f32.partialorder %v4206_v34, 0.0  ;;  %v4208_v45 = vadd.f32 %v4207_v32, %v4095_v60  ;;  %v13776_v13 = vld [vmem:[#allocation29_spill] sm:$0xff] }
 0x2cb   :  { %13775 = vst [vmem:[#allocation30_spill] sm:$0xff] %v12633_v19  ;;  %7059 = vmatprep.subr.bf16.mxu1 %v10316_v62  ;;  %v4209_v20 = vpop.f32.mrf.mxu1  ;;  %v4098_v24 = vpop.f32.mrf.mxu0  ;;  %v5013_v58 = vsel %vm4757_vm4, %v4202_v54, %v4885_v11  ;;  %v10269_v15 = vld [vmem:[#allocation8 + $0x28] ss:$16 sps:$4 sm:$0xff]  }
 0x2cc   :  { %v4210_v35 = vadd.f32 %v4209_v20, %v4097_v41  ;;  %v4099_v62 = vadd.f32 %v4098_v24, %v12510_v9  ;;  %v12639_v25 = vpack.c.bf16 %v5013_v58, %v5005_v6  ;;  %v5020_v43 = vsel %vm4764_vm0, %v4206_v34, %v4892_v39  ;;  %v10326_v24 = vld [vmem:[#allocation8 + $0x780] ss:$16 sps:$4 sm:$0xff]  }
 0x2cd   :  { %6947 = vmatpush2.bf16.msra.mxu0 %v10224_v44  ;;  %v4211_v14 = vpop.f32.mrf.mxu1  ;;  %v4102_v16 = vpop.f32.mrf.mxu0  ;;  %v10328_v44 = vld [vmem:[#allocation8 + $0x784] ss:$16 sps:$4 sm:$0xff]   ;;  %v4893_v11 = vmul.f32 0.2, %v4208_v45  ;;  %vm4765_vm6 = vcmp.gt.f32.partialorder %v4208_v45, 0.0 }
 0x2ce   :  { %6948 = vmatprep.subr.bf16.mxu0 %v10229_v38  ;;  %7060 = vmatpush2.bf16.msra.mxu1 %v10314_v8  ;;  %13777 = vst [vmem:[#allocation29_spill] sm:$0xff] %v12639_v25  ;;  %vm4772_vm5 = vcmp.gt.f32.partialorder %v4210_v35, 0.0  ;;  %v4900_v54 = vmul.f32 0.2, %v4210_v35  ;;  %v4103_v60 = vadd.f32 %v4102_v16, %v12517_v30  ;;  %v13778_v38 = vld [vmem:[#allocation32_spill] sm:$0xff]  ;;  %v4212_v59 = vadd.f32 %v4211_v14, %v4099_v62 }
 0x2cf   :  { %6785 = vmatmul.mubr.bf16.gmra.mxu0 %v13776_v13  ;;  %7061 = vmatprep.subr.bf16.mxu1 %v10322_v2  ;;  %v4215_v32 = vpop.f32.mrf.mxu1  ;;  %v4104_v9 = vpop.f32.mrf.mxu0  ;;  %v10230_v8 = vld [vmem:[#allocation8 + $0x580] ss:$16 sps:$4 sm:$0xff]   ;;  %v10235_v30 = vld [vmem:[#allocation8 + $0x564] ss:$16 sps:$4 sm:$0xff]  }
 0x2d0   :  { %6898 = vmatmul.mubr.bf16.gmra.mxu1 %v12338_v4  ;;  %6794 = vmatprep.mubr.bf16.mxu0 %v13778_v38  ;;  %v5028_v37 = vsel %vm4772_vm5, %v4210_v35, %v4900_v54  ;;  %v4216_v2 = vadd.f32 %v4215_v32, %v4103_v60  ;;  %v4105_v41 = vadd.f32 %v4104_v9, %v12524_v18  ;;  %vm4773_vm7 = vcmp.gt.f32.partialorder %v4212_v59, 0.0  ;;  %v10233_v18 = vld [vmem:[#allocation8 + $0x560] ss:$16 sps:$4 sm:$0xff]   ;;  %v10238_v60 = vld [vmem:[#allocation8 + $0x544] ss:$16 sps:$4 sm:$0xff]  }
 0x2d1   :  { %6907 = vmatprep.mubr.bf16.mxu1 %v12384_v21  ;;  %6949 = vmatpush2.bf16.msra.mxu0 %v10227_v48  ;;  %v4217_v20 = vpop.f32.mrf.mxu1  ;;  %v12647_v58 = vpack.c.bf16 %v5028_v37, %v5020_v43  ;;  %v4901_v34 = vmul.f32 0.2, %v4212_v59  ;;  %v4106_v39 = vpop.f32.mrf.mxu0  ;;  %v10334_v48 = vld [vmem:[#allocation8 + $0x764] ss:$16 sps:$4 sm:$0xff]   ;;  %v5021_v32 = vsel %vm4765_vm6, %v4208_v45, %v4893_v11  ;;  %v10332_v43 = vld [vmem:[#allocation8 + $0x760] ss:$16 sps:$4 sm:$0xff]  }
 0x2d2   :  { %6950 = vmatprep.subr.bf16.mxu0 %v10232_v7  ;;  %7062 = vmatpush2.bf16.msra.mxu1 %v10320_v55  ;;  %v4107_v14 = vadd.f32 %v4106_v39, %v12527_v36  ;;  %v4908_v35 = vmul.f32 0.2, %v4216_v2  ;;  %vm4780_vm8 = vcmp.gt.f32.partialorder %v4216_v2, 0.0  ;;  %v4218_v7 = vadd.f32 %v4217_v20, %v4105_v41  ;;  %v13780_v36 = vld [vmem:[#allocation31_spill] sm:$0xff]  ;;  %v13784_v39 = vld [vmem:[#allocation34_spill] sm:$0xff] }
 0x2d3   :  { %13779 = vst [vmem:[#allocation32_spill] sm:$0xff] %v12647_v58  ;;  %7063 = vmatprep.subr.bf16.mxu1 %v10328_v44  ;;  %v4219_v6 = vpop.f32.mrf.mxu1  ;;  %v4108_v62 = vpop.f32.mrf.mxu0  ;;  %v5029_v16 = vsel %vm4773_vm7, %v4212_v59, %v4901_v34  ;;  %v13782_v41 = vld [vmem:[#allocation51_spill] sm:$0xff]  ;;  %v10350_v4 = vld [vmem:[#allocation8 + $0x700] ss:$16 sps:$4 sm:$0xff]  }
 0x2d4   :  { %v4220_v55 = vadd.f32 %v4219_v6, %v4107_v14  ;;  %v4109_v44 = vadd.f32 %v4108_v62, %v12533_v33  ;;  %v12653_v37 = vpack.c.bf16 %v5029_v16, %v5021_v32  ;;  %v5036_v45 = vsel %vm4780_vm8, %v4216_v2, %v4908_v35  ;;  %v13785_v33 = vld [vmem:[#allocation50_spill] sm:$0xff] }
 0x2d5   :  { %6951 = vmatpush2.bf16.msra.mxu0 %v10230_v8  ;;  %v4221_v54 = vpop.f32.mrf.mxu1  ;;  %v10340_v8 = vld [vmem:[#allocation8 + $0x744] ss:$16 sps:$4 sm:$0xff]   ;;  %v10236_v14 = vld [vmem:[#allocation8 + $0x540] ss:$16 sps:$4 sm:$0xff]   ;;  %v4909_v6 = vmul.f32 0.2, %v4218_v7 }
 0x2d6   :  { %6952 = vmatprep.subr.bf16.mxu0 %v10235_v30  ;;  %7064 = vmatpush2.bf16.msra.mxu1 %v10326_v24  ;;  %v4112_v9 = vpop.f32.mrf.mxu0  ;;  %13781 = vst [vmem:[#allocation31_spill] sm:$0xff] %v12653_v37  ;;  %vm4788_vm9 = vcmp.gt.f32.partialorder %v4220_v55, 0.0  ;;  %v4916_v59 = vmul.f32 0.2, %v4220_v55  ;;  %v13783_v30 = vld [vmem:[#allocation47_spill] sm:$0xff]  ;;  %v4222_v11 = vadd.f32 %v4221_v54, %v4109_v44  ;;  %vm4781_vm10 = vcmp.gt.f32.partialorder %v4218_v7, 0.0 }
 0x2d7   :  { %6795 = vmatmul.mubr.bf16.gmra.mxu0 %v13780_v36  ;;  %7065 = vmatprep.subr.bf16.mxu1 %v10334_v48  ;;  %v4113_v20 = vadd.f32 %v4112_v9, %v13782_v41  ;;  %v4225_v34 = vpop.f32.mrf.mxu1  ;;  %v10241_v9 = vld [vmem:[#allocation8 + $0x524] ss:$16 sps:$4 sm:$0xff]   ;;  %v10338_v41 = vld [vmem:[#allocation8 + $0x740] ss:$16 sps:$4 sm:$0xff]  }
 0x2d8   :  { %6908 = vmatmul.mubr.bf16.gmra.mxu1 %v13783_v30  ;;  %6804 = vmatprep.mubr.bf16.mxu0 %v13784_v39  ;;  %v4114_v24 = vpop.f32.mrf.mxu0  ;;  %v5044_v48 = vsel %vm4788_vm9, %v4220_v55, %v4916_v59  ;;  %vm4789_vm11 = vcmp.gt.f32.partialorder %v4222_v11, 0.0  ;;  %v4917_v2 = vmul.f32 0.2, %v4222_v11 }
 0x2d9   :  { %6917 = vmatprep.mubr.bf16.mxu1 %v13785_v33  ;;  %6953 = vmatpush2.bf16.msra.mxu0 %v10233_v18  ;;  %v4226_v62 = vadd.f32 %v4225_v34, %v4113_v20  ;;  %v4115_v16 = vadd.f32 %v4114_v24, %v12547_v42  ;;  %v4227_v32 = vpop.f32.mrf.mxu1  ;;  %v12661_v30 = vpack.c.bf16 %v5044_v48, %v5036_v45  ;;  %v10346_v18 = vld [vmem:[#allocation8 + $0x724] ss:$16 sps:$4 sm:$0xff]   ;;  %v10239_v42 = vld [vmem:[#allocation8 + $0x520] ss:$16 sps:$4 sm:$0xff]  }
 0x2da   :  { %6954 = vmatprep.subr.bf16.mxu0 %v10238_v60  ;;  %7066 = vmatpush2.bf16.msra.mxu1 %v10332_v43  ;;  %v4116_v35 = vpop.f32.mrf.mxu0  ;;  %v5045_v20 = vsel %vm4789_vm11, %v4222_v11, %v4917_v2  ;;  %v10244_v45 = vld [vmem:[#allocation8 + $0x504] ss:$16 sps:$4 sm:$0xff]   ;;  %v5037_v24 = vsel %vm4781_vm10, %v4218_v7, %v4909_v6  ;;  %v10344_v48 = vld [vmem:[#allocation8 + $0x720] ss:$16 sps:$4 sm:$0xff]  }
 0x2db   :  { %13786 = vst [vmem:[#allocation51_spill] sm:$0xff] %v12661_v30  ;;  %7067 = vmatprep.subr.bf16.mxu1 %v10340_v8  ;;  %v4117_v54 = vadd.f32 %v4116_v35, %v12550_v22  ;;  %v4229_v44 = vpop.f32.mrf.mxu1  ;;  %v4924_v55 = vmul.f32 0.2, %v4226_v62  ;;  %vm4796_vm12 = vcmp.gt.f32.partialorder %v4226_v62, 0.0  ;;  %v4228_v60 = vadd.f32 %v4227_v32, %v4115_v16  ;;  %v13787_v8 = vld [vmem:[#allocation52_spill] sm:$0xff]  ;;  %v13788_v22 = vld [vmem:[#allocation33_spill] sm:$0xff] }
 0x2dc   :  { %v4118_v59 = vpop.f32.mrf.mxu0  ;;  %v12667_v35 = vpack.c.bf16 %v5045_v20, %v5037_v24  ;;  %v13790_v16 = vld [vmem:[#allocation53_spill] sm:$0xff] }
 0x2dd   :  { %6955 = vmatpush2.bf16.msra.mxu0 %v10236_v14  ;;  %v4230_v43 = vadd.f32 %v4229_v44, %v4117_v54  ;;  %v4231_v34 = vpop.f32.mrf.mxu1  ;;  %v4119_v33 = vadd.f32 %v4118_v59, %v13787_v8  ;;  %v10352_v14 = vld [vmem:[#allocation8 + $0x704] ss:$16 sps:$4 sm:$0xff]   ;;  %v10242_v59 = vld [vmem:[#allocation8 + $0x500] ss:$16 sps:$4 sm:$0xff]   ;;  %v4925_v20 = vmul.f32 0.2, %v4228_v60 }
 0x2de   :  { %6956 = vmatprep.subr.bf16.mxu0 %v10241_v9  ;;  %7068 = vmatpush2.bf16.msra.mxu1 %v10338_v41  ;;  %13789 = vst [vmem:[#allocation52_spill] sm:$0xff] %v12667_v35  ;;  %v13791_v9 = vld [vmem:[#allocation49_spill] sm:$0xff]  ;;  %v5052_v41 = vsel %vm4796_vm12, %v4226_v62, %v4924_v55  ;;  %vm4797_vm14 = vcmp.gt.f32.partialorder %v4228_v60, 0.0 }
 0x2df   :  { %v4122_v21 = vpop.f32.mrf.mxu0  ;;  %6805 = vmatmul.mubr.bf16.gmra.mxu0 %v13788_v22  ;;  %7069 = vmatprep.subr.bf16.mxu1 %v10346_v18  ;;  %vm4804_vm13 = vcmp.gt.f32.partialorder %v4230_v43, 0.0  ;;  %v4932_v11 = vmul.f32 0.2, %v4230_v43  ;;  %v4235_v2 = vpop.f32.mrf.mxu1  ;;  %v13792_v7 = vld [vmem:[#allocation21_spill] sm:$0xff]  ;;  %v4232_v54 = vadd.f32 %v4231_v34, %v4119_v33 }
 0x2e0   :  { %v4123_v32 = vadd.f32 %v4122_v21, %v13790_v16  ;;  %6918 = vmatmul.mubr.bf16.gmra.mxu1 %v13791_v9  ;;  %6960 = vmatprep.mubr.bf16.mxu0 %v12597_v10  ;;  %v609_v6 = vsub.s32 6, %v13792_v7  ;;  %v613_v18 = vsub.s32 7, %v13792_v7  ;;  %v10247_v9 = vld [vmem:[#allocation8 + $0xec] ss:$16 sps:$4 sm:$0xff]   ;;  %v5053_v7 = vsel %vm4797_vm14, %v4228_v60, %v4925_v20 }
 0x2e1   :  { %6957 = vmatpush2.bf16.msra.mxu0 %v10239_v42  ;;  %v4124_v44 = vpop.f32.mrf.mxu0  ;;  %v5060_v24 = vsel %vm4804_vm13, %v4230_v43, %v4932_v11  ;;  %v4237_v16 = vpop.f32.mrf.mxu1  ;;  %vm4805_vm15 = vcmp.gt.f32.partialorder %v4232_v54, 0.0  ;;  %v4933_v33 = vmul.f32 0.2, %v4232_v54  ;;  %v10358_v55 = vld [vmem:[#allocation8 + $0x2ec] ss:$16 sps:$4 sm:$0xff]  }
 0x2e2   :  { %v4236_v8 = vadd.f32 %v4235_v2, %v4123_v32  ;;  %v4125_v21 = vadd.f32 %v4124_v44, %v12568_v56  ;;  %6958 = vmatprep.subr.bf16.mxu0 %v10244_v45  ;;  %7070 = vmatpush2.bf16.msra.mxu1 %v10344_v48  ;;  %v12676_v0 = vpack.c.bf16 %v5060_v24, %v5052_v41  ;;  %v10831_v43 = vld [vmem:[#allocation6] sm:$0xff] }
 0x2e3   :  { %v4126_v62 = vpop.f32.mrf.mxu0  ;;  %7071 = vmatprep.subr.bf16.mxu1 %v10352_v14  ;;  %v4239_v34 = vpop.f32.mrf.mxu1  ;;  %v12679_v11 = vrot.slane %v10831_v43, %v609_v6  ;;  %v10245_v48 = vld [vmem:[#allocation8 + $0xe8] ss:$16 sps:$4 sm:$0xff]   ;;  %v5061_v2 = vsel %vm4805_vm15, %v4232_v54, %v4933_v33  ;;  %v12681_v24 = vrot.slane %v10831_v43, %v613_v18  ;;  %v10250_v14 = vld [vmem:[#allocation8 + $0xcc] ss:$16 sps:$4 sm:$0xff]  }
 0x2e4   :  { %13793 = vst [vmem:[#allocation53_spill] sm:$0xff] %v12676_v0  ;;  %v4127_v42 = vadd.f32 %v4126_v62, %v12571_v23  ;;  %v4940_v56 = vmul.f32 0.2, %v4236_v8  ;;  %v4238_v32 = vadd.f32 %v4237_v16, %v4125_v21  ;;  %vm4812_vm1 = vcmp.gt.f32.partialorder %v4236_v8, 0.0 }
 0x2e5   :  { %6959 = vmatpush2.bf16.msra.mxu0 %v10242_v59  ;;  %v4128_v45 = vpop.f32.mrf.mxu0  ;;  %v4241_v44 = vpop.f32.mrf.mxu1  ;;  %v12685_v62 = vpack.c.bf16 %v5061_v2, %v5053_v7  ;;  %v10251_v2 = vld [vmem:[#allocation8 + $0xa8] ss:$16 sps:$4 sm:$0xff]  }
 0x2e6   :  { %v4240_v41 = vadd.f32 %v4239_v34, %v4127_v42  ;;  %7154 = vmatprep.subr.bf16.mxu0 %v10247_v9  ;;  %7072 = vmatpush2.bf16.msra.mxu1 %v10350_v4  ;;  %v4129_v23 = vadd.f32 %v4128_v45, %v12575_v26  ;;  %v5068_v9 = vsel %vm4812_vm1, %v4236_v8, %v4940_v56  ;;  %v4941_v18 = vmul.f32 0.2, %v4238_v32  ;;  %v10248_v26 = vld [vmem:[#allocation8 + $0xc8] ss:$16 sps:$4 sm:$0xff]  }
 0x2e7   :  { %v4278_v6 = vpop.f32.mrf.mxu0  ;;  %13794 = vst [vmem:[#allocation56_spill] sm:$0xff] %v12685_v62  ;;  %7267 = vmatprep.subr.bf16.mxu1 %v10358_v55  ;;  %v4391_v21 = vpop.f32.mrf.mxu1  ;;  %vm4813_vm3 = vcmp.gt.f32.partialorder %v4238_v32, 0.0  ;;  %v10253_v55 = vld [vmem:[#allocation8 + $0xac] ss:$16 sps:$4 sm:$0xff]  }
 0x2e8   :  { %vm4820_vm2 = vcmp.gt.f32.partialorder %v4240_v41, 0.0  ;;  %v4948_v59 = vmul.f32 0.2, %v4240_v41  ;;  %v4279_v54 = vadd.f32 %v4278_v6, %v12679_v11  ;;  %6961 = vmatmul.mubr.bf16.vlgmr.msra.gmra.mxu0 %v12591_v52  ;;  %v4242_v16 = vadd.f32 %v4241_v44, %v4129_v23  ;;  %v10256_v6 = vld [vmem:[#allocation8 + $0x8c] ss:$16 sps:$4 sm:$0xff]  }
 0x2e9   :  { %6970 = vmatprep.mubr.bf16.mxu0 %v12611_v46  ;;  %7155 = vmatpush1.bf16.msra.mxu0 %v10245_v48  ;;  %v4280_v4 = vpop.f32.mrf.mxu0  ;;  %v4393_v33 = vpop.f32.mrf.mxu1 }
 0x2ea   :  { %v5076_v60 = vsel %vm4820_vm2, %v4240_v41, %v4948_v59  ;;  %v12691_v7 = vadd.f32 %v4391_v21, %v4279_v54  ;;  %v4281_v20 = vadd.f32 %v4280_v4, %v12681_v24  ;;  %7156 = vmatprep.subr.bf16.mxu0 %v10250_v14  ;;  %vm4821_vm4 = vcmp.gt.f32.partialorder %v4242_v16, 0.0 }
 0x2eb   :  { %v12694_v42 = vpack.c.bf16 %v5076_v60, %v5068_v9  ;;  %v4949_v8 = vmul.f32 0.2, %v4242_v16  ;;  %v4282_v34 = vpop.f32.mrf.mxu0  ;;  %v4395_v45 = vpop.f32.mrf.mxu1  ;;  %v5069_v41 = vsel %vm4813_vm3, %v4238_v32, %v4941_v18  ;;  %v10254_v32 = vld [vmem:[#allocation8 + $0x88] ss:$16 sps:$4 sm:$0xff]   ;;  %v10259_v60 = vld [vmem:[#allocation8 + $0x6c] ss:$16 sps:$4 sm:$0xff]  }
 0x2ec   :  { %v12696_v43 = vadd.f32 %v4393_v33, %v4281_v20  ;;  %v4283_v56 = vadd.f32 %v4282_v34, %v12679_v11 }
 0x2ed   :  { %13795 = vst [vmem:[#allocation57_spill] sm:$0xff] %v12694_v42  ;;  %7157 = vmatpush1.bf16.msra.mxu0 %v10248_v26  ;;  %v12699_v48 = vpop.f32.mrf.mxu0  ;;  %v5077_v44 = vsel %vm4821_vm4, %v4242_v16, %v4949_v8  ;;  %v12704_v14 = vpop.f32.mrf.mxu1 }
 0x2ee   :  { %v12702_v23 = vadd.f32 %v4395_v45, %v4283_v56  ;;  %7158 = vmatprep.subr.bf16.mxu0 %v10253_v55  ;;  %v12706_v59 = vpack.c.bf16 %v5077_v44, %v5069_v41  ;;  %v10257_v56 = vld [vmem:[#allocation8 + $0x68] ss:$16 sps:$4 sm:$0xff]   ;;  %v10265_v41 = vld [vmem:[#allocation8 + $0x4c] ss:$16 sps:$4 sm:$0xff]  }
 0x2ef   :  { %v4288_v54 = vpop.f32.mrf.mxu0  ;;  %v4401_v9 = vpop.f32.mrf.mxu1 }
 0x2f0   :  { %13796 = vst [vmem:[#allocation58_spill] sm:$0xff] %v12706_v59  ;;  %v4289_v21 = vadd.f32 %v4288_v54, %v12679_v11  ;;  %6971 = vmatmul.mubr.bf16.gmra.mxu0 %v12605_v47 }
 0x2f1   :  { %6980 = vmatprep.mubr.bf16.mxu0 %v12625_v40  ;;  %7159 = vmatpush1.bf16.msra.mxu0 %v10251_v2  ;;  %v4290_v4 = vpop.f32.mrf.mxu0  ;;  %v4403_v26 = vpop.f32.mrf.mxu1 }
 0x2f2   :  { %v12711_v18 = vadd.f32 %v4401_v9, %v4289_v21  ;;  %v4291_v16 = vadd.f32 %v4290_v4, %v12681_v24  ;;  %7160 = vmatprep.subr.bf16.mxu0 %v10256_v6  ;;  %v10263_v9 = vld [vmem:[#allocation8 + $0x48] ss:$16 sps:$4 sm:$0xff]  }
 0x2f3   :  { %v4292_v20 = vpop.f32.mrf.mxu0  ;;  %v4405_v8 = vpop.f32.mrf.mxu1 }
 0x2f4   :  { %v12714_v33 = vadd.f32 %v4403_v26, %v4291_v16  ;;  %v4293_v55 = vadd.f32 %v4292_v20, %v12679_v11  ;;  %v10271_v26 = vld [vmem:[#allocation8 + $0x2c] ss:$16 sps:$4 sm:$0xff]  }
 0x2f5   :  { %7161 = vmatpush1.bf16.msra.mxu0 %v10254_v32  ;;  %v12717_v34 = vpop.f32.mrf.mxu0  ;;  %v12721_v2 = vpop.f32.mrf.mxu1 }
 0x2f6   :  { %v12719_v45 = vadd.f32 %v4405_v8, %v4293_v55  ;;  %7162 = vmatprep.subr.bf16.mxu0 %v10259_v60 }
 0x2f7   :  { %v4298_v44 = vpop.f32.mrf.mxu0  ;;  %v4411_v54 = vpop.f32.mrf.mxu1 }
 0x2f8   :  { %v4299_v6 = vadd.f32 %v4298_v44, %v12679_v11  ;;  %6981 = vmatmul.mubr.bf16.gmra.mxu0 %v12619_v31 }
 0x2f9   :  { %6990 = vmatprep.mubr.bf16.mxu0 %v12639_v25  ;;  %7163 = vmatpush1.bf16.msra.mxu0 %v10257_v56  ;;  %v4300_v21 = vpop.f32.mrf.mxu0  ;;  %v4413_v16 = vpop.f32.mrf.mxu1 }
 0x2fa   :  { %v12726_v4 = vadd.f32 %v4411_v54, %v4299_v6  ;;  %v4301_v32 = vadd.f32 %v4300_v21, %v12681_v24  ;;  %7164 = vmatprep.subr.bf16.mxu0 %v10265_v41  ;;  %v10277_v6 = vld [vmem:[#allocation8 + $0xc] ss:$16 sps:$4 sm:$0xff]  }
 0x2fb   :  { %v4302_v60 = vpop.f32.mrf.mxu0  ;;  %v4415_v8 = vpop.f32.mrf.mxu1 }
 0x2fc   :  { %v12729_v20 = vadd.f32 %v4413_v16, %v4301_v32  ;;  %v4303_v55 = vadd.f32 %v4302_v60, %v12679_v11 }
 0x2fd   :  { %7165 = vmatpush1.bf16.msra.mxu0 %v10263_v9  ;;  %v12732_v44 = vpop.f32.mrf.mxu0  ;;  %v12736_v50 = vpop.f32.mrf.mxu1  ;;  %v10275_v9 = vld [vmem:[#allocation8 + $0x8] ss:$16 sps:$4 sm:$0xff]  }
 0x2fe   :  { %v12734_v56 = vadd.f32 %v4415_v8, %v4303_v55  ;;  %7166 = vmatprep.subr.bf16.mxu0 %v10271_v26  ;;  %v10283_v8 = vld [vmem:[#allocation8 + $0x1ec] ss:$16 sps:$4 sm:$0xff]  }
 0x2ff   :  { %v4308_v54 = vpop.f32.mrf.mxu0  ;;  %v4421_v21 = vpop.f32.mrf.mxu1 }
 0x300   :  { %v4309_v41 = vadd.f32 %v4308_v54, %v12679_v11  ;;  %6991 = vmatmul.mubr.bf16.gmra.mxu0 %v12633_v19 }
 0x301   :  { %7000 = vmatprep.mubr.bf16.mxu0 %v12653_v37  ;;  %7167 = vmatpush1.bf16.msra.mxu0 %v10269_v15  ;;  %v4310_v32 = vpop.f32.mrf.mxu0  ;;  %v4423_v55 = vpop.f32.mrf.mxu1  ;;  %v10281_v37 = vld [vmem:[#allocation8 + $0x1e8] ss:$16 sps:$4 sm:$0xff]  }
 0x302   :  { %v12741_v16 = vadd.f32 %v4421_v21, %v4309_v41  ;;  %v4311_v60 = vadd.f32 %v4310_v32, %v12681_v24  ;;  %7168 = vmatprep.subr.bf16.mxu0 %v10277_v6  ;;  %v10289_v41 = vld [vmem:[#allocation8 + $0x1cc] ss:$16 sps:$4 sm:$0xff]  }
 0x303   :  { %v4312_v26 = vpop.f32.mrf.mxu0  ;;  %v4425_v49 = vpop.f32.mrf.mxu1 }
 0x304   :  { %v12744_v28 = vadd.f32 %v4423_v55, %v4311_v60  ;;  %v4313_v54 = vadd.f32 %v4312_v26, %v12679_v11 }
 0x305   :  { %7169 = vmatpush1.bf16.msra.mxu0 %v10275_v9  ;;  %v12747_v53 = vpop.f32.mrf.mxu0  ;;  %v12751_v19 = vpop.f32.mrf.mxu1  ;;  %v10287_v9 = vld [vmem:[#allocation8 + $0x1c8] ss:$16 sps:$4 sm:$0xff]  }
 0x306   :  { %v12749_v15 = vadd.f32 %v4425_v49, %v4313_v54  ;;  %7170 = vmatprep.subr.bf16.mxu0 %v10283_v8  ;;  %v10295_v54 = vld [vmem:[#allocation8 + $0x1ac] ss:$16 sps:$4 sm:$0xff]  }
 0x307   :  { %v4318_v21 = vpop.f32.mrf.mxu0  ;;  %v4431_v32 = vpop.f32.mrf.mxu1 }
 0x308   :  { %v4319_v6 = vadd.f32 %v4318_v21, %v12679_v11  ;;  %7001 = vmatmul.mubr.bf16.gmra.mxu0 %v12647_v58 }
 0x309   :  { %7010 = vmatprep.mubr.bf16.mxu0 %v12667_v35  ;;  %7171 = vmatpush2.bf16.msra.mxu0 %v10281_v37  ;;  %v4320_v60 = vpop.f32.mrf.mxu0  ;;  %v4433_v26 = vpop.f32.mrf.mxu1  ;;  %v10293_v35 = vld [vmem:[#allocation8 + $0x1a8] ss:$16 sps:$4 sm:$0xff]  }
 0x30a   :  { %v12756_v55 = vadd.f32 %v4431_v32, %v4319_v6  ;;  %v4321_v49 = vadd.f32 %v4320_v60, %v12681_v24  ;;  %7172 = vmatprep.subr.bf16.mxu0 %v10289_v41  ;;  %v10301_v6 = vld [vmem:[#allocation8 + $0x18c] ss:$16 sps:$4 sm:$0xff]  }
 0x30b   :  { %v4322_v8 = vpop.f32.mrf.mxu0  ;;  %v4435_v57 = vpop.f32.mrf.mxu1 }
 0x30c   :  { %v12759_v25 = vadd.f32 %v4433_v26, %v4321_v49  ;;  %v4323_v21 = vadd.f32 %v4322_v8, %v12679_v11 }
 0x30d   :  { %7173 = vmatpush2.bf16.msra.mxu0 %v10287_v9  ;;  %v12762_v58 = vpop.f32.mrf.mxu0  ;;  %v12766_v31 = vpop.f32.mrf.mxu1  ;;  %v10299_v9 = vld [vmem:[#allocation8 + $0x188] ss:$16 sps:$4 sm:$0xff]  }
 0x30e   :  { %v12764_v37 = vadd.f32 %v4435_v57, %v4323_v21  ;;  %7174 = vmatprep.subr.bf16.mxu0 %v10295_v54  ;;  %v10307_v21 = vld [vmem:[#allocation8 + $0x16c] ss:$16 sps:$4 sm:$0xff]  }
 0x30f   :  { %v4328_v32 = vpop.f32.mrf.mxu0  ;;  %v4441_v60 = vpop.f32.mrf.mxu1 }
 0x310   :  { %v4329_v41 = vadd.f32 %v4328_v32, %v12679_v11  ;;  %7011 = vmatmul.mubr.bf16.gmra.mxu0 %v12661_v30 }
 0x311   :  { %7020 = vmatprep.mubr.bf16.mxu0 %v12685_v62  ;;  %7175 = vmatpush2.bf16.msra.mxu0 %v10293_v35  ;;  %v4330_v49 = vpop.f32.mrf.mxu0  ;;  %v4443_v8 = vpop.f32.mrf.mxu1  ;;  %v10305_v62 = vld [vmem:[#allocation8 + $0x168] ss:$16 sps:$4 sm:$0xff]  }
 0x312   :  { %v12771_v26 = vadd.f32 %v4441_v60, %v4329_v41  ;;  %v4331_v57 = vadd.f32 %v4330_v49, %v12681_v24  ;;  %7176 = vmatprep.subr.bf16.mxu0 %v10301_v6  ;;  %v10313_v41 = vld [vmem:[#allocation8 + $0x14c] ss:$16 sps:$4 sm:$0xff]  }
 0x313   :  { %v4332_v54 = vpop.f32.mrf.mxu0  ;;  %v4445_v47 = vpop.f32.mrf.mxu1 }
 0x314   :  { %v12774_v40 = vadd.f32 %v4443_v8, %v4331_v57  ;;  %v4333_v32 = vadd.f32 %v4332_v54, %v12679_v11 }
 0x315   :  { %7177 = vmatpush2.bf16.msra.mxu0 %v10299_v9  ;;  %v12777_v30 = vpop.f32.mrf.mxu0  ;;  %v12781_v46 = vpop.f32.mrf.mxu1  ;;  %v10311_v9 = vld [vmem:[#allocation8 + $0x148] ss:$16 sps:$4 sm:$0xff]  }
 0x316   :  { %v12779_v35 = vadd.f32 %v4445_v47, %v4333_v32  ;;  %7178 = vmatprep.subr.bf16.mxu0 %v10307_v21  ;;  %v10319_v32 = vld [vmem:[#allocation8 + $0x12c] ss:$16 sps:$4 sm:$0xff]  }
 0x317   :  { %v4338_v60 = vpop.f32.mrf.mxu0  ;;  %v4451_v49 = vpop.f32.mrf.mxu1 }
 0x318   :  { %v4339_v6 = vadd.f32 %v4338_v60, %v12679_v11  ;;  %7021 = vmatmul.mubr.bf16.gmra.mxu0 %v12676_v0 }
 0x319   :  { %7030 = vmatprep.mubr.bf16.mxu0 %v12706_v59  ;;  %7179 = vmatpush2.bf16.msra.mxu0 %v10305_v62  ;;  %v4340_v57 = vpop.f32.mrf.mxu0  ;;  %v4453_v54 = vpop.f32.mrf.mxu1  ;;  %v10317_v59 = vld [vmem:[#allocation8 + $0x128] ss:$16 sps:$4 sm:$0xff]  }
 0x31a   :  { %v12786_v8 = vadd.f32 %v4451_v49, %v4339_v6  ;;  %v4341_v47 = vadd.f32 %v4340_v57, %v12681_v24  ;;  %7180 = vmatprep.subr.bf16.mxu0 %v10313_v41  ;;  %v10325_v6 = vld [vmem:[#allocation8 + $0x10c] ss:$16 sps:$4 sm:$0xff]  }
 0x31b   :  { %v4342_v21 = vpop.f32.mrf.mxu0  ;;  %v4455_v10 = vpop.f32.mrf.mxu1 }
 0x31c   :  { %v12789_v52 = vadd.f32 %v4453_v54, %v4341_v47  ;;  %v4343_v60 = vadd.f32 %v4342_v21, %v12679_v11  ;;  %v13800_v47 = vld [vmem:[#allocation24_spill] sm:$0xff] }
 0x31d   :  { %7181 = vmatpush2.bf16.msra.mxu0 %v10311_v9  ;;  %v12792_v0 = vpop.f32.mrf.mxu0  ;;  %v12796_v22 = vpop.f32.mrf.mxu1  ;;  %v10323_v9 = vld [vmem:[#allocation8 + $0x108] ss:$16 sps:$4 sm:$0xff]  }
 0x31e   :  { %13797 = vst [vmem:[#allocation59_spill] sm:$0xff] %v12789_v52  ;;  %v12794_v62 = vadd.f32 %v4455_v10, %v4343_v60  ;;  %13799 = vst [vmem:[#allocation61_spill] sm:$0xff] %v12796_v22  ;;  %7182 = vmatprep.subr.bf16.mxu0 %v10319_v32  ;;  %v10331_v22 = vld [vmem:[#allocation8 + $0x4ec] ss:$16 sps:$4 sm:$0xff]  }
 0x31f   :  { %v4348_v49 = vpop.f32.mrf.mxu0  ;;  %v4461_v57 = vpop.f32.mrf.mxu1 }
 0x320   :  { %13798 = vst [vmem:[#allocation60_spill] sm:$0xff] %v12794_v62  ;;  %v4349_v41 = vadd.f32 %v4348_v49, %v12679_v11  ;;  %7031 = vmatmul.mubr.bf16.gmra.mxu0 %v12694_v42 }
 0x321   :  { %7183 = vmatpush2.bf16.msra.mxu0 %v10317_v59  ;;  %7186 = vmatprep.mubr.bf16.mxu0 %v13800_v47  ;;  %v4350_v54 = vpop.f32.mrf.mxu0  ;;  %v4463_v60 = vpop.f32.mrf.mxu1  ;;  %v10329_v59 = vld [vmem:[#allocation8 + $0x4e8] ss:$16 sps:$4 sm:$0xff]  }
 0x322   :  { %v12801_v21 = vadd.f32 %v4461_v57, %v4349_v41  ;;  %v4351_v10 = vadd.f32 %v4350_v54, %v12681_v24  ;;  %7184 = vmatprep.subr.bf16.mxu0 %v10325_v6  ;;  %v10337_v41 = vld [vmem:[#allocation8 + $0x4cc] ss:$16 sps:$4 sm:$0xff]  }
 0x323   :  { %v4352_v32 = vpop.f32.mrf.mxu0  ;;  %v4465_v52 = vpop.f32.mrf.mxu1 }
 0x324   :  { %v12804_v62 = vadd.f32 %v4463_v60, %v4351_v10  ;;  %v4353_v49 = vadd.f32 %v4352_v32, %v12679_v11  ;;  %v4285_v11 = vadd.f32 %v12699_v48, %v12681_v24  ;;  %v10335_v10 = vld [vmem:[#allocation8 + $0x4c8] ss:$16 sps:$4 sm:$0xff]  }
 0x325   :  { %7185 = vmatpush2.bf16.msra.mxu0 %v10323_v9  ;;  %v12807_v42 = vpop.f32.mrf.mxu0  ;;  %v12811_v39 = vpop.f32.mrf.mxu1 }
 0x326   :  { %13801 = vst [vmem:[#allocation24_spill] sm:$0xff] %v12804_v62  ;;  %v12809_v47 = vadd.f32 %v4465_v52, %v4353_v49  ;;  %13803 = vst [vmem:[#allocation63_spill] sm:$0xff] %v12811_v39  ;;  %7380 = vmatprep.subr.bf16.mxu0 %v10331_v22  ;;  %v10343_v22 = vld [vmem:[#allocation8 + $0x4ac] ss:$16 sps:$4 sm:$0xff]  }
 0x327   :  { %v4504_v57 = vpop.f32.mrf.mxu0  ;;  %v4617_v54 = vpop.f32.mrf.mxu1 }
 0x328   :  { %13802 = vst [vmem:[#allocation62_spill] sm:$0xff] %v12809_v47  ;;  %v4505_v6 = vadd.f32 %v4504_v57, %v12691_v7  ;;  %7187 = vmatmul.mubr.bf16.vlgmr.msra.gmra.mxu0 %v11640_v27  ;;  %v4398_v27 = vadd.f32 %v12704_v14, %v4285_v11  ;;  %v10341_v47 = vld [vmem:[#allocation8 + $0x4a8] ss:$16 sps:$4 sm:$0xff]   ;;  %v4295_v14 = vadd.f32 %v12717_v34, %v12681_v24 }
 0x329   :  { %7196 = vmatprep.mubr.bf16.mxu0 %v11693_v1  ;;  %7381 = vmatpush1.bf16.msra.mxu0 %v10329_v59  ;;  %v4506_v9 = vpop.f32.mrf.mxu0  ;;  %v4619_v32 = vpop.f32.mrf.mxu1 }
 0x32a   :  { %v4618_v52 = vadd.f32 %v4617_v54, %v4505_v6  ;;  %v4507_v60 = vadd.f32 %v4506_v9, %v12696_v43  ;;  %7382 = vmatprep.subr.bf16.mxu0 %v10337_v41  ;;  %v10349_v6 = vld [vmem:[#allocation8 + $0x48c] ss:$16 sps:$4 sm:$0xff]  }
 0x32b   :  { %v4508_v49 = vpop.f32.mrf.mxu0  ;;  %v4621_v57 = vpop.f32.mrf.mxu1 }
 0x32c   :  { %v4509_v7 = vadd.f32 %v4508_v49, %v12702_v23  ;;  %v4830_v39 = vmul.f32 0.2, %v4618_v52  ;;  %vm4702_vm0 = vcmp.gt.f32.partialorder %v4618_v52, 0.0  ;;  %v4620_v1 = vadd.f32 %v4619_v32, %v4507_v60  ;;  %v10347_v32 = vld [vmem:[#allocation8 + $0x488] ss:$16 sps:$4 sm:$0xff]  }
 0x32d   :  { %7383 = vmatpush1.bf16.msra.mxu0 %v10335_v10  ;;  %v4510_v48 = vpop.f32.mrf.mxu0  ;;  %v4623_v62 = vpop.f32.mrf.mxu1 }
 0x32e   :  { %v4622_v59 = vadd.f32 %v4621_v57, %v4509_v7  ;;  %7384 = vmatprep.subr.bf16.mxu0 %v10343_v22  ;;  %v4511_v43 = vadd.f32 %v4510_v48, %v4398_v27  ;;  %v4958_v11 = vsel %vm4702_vm0, %v4618_v52, %v4830_v39  ;;  %v4831_v22 = vmul.f32 0.2, %v4620_v1 }
 0x32f   :  { %v4514_v54 = vpop.f32.mrf.mxu0  ;;  %v4627_v23 = vpop.f32.mrf.mxu1  ;;  %vm4703_vm6 = vcmp.gt.f32.partialorder %v4620_v1, 0.0 }
 0x330   :  { %vm4710_vm5 = vcmp.gt.f32.partialorder %v4622_v59, 0.0  ;;  %v4838_v41 = vmul.f32 0.2, %v4622_v59  ;;  %v4515_v9 = vadd.f32 %v4514_v54, %v12711_v18  ;;  %7197 = vmatmul.mubr.bf16.gmra.mxu0 %v11675_v3  ;;  %v4624_v10 = vadd.f32 %v4623_v62, %v4511_v43  ;;  %v10355_v18 = vld [vmem:[#allocation8 + $0x46c] ss:$16 sps:$4 sm:$0xff]  }
 0x331   :  { %7206 = vmatprep.mubr.bf16.mxu0 %v11730_v51  ;;  %7385 = vmatpush1.bf16.msra.mxu0 %v10341_v47  ;;  %v4516_v60 = vpop.f32.mrf.mxu0  ;;  %v4629_v27 = vpop.f32.mrf.mxu1  ;;  %v4408_v47 = vadd.f32 %v12721_v2, %v4295_v14  ;;  %v4959_v54 = vsel %vm4703_vm6, %v4620_v1, %v4831_v22 }
 0x332   :  { %v4966_v49 = vsel %vm4710_vm5, %v4622_v59, %v4838_v41  ;;  %v4628_v7 = vadd.f32 %v4627_v23, %v4515_v9  ;;  %v4517_v57 = vadd.f32 %v4516_v60, %v12714_v33  ;;  %7386 = vmatprep.subr.bf16.mxu0 %v10349_v6  ;;  %vm4711_vm7 = vcmp.gt.f32.partialorder %v4624_v10, 0.0  ;;  %v10353_v41 = vld [vmem:[#allocation8 + $0x468] ss:$16 sps:$4 sm:$0xff]   ;;  %v10361_v60 = vld [vmem:[#allocation8 + $0x44c] ss:$16 sps:$4 sm:$0xff]  }
 0x333   :  { %v12827_v3 = vpack.c.bf16 %v4966_v49, %v4958_v11  ;;  %v4839_v34 = vmul.f32 0.2, %v4624_v10  ;;  %v4518_v39 = vpop.f32.mrf.mxu0  ;;  %v4631_v51 = vpop.f32.mrf.mxu1  ;;  %v4305_v49 = vadd.f32 %v12732_v44, %v12681_v24 }
 0x334   :  { %v4519_v62 = vadd.f32 %v4518_v39, %v12719_v45  ;;  %v4846_v52 = vmul.f32 0.2, %v4628_v7  ;;  %vm4718_vm8 = vcmp.gt.f32.partialorder %v4628_v7, 0.0  ;;  %v4630_v33 = vadd.f32 %v4629_v27, %v4517_v57  ;;  %v10356_v45 = vld [vmem:[#allocation8 + $0x2e8] ss:$16 sps:$4 sm:$0xff]  }
 0x335   :  { %7387 = vmatpush1.bf16.msra.mxu0 %v10347_v32  ;;  %v4520_v48 = vpop.f32.mrf.mxu0  ;;  %v4967_v59 = vsel %vm4711_vm7, %v4624_v10, %v4839_v34  ;;  %v4633_v6 = vpop.f32.mrf.mxu1  ;;  %v10364_v10 = vld [vmem:[#allocation8 + $0x2cc] ss:$16 sps:$4 sm:$0xff]   ;;  %v10359_v39 = vld [vmem:[#allocation8 + $0x448] ss:$16 sps:$4 sm:$0xff]  }
 0x336   :  { %v4632_v43 = vadd.f32 %v4631_v51, %v4519_v62  ;;  %7388 = vmatprep.subr.bf16.mxu0 %v10355_v18  ;;  %v4521_v9 = vadd.f32 %v4520_v48, %v4408_v47  ;;  %v12832_v11 = vpack.c.bf16 %v4967_v59, %v4959_v54  ;;  %v4974_v1 = vsel %vm4718_vm8, %v4628_v7, %v4846_v52  ;;  %v10362_v62 = vld [vmem:[#allocation8 + $0x2c8] ss:$16 sps:$4 sm:$0xff]   ;;  %v10370_v48 = vld [vmem:[#allocation8 + $0x2ac] ss:$16 sps:$4 sm:$0xff]  }
 0x337   :  { %v4524_v23 = vpop.f32.mrf.mxu0  ;;  %v4637_v32 = vpop.f32.mrf.mxu1  ;;  %v4847_v27 = vmul.f32 0.2, %v4630_v33  ;;  %vm4719_vm10 = vcmp.gt.f32.partialorder %v4630_v33, 0.0  ;;  %v4418_v59 = vadd.f32 %v12736_v50, %v4305_v49 }
 0x338   :  { %vm4726_vm9 = vcmp.gt.f32.partialorder %v4632_v43, 0.0  ;;  %v4854_v2 = vmul.f32 0.2, %v4632_v43  ;;  %v4525_v14 = vadd.f32 %v4524_v23, %v12726_v4  ;;  %7207 = vmatmul.mubr.bf16.gmra.mxu0 %v11712_v29  ;;  %v4634_v22 = vadd.f32 %v4633_v6, %v4521_v9  ;;  %7073 = vmatprep.mubr.bf16.mxu1 %v12832_v11 }
 0x339   :  { %7216 = vmatprep.mubr.bf16.mxu0 %v13766_v5  ;;  %v4526_v57 = vpop.f32.mrf.mxu0  ;;  %7074 = vmatmul.mubr.bf16.vlgmr.msra.gmra.mxu1 %v12827_v3  ;;  %v4639_v4 = vpop.f32.mrf.mxu1  ;;  %v10367_v5 = vld [vmem:[#allocation8 + $0x42c] ss:$16 sps:$4 sm:$0xff]   ;;  %v4975_v23 = vsel %vm4719_vm10, %v4630_v33, %v4847_v27  ;;  %v4315_v33 = vadd.f32 %v12747_v53, %v12681_v24 }
 0x33a   :  { %v4982_v18 = vsel %vm4726_vm9, %v4632_v43, %v4854_v2  ;;  %v4638_v34 = vadd.f32 %v4637_v32, %v4525_v14  ;;  %7389 = vmatpush1.bf16.msra.mxu0 %v10353_v41  ;;  %v4527_v29 = vadd.f32 %v4526_v57, %v12729_v20  ;;  %vm4727_vm11 = vcmp.gt.f32.partialorder %v4634_v22, 0.0  ;;  %7268 = vmatpush1.bf16.msra.mxu1 %v10356_v45  ;;  %v10365_v45 = vld [vmem:[#allocation8 + $0x428] ss:$16 sps:$4 sm:$0xff]   ;;  %v10373_v32 = vld [vmem:[#allocation8 + $0x40c] ss:$16 sps:$4 sm:$0xff]  }
 0x33b   :  { %v12843_v44 = vpack.c.bf16 %v4982_v18, %v4974_v1  ;;  %v4855_v7 = vmul.f32 0.2, %v4634_v22  ;;  %v4528_v51 = vpop.f32.mrf.mxu0  ;;  %7390 = vmatprep.subr.bf16.mxu0 %v10361_v60  ;;  %v4641_v52 = vpop.f32.mrf.mxu1  ;;  %7269 = vmatprep.subr.bf16.mxu1 %v10364_v10  ;;  %v10368_v14 = vld [vmem:[#allocation8 + $0x2a8] ss:$16 sps:$4 sm:$0xff]   ;;  %v10376_v1 = vld [vmem:[#allocation8 + $0x28c] ss:$16 sps:$4 sm:$0xff]  }
 0x33c   :  { %v4529_v47 = vadd.f32 %v4528_v51, %v12734_v56  ;;  %v4862_v20 = vmul.f32 0.2, %v4638_v34  ;;  %vm4734_vm12 = vcmp.gt.f32.partialorder %v4638_v34, 0.0  ;;  %v4640_v54 = vadd.f32 %v4639_v4, %v4527_v29 }
 0x33d   :  { %v4530_v43 = vpop.f32.mrf.mxu0  ;;  %v4983_v6 = vsel %vm4727_vm11, %v4634_v22, %v4855_v7  ;;  %v4643_v9 = vpop.f32.mrf.mxu1 }
 0x33e   :  { %v4642_v41 = vadd.f32 %v4641_v52, %v4529_v47  ;;  %7391 = vmatpush1.bf16.msra.mxu0 %v10359_v39  ;;  %v4531_v60 = vadd.f32 %v4530_v43, %v4418_v59  ;;  %7270 = vmatpush1.bf16.msra.mxu1 %v10362_v62  ;;  %v12848_v56 = vpack.c.bf16 %v4983_v6, %v4975_v23  ;;  %v4863_v18 = vmul.f32 0.2, %v4640_v54  ;;  %v10371_v39 = vld [vmem:[#allocation8 + $0x408] ss:$16 sps:$4 sm:$0xff]   ;;  %v10382_v47 = vld [vmem:[#allocation8 + $0x26c] ss:$16 sps:$4 sm:$0xff]  }
 0x33f   :  { %v4534_v2 = vpop.f32.mrf.mxu0  ;;  %7392 = vmatprep.subr.bf16.mxu0 %v10367_v5  ;;  %v4647_v49 = vpop.f32.mrf.mxu1  ;;  %7271 = vmatprep.subr.bf16.mxu1 %v10370_v48  ;;  %v4990_v22 = vsel %vm4734_vm12, %v4638_v34, %v4862_v20  ;;  %v10374_v62 = vld [vmem:[#allocation8 + $0x288] ss:$16 sps:$4 sm:$0xff]   ;;  %vm4735_vm14 = vcmp.gt.f32.partialorder %v4640_v54, 0.0  ;;  %v4428_v52 = vadd.f32 %v12751_v19, %v4315_v33 }
 0x340   :  { %vm4742_vm13 = vcmp.gt.f32.partialorder %v4642_v41, 0.0  ;;  %v4870_v50 = vmul.f32 0.2, %v4642_v41  ;;  %v4535_v10 = vadd.f32 %v4534_v2, %v12741_v16  ;;  %7217 = vmatmul.mubr.bf16.gmra.mxu0 %v13768_v61  ;;  %v4644_v57 = vadd.f32 %v4643_v9, %v4531_v60  ;;  %7083 = vmatprep.mubr.bf16.mxu1 %v12848_v56  ;;  %v10377_v9 = vld [vmem:[#allocation8 + $0x5e8] ss:$16 sps:$4 sm:$0xff]  }
 0x341   :  { %7226 = vmatprep.mubr.bf16.mxu0 %v13770_v17  ;;  %v4536_v27 = vpop.f32.mrf.mxu0  ;;  %7084 = vmatmul.mubr.bf16.gmra.mxu1 %v12843_v44  ;;  %v4649_v16 = vpop.f32.mrf.mxu1  ;;  %v10379_v17 = vld [vmem:[#allocation8 + $0x5ec] ss:$16 sps:$4 sm:$0xff]   ;;  %v10380_v60 = vld [vmem:[#allocation8 + $0x268] ss:$16 sps:$4 sm:$0xff]  }
 0x342   :  { %v4998_v29 = vsel %vm4742_vm13, %v4642_v41, %v4870_v50  ;;  %v4648_v4 = vadd.f32 %v4647_v49, %v4535_v10  ;;  %7393 = vmatpush1.bf16.msra.mxu0 %v10365_v45  ;;  %v4537_v61 = vadd.f32 %v4536_v27, %v12744_v28  ;;  %vm4743_vm15 = vcmp.gt.f32.partialorder %v4644_v57, 0.0  ;;  %7272 = vmatpush1.bf16.msra.mxu1 %v10368_v14  ;;  %v10385_v2 = vld [vmem:[#allocation8 + $0x5cc] ss:$16 sps:$4 sm:$0xff]   ;;  %v10383_v27 = vld [vmem:[#allocation8 + $0x5c8] ss:$16 sps:$4 sm:$0xff]  }
 0x343   :  { %v12859_v53 = vpack.c.bf16 %v4998_v29, %v4990_v22  ;;  %v4871_v34 = vmul.f32 0.2, %v4644_v57  ;;  %v4538_v7 = vpop.f32.mrf.mxu0  ;;  %7394 = vmatprep.subr.bf16.mxu0 %v10373_v32  ;;  %v4651_v5 = vpop.f32.mrf.mxu1  ;;  %7273 = vmatprep.subr.bf16.mxu1 %v10376_v1  ;;  %v4991_v41 = vsel %vm4735_vm14, %v4640_v54, %v4863_v18  ;;  %v10388_v50 = vld [vmem:[#allocation8 + $0x24c] ss:$16 sps:$4 sm:$0xff]   ;;  %v4325_v54 = vadd.f32 %v12762_v58, %v12681_v24  ;;  %v10386_v18 = vld [vmem:[#allocation8 + $0x248] ss:$16 sps:$4 sm:$0xff]  }
 0x344   :  { %v4539_v51 = vadd.f32 %v4538_v7, %v12749_v15  ;;  %v4878_v28 = vmul.f32 0.2, %v4648_v4  ;;  %vm4750_vm1 = vcmp.gt.f32.partialorder %v4648_v4, 0.0  ;;  %v4650_v20 = vadd.f32 %v4649_v16, %v4537_v61 }
 0x345   :  { %v4540_v48 = vpop.f32.mrf.mxu0  ;;  %v4999_v59 = vsel %vm4743_vm15, %v4644_v57, %v4871_v34  ;;  %v4653_v6 = vpop.f32.mrf.mxu1 }
 0x346   :  { %v4652_v43 = vadd.f32 %v4651_v5, %v4539_v51  ;;  %7395 = vmatpush1.bf16.msra.mxu0 %v10371_v39  ;;  %v4541_v23 = vadd.f32 %v4540_v48, %v4428_v52  ;;  %7274 = vmatpush1.bf16.msra.mxu1 %v10374_v62  ;;  %v12864_v15 = vpack.c.bf16 %v4999_v59, %v4991_v41  ;;  %v4879_v33 = vmul.f32 0.2, %v4650_v20  ;;  %v10394_v39 = vld [vmem:[#allocation8 + $0x22c] ss:$16 sps:$4 sm:$0xff]   ;;  %v10389_v52 = vld [vmem:[#allocation8 + $0x5a8] ss:$16 sps:$4 sm:$0xff]  }
 0x347   :  { %v4544_v45 = vpop.f32.mrf.mxu0  ;;  %7396 = vmatprep.subr.bf16.mxu0 %v10379_v17  ;;  %v4657_v32 = vpop.f32.mrf.mxu1  ;;  %7275 = vmatprep.subr.bf16.mxu1 %v10382_v47  ;;  %v5006_v10 = vsel %vm4750_vm1, %v4648_v4, %v4878_v28  ;;  %vm4751_vm3 = vcmp.gt.f32.partialorder %v4650_v20, 0.0  ;;  %v4438_v62 = vadd.f32 %v12766_v31, %v4325_v54  ;;  %v10392_v59 = vld [vmem:[#allocation8 + $0x228] ss:$16 sps:$4 sm:$0xff]  }
 0x348   :  { %vm4758_vm2 = vcmp.gt.f32.partialorder %v4652_v43, 0.0  ;;  %v4886_v19 = vmul.f32 0.2, %v4652_v43  ;;  %v4545_v14 = vadd.f32 %v4544_v45, %v12756_v55  ;;  %7227 = vmatmul.mubr.bf16.gmra.mxu0 %v13772_v12  ;;  %v4654_v49 = vadd.f32 %v4653_v6, %v4541_v23  ;;  %7093 = vmatprep.mubr.bf16.mxu1 %v12864_v15 }
 0x349   :  { %7236 = vmatprep.mubr.bf16.mxu0 %v13774_v63  ;;  %v4546_v1 = vpop.f32.mrf.mxu0  ;;  %7094 = vmatmul.mubr.bf16.gmra.mxu1 %v12859_v53  ;;  %v4659_v55 = vpop.f32.mrf.mxu1  ;;  %v10391_v63 = vld [vmem:[#allocation8 + $0x5ac] ss:$16 sps:$4 sm:$0xff]   ;;  %v5007_v47 = vsel %vm4751_vm3, %v4650_v20, %v4879_v33  ;;  %v4335_v20 = vadd.f32 %v12777_v30, %v12681_v24 }
 0x34a   :  { %v5014_v22 = vsel %vm4758_vm2, %v4652_v43, %v4886_v19  ;;  %v4658_v57 = vadd.f32 %v4657_v32, %v4545_v14  ;;  %7397 = vmatpush2.bf16.msra.mxu0 %v10377_v9  ;;  %v4547_v12 = vadd.f32 %v4546_v1, %v12759_v25  ;;  %vm4759_vm4 = vcmp.gt.f32.partialorder %v4654_v49, 0.0  ;;  %7276 = vmatpush1.bf16.msra.mxu1 %v10380_v60  ;;  %v10397_v43 = vld [vmem:[#allocation8 + $0x58c] ss:$16 sps:$4 sm:$0xff]   ;;  %v10395_v32 = vld [vmem:[#allocation8 + $0x588] ss:$16 sps:$4 sm:$0xff]  }
 0x34b   :  { %v12875_v58 = vpack.c.bf16 %v5014_v22, %v5006_v10  ;;  %v4887_v29 = vmul.f32 0.2, %v4654_v49  ;;  %v4548_v4 = vpop.f32.mrf.mxu0  ;;  %7398 = vmatprep.subr.bf16.mxu0 %v10385_v2  ;;  %v4661_v16 = vpop.f32.mrf.mxu1  ;;  %7277 = vmatprep.subr.bf16.mxu1 %v10388_v50  ;;  %v10400_v9 = vld [vmem:[#allocation8 + $0x20c] ss:$16 sps:$4 sm:$0xff]   ;;  %v10398_v50 = vld [vmem:[#allocation8 + $0x208] ss:$16 sps:$4 sm:$0xff]   ;;  %v4448_v22 = vadd.f32 %v12781_v46, %v4335_v20 }
 0x34c   :  { %v4549_v61 = vadd.f32 %v4548_v4, %v12764_v37  ;;  %v4894_v25 = vmul.f32 0.2, %v4658_v57  ;;  %vm4766_vm0 = vcmp.gt.f32.partialorder %v4658_v57, 0.0  ;;  %v4660_v17 = vadd.f32 %v4659_v55, %v4547_v12  ;;  %v10406_v33 = vld [vmem:[#allocation8 + $0x3ec] ss:$16 sps:$4 sm:$0xff]  }
 0x34d   :  { %v4550_v34 = vpop.f32.mrf.mxu0  ;;  %v5015_v7 = vsel %vm4759_vm4, %v4654_v49, %v4887_v29  ;;  %v4663_v5 = vpop.f32.mrf.mxu1  ;;  %v10401_v4 = vld [vmem:[#allocation8 + $0x568] ss:$16 sps:$4 sm:$0xff]   ;;  %v13806_v20 = vld [vmem:[#allocation60_spill] sm:$0xff] }
 0x34e   :  { %v4662_v51 = vadd.f32 %v4661_v16, %v4549_v61  ;;  %7399 = vmatpush2.bf16.msra.mxu0 %v10383_v27  ;;  %v4551_v28 = vadd.f32 %v4550_v34, %v4438_v62  ;;  %7278 = vmatpush1.bf16.msra.mxu1 %v10386_v18  ;;  %v12880_v37 = vpack.c.bf16 %v5015_v7, %v5007_v47  ;;  %v4895_v2 = vmul.f32 0.2, %v4660_v17  ;;  %v10404_v16 = vld [vmem:[#allocation8 + $0x3e8] ss:$16 sps:$4 sm:$0xff]   ;;  %v10412_v34 = vld [vmem:[#allocation8 + $0x3cc] ss:$16 sps:$4 sm:$0xff]  }
 0x34f   :  { %v4554_v48 = vpop.f32.mrf.mxu0  ;;  %7400 = vmatprep.subr.bf16.mxu0 %v10391_v63  ;;  %v4667_v41 = vpop.f32.mrf.mxu1  ;;  %7279 = vmatprep.subr.bf16.mxu1 %v10394_v39  ;;  %v5022_v23 = vsel %vm4766_vm0, %v4658_v57, %v4894_v25  ;;  %vm4767_vm6 = vcmp.gt.f32.partialorder %v4660_v17, 0.0  ;;  %v10409_v39 = vld [vmem:[#allocation8 + $0x54c] ss:$16 sps:$4 sm:$0xff]   ;;  %v4345_v7 = vadd.f32 %v12792_v0, %v12681_v24 }
 0x350   :  { %vm4774_vm5 = vcmp.gt.f32.partialorder %v4662_v51, 0.0  ;;  %v4902_v31 = vmul.f32 0.2, %v4662_v51  ;;  %v4555_v6 = vadd.f32 %v4554_v48, %v12771_v26  ;;  %7237 = vmatmul.mubr.bf16.gmra.mxu0 %v13776_v13  ;;  %v4664_v45 = vadd.f32 %v4663_v5, %v4551_v28  ;;  %7103 = vmatprep.mubr.bf16.mxu1 %v12880_v37  ;;  %v13804_v5 = vld [vmem:[#allocation34_spill] sm:$0xff] }
 0x351   :  { %7246 = vmatprep.mubr.bf16.mxu0 %v13778_v38  ;;  %v4556_v60 = vpop.f32.mrf.mxu0  ;;  %7104 = vmatmul.mubr.bf16.gmra.mxu1 %v12875_v58  ;;  %v4669_v26 = vpop.f32.mrf.mxu1  ;;  %v10403_v38 = vld [vmem:[#allocation8 + $0x56c] ss:$16 sps:$4 sm:$0xff]   ;;  %v5023_v29 = vsel %vm4767_vm6, %v4660_v17, %v4895_v2 }
 0x352   :  { %v5030_v19 = vsel %vm4774_vm5, %v4662_v51, %v4902_v31  ;;  %v4668_v14 = vadd.f32 %v4667_v41, %v4555_v6  ;;  %7401 = vmatpush2.bf16.msra.mxu0 %v10389_v52  ;;  %v4557_v13 = vadd.f32 %v4556_v60, %v12774_v40  ;;  %vm4775_vm7 = vcmp.gt.f32.partialorder %v4664_v45, 0.0  ;;  %7280 = vmatpush1.bf16.msra.mxu1 %v10392_v59  ;;  %v10410_v31 = vld [vmem:[#allocation8 + $0x3c8] ss:$16 sps:$4 sm:$0xff]   ;;  %v10418_v60 = vld [vmem:[#allocation8 + $0x3ac] ss:$16 sps:$4 sm:$0xff]  }
 0x353   :  { %v12891_v30 = vpack.c.bf16 %v5030_v19, %v5022_v23  ;;  %v4903_v54 = vmul.f32 0.2, %v4664_v45  ;;  %v4558_v10 = vpop.f32.mrf.mxu0  ;;  %7402 = vmatprep.subr.bf16.mxu0 %v10397_v43  ;;  %v4671_v1 = vpop.f32.mrf.mxu1  ;;  %7281 = vmatprep.subr.bf16.mxu1 %v10400_v9  ;;  %v10407_v43 = vld [vmem:[#allocation8 + $0x548] ss:$16 sps:$4 sm:$0xff]   ;;  %v10415_v9 = vld [vmem:[#allocation8 + $0x52c] ss:$16 sps:$4 sm:$0xff]  }
 0x354   :  { %v4559_v49 = vadd.f32 %v4558_v10, %v12779_v35  ;;  %v4910_v40 = vmul.f32 0.2, %v4668_v14  ;;  %vm4782_vm8 = vcmp.gt.f32.partialorder %v4668_v14, 0.0  ;;  %v4670_v55 = vadd.f32 %v4669_v26, %v4557_v13  ;;  %v13807_v2 = vld [vmem:[#allocation61_spill] sm:$0xff] }
 0x355   :  { %v4560_v57 = vpop.f32.mrf.mxu0  ;;  %v5031_v12 = vsel %vm4775_vm7, %v4664_v45, %v4903_v54  ;;  %v4673_v18 = vpop.f32.mrf.mxu1  ;;  %v4458_v19 = vadd.f32 %v13807_v2, %v4345_v7  ;;  %v13814_v2 = vld [vmem:[#allocation23_spill] sm:$0xff] }
 0x356   :  { %v4672_v27 = vadd.f32 %v4671_v1, %v4559_v49  ;;  %7403 = vmatpush2.bf16.msra.mxu0 %v10395_v32  ;;  %v4561_v63 = vadd.f32 %v4560_v57, %v4448_v22  ;;  %7282 = vmatpush1.bf16.msra.mxu1 %v10398_v50  ;;  %v12896_v35 = vpack.c.bf16 %v5031_v12, %v5023_v29  ;;  %v4911_v52 = vmul.f32 0.2, %v4670_v55  ;;  %v10416_v22 = vld [vmem:[#allocation8 + $0x3a8] ss:$16 sps:$4 sm:$0xff]   ;;  %v10424_v29 = vld [vmem:[#allocation8 + $0x38c] ss:$16 sps:$4 sm:$0xff]  }
 0x357   :  { %v4564_v61 = vpop.f32.mrf.mxu0  ;;  %7404 = vmatprep.subr.bf16.mxu0 %v10403_v38  ;;  %v4677_v25 = vpop.f32.mrf.mxu1  ;;  %7283 = vmatprep.subr.bf16.mxu1 %v10406_v33  ;;  %v5038_v17 = vsel %vm4782_vm8, %v4668_v14, %v4910_v40  ;;  %vm4783_vm10 = vcmp.gt.f32.partialorder %v4670_v55, 0.0  ;;  %v10413_v38 = vld [vmem:[#allocation8 + $0x528] ss:$16 sps:$4 sm:$0xff]   ;;  %v10421_v40 = vld [vmem:[#allocation8 + $0x50c] ss:$16 sps:$4 sm:$0xff]  }
 0x358   :  { %vm4790_vm9 = vcmp.gt.f32.partialorder %v4672_v27, 0.0  ;;  %v4918_v46 = vmul.f32 0.2, %v4672_v27  ;;  %v4565_v62 = vadd.f32 %v4564_v61, %v12786_v8  ;;  %7247 = vmatmul.mubr.bf16.gmra.mxu0 %v13780_v36  ;;  %v4674_v51 = vadd.f32 %v4673_v18, %v4561_v63  ;;  %7113 = vmatprep.mubr.bf16.mxu1 %v12896_v35  ;;  %v13805_v36 = vld [vmem:[#allocation59_spill] sm:$0xff]  ;;  %v13808_v18 = vld [vmem:[#allocation33_spill] sm:$0xff] }
 0x359   :  { %7256 = vmatprep.mubr.bf16.mxu0 %v13804_v5  ;;  %v4566_v47 = vpop.f32.mrf.mxu0  ;;  %7114 = vmatmul.mubr.bf16.gmra.mxu1 %v12891_v30  ;;  %v4679_v59 = vpop.f32.mrf.mxu1  ;;  %v5039_v10 = vsel %vm4783_vm10, %v4670_v55, %v4911_v52  ;;  %v4355_v55 = vadd.f32 %v12807_v42, %v12681_v24  ;;  %v13809_v61 = vld [vmem:[#allocation55_spill] sm:$0xff]  ;;  %v13811_v52 = vld [vmem:[#allocation62_spill] sm:$0xff] }
 0x35a   :  { %v5046_v28 = vsel %vm4790_vm9, %v4672_v27, %v4918_v46  ;;  %v4678_v48 = vadd.f32 %v4677_v25, %v4565_v62  ;;  %7405 = vmatpush2.bf16.msra.mxu0 %v10401_v4  ;;  %v4567_v8 = vadd.f32 %v4566_v47, %v13805_v36  ;;  %vm4791_vm11 = vcmp.gt.f32.partialorder %v4674_v51, 0.0  ;;  %7284 = vmatpush2.bf16.msra.mxu1 %v10404_v16  ;;  %v13810_v25 = vld [vmem:[#allocation24_spill] sm:$0xff]  ;;  %v10422_v24 = vld [vmem:[#allocation8 + $0x388] ss:$16 sps:$4 sm:$0xff]   ;;  %v13812_v36 = vld [vmem:[#allocation22_spill] sm:$0xff] }
 0x35b   :  { %v12907_v0 = vpack.c.bf16 %v5046_v28, %v5038_v17  ;;  %v4919_v6 = vmul.f32 0.2, %v4674_v51  ;;  %v4568_v41 = vpop.f32.mrf.mxu0  ;;  %7406 = vmatprep.subr.bf16.mxu0 %v10409_v39  ;;  %v4681_v45 = vpop.f32.mrf.mxu1  ;;  %7285 = vmatprep.subr.bf16.mxu1 %v10412_v34  ;;  %v5400_v39 = vld [vmem:[#allocation9] sm:$0xf]  ;;  %v10419_v17 = vld [vmem:[#allocation8 + $0x508] ss:$16 sps:$4 sm:$0xff]  }
 0x35c   :  { %v4569_v23 = vadd.f32 %v4568_v41, %v13806_v20  ;;  %v4926_v14 = vmul.f32 0.2, %v4678_v48  ;;  %vm4798_vm12 = vcmp.gt.f32.partialorder %v4678_v48, 0.0  ;;  %v4680_v32 = vadd.f32 %v4679_v59, %v4567_v8  ;;  %v10487_v47 = vld [vmem:[#allocation11 + $0x74] ss:$8 sps:$4 sm:$0xff]  }
 0x35d   :  { %v4570_v13 = vpop.f32.mrf.mxu0  ;;  %v5047_v26 = vsel %vm4791_vm11, %v4674_v51, %v4919_v6  ;;  %v4683_v54 = vpop.f32.mrf.mxu1  ;;  %v12927_v8 = vrot.slane %v5400_v39, %v13812_v36  ;;  %v10427_v59 = vld [vmem:[#allocation8 + $0x36c] ss:$16 sps:$4 sm:$0xff]  }
 0x35e   :  { %v4682_v50 = vadd.f32 %v4681_v45, %v4569_v23  ;;  %7407 = vmatpush2.bf16.msra.mxu0 %v10407_v43  ;;  %v4571_v49 = vadd.f32 %v4570_v13, %v4458_v19  ;;  %7286 = vmatpush2.bf16.msra.mxu1 %v10410_v31  ;;  %v12912_v33 = vpack.c.bf16 %v5047_v26, %v5039_v10  ;;  %v4927_v46 = vmul.f32 0.2, %v4680_v32  ;;  %v13813_v43 = vld [vmem:[#allocation63_spill] sm:$0xff] }
 0x35f   :  { %v4574_v1 = vpop.f32.mrf.mxu0  ;;  %7408 = vmatprep.subr.bf16.mxu0 %v10415_v9  ;;  %v4687_v27 = vpop.f32.mrf.mxu1  ;;  %7287 = vmatprep.subr.bf16.mxu1 %v10418_v60  ;;  %v5054_v4 = vsel %vm4798_vm12, %v4678_v48, %v4926_v14  ;;  %vm4799_vm14 = vcmp.gt.f32.partialorder %v4680_v32, 0.0  ;;  %v4468_v31 = vadd.f32 %v13813_v43, %v4355_v55  ;;  %v12932_v19 = vrot.slane %v5400_v39, %v13814_v2  ;;  %v10485_v10 = vld [vmem:[#allocation11 + $0x70] ss:$8 sps:$4 sm:$0xff]   ;;  %v13816_v55 = vld [vmem:[#allocation25_spill] sm:$0xff] }
 0x360   :  { %vm4806_vm13 = vcmp.gt.f32.partialorder %v4682_v50, 0.0  ;;  %v4934_v57 = vmul.f32 0.2, %v4682_v50  ;;  %v4575_v12 = vadd.f32 %v4574_v1, %v12801_v21  ;;  %7257 = vmatmul.mubr.bf16.gmra.mxu0 %v13808_v18  ;;  %v4684_v63 = vadd.f32 %v4683_v54, %v4571_v49  ;;  %7123 = vmatprep.mubr.bf16.mxu1 %v12912_v33  ;;  %v10430_v54 = vld [vmem:[#allocation8 + $0x34c] ss:$16 sps:$4 sm:$0xff]  }
 0x361   :  { %7412 = vmatprep.mubr.bf16.mxu0 %v13809_v61  ;;  %v4576_v16 = vpop.f32.mrf.mxu0  ;;  %7124 = vmatmul.mubr.bf16.gmra.mxu1 %v12907_v0  ;;  %v4689_v7 = vpop.f32.mrf.mxu1  ;;  %v5055_v60 = vsel %vm4799_vm14, %v4680_v32, %v4927_v46  ;;  %v10428_v61 = vld [vmem:[#allocation8 + $0x348] ss:$16 sps:$4 sm:$0xff]  }
 0x362   :  { %v5062_v62 = vsel %vm4806_vm13, %v4682_v50, %v4934_v57  ;;  %v4688_v21 = vadd.f32 %v4687_v27, %v4575_v12  ;;  %7409 = vmatpush2.bf16.msra.mxu0 %v10413_v38  ;;  %v4577_v34 = vadd.f32 %v4576_v16, %v13810_v25  ;;  %vm4807_vm15 = vcmp.gt.f32.partialorder %v4684_v63, 0.0  ;;  %7288 = vmatpush2.bf16.msra.mxu1 %v10416_v22  ;;  %v10425_v50 = vld [vmem:[#allocation8 + $0x368] ss:$16 sps:$4 sm:$0xff]   ;;  %v13815_v12 = vld [vmem:[#allocation54_spill] sm:$0xff] }
 0x363   :  { %v12923_v42 = vpack.c.bf16 %v5062_v62, %v5054_v4  ;;  %v4935_v51 = vmul.f32 0.2, %v4684_v63  ;;  %v4578_v5 = vpop.f32.mrf.mxu0  ;;  %7410 = vmatprep.subr.bf16.mxu0 %v10421_v40  ;;  %v4691_v48 = vpop.f32.mrf.mxu1  ;;  %7289 = vmatprep.subr.bf16.mxu1 %v10424_v29  ;;  %v10490_v22 = vld [vmem:[#allocation11 + $0x64] ss:$8 sps:$4 sm:$0xff]   ;;  %v10488_v62 = vld [vmem:[#allocation11 + $0x60] ss:$8 sps:$4 sm:$0xff]  }
 0x364   :  { %v4579_v28 = vadd.f32 %v4578_v5, %v13811_v52  ;;  %v4942_v6 = vmul.f32 0.2, %v4688_v21  ;;  %v4690_v41 = vadd.f32 %v4689_v7, %v4577_v34  ;;  %vm4814_vm1 = vcmp.gt.f32.partialorder %v4688_v21, 0.0  ;;  %v10433_v7 = vld [vmem:[#allocation8 + $0x32c] ss:$16 sps:$4 sm:$0xff]  }
 0x365   :  { %v4580_v9 = vpop.f32.mrf.mxu0  ;;  %v5063_v20 = vsel %vm4807_vm15, %v4684_v63, %v4935_v51  ;;  %v4693_v45 = vpop.f32.mrf.mxu1  ;;  %v10493_v5 = vld [vmem:[#allocation11 + $0x54] ss:$8 sps:$4 sm:$0xff]  }
 0x366   :  { %v4692_v23 = vadd.f32 %v4691_v48, %v4579_v28  ;;  %7411 = vmatpush2.bf16.msra.mxu0 %v10419_v17  ;;  %v4581_v14 = vadd.f32 %v4580_v9, %v4468_v31  ;;  %7290 = vmatpush2.bf16.msra.mxu1 %v10422_v24  ;;  %v12934_v26 = vpack.c.bf16 %v5063_v20, %v5055_v60  ;;  %v4943_v40 = vmul.f32 0.2, %v4690_v41  ;;  %v13817_v9 = vld [vmem:[#allocation26_spill] sm:$0xff]  ;;  %v13818_v60 = vld [vmem:[#allocation27_spill] sm:$0xff] }
 0x367   :  { %v6736_v13 = vpop.f32.mrf.mxu0  ;;  %8226 = vmatprep.subr.bf16.mxu0 %v10487_v47  ;;  %7291 = vmatprep.subr.bf16.mxu1 %v10427_v59  ;;  %v5070_v32 = vsel %vm4814_vm1, %v4688_v21, %v4942_v6  ;;  %vm4815_vm3 = vcmp.gt.f32.partialorder %v4690_v41, 0.0  ;;  %v10431_v59 = vld [vmem:[#allocation8 + $0x328] ss:$16 sps:$4 sm:$0xff]   ;;  %v10436_v6 = vld [vmem:[#allocation8 + $0x30c] ss:$16 sps:$4 sm:$0xff]  }
 0x368   :  { %vm4822_vm2 = vcmp.gt.f32.partialorder %v4692_v23, 0.0  ;;  %v4950_v38 = vmul.f32 0.2, %v4692_v23  ;;  %v6737_v49 = vadd.f32 %v6736_v13, %v12927_v8  ;;  %v6849_v1 = vpop.f32.mrf.mxu1  ;;  %v4694_v57 = vadd.f32 %v4693_v45, %v4581_v14  ;;  %7133 = vmatprep.mubr.bf16.mxu1 %v12934_v26 }
 0x369   :  { %7413 = vmatmul.mubr.bf16.vlgmr.msra.gmra.mxu0 %v13815_v12  ;;  %v6738_v27 = vpop.f32.mrf.mxu0  ;;  %7134 = vmatmul.mubr.bf16.gmra.mxu1 %v12923_v42  ;;  %v5071_v24 = vsel %vm4815_vm3, %v4690_v41, %v4943_v40  ;;  %v10491_v41 = vld [vmem:[#allocation11 + $0x50] ss:$8 sps:$4 sm:$0xff]  }
 0x36a   :  { %v5078_v18 = vsel %vm4822_vm2, %v4692_v23, %v4950_v38  ;;  %v12940_v29 = vadd.f32 %v6849_v1, %v6737_v49  ;;  %7422 = vmatprep.mubr.bf16.mxu0 %v13816_v55  ;;  %v6739_v4 = vadd.f32 %v6738_v27, %v12932_v19  ;;  %v6851_v63 = vpop.f32.mrf.mxu1  ;;  %vm4823_vm4 = vcmp.gt.f32.partialorder %v4694_v57, 0.0  ;;  %7292 = vmatpush2.bf16.msra.mxu1 %v10425_v50  ;;  %v10496_v23 = vld [vmem:[#allocation11 + $0x44] ss:$8 sps:$4 sm:$0xff]   ;;  %v13819_v50 = vld [vmem:[#allocation36_spill] sm:$0xff] }
 0x36b   :  { %v12945_v16 = vpack.c.bf16 %v5078_v18, %v5070_v32  ;;  %v4951_v39 = vmul.f32 0.2, %v4694_v57  ;;  %v6740_v46 = vpop.f32.mrf.mxu0  ;;  %8227 = vmatpush1.bf16.msra.mxu0 %v10485_v10  ;;  %7293 = vmatprep.subr.bf16.mxu1 %v10430_v54  ;;  %v10434_v10 = vld [vmem:[#allocation8 + $0x308] ss:$16 sps:$4 sm:$0xff]   ;;  %v10494_v32 = vld [vmem:[#allocation11 + $0x40] ss:$8 sps:$4 sm:$0xff]  }
 0x36c   :  { %v12947_v21 = vadd.f32 %v6851_v63, %v6739_v4  ;;  %v6741_v25 = vadd.f32 %v6740_v46, %v12927_v8  ;;  %v6853_v34 = vpop.f32.mrf.mxu1  ;;  %8228 = vmatprep.subr.bf16.mxu0 %v10490_v22  ;;  %v10439_v22 = vld [vmem:[#allocation8 + $0x6ec] ss:$16 sps:$4 sm:$0xff]   ;;  %v10437_v55 = vld [vmem:[#allocation8 + $0x6e8] ss:$16 sps:$4 sm:$0xff]  }
 0x36d   :  { %v12950_v17 = vpop.f32.mrf.mxu0  ;;  %v5079_v51 = vsel %vm4823_vm4, %v4694_v57, %v4951_v39  ;;  %v10499_v57 = vld [vmem:[#allocation11 + $0x34] ss:$8 sps:$4 sm:$0xff]   ;;  %v10497_v39 = vld [vmem:[#allocation11 + $0x30] ss:$8 sps:$4 sm:$0xff]  }
 0x36e   :  { %v12953_v47 = vadd.f32 %v6853_v34, %v6741_v25  ;;  %v12955_v52 = vpop.f32.mrf.mxu1  ;;  %v12957_v28 = vpack.c.bf16 %v5079_v51, %v5071_v24  ;;  %7294 = vmatpush2.bf16.msra.mxu1 %v10428_v61  ;;  %v10442_v61 = vld [vmem:[#allocation8 + $0x6cc] ss:$16 sps:$4 sm:$0xff]   ;;  %v10502_v25 = vld [vmem:[#allocation11 + $0x24] ss:$8 sps:$4 sm:$0xff]  }
 0x36f   :  { %v6746_v48 = vpop.f32.mrf.mxu0  ;;  %8229 = vmatpush1.bf16.msra.mxu0 %v10488_v62  ;;  %7295 = vmatprep.subr.bf16.mxu1 %v10433_v7  ;;  %v13820_v46 = vld [vmem:[#allocation28_spill] sm:$0xff]  ;;  %v13821_v7 = vld [vmem:[#allocation35_spill] sm:$0xff]  ;;  %v13822_v24 = vld [vmem:[#allocation29_spill] sm:$0xff] }
 0x370   :  { %v6747_v43 = vadd.f32 %v6746_v48, %v12927_v8  ;;  %v6859_v31 = vpop.f32.mrf.mxu1  ;;  %7143 = vmatprep.mubr.bf16.mxu1 %v12957_v28  ;;  %8230 = vmatprep.subr.bf16.mxu0 %v10493_v5  ;;  %v13823_v48 = vld [vmem:[#allocation38_spill] sm:$0xff] }
 0x371   :  { %7423 = vmatmul.mubr.bf16.gmra.mxu0 %v13817_v9  ;;  %v6748_v20 = vpop.f32.mrf.mxu0  ;;  %7144 = vmatmul.mubr.bf16.gmra.mxu1 %v12945_v16  ;;  %v10445_v9 = vld [vmem:[#allocation8 + $0x6ac] ss:$16 sps:$4 sm:$0xff]  }
 0x372   :  { %v12962_v45 = vadd.f32 %v6859_v31, %v6747_v43  ;;  %7432 = vmatprep.mubr.bf16.mxu0 %v13818_v60  ;;  %v6749_v14 = vadd.f32 %v6748_v20, %v12932_v19  ;;  %v6861_v13 = vpop.f32.mrf.mxu1  ;;  %7296 = vmatpush2.bf16.msra.mxu1 %v10431_v59  ;;  %v10440_v43 = vld [vmem:[#allocation8 + $0x6c8] ss:$16 sps:$4 sm:$0xff]   ;;  %v10500_v20 = vld [vmem:[#allocation11 + $0x20] ss:$8 sps:$4 sm:$0xff]  }
 0x373   :  { %7299 = vmatprep.mubr.bf16.mxu1 %v13819_v50  ;;  %v6750_v54 = vpop.f32.mrf.mxu0  ;;  %7297 = vmatprep.subr.bf16.mxu1 %v10436_v6  ;;  %v10505_v60 = vld [vmem:[#allocation11 + $0x14] ss:$8 sps:$4 sm:$0xff]  }
 0x374   :  { %v12968_v38 = vadd.f32 %v6861_v13, %v6749_v14  ;;  %v6751_v49 = vadd.f32 %v6750_v54, %v12927_v8  ;;  %v6863_v1 = vpop.f32.mrf.mxu1  ;;  %8231 = vmatpush1.bf16.msra.mxu0 %v10491_v41  ;;  %v10443_v54 = vld [vmem:[#allocation8 + $0x6a8] ss:$16 sps:$4 sm:$0xff]  }
 0x375   :  { %v12971_v40 = vpop.f32.mrf.mxu0  ;;  %8232 = vmatprep.subr.bf16.mxu0 %v10496_v23 }
 0x376   :  { %v12973_v12 = vadd.f32 %v6863_v1, %v6751_v49  ;;  %v12975_v27 = vpop.f32.mrf.mxu1  ;;  %7298 = vmatpush2.bf16.msra.mxu1 %v10434_v10  ;;  %v10448_v1 = vld [vmem:[#allocation8 + $0x68c] ss:$16 sps:$4 sm:$0xff]  }
 0x377   :  { %v6756_v18 = vpop.f32.mrf.mxu0  ;;  %7493 = vmatprep.subr.bf16.mxu1 %v10439_v22  ;;  %v10503_v22 = vld [vmem:[#allocation11 + $0x10] ss:$8 sps:$4 sm:$0xff]  }
 0x378   :  { %v6757_v4 = vadd.f32 %v6756_v18, %v12927_v8  ;;  %v6869_v63 = vpop.f32.mrf.mxu1  ;;  %8233 = vmatpush1.bf16.msra.mxu0 %v10494_v32  ;;  %v13824_v32 = vld [vmem:[#allocation30_spill] sm:$0xff] }
 0x379   :  { %7433 = vmatmul.mubr.bf16.gmra.mxu0 %v13820_v46  ;;  %v6758_v62 = vpop.f32.mrf.mxu0  ;;  %8234 = vmatprep.subr.bf16.mxu0 %v10499_v57  ;;  %v10508_v18 = vld [vmem:[#allocation11 + $0x4] ss:$8 sps:$4 sm:$0xff]   ;;  %v13827_v46 = vld [vmem:[#allocation40_spill] sm:$0xff] }
 0x37a   :  { %v12979_v34 = vadd.f32 %v6869_v63, %v6757_v4  ;;  %7300 = vmatmul.mubr.bf16.vlgmr.msra.gmra.mxu1 %v13821_v7  ;;  %7442 = vmatprep.mubr.bf16.mxu0 %v13822_v24  ;;  %v6759_v51 = vadd.f32 %v6758_v62, %v12932_v19  ;;  %v6871_v5 = vpop.f32.mrf.mxu1  ;;  %v13825_v4 = vld [vmem:[#allocation37_spill] sm:$0xff]  ;;  %v13826_v63 = vld [vmem:[#allocation31_spill] sm:$0xff] }
 0x37b   :  { %7309 = vmatprep.mubr.bf16.mxu1 %v13823_v48  ;;  %7494 = vmatpush1.bf16.msra.mxu1 %v10437_v55  ;;  %v6760_v59 = vpop.f32.mrf.mxu0  ;;  %v10506_v48 = vld [vmem:[#allocation11] ss:$8 sps:$4 sm:$0xff]  }
 0x37c   :  { %v12985_v31 = vadd.f32 %v6871_v5, %v6759_v51  ;;  %v6761_v6 = vadd.f32 %v6760_v59, %v12927_v8  ;;  %v6873_v41 = vpop.f32.mrf.mxu1  ;;  %7495 = vmatprep.subr.bf16.mxu1 %v10442_v61  ;;  %8235 = vmatpush1.bf16.msra.mxu0 %v10497_v39  ;;  %v10451_v5 = vld [vmem:[#allocation8 + $0x66c] ss:$16 sps:$4 sm:$0xff]  }
 0x37d   :  { %v12988_v23 = vpop.f32.mrf.mxu0  ;;  %8236 = vmatprep.subr.bf16.mxu0 %v10502_v25  ;;  %v10446_v25 = vld [vmem:[#allocation8 + $0x688] ss:$16 sps:$4 sm:$0xff]  }
 0x37e   :  { %v12990_v14 = vadd.f32 %v6873_v41, %v6761_v6  ;;  %v12992_v13 = vpop.f32.mrf.mxu1 }
 0x37f   :  { %7496 = vmatpush1.bf16.msra.mxu1 %v10440_v43  ;;  %v6766_v50 = vpop.f32.mrf.mxu0  ;;  %v10511_v43 = vld [vmem:[#allocation11 + $0xf4] ss:$8 sps:$4 sm:$0xff]  }
 0x380   :  { %v6767_v10 = vadd.f32 %v6766_v50, %v12927_v8  ;;  %v6879_v49 = vpop.f32.mrf.mxu1  ;;  %7497 = vmatprep.subr.bf16.mxu1 %v10445_v9  ;;  %8237 = vmatpush1.bf16.msra.mxu0 %v10500_v20  ;;  %v10449_v20 = vld [vmem:[#allocation8 + $0x668] ss:$16 sps:$4 sm:$0xff]  }
 0x381   :  { %7443 = vmatmul.mubr.bf16.gmra.mxu0 %v13824_v32  ;;  %v6768_v57 = vpop.f32.mrf.mxu0  ;;  %8238 = vmatprep.subr.bf16.mxu0 %v10505_v60 }
 0x382   :  { %v12996_v55 = vadd.f32 %v6879_v49, %v6767_v10  ;;  %7310 = vmatmul.mubr.bf16.gmra.mxu1 %v13825_v4  ;;  %7452 = vmatprep.mubr.bf16.mxu0 %v13826_v63  ;;  %v6769_v61 = vadd.f32 %v6768_v57, %v12932_v19  ;;  %v6881_v39 = vpop.f32.mrf.mxu1  ;;  %v10509_v10 = vld [vmem:[#allocation11 + $0xf0] ss:$8 sps:$4 sm:$0xff]  }
 0x383   :  { %7319 = vmatprep.mubr.bf16.mxu1 %v13827_v46  ;;  %7498 = vmatpush1.bf16.msra.mxu1 %v10443_v54  ;;  %v6770_v62 = vpop.f32.mrf.mxu0  ;;  %v10454_v54 = vld [vmem:[#allocation8 + $0x64c] ss:$16 sps:$4 sm:$0xff]   ;;  %v10452_v46 = vld [vmem:[#allocation8 + $0x648] ss:$16 sps:$4 sm:$0xff]  }
 0x384   :  { %v13002_v7 = vadd.f32 %v6881_v39, %v6769_v61  ;;  %v6771_v24 = vadd.f32 %v6770_v62, %v12927_v8  ;;  %v6883_v51 = vpop.f32.mrf.mxu1  ;;  %7499 = vmatprep.subr.bf16.mxu1 %v10448_v1  ;;  %8239 = vmatpush1.bf16.msra.mxu0 %v10503_v22  ;;  %v13828_v49 = vld [vmem:[#allocation32_spill] sm:$0xff]  ;;  %v10514_v22 = vld [vmem:[#allocation11 + $0xe4] ss:$8 sps:$4 sm:$0xff]   ;;  %v13829_v57 = vld [vmem:[#allocation39_spill] sm:$0xff] }
 0x385   :  { %v13005_v59 = vpop.f32.mrf.mxu0  ;;  %8240 = vmatprep.subr.bf16.mxu0 %v10508_v18  ;;  %v13830_v18 = vld [vmem:[#allocation52_spill] sm:$0xff]  ;;  %v13831_v61 = vld [vmem:[#allocation42_spill] sm:$0xff] }
 0x386   :  { %v13007_v6 = vadd.f32 %v6883_v51, %v6771_v24  ;;  %v13009_v41 = vpop.f32.mrf.mxu1  ;;  %v10457_v51 = vld [vmem:[#allocation8 + $0x62c] ss:$16 sps:$4 sm:$0xff]  }
 0x387   :  { %7500 = vmatpush1.bf16.msra.mxu1 %v10446_v25  ;;  %v6776_v9 = vpop.f32.mrf.mxu0 }
 0x388   :  { %v6777_v60 = vadd.f32 %v6776_v9, %v12927_v8  ;;  %v6889_v50 = vpop.f32.mrf.mxu1  ;;  %7501 = vmatprep.subr.bf16.mxu1 %v10451_v5  ;;  %8241 = vmatpush1.bf16.msra.mxu0 %v10506_v48  ;;  %v10512_v5 = vld [vmem:[#allocation11 + $0xe0] ss:$8 sps:$4 sm:$0xff]  }
 0x389   :  { %7453 = vmatmul.mubr.bf16.gmra.mxu0 %v13828_v49  ;;  %v6778_v1 = vpop.f32.mrf.mxu0  ;;  %8242 = vmatprep.subr.bf16.mxu0 %v10511_v43  ;;  %v10517_v43 = vld [vmem:[#allocation11 + $0xd4] ss:$8 sps:$4 sm:$0xff]  }
 0x38a   :  { %v13013_v32 = vadd.f32 %v6889_v50, %v6777_v60  ;;  %7320 = vmatmul.mubr.bf16.gmra.mxu1 %v13829_v57  ;;  %7462 = vmatprep.mubr.bf16.mxu0 %v13830_v18  ;;  %v6779_v4 = vadd.f32 %v6778_v1, %v12932_v19  ;;  %v6891_v63 = vpop.f32.mrf.mxu1  ;;  %v10455_v50 = vld [vmem:[#allocation8 + $0x628] ss:$16 sps:$4 sm:$0xff]   ;;  %v10460_v57 = vld [vmem:[#allocation8 + $0x60c] ss:$16 sps:$4 sm:$0xff]  }
 0x38b   :  { %7329 = vmatprep.mubr.bf16.mxu1 %v13831_v61  ;;  %7502 = vmatpush1.bf16.msra.mxu1 %v10449_v20  ;;  %v6780_v39 = vpop.f32.mrf.mxu0  ;;  %v13835_v61 = vld [vmem:[#allocation56_spill] sm:$0xff] }
 0x38c   :  { %v13019_v62 = vadd.f32 %v6891_v63, %v6779_v4  ;;  %v6781_v25 = vadd.f32 %v6780_v39, %v12927_v8  ;;  %v6893_v24 = vpop.f32.mrf.mxu1  ;;  %7503 = vmatprep.subr.bf16.mxu1 %v10454_v54  ;;  %8243 = vmatpush2.bf16.msra.mxu0 %v10509_v10  ;;  %v10515_v54 = vld [vmem:[#allocation11 + $0xd0] ss:$8 sps:$4 sm:$0xff]   ;;  %v13834_v63 = vld [vmem:[#allocation41_spill] sm:$0xff] }
 0x38d   :  { %v13022_v48 = vpop.f32.mrf.mxu0  ;;  %8244 = vmatprep.subr.bf16.mxu0 %v10514_v22  ;;  %v13832_v10 = vld [vmem:[#allocation51_spill] sm:$0xff]  ;;  %v10520_v22 = vld [vmem:[#allocation11 + $0xc4] ss:$8 sps:$4 sm:$0xff]  }
 0x38e   :  { %v13024_v9 = vadd.f32 %v6893_v24, %v6781_v25  ;;  %v13026_v60 = vpop.f32.mrf.mxu1  ;;  %v13836_v25 = vld [vmem:[#allocation44_spill] sm:$0xff] }
 0x38f   :  { %7504 = vmatpush1.bf16.msra.mxu1 %v10452_v46  ;;  %v6786_v20 = vpop.f32.mrf.mxu0 }
 0x390   :  { %v6787_v49 = vadd.f32 %v6786_v20, %v12927_v8  ;;  %v6899_v1 = vpop.f32.mrf.mxu1  ;;  %7505 = vmatprep.subr.bf16.mxu1 %v10457_v51  ;;  %8245 = vmatpush2.bf16.msra.mxu0 %v10512_v5  ;;  %v10458_v51 = vld [vmem:[#allocation8 + $0x608] ss:$16 sps:$4 sm:$0xff]  }
 0x391   :  { %7463 = vmatmul.mubr.bf16.gmra.mxu0 %v13832_v10  ;;  %v6788_v18 = vpop.f32.mrf.mxu0  ;;  %8246 = vmatprep.subr.bf16.mxu0 %v10517_v43 }
 0x392   :  { %v13030_v4 = vadd.f32 %v6899_v1, %v6787_v49  ;;  %7330 = vmatmul.mubr.bf16.gmra.mxu1 %v13834_v63  ;;  %7472 = vmatprep.mubr.bf16.mxu0 %v13835_v61  ;;  %v6789_v39 = vadd.f32 %v6788_v18, %v12932_v19  ;;  %v6901_v46 = vpop.f32.mrf.mxu1  ;;  %v10463_v49 = vld [vmem:[#allocation8 + $0x7ec] ss:$16 sps:$4 sm:$0xff]   ;;  %v10523_v63 = vld [vmem:[#allocation11 + $0xb4] ss:$8 sps:$4 sm:$0xff]  }
 0x393   :  { %7339 = vmatprep.mubr.bf16.mxu1 %v13836_v25  ;;  %7506 = vmatpush1.bf16.msra.mxu1 %v10455_v50  ;;  %v6790_v24 = vpop.f32.mrf.mxu0  ;;  %v10518_v1 = vld [vmem:[#allocation11 + $0xc0] ss:$8 sps:$4 sm:$0xff]   ;;  %v10461_v25 = vld [vmem:[#allocation8 + $0x7e8] ss:$16 sps:$4 sm:$0xff]  }
 0x394   :  { %13833 = vst [vmem:[#allocation34_spill] sm:$0xff] %v13030_v4  ;;  %v13036_v5 = vadd.f32 %v6901_v46, %v6789_v39  ;;  %v6791_v20 = vadd.f32 %v6790_v24, %v12927_v8  ;;  %v6903_v43 = vpop.f32.mrf.mxu1  ;;  %7507 = vmatprep.subr.bf16.mxu1 %v10460_v57  ;;  %8247 = vmatpush2.bf16.msra.mxu0 %v10515_v54  ;;  %v10466_v24 = vld [vmem:[#allocation8 + $0x7cc] ss:$16 sps:$4 sm:$0xff]  }
 0x395   :  { %v13039_v10 = vpop.f32.mrf.mxu0  ;;  %8248 = vmatprep.subr.bf16.mxu0 %v10520_v22  ;;  %v10521_v57 = vld [vmem:[#allocation11 + $0xb0] ss:$8 sps:$4 sm:$0xff]   ;;  %v13841_v54 = vld [vmem:[#allocation53_spill] sm:$0xff] }
 0x396   :  { %13837 = vst [vmem:[#allocation59_spill] sm:$0xff] %v13036_v5  ;;  %13838 = vst [vmem:[#allocation60_spill] sm:$0xff] %v13039_v10  ;;  %v13041_v18 = vadd.f32 %v6903_v43, %v6791_v20  ;;  %v13043_v61 = vpop.f32.mrf.mxu1  ;;  %v10526_v22 = vld [vmem:[#allocation11 + $0xa4] ss:$8 sps:$4 sm:$0xff]   ;;  %v13843_v20 = vld [vmem:[#allocation43_spill] sm:$0xff] }
 0x397   :  { %13840 = vst [vmem:[#allocation33_spill] sm:$0xff] %v13043_v61  ;;  %7508 = vmatpush1.bf16.msra.mxu1 %v10458_v51  ;;  %v6796_v50 = vpop.f32.mrf.mxu0  ;;  %v13844_v43 = vld [vmem:[#allocation58_spill] sm:$0xff]  ;;  %v10541_v10 = vld [vmem:[#allocation11 + $0x154] ss:$8 sps:$4 sm:$0xff]  }
 0x398   :  { %13839 = vst [vmem:[#allocation61_spill] sm:$0xff] %v13041_v18  ;;  %v6797_v39 = vadd.f32 %v6796_v50, %v12927_v8  ;;  %v6909_v46 = vpop.f32.mrf.mxu1  ;;  %7509 = vmatprep.subr.bf16.mxu1 %v10463_v49  ;;  %8249 = vmatpush2.bf16.msra.mxu0 %v10518_v1  ;;  %v13845_v50 = vld [vmem:[#allocation46_spill] sm:$0xff]  ;;  %v10464_v1 = vld [vmem:[#allocation8 + $0x7c8] ss:$16 sps:$4 sm:$0xff]  }
 0x399   :  { %7473 = vmatmul.mubr.bf16.gmra.mxu0 %v13841_v54  ;;  %v6798_v36 = vpop.f32.mrf.mxu0  ;;  %8250 = vmatprep.subr.bf16.mxu0 %v10523_v63  ;;  %v10539_v4 = vld [vmem:[#allocation11 + $0x150] ss:$8 sps:$4 sm:$0xff]  }
 0x39a   :  { %v13047_v2 = vadd.f32 %v6909_v46, %v6797_v39  ;;  %7340 = vmatmul.mubr.bf16.gmra.mxu1 %v13843_v20  ;;  %7482 = vmatprep.mubr.bf16.mxu0 %v13844_v43  ;;  %v6799_v51 = vadd.f32 %v6798_v36, %v12932_v19  ;;  %v6911_v18 = vpop.f32.mrf.mxu1  ;;  %v10469_v39 = vld [vmem:[#allocation8 + $0x7ac] ss:$16 sps:$4 sm:$0xff]   ;;  %v10529_v43 = vld [vmem:[#allocation11 + $0x94] ss:$8 sps:$4 sm:$0xff]  }
 0x39b   :  { %7349 = vmatprep.mubr.bf16.mxu1 %v13845_v50  ;;  %7510 = vmatpush2.bf16.msra.mxu1 %v10461_v25  ;;  %v6800_v49 = vpop.f32.mrf.mxu0  ;;  %v10524_v46 = vld [vmem:[#allocation11 + $0xa0] ss:$8 sps:$4 sm:$0xff]   ;;  %v10467_v50 = vld [vmem:[#allocation8 + $0x7a8] ss:$16 sps:$4 sm:$0xff]  }
 0x39c   :  { %13842 = vst [vmem:[#allocation55_spill] sm:$0xff] %v13047_v2  ;;  %v13053_v61 = vadd.f32 %v6911_v18, %v6799_v51  ;;  %v6801_v54 = vadd.f32 %v6800_v49, %v12927_v8  ;;  %v6913_v63 = vpop.f32.mrf.mxu1  ;;  %7511 = vmatprep.subr.bf16.mxu1 %v10466_v24  ;;  %8251 = vmatpush2.bf16.msra.mxu0 %v10521_v57  ;;  %v10472_v49 = vld [vmem:[#allocation8 + $0x78c] ss:$16 sps:$4 sm:$0xff]  }
 0x39d   :  { %v13056_v20 = vpop.f32.mrf.mxu0  ;;  %8252 = vmatprep.subr.bf16.mxu0 %v10526_v22  ;;  %v10527_v24 = vld [vmem:[#allocation11 + $0x90] ss:$8 sps:$4 sm:$0xff]   ;;  %v13850_v57 = vld [vmem:[#allocation57_spill] sm:$0xff] }
 0x39e   :  { %13846 = vst [vmem:[#allocation24_spill] sm:$0xff] %v13053_v61  ;;  %13847 = vst [vmem:[#allocation62_spill] sm:$0xff] %v13056_v20  ;;  %v13058_v36 = vadd.f32 %v6913_v63, %v6801_v54  ;;  %v13060_v2 = vpop.f32.mrf.mxu1  ;;  %v10532_v22 = vld [vmem:[#allocation11 + $0x84] ss:$8 sps:$4 sm:$0xff]  }
 0x39f   :  { %13849 = vst [vmem:[#allocation54_spill] sm:$0xff] %v13060_v2  ;;  %7512 = vmatpush2.bf16.msra.mxu1 %v10464_v1  ;;  %v6806_v25 = vpop.f32.mrf.mxu0  ;;  %v13852_v54 = vld [vmem:[#allocation45_spill] sm:$0xff] }
 0x3a0   :  { %13848 = vst [vmem:[#allocation63_spill] sm:$0xff] %v13058_v36  ;;  %v6807_v18 = vadd.f32 %v6806_v25, %v12927_v8  ;;  %v6919_v51 = vpop.f32.mrf.mxu1  ;;  %7513 = vmatprep.subr.bf16.mxu1 %v10469_v39  ;;  %8253 = vmatpush2.bf16.msra.mxu0 %v10524_v46  ;;  %v13853_v36 = vld [vmem:[#allocation48_spill] sm:$0xff]  ;;  %v10470_v39 = vld [vmem:[#allocation8 + $0x788] ss:$16 sps:$4 sm:$0xff]  }
 0x3a1   :  { %7483 = vmatmul.mubr.bf16.gmra.mxu0 %v13850_v57  ;;  %v6808_v61 = vpop.f32.mrf.mxu0  ;;  %8254 = vmatprep.subr.bf16.mxu0 %v10529_v43  ;;  %v10475_v57 = vld [vmem:[#allocation8 + $0x76c] ss:$16 sps:$4 sm:$0xff]  }
 0x3a2   :  { %v13064_v20 = vadd.f32 %v6919_v51, %v6807_v18  ;;  %7350 = vmatmul.mubr.bf16.gmra.mxu1 %v13852_v54  ;;  %v6809_v1 = vadd.f32 %v6808_v61, %v12932_v19  ;;  %v6921_v63 = vpop.f32.mrf.mxu1  ;;  %v10530_v43 = vld [vmem:[#allocation11 + $0x80] ss:$8 sps:$4 sm:$0xff]   ;;  %v10473_v61 = vld [vmem:[#allocation8 + $0x768] ss:$16 sps:$4 sm:$0xff]  }
 0x3a3   :  { %7359 = vmatprep.mubr.bf16.mxu1 %v13853_v36  ;;  %7514 = vmatpush2.bf16.msra.mxu1 %v10467_v50  ;;  %v6810_v25 = vpop.f32.mrf.mxu0  ;;  %v10478_v50 = vld [vmem:[#allocation8 + $0x74c] ss:$16 sps:$4 sm:$0xff]  }
 0x3a4   :  { %13851 = vst [vmem:[#allocation25_spill] sm:$0xff] %v13064_v20  ;;  %v13069_v2 = vadd.f32 %v6921_v63, %v6809_v1  ;;  %v6811_v46 = vadd.f32 %v6810_v25, %v12927_v8  ;;  %7515 = vmatprep.subr.bf16.mxu1 %v10472_v49  ;;  %8255 = vmatpush2.bf16.msra.mxu0 %v10527_v24  ;;  %v6923_v18 = vpop.f32.mrf.mxu1  ;;  %v13857_v1 = vld [vmem:[#allocation47_spill] sm:$0xff]  ;;  %v13858_v49 = vld [vmem:[#allocation50_spill] sm:$0xff] }
 0x3a5   :  { %v13072_v51 = vpop.f32.mrf.mxu0  ;;  %8256 = vmatprep.subr.bf16.mxu0 %v10532_v22  ;;  %v10476_v24 = vld [vmem:[#allocation8 + $0x748] ss:$16 sps:$4 sm:$0xff]   ;;  %v10481_v22 = vld [vmem:[#allocation8 + $0x72c] ss:$16 sps:$4 sm:$0xff]  }
 0x3a6   :  { %13854 = vst [vmem:[#allocation26_spill] sm:$0xff] %v13069_v2  ;;  %13855 = vst [vmem:[#allocation27_spill] sm:$0xff] %v13072_v51  ;;  %v13074_v54 = vadd.f32 %v6923_v18, %v6811_v46  ;;  %v10536_v20 = vld [vmem:[#allocation11 + $0x160] ss:$8 sps:$4 sm:$0xff]  }
 0x3a7   :  { %7516 = vmatpush2.bf16.msra.mxu1 %v10470_v39  ;;  %v10479_v39 = vld [vmem:[#allocation8 + $0x728] ss:$16 sps:$4 sm:$0xff]  }
 0x3a8   :  { %13856 = vst [vmem:[#allocation36_spill] sm:$0xff] %v13074_v54  ;;  %v13076_v36 = vpop.f32.mrf.mxu0  ;;  %7517 = vmatprep.subr.bf16.mxu1 %v10475_v57  ;;  %8257 = vmatpush2.bf16.msra.mxu0 %v10530_v43  ;;  %v10484_v57 = vld [vmem:[#allocation8 + $0x70c] ss:$16 sps:$4 sm:$0xff]  }
 0x3a9   :  { %v13859_v43 = vld [vmem:[#allocation49_spill] sm:$0xff]  ;;  %v10533_v54 = vld [vmem:[#allocation11 + $0x170] ss:$8 sps:$4 sm:$0xff]  }
 0x3aa   :  { %7360 = vmatmul.mubr.bf16.gmra.mxu1 %v13857_v1  ;;  %v13079_v8 = vpop.f32.mrf.mxu0 }
 0x3ab   :  { %7369 = vmatprep.mubr.bf16.mxu1 %v13858_v49  ;;  %7518 = vmatpush2.bf16.msra.mxu1 %v10473_v61  ;;  %v10482_v61 = vld [vmem:[#allocation8 + $0x708] ss:$16 sps:$4 sm:$0xff]  }
 0x3ac   :  { %v13082_v63 = vpop.f32.mrf.mxu0  ;;  %7519 = vmatprep.subr.bf16.mxu1 %v10478_v50 }
 0x3ae   :  { %v13084_v25 = vpop.f32.mrf.mxu0 }
 0x3af   :  { %7520 = vmatpush2.bf16.msra.mxu1 %v10476_v24 }
 0x3b0   :  { %v13086_v46 = vpop.f32.mrf.mxu0  ;;  %7521 = vmatprep.subr.bf16.mxu1 %v10481_v22 }
 0x3b2   :  { %7370 = vmatmul.mubr.bf16.gmra.mxu1 %v13859_v43  ;;  %v13089_v18 = vpop.f32.mrf.mxu0 }
 0x3b3   :  { %7522 = vmatpush2.bf16.msra.mxu1 %v10479_v39  ;;  %7525 = vmatprep.mubr.bf16.mxu1 %v12832_v11 }
 0x3b4   :  { %v13092_v1 = vpop.f32.mrf.mxu0  ;;  %7523 = vmatprep.subr.bf16.mxu1 %v10484_v57 }
 0x3b6   :  { %v13094_v50 = vpop.f32.mrf.mxu0 }
 0x3b7   :  { %7524 = vmatpush2.bf16.msra.mxu1 %v10482_v61 }
 0x3b8   :  { %v13096_v49 = vpop.f32.mrf.mxu0 }
 0x3ba   :  { %7526 = vmatmul.mubr.bf16.vlgmr.msra.gmra.mxu1 %v12827_v3  ;;  %v13099_v24 = vpop.f32.mrf.mxu0 }
 0x3bb   :  { %7535 = vmatprep.mubr.bf16.mxu1 %v12848_v56  ;;  %v10535_v56 = vld [vmem:[#allocation11 + $0x174] ss:$8 sps:$4 sm:$0xff]  }
 0x3bc   :  { %v13102_v22 = vpop.f32.mrf.mxu0  ;;  %8339 = vmatprep.subr.bf16.mxu1 %v10535_v56  ;;  %v10544_v56 = vld [vmem:[#allocation11 + $0x144] ss:$8 sps:$4 sm:$0xff]  }
 0x3bd   :  { %8340 = vmatpush1.bf16.msra.mxu1 %v10533_v54  ;;  %v10542_v54 = vld [vmem:[#allocation11 + $0x140] ss:$8 sps:$4 sm:$0xff]  }
 0x3be   :  { %v13104_v39 = vpop.f32.mrf.mxu0 }
 0x3c0   :  { %v13106_v11 = vpop.f32.mrf.mxu0 }
 0x3c2   :  { %7536 = vmatmul.mubr.bf16.gmra.mxu1 %v12843_v44  ;;  %v13109_v57 = vpop.f32.mrf.mxu0 }
 0x3c3   :  { %7545 = vmatprep.mubr.bf16.mxu1 %v12864_v15  ;;  %v10538_v15 = vld [vmem:[#allocation11 + $0x164] ss:$8 sps:$4 sm:$0xff]  }
 0x3c4   :  { %v13112_v43 = vpop.f32.mrf.mxu0  ;;  %8341 = vmatprep.subr.bf16.mxu1 %v10538_v15 }
 0x3c5   :  { %8342 = vmatpush1.bf16.msra.mxu1 %v10536_v20  ;;  %v10545_v20 = vld [vmem:[#allocation11 + $0x130] ss:$8 sps:$4 sm:$0xff]  }
 0x3c6   :  { %v13114_v61 = vpop.f32.mrf.mxu0  ;;  %8343 = vmatprep.subr.bf16.mxu1 %v10541_v10  ;;  %v10550_v10 = vld [vmem:[#allocation11 + $0x124] ss:$8 sps:$4 sm:$0xff]  }
 0x3c8   :  { %v13116_v3 = vpop.f32.mrf.mxu0 }
 0x3c9   :  { %8344 = vmatpush1.bf16.msra.mxu1 %v10539_v4  ;;  %v10548_v4 = vld [vmem:[#allocation11 + $0x120] ss:$8 sps:$4 sm:$0xff]  }
 0x3ca   :  { %7546 = vmatmul.mubr.bf16.gmra.mxu1 %v12859_v53  ;;  %v13119_v2 = vpop.f32.mrf.mxu0  ;;  %8345 = vmatprep.subr.bf16.mxu1 %v10544_v56 }
 0x3cb   :  { %7555 = vmatprep.mubr.bf16.mxu1 %v12880_v37 }
 0x3cc   :  { %v13122_v44 = vpop.f32.mrf.mxu0 }
 0x3cd   :  { %13860 = vst [vmem:[#allocation28_spill] sm:$0xff] %v13122_v44  ;;  %8346 = vmatpush1.bf16.msra.mxu1 %v10542_v54  ;;  %v10551_v54 = vld [vmem:[#allocation11 + $0x110] ss:$8 sps:$4 sm:$0xff]  }
 0x3ce   :  { %v13124_v51 = vpop.f32.mrf.mxu0 }
 0x3d0   :  { %v13126_v5 = vpop.f32.mrf.mxu0 }
 0x3d1   :  { %13861 = vst [vmem:[#allocation35_spill] sm:$0xff] %v13126_v5  ;;  %v10547_v5 = vld [vmem:[#allocation11 + $0x134] ss:$8 sps:$4 sm:$0xff]  }
 0x3d2   :  { %7556 = vmatmul.mubr.bf16.gmra.mxu1 %v12875_v58  ;;  %v13129_v53 = vpop.f32.mrf.mxu0  ;;  %8347 = vmatprep.subr.bf16.mxu1 %v10547_v5  ;;  %v10554_v5 = vld [vmem:[#allocation11 + $0x100] ss:$8 sps:$4 sm:$0xff]  }
 0x3d3   :  { %7565 = vmatprep.mubr.bf16.mxu1 %v12896_v35  ;;  %8348 = vmatpush1.bf16.msra.mxu1 %v10545_v20  ;;  %v10556_v20 = vld [vmem:[#allocation11 + $0x104] ss:$8 sps:$4 sm:$0xff]  }
 0x3d4   :  { %v13132_v37 = vpop.f32.mrf.mxu0  ;;  %8349 = vmatprep.subr.bf16.mxu1 %v10550_v10 }
 0x3d5   :  { %13862 = vst [vmem:[#allocation29_spill] sm:$0xff] %v13132_v37 }
 0x3d6   :  { %v13134_v44 = vpop.f32.mrf.mxu0 }
 0x3d7   :  { %8350 = vmatpush1.bf16.msra.mxu1 %v10548_v4  ;;  %v10557_v4 = vld [vmem:[#allocation11 + $0x1f0] ss:$8 sps:$4 sm:$0xff]  }
 0x3d8   :  { %v13136_v15 = vpop.f32.mrf.mxu0 }
 0x3d9   :  { %13863 = vst [vmem:[#allocation38_spill] sm:$0xff] %v13136_v15  ;;  %v10553_v15 = vld [vmem:[#allocation11 + $0x114] ss:$8 sps:$4 sm:$0xff]  }
 0x3da   :  { %7566 = vmatmul.mubr.bf16.gmra.mxu1 %v12891_v30  ;;  %v13139_v58 = vpop.f32.mrf.mxu0  ;;  %8351 = vmatprep.subr.bf16.mxu1 %v10553_v15  ;;  %v10560_v15 = vld [vmem:[#allocation11 + $0x1e0] ss:$8 sps:$4 sm:$0xff]  }
 0x3db   :  { %7575 = vmatprep.mubr.bf16.mxu1 %v12912_v33  ;;  %8352 = vmatpush1.bf16.msra.mxu1 %v10551_v54  ;;  %v10562_v54 = vld [vmem:[#allocation11 + $0x1e4] ss:$8 sps:$4 sm:$0xff]  }
 0x3dc   :  { %v13142_v35 = vpop.f32.mrf.mxu0  ;;  %8353 = vmatprep.subr.bf16.mxu1 %v10556_v20 }
 0x3dd   :  { %13864 = vst [vmem:[#allocation30_spill] sm:$0xff] %v13142_v35 }
 0x3de   :  { %v13144_v37 = vpop.f32.mrf.mxu0 }
 0x3df   :  { %8354 = vmatpush1.bf16.msra.mxu1 %v10554_v5  ;;  %v10563_v5 = vld [vmem:[#allocation11 + $0x1d0] ss:$8 sps:$4 sm:$0xff]  }
 0x3e0   :  { %v13146_v56 = vpop.f32.mrf.mxu0 }
 0x3e1   :  { %13865 = vst [vmem:[#allocation37_spill] sm:$0xff] %v13146_v56  ;;  %v10559_v56 = vld [vmem:[#allocation11 + $0x1f4] ss:$8 sps:$4 sm:$0xff]  }
 0x3e2   :  { %7576 = vmatmul.mubr.bf16.gmra.mxu1 %v12907_v0  ;;  %v13149_v30 = vpop.f32.mrf.mxu0  ;;  %8355 = vmatprep.subr.bf16.mxu1 %v10559_v56  ;;  %v10566_v56 = vld [vmem:[#allocation11 + $0x1c0] ss:$8 sps:$4 sm:$0xff]  }
 0x3e3   :  { %7585 = vmatprep.mubr.bf16.mxu1 %v12934_v26  ;;  %8356 = vmatpush2.bf16.msra.mxu1 %v10557_v4  ;;  %v10568_v4 = vld [vmem:[#allocation11 + $0x1c4] ss:$8 sps:$4 sm:$0xff]  }
 0x3e4   :  { %v13152_v33 = vpop.f32.mrf.mxu0  ;;  %8357 = vmatprep.subr.bf16.mxu1 %v10562_v54 }
 0x3e5   :  { %13866 = vst [vmem:[#allocation31_spill] sm:$0xff] %v13152_v33 }
 0x3e6   :  { %v13154_v35 = vpop.f32.mrf.mxu0 }
 0x3e7   :  { %13867 = vst [vmem:[#allocation40_spill] sm:$0xff] %v13154_v35  ;;  %8358 = vmatpush2.bf16.msra.mxu1 %v10560_v15  ;;  %v6743_v15 = vadd.f32 %v12950_v17, %v12932_v19  ;;  %v6967_v17 = vadd.f32 %v13082_v63, %v12953_v47  ;;  %v6973_v47 = vadd.f32 %v13086_v46, %v12962_v45 }
 0x3e8   :  { %v13156_v10 = vpop.f32.mrf.mxu0 }
 0x3e9   :  { %13868 = vst [vmem:[#allocation32_spill] sm:$0xff] %v13156_v10  ;;  %v10565_v10 = vld [vmem:[#allocation11 + $0x1d4] ss:$8 sps:$4 sm:$0xff]  }
 0x3ea   :  { %7586 = vmatmul.mubr.bf16.gmra.mxu1 %v12923_v42  ;;  %v13159_v0 = vpop.f32.mrf.mxu0  ;;  %8359 = vmatprep.subr.bf16.mxu1 %v10565_v10  ;;  %v10569_v10 = vld [vmem:[#allocation11 + $0x1b0] ss:$8 sps:$4 sm:$0xff]  }
 0x3eb   :  { %13869 = vst [vmem:[#allocation39_spill] sm:$0xff] %v13159_v0  ;;  %7595 = vmatprep.mubr.bf16.mxu1 %v12957_v28  ;;  %8360 = vmatpush2.bf16.msra.mxu1 %v10563_v5 }
 0x3ec   :  { %v13162_v26 = vpop.f32.mrf.mxu0  ;;  %8361 = vmatprep.subr.bf16.mxu1 %v10568_v4  ;;  %v6965_v4 = vadd.f32 %v13079_v8, %v12947_v21  ;;  %v6753_v8 = vadd.f32 %v12971_v40, %v12932_v19 }
 0x3ed   :  { %13870 = vst [vmem:[#allocation52_spill] sm:$0xff] %v13162_v26 }
 0x3ee   :  { %v13164_v33 = vpop.f32.mrf.mxu0 }
 0x3ef   :  { %13871 = vst [vmem:[#allocation42_spill] sm:$0xff] %v13164_v33  ;;  %v13175_v33 = vpop.f32.mrf.mxu1  ;;  %8362 = vmatpush2.bf16.msra.mxu1 %v10566_v56  ;;  %v6856_v56 = vadd.f32 %v12955_v52, %v6743_v15  ;;  %v10577_v15 = vld [vmem:[#allocation11 + $0x194] ss:$8 sps:$4 sm:$0xff]  }
 0x3f0   :  { %v13166_v20 = vpop.f32.mrf.mxu0  ;;  %13876 = vst [vmem:[#allocation53_spill] sm:$0xff] %v13175_v33 }
 0x3f1   :  { %13872 = vst [vmem:[#allocation51_spill] sm:$0xff] %v13166_v20 }
 0x3f2   :  { %7596 = vmatmul.mubr.bf16.gmra.mxu1 %v12945_v16  ;;  %v13169_v42 = vpop.f32.mrf.mxu0  ;;  %v6963_v16 = vadd.f32 %v13076_v36, %v12940_v29  ;;  %v10574_v29 = vld [vmem:[#allocation11 + $0x1a4] ss:$8 sps:$4 sm:$0xff]  }
 0x3f3   :  { %13873 = vst [vmem:[#allocation41_spill] sm:$0xff] %v13169_v42  ;;  %v10571_v42 = vld [vmem:[#allocation11 + $0x1b4] ss:$8 sps:$4 sm:$0xff]  }
 0x3f4   :  { %v13171_v28 = vpop.f32.mrf.mxu0  ;;  %8363 = vmatprep.subr.bf16.mxu1 %v10571_v42  ;;  %v6969_v42 = vadd.f32 %v13084_v25, %v6856_v56 }
 0x3f5   :  { %13874 = vst [vmem:[#allocation56_spill] sm:$0xff] %v13171_v28  ;;  %8364 = vmatpush2.bf16.msra.mxu1 %v10569_v10 }
 0x3f6   :  { %v13173_v26 = vpop.f32.mrf.mxu0  ;;  %8365 = vmatprep.subr.bf16.mxu1 %v10574_v29 }
 0x3f7   :  { %13875 = vst [vmem:[#allocation44_spill] sm:$0xff] %v13173_v26 }
 0x3f8   :  { %v13177_v54 = vpop.f32.mrf.mxu0 }
 0x3f9   :  { %13877 = vst [vmem:[#allocation43_spill] sm:$0xff] %v13177_v54  ;;  %v7075_v28 = vpop.f32.mrf.mxu1 }
 0x3fa   :  { %v13183_v5 = vpop.f32.mrf.mxu0  ;;  %v7076_v20 = vadd.f32 %v7075_v28, %v6963_v16  ;;  %v10572_v28 = vld [vmem:[#allocation11 + $0x1a0] ss:$8 sps:$4 sm:$0xff]  }
 0x3fb   :  { %v7077_v26 = vpop.f32.mrf.mxu1  ;;  %8366 = vmatpush2.bf16.msra.mxu1 %v10572_v28  ;;  %v6975_v28 = vadd.f32 %v13089_v18, %v12968_v38  ;;  %v10578_v38 = vld [vmem:[#allocation11 + $0x180] ss:$8 sps:$4 sm:$0xff]  }
 0x3fc   :  { %v13187_v0 = vpop.f32.mrf.mxu0  ;;  %v7670_v36 = vmul.f32 0.2, %v7076_v20  ;;  %v7078_v54 = vadd.f32 %v7077_v26, %v6965_v4  ;;  %vm7606_vm0 = vcmp.gt.f32.partialorder %v7076_v20, 0.0  ;;  %8367 = vmatprep.subr.bf16.mxu1 %v10577_v15 }
 0x3fd   :  { %v7079_v35 = vpop.f32.mrf.mxu1 }
 0x3fe   :  { %v13192_v33 = vpop.f32.mrf.mxu0  ;;  %v7080_v21 = vadd.f32 %v7079_v35, %v6967_v17  ;;  %v7734_v10 = vsel %vm7606_vm0, %v7076_v20, %v7670_v36  ;;  %v7671_v4 = vmul.f32 0.2, %v7078_v54  ;;  %v10575_v35 = vld [vmem:[#allocation11 + $0x190] ss:$8 sps:$4 sm:$0xff]   ;;  %vm7607_vm7 = vcmp.gt.f32.partialorder %v7078_v54, 0.0 }
 0x3ff   :  { %13878 = vst [vmem:[#allocation58_spill] sm:$0xff] %v13192_v33  ;;  %v7081_v16 = vpop.f32.mrf.mxu1  ;;  %8368 = vmatpush2.bf16.msra.mxu1 %v10575_v35  ;;  %v6866_v20 = vadd.f32 %v12975_v27, %v6753_v8  ;;  %v6977_v36 = vadd.f32 %v13092_v1, %v12973_v12  ;;  %v6763_v27 = vadd.f32 %v12988_v23, %v12932_v19 }
 0x400   :  { %v13197_v52 = vpop.f32.mrf.mxu0  ;;  %vm7610_vm5 = vcmp.gt.f32.partialorder %v7080_v21, 0.0  ;;  %v7674_v63 = vmul.f32 0.2, %v7080_v21  ;;  %v7082_v26 = vadd.f32 %v7081_v16, %v6969_v42  ;;  %v10580_v42 = vld [vmem:[#allocation11 + $0x184] ss:$8 sps:$4 sm:$0xff]   ;;  %v6983_v35 = vadd.f32 %v13096_v49, %v12979_v34 }
 0x401   :  { %v7085_v25 = vpop.f32.mrf.mxu1  ;;  %v6979_v18 = vadd.f32 %v13094_v50, %v6866_v20  ;;  %8369 = vmatprep.subr.bf16.mxu1 %v10580_v42  ;;  %v6985_v20 = vadd.f32 %v13099_v24, %v12985_v31  ;;  %v6987_v42 = vadd.f32 %v13102_v22, %v12990_v14  ;;  %v6993_v14 = vadd.f32 %v13106_v11, %v12996_v55 }
 0x402   :  { %v13201_v56 = vpop.f32.mrf.mxu0  ;;  %v7738_v17 = vsel %vm7610_vm5, %v7080_v21, %v7674_v63  ;;  %vm7611_vm6 = vcmp.gt.f32.partialorder %v7082_v26, 0.0  ;;  %v7675_v40 = vmul.f32 0.2, %v7082_v26  ;;  %v7086_v29 = vadd.f32 %v7085_v25, %v6973_v47 }
 0x403   :  { %v7798_v45 = vpack.c.bf16 %v7738_v17, %v7734_v10  ;;  %v7087_v46 = vpop.f32.mrf.mxu1  ;;  %v7735_v25 = vsel %vm7607_vm7, %v7078_v54, %v7671_v4  ;;  %8370 = vmatpush2.bf16.msra.mxu1 %v10578_v38 }
 0x404   :  { %v13205_v33 = vpop.f32.mrf.mxu0  ;;  %v7678_v21 = vmul.f32 0.2, %v7086_v29  ;;  %v7088_v16 = vadd.f32 %v7087_v46, %v6975_v28  ;;  %v7739_v15 = vsel %vm7611_vm6, %v7082_v26, %v7675_v40  ;;  %vm7614_vm8 = vcmp.gt.f32.partialorder %v7086_v29, 0.0 }
 0x405   :  { %v7089_v63 = vpop.f32.mrf.mxu1  ;;  %v7799_v1 = vpack.c.bf16 %v7739_v15, %v7735_v25 }
 0x406   :  { %v13210_v47 = vpop.f32.mrf.mxu0  ;;  %v7090_v10 = vadd.f32 %v7089_v63, %v6977_v36  ;;  %v7742_v50 = vsel %vm7614_vm8, %v7086_v29, %v7678_v21  ;;  %v7679_v40 = vmul.f32 0.2, %v7088_v16  ;;  %vm7615_vm11 = vcmp.gt.f32.partialorder %v7088_v16, 0.0 }
 0x407   :  { %v7091_v12 = vpop.f32.mrf.mxu1  ;;  %8258 = vmatprep.mubr.bf16.mxu0 %v7799_v1  ;;  %v6876_v29 = vadd.f32 %v12992_v13, %v6763_v27 }
 0x408   :  { %v13217_v8 = vpop.f32.mrf.mxu0  ;;  %vm7618_vm9 = vcmp.gt.f32.partialorder %v7090_v10, 0.0  ;;  %v7682_v26 = vmul.f32 0.2, %v7090_v10  ;;  %v7092_v17 = vadd.f32 %v7091_v12, %v6979_v18  ;;  %8259 = vmatmul.mubr.bf16.vlgmr.msra.gmra.mxu0 %v7798_v45  ;;  %v7743_v24 = vsel %vm7615_vm11, %v7088_v16, %v7679_v40 }
 0x409   :  { %v7095_v28 = vpop.f32.mrf.mxu1  ;;  %v6989_v18 = vadd.f32 %v13104_v39, %v6876_v29 }
 0x40a   :  { %v13221_v54 = vpop.f32.mrf.mxu0  ;;  %v7746_v4 = vsel %vm7618_vm9, %v7090_v10, %v7682_v26  ;;  %vm7619_vm10 = vcmp.gt.f32.partialorder %v7092_v17, 0.0  ;;  %v7683_v23 = vmul.f32 0.2, %v7092_v17  ;;  %v7096_v46 = vadd.f32 %v7095_v28, %v6983_v35 }
 0x40b   :  { %v7802_v36 = vpack.c.bf16 %v7746_v4, %v7742_v50  ;;  %v7097_v34 = vpop.f32.mrf.mxu1  ;;  %v6773_v10 = vadd.f32 %v13005_v59, %v12932_v19  ;;  %v6995_v50 = vadd.f32 %v13109_v57, %v13002_v7  ;;  %v6997_v4 = vadd.f32 %v13112_v43, %v13007_v6 }
 0x40c   :  { %v13225_v49 = vpop.f32.mrf.mxu0  ;;  %v7686_v21 = vmul.f32 0.2, %v7096_v46  ;;  %v7098_v63 = vadd.f32 %v7097_v34, %v6985_v20  ;;  %v7747_v45 = vsel %vm7619_vm10, %v7092_v17, %v7683_v23  ;;  %vm7622_vm12 = vcmp.gt.f32.partialorder %v7096_v46, 0.0 }
 0x40d   :  { %v7099_v15 = vpop.f32.mrf.mxu1  ;;  %v7803_v12 = vpack.c.bf16 %v7747_v45, %v7743_v24  ;;  %v6886_v28 = vadd.f32 %v13009_v41, %v6773_v10  ;;  %v7003_v41 = vadd.f32 %v13116_v3, %v13013_v32 }
 0x40e   :  { %v13230_v38 = vpop.f32.mrf.mxu0  ;;  %v7100_v31 = vadd.f32 %v7099_v15, %v6987_v42  ;;  %v7750_v1 = vsel %vm7622_vm12, %v7096_v46, %v7686_v21  ;;  %v7687_v35 = vmul.f32 0.2, %v7098_v63  ;;  %vm7623_vm15 = vcmp.gt.f32.partialorder %v7098_v63, 0.0 }
 0x40f   :  { %v7101_v25 = vpop.f32.mrf.mxu1  ;;  %8268 = vmatprep.mubr.bf16.mxu0 %v7803_v12  ;;  %v6999_v29 = vadd.f32 %v13114_v61, %v6886_v28  ;;  %v6783_v42 = vadd.f32 %v13022_v48, %v12932_v19  ;;  %v7005_v48 = vadd.f32 %v13119_v2, %v13019_v62  ;;  %v13879_v12 = vld [vmem:[#allocation28_spill] sm:$0xff] }
 0x410   :  { %v13235_v13 = vpop.f32.mrf.mxu0  ;;  %vm7626_vm13 = vcmp.gt.f32.partialorder %v7100_v31, 0.0  ;;  %v7690_v22 = vmul.f32 0.2, %v7100_v31  ;;  %v7102_v27 = vadd.f32 %v7101_v25, %v6989_v18  ;;  %8269 = vmatmul.mubr.bf16.gmra.mxu0 %v7802_v36  ;;  %v7751_v57 = vsel %vm7623_vm15, %v7098_v63, %v7687_v35  ;;  %v13880_v2 = vld [vmem:[#allocation60_spill] sm:$0xff] }
 0x411   :  { %v7105_v39 = vpop.f32.mrf.mxu1  ;;  %v6896_v3 = vadd.f32 %v13026_v60, %v6783_v42  ;;  %v6793_v62 = vadd.f32 %v13880_v2, %v12932_v19  ;;  %v13881_v60 = vld [vmem:[#allocation34_spill] sm:$0xff] }
 0x412   :  { %v13239_v26 = vpop.f32.mrf.mxu0  ;;  %v7754_v16 = vsel %vm7626_vm13, %v7100_v31, %v7690_v22  ;;  %vm7627_vm14 = vcmp.gt.f32.partialorder %v7102_v27, 0.0  ;;  %v7691_v17 = vmul.f32 0.2, %v7102_v27  ;;  %v7106_v59 = vadd.f32 %v7105_v39, %v6993_v14 }
 0x413   :  { %v7806_v40 = vpack.c.bf16 %v7754_v16, %v7750_v1  ;;  %v7107_v55 = vpop.f32.mrf.mxu1  ;;  %v7007_v14 = vadd.f32 %v13879_v12, %v13024_v9  ;;  %v7009_v16 = vadd.f32 %v13124_v51, %v6896_v3  ;;  %v13889_v3 = vld [vmem:[#allocation62_spill] sm:$0xff] }
 0x414   :  { %v13243_v11 = vpop.f32.mrf.mxu0  ;;  %v7694_v23 = vmul.f32 0.2, %v7106_v59  ;;  %v7108_v46 = vadd.f32 %v7107_v55, %v6995_v50  ;;  %v7755_v36 = vsel %vm7627_vm14, %v7102_v27, %v7691_v17  ;;  %vm7630_vm1 = vcmp.gt.f32.partialorder %v7106_v59, 0.0  ;;  %v13882_v55 = vld [vmem:[#allocation35_spill] sm:$0xff] }
 0x415   :  { %v7109_v20 = vpop.f32.mrf.mxu1  ;;  %v7807_v15 = vpack.c.bf16 %v7755_v36, %v7751_v57  ;;  %v7013_v28 = vadd.f32 %v13882_v55, %v13881_v60  ;;  %v6803_v12 = vadd.f32 %v13889_v3, %v12932_v19  ;;  %v13899_v3 = vld [vmem:[#allocation26_spill] sm:$0xff] }
 0x416   :  { %v13248_v34 = vpop.f32.mrf.mxu0  ;;  %v7110_v7 = vadd.f32 %v7109_v20, %v6997_v4  ;;  %v7758_v45 = vsel %vm7630_vm1, %v7106_v59, %v7694_v23  ;;  %v7695_v18 = vmul.f32 0.2, %v7108_v46  ;;  %vm7631_vm4 = vcmp.gt.f32.partialorder %v7108_v46, 0.0  ;;  %v13883_v23 = vld [vmem:[#allocation59_spill] sm:$0xff] }
 0x417   :  { %v7111_v21 = vpop.f32.mrf.mxu1  ;;  %8278 = vmatprep.mubr.bf16.mxu0 %v7807_v15  ;;  %v7015_v20 = vadd.f32 %v13129_v53, %v13883_v23 }
 0x418   :  { %vm7634_vm2 = vcmp.gt.f32.partialorder %v7110_v7, 0.0  ;;  %v7698_v6 = vmul.f32 0.2, %v7110_v7  ;;  %v7112_v43 = vadd.f32 %v7111_v21, %v6999_v29  ;;  %v13255_v31 = vpop.f32.mrf.mxu0  ;;  %8279 = vmatmul.mubr.bf16.gmra.mxu0 %v7806_v40  ;;  %v7759_v59 = vsel %vm7631_vm4, %v7108_v46, %v7695_v18 }
 0x419   :  { %v7115_v61 = vpop.f32.mrf.mxu1 }
 0x41a   :  { %v7762_v24 = vsel %vm7634_vm2, %v7110_v7, %v7698_v6  ;;  %vm7635_vm3 = vcmp.gt.f32.partialorder %v7112_v43, 0.0  ;;  %v7699_v63 = vmul.f32 0.2, %v7112_v43  ;;  %v7116_v10 = vadd.f32 %v7115_v61, %v7003_v41  ;;  %v13262_v27 = vpop.f32.mrf.mxu0  ;;  %v13885_v41 = vld [vmem:[#allocation33_spill] sm:$0xff] }
 0x41b   :  { %v7810_v25 = vpack.c.bf16 %v7762_v24, %v7758_v45  ;;  %v7117_v32 = vpop.f32.mrf.mxu1  ;;  %v6906_v6 = vadd.f32 %v13885_v41, %v6793_v62  ;;  %v13887_v45 = vld [vmem:[#allocation29_spill] sm:$0xff]  ;;  %v13892_v62 = vld [vmem:[#allocation24_spill] sm:$0xff] }
 0x41c   :  { %v7702_v22 = vmul.f32 0.2, %v7116_v10  ;;  %v7118_v1 = vadd.f32 %v7117_v32, %v7005_v48  ;;  %v7763_v39 = vsel %vm7635_vm3, %v7112_v43, %v7699_v63  ;;  %vm7638_vm0 = vcmp.gt.f32.partialorder %v7116_v10, 0.0  ;;  %v13271_v51 = vpop.f32.mrf.mxu0  ;;  %v13886_v43 = vld [vmem:[#allocation61_spill] sm:$0xff] }
 0x41d   :  { %v7119_v35 = vpop.f32.mrf.mxu1  ;;  %v7811_v40 = vpack.c.bf16 %v7763_v39, %v7759_v59  ;;  %13884 = vst [vmem:[#allocation46_spill] sm:$0xff] %v13271_v51  ;;  %v7017_v18 = vadd.f32 %v13887_v45, %v13886_v43  ;;  %v7019_v48 = vadd.f32 %v13134_v44, %v6906_v6  ;;  %v13896_v45 = vld [vmem:[#allocation27_spill] sm:$0xff] }
 0x41e   :  { %v7120_v17 = vadd.f32 %v7119_v35, %v7007_v14  ;;  %v7766_v36 = vsel %vm7638_vm0, %v7116_v10, %v7702_v22  ;;  %v7703_v29 = vmul.f32 0.2, %v7118_v1  ;;  %vm7639_vm7 = vcmp.gt.f32.partialorder %v7118_v1, 0.0  ;;  %v13276_v61 = vpop.f32.mrf.mxu0  ;;  %v13890_v14 = vld [vmem:[#allocation55_spill] sm:$0xff]  ;;  %v13891_v22 = vld [vmem:[#allocation38_spill] sm:$0xff] }
 0x41f   :  { %v7121_v50 = vpop.f32.mrf.mxu1  ;;  %8288 = vmatprep.mubr.bf16.mxu0 %v7811_v40  ;;  %13888 = vst [vmem:[#allocation57_spill] sm:$0xff] %v13276_v61  ;;  %v7023_v35 = vadd.f32 %v13891_v22, %v13890_v14 }
 0x420   :  { %vm7642_vm5 = vcmp.gt.f32.partialorder %v7120_v17, 0.0  ;;  %v7706_v9 = vmul.f32 0.2, %v7120_v17  ;;  %v7122_v4 = vadd.f32 %v7121_v50, %v7009_v16  ;;  %8289 = vmatmul.mubr.bf16.gmra.mxu0 %v7810_v25  ;;  %v7767_v25 = vsel %vm7639_vm7, %v7118_v1, %v7703_v29  ;;  %v13285_v40 = vpop.f32.mrf.mxu0  ;;  %v13895_v29 = vld [vmem:[#allocation30_spill] sm:$0xff] }
 0x421   :  { %v7125_v46 = vpop.f32.mrf.mxu1  ;;  %v7025_v50 = vadd.f32 %v13139_v58, %v13892_v62 }
 0x422   :  { %v7770_v7 = vsel %vm7642_vm5, %v7120_v17, %v7706_v9  ;;  %vm7643_vm6 = vcmp.gt.f32.partialorder %v7122_v4, 0.0  ;;  %v7707_v57 = vmul.f32 0.2, %v7122_v4  ;;  %v7126_v42 = vadd.f32 %v7125_v46, %v7013_v28  ;;  %v13893_v9 = vld [vmem:[#allocation54_spill] sm:$0xff] }
 0x423   :  { %v7814_v21 = vpack.c.bf16 %v7770_v7, %v7766_v36  ;;  %v7127_v15 = vpop.f32.mrf.mxu1  ;;  %v13894_v36 = vld [vmem:[#allocation63_spill] sm:$0xff] }
 0x424   :  { %v7128_v53 = vadd.f32 %v7127_v15, %v7015_v20  ;;  %v7710_v24 = vmul.f32 0.2, %v7126_v42  ;;  %v7771_v10 = vsel %vm7643_vm6, %v7122_v4, %v7707_v57  ;;  %vm7646_vm8 = vcmp.gt.f32.partialorder %v7126_v42, 0.0  ;;  %v13290_v15 = vpop.f32.mrf.mxu0 }
 0x425   :  { %v7129_v63 = vpop.f32.mrf.mxu1  ;;  %v7815_v16 = vpack.c.bf16 %v7771_v10, %v7767_v25  ;;  %v6916_v4 = vadd.f32 %v13893_v9, %v6803_v12  ;;  %v7027_v46 = vadd.f32 %v13895_v29, %v13894_v36  ;;  %v7035_v12 = vadd.f32 %v13149_v30, %v13899_v3  ;;  %v13904_v30 = vld [vmem:[#allocation36_spill] sm:$0xff] }
 0x426   :  { %v7130_v32 = vadd.f32 %v7129_v63, %v7017_v18  ;;  %v7711_v17 = vmul.f32 0.2, %v7128_v53  ;;  %v7774_v44 = vsel %vm7646_vm8, %v7126_v42, %v7710_v24  ;;  %vm7647_vm10 = vcmp.gt.f32.partialorder %v7128_v53, 0.0  ;;  %v13897_v24 = vld [vmem:[#allocation25_spill] sm:$0xff]  ;;  %v13299_v14 = vpop.f32.mrf.mxu0 }
 0x427   :  { %v7131_v39 = vpop.f32.mrf.mxu1  ;;  %8298 = vmatprep.mubr.bf16.mxu0 %v7815_v16  ;;  %v7029_v43 = vadd.f32 %v13144_v37, %v6916_v4  ;;  %v6813_v18 = vadd.f32 %v13896_v45, %v12932_v19  ;;  %v13898_v63 = vld [vmem:[#allocation37_spill] sm:$0xff]  ;;  %13900 = vst [vmem:[#allocation45_spill] sm:$0xff] %v13299_v14 }
 0x428   :  { %vm7650_vm9 = vcmp.gt.f32.partialorder %v7130_v32, 0.0  ;;  %v7714_v59 = vmul.f32 0.2, %v7130_v32  ;;  %v7132_v2 = vadd.f32 %v7131_v39, %v7019_v48  ;;  %8299 = vmatmul.mubr.bf16.gmra.mxu0 %v7814_v21  ;;  %v7775_v58 = vsel %vm7647_vm10, %v7128_v53, %v7711_v17  ;;  %v13901_v16 = vld [vmem:[#allocation53_spill] sm:$0xff] }
 0x429   :  { %v7135_v1 = vpop.f32.mrf.mxu1  ;;  %v7033_v10 = vadd.f32 %v13898_v63, %v13897_v24  ;;  %v6926_v17 = vadd.f32 %v13901_v16, %v6813_v18  ;;  %v13910_v24 = vld [vmem:[#allocation39_spill] sm:$0xff] }
 0x42a   :  { %v7778_v60 = vsel %vm7650_vm9, %v7130_v32, %v7714_v59  ;;  %vm7651_vm11 = vcmp.gt.f32.partialorder %v7132_v2, 0.0  ;;  %v7715_v55 = vmul.f32 0.2, %v7132_v2  ;;  %v7136_v28 = vadd.f32 %v7135_v1, %v7023_v35  ;;  %v10832_v59 = vld [vmem:[#allocation9] sm:$0xf] }
 0x42b   :  { %v7818_v23 = vpack.c.bf16 %v7778_v60, %v7774_v44  ;;  %v7137_v20 = vpop.f32.mrf.mxu1  ;;  %v13905_v60 = vld [vmem:[#allocation31_spill] sm:$0xff] }
 0x42c   :  { %v7138_v7 = vadd.f32 %v7137_v20, %v7025_v50  ;;  %v7779_v57 = vsel %vm7651_vm11, %v7132_v2, %v7715_v55  ;;  %v7718_v42 = vmul.f32 0.2, %v7136_v28  ;;  %vm7654_vm12 = vcmp.gt.f32.partialorder %v7136_v28, 0.0  ;;  %v13902_v2 = vld [vmem:[#allocation21_spill] sm:$0xff] }
 0x42d   :  { %v7139_v41 = vpop.f32.mrf.mxu1  ;;  %v7819_v6 = vpack.c.bf16 %v7779_v57, %v7775_v58  ;;  %v13903_v62 = vsub.s32 2, %v13902_v2  ;;  %v7037_v55 = vadd.f32 %v13905_v60, %v13904_v30  ;;  %v13906_v20 = vsub.s32 3, %v13902_v2  ;;  %v13908_v57 = vld [vmem:[#allocation40_spill] sm:$0xff]  ;;  %v13911_v2 = vld [vmem:[#allocation51_spill] sm:$0xff]  ;;  %v13912_v30 = vld [vmem:[#allocation41_spill] sm:$0xff] }
 0x42e   :  { %v7140_v21 = vadd.f32 %v7139_v41, %v7027_v46  ;;  %v7719_v32 = vmul.f32 0.2, %v7138_v7  ;;  %v7782_v37 = vsel %vm7654_vm12, %v7136_v28, %v7718_v42  ;;  %vm7655_vm14 = vcmp.gt.f32.partialorder %v7138_v7, 0.0 }
 0x42f   :  { %v7141_v48 = vpop.f32.mrf.mxu1  ;;  %8308 = vmatprep.mubr.bf16.mxu0 %v7819_v6  ;;  %v13304_v50 = vrot.slane %v10832_v59, %v13903_v62  ;;  %v13310_v36 = vrot.slane %v10832_v59, %v13906_v20  ;;  %v7039_v42 = vadd.f32 %v13908_v57, %v6926_v17  ;;  %v13909_v6 = vld [vmem:[#allocation32_spill] sm:$0xff] }
 0x430   :  { %vm7658_vm13 = vcmp.gt.f32.partialorder %v7140_v21, 0.0  ;;  %v7722_v53 = vmul.f32 0.2, %v7140_v21  ;;  %v7142_v25 = vadd.f32 %v7141_v48, %v7029_v43  ;;  %8309 = vmatmul.mubr.bf16.gmra.mxu0 %v7818_v23  ;;  %v7783_v9 = vsel %vm7655_vm14, %v7138_v7, %v7719_v32  ;;  %v13312_v23 = vpop.f32.mrf.mxu0 }
 0x431   :  { %v7145_v22 = vpop.f32.mrf.mxu1  ;;  %13907 = vst [vmem:[#allocation48_spill] sm:$0xff] %v13312_v23  ;;  %v7189_v43 = vadd.f32 %v13909_v6, %v13304_v50  ;;  %v7191_v63 = vadd.f32 %v13910_v24, %v13310_v36  ;;  %v7199_v62 = vadd.f32 %v13911_v2, %v13304_v50  ;;  %v7201_v60 = vadd.f32 %v13912_v30, %v13310_v36 }
 0x432   :  { %v7786_v35 = vsel %vm7658_vm13, %v7140_v21, %v7722_v53  ;;  %vm7659_vm15 = vcmp.gt.f32.partialorder %v7142_v25, 0.0  ;;  %v7723_v19 = vmul.f32 0.2, %v7142_v25  ;;  %v7146_v39 = vadd.f32 %v7145_v22, %v7033_v10  ;;  %v13319_v10 = vpop.f32.mrf.mxu0 }
 0x433   :  { %v7822_v44 = vpack.c.bf16 %v7786_v35, %v7782_v37  ;;  %v7147_v1 = vpop.f32.mrf.mxu1  ;;  %v7219_v24 = vadd.f32 %v13197_v52, %v13304_v50  ;;  %v7229_v52 = vadd.f32 %v13217_v8, %v13304_v50  ;;  %v7239_v8 = vadd.f32 %v13235_v13, %v13304_v50 }
 0x434   :  { %v7148_v28 = vadd.f32 %v7147_v1, %v7035_v12  ;;  %v7787_v4 = vsel %vm7659_vm15, %v7142_v25, %v7723_v19  ;;  %v7726_v29 = vmul.f32 0.2, %v7146_v39  ;;  %vm7662_vm1 = vcmp.gt.f32.partialorder %v7146_v39, 0.0  ;;  %v13325_v16 = vpop.f32.mrf.mxu0 }
 0x435   :  { %v7149_v46 = vpop.f32.mrf.mxu1  ;;  %v7823_v58 = vpack.c.bf16 %v7787_v4, %v7783_v9  ;;  %v7249_v13 = vadd.f32 %v13255_v31, %v13304_v50  ;;  %v7259_v31 = vadd.f32 %v13285_v40, %v13304_v50  ;;  %v13925_v40 = vld [vmem:[#allocation42_spill] sm:$0xff] }
 0x436   :  { %v7150_v41 = vadd.f32 %v7149_v46, %v7037_v55  ;;  %v7727_v7 = vmul.f32 0.2, %v7148_v28  ;;  %v7790_v48 = vsel %vm7662_vm1, %v7146_v39, %v7726_v29  ;;  %vm7663_vm3 = vcmp.gt.f32.partialorder %v7148_v28, 0.0  ;;  %v13913_v46 = vld [vmem:[#allocation43_spill] sm:$0xff] }
 0x437   :  { %v7151_v21 = vpop.f32.mrf.mxu1  ;;  %8318 = vmatprep.mubr.bf16.mxu0 %v7823_v58  ;;  %v7209_v58 = vadd.f32 %v13913_v46, %v13304_v50 }
 0x438   :  { %vm7666_vm2 = vcmp.gt.f32.partialorder %v7150_v41, 0.0  ;;  %v7730_v45 = vmul.f32 0.2, %v7150_v41  ;;  %v7152_v18 = vadd.f32 %v7151_v21, %v7039_v42  ;;  %8319 = vmatmul.mubr.bf16.gmra.mxu0 %v7822_v44  ;;  %v7791_v35 = vsel %vm7663_vm3, %v7148_v28, %v7727_v7  ;;  %v13333_v44 = vpop.f32.mrf.mxu0 }
 0x43a   :  { %v7301_v32 = vpop.f32.mrf.mxu1  ;;  %v7794_v53 = vsel %vm7666_vm2, %v7150_v41, %v7730_v45  ;;  %vm7667_vm4 = vcmp.gt.f32.partialorder %v7152_v18, 0.0  ;;  %v7731_v25 = vmul.f32 0.2, %v7152_v18  ;;  %v13341_v4 = vpop.f32.mrf.mxu0  ;;  %v7211_v41 = vadd.f32 %v13183_v5, %v13310_v36 }
 0x43b   :  { %v13321_v3 = vadd.f32 %v7301_v32, %v7189_v43  ;;  %v7826_v12 = vpack.c.bf16 %v7794_v53, %v7790_v48  ;;  %v7221_v5 = vadd.f32 %v13201_v56, %v13310_v36  ;;  %v7231_v56 = vadd.f32 %v13221_v54, %v13310_v36 }
 0x43c   :  { %v7303_v37 = vpop.f32.mrf.mxu1  ;;  %v7795_v19 = vsel %vm7667_vm4, %v7152_v18, %v7731_v25  ;;  %v13349_v57 = vpop.f32.mrf.mxu0  ;;  %v7241_v54 = vadd.f32 %v13239_v26, %v13310_v36  ;;  %v7251_v26 = vadd.f32 %v13262_v27, %v13310_v36  ;;  %v7261_v27 = vadd.f32 %v13290_v15, %v13310_v36 }
 0x43d   :  { %v13323_v22 = vadd.f32 %v7303_v37, %v7191_v63  ;;  %v7827_v59 = vpack.c.bf16 %v7795_v19, %v7791_v35 }
 0x43e   :  { %v13327_v17 = vpop.f32.mrf.mxu1  ;;  %v13357_v7 = vpop.f32.mrf.mxu0 }
 0x43f   :  { %8328 = vmatprep.mubr.bf16.mxu0 %v7827_v59 }
 0x440   :  { %v13329_v39 = vpop.f32.mrf.mxu1  ;;  %8329 = vmatmul.mubr.bf16.gmra.mxu0 %v7826_v12  ;;  %v13365_v63 = vpop.f32.mrf.mxu0 }
 0x442   :  { %v7311_v1 = vpop.f32.mrf.mxu1  ;;  %v13373_v12 = vpop.f32.mrf.mxu0 }
 0x443   :  { %v13337_v55 = vadd.f32 %v7311_v1, %v7199_v62 }
 0x444   :  { %v7313_v28 = vpop.f32.mrf.mxu1  ;;  %v13381_v19 = vpop.f32.mrf.mxu0 }
 0x445   :  { %v13339_v9 = vadd.f32 %v7313_v28, %v7201_v60 }
 0x446   :  { %v13343_v20 = vpop.f32.mrf.mxu1  ;;  %v13389_v30 = vpop.f32.mrf.mxu0 }
 0x448   :  { %v13345_v29 = vpop.f32.mrf.mxu1  ;;  %v13397_v46 = vpop.f32.mrf.mxu0 }
 0x44a   :  { %v7321_v42 = vpop.f32.mrf.mxu1 }
 0x44b   :  { %v13353_v6 = vadd.f32 %v7321_v42, %v7209_v58 }
 0x44c   :  { %v7323_v43 = vpop.f32.mrf.mxu1 }
 0x44d   :  { %v13355_v21 = vadd.f32 %v7323_v43, %v7211_v41 }
 0x44e   :  { %v13359_v45 = vpop.f32.mrf.mxu1 }
 0x450   :  { %v13361_v18 = vpop.f32.mrf.mxu1 }
 0x452   :  { %v7331_v48 = vpop.f32.mrf.mxu1 }
 0x453   :  { %v13369_v32 = vadd.f32 %v7331_v48, %v7219_v24  ;;  %v13405_v24 = vpop.f32.mrf.mxu0 }
 0x454   :  { %v7333_v53 = vpop.f32.mrf.mxu1 }
 0x455   :  { %v13371_v25 = vadd.f32 %v7333_v53, %v7221_v5  ;;  %v13413_v53 = vpop.f32.mrf.mxu0 }
 0x456   :  { %v13375_v37 = vpop.f32.mrf.mxu1 }
 0x458   :  { %v13377_v35 = vpop.f32.mrf.mxu1 }
 0x45a   :  { %v7341_v59 = vpop.f32.mrf.mxu1 }
 0x45b   :  { %v13385_v2 = vadd.f32 %v7341_v59, %v7229_v52 }
 0x45c   :  { %v7343_v62 = vpop.f32.mrf.mxu1 }
 0x45d   :  { %v13387_v1 = vadd.f32 %v7343_v62, %v7231_v56 }
 0x45e   :  { %v13391_v60 = vpop.f32.mrf.mxu1 }
 0x460   :  { %v13393_v28 = vpop.f32.mrf.mxu1 }
 0x462   :  { %v7351_v58 = vpop.f32.mrf.mxu1 }
 0x463   :  { %v13401_v42 = vadd.f32 %v7351_v58, %v7239_v8  ;;  %v13421_v8 = vpop.f32.mrf.mxu0 }
 0x464   :  { %v7353_v41 = vpop.f32.mrf.mxu1 }
 0x465   :  { %13914 = vst [vmem:[#allocation47_spill] sm:$0xff] %v13401_v42  ;;  %v13403_v43 = vadd.f32 %v7353_v41, %v7241_v54  ;;  %v13429_v41 = vpop.f32.mrf.mxu0 }
 0x466   :  { %v13407_v48 = vpop.f32.mrf.mxu1 }
 0x468   :  { %v13409_v5 = vpop.f32.mrf.mxu1 }
 0x469   :  { %13915 = vst [vmem:[#allocation50_spill] sm:$0xff] %v13409_v5 }
 0x46a   :  { %v7361_v52 = vpop.f32.mrf.mxu1 }
 0x46b   :  { %v13417_v59 = vadd.f32 %v7361_v52, %v7249_v13 }
 0x46c   :  { %v7363_v56 = vpop.f32.mrf.mxu1 }
 0x46d   :  { %13916 = vst [vmem:[#allocation49_spill] sm:$0xff] %v13417_v59  ;;  %v13419_v62 = vadd.f32 %v7363_v56, %v7251_v26  ;;  %v13437_v56 = vpop.f32.mrf.mxu0  ;;  %v13923_v59 = vld [vmem:[#allocation52_spill] sm:$0xff] }
 0x46e   :  { %v13423_v58 = vpop.f32.mrf.mxu1 }
 0x46f   :  { %13917 = vst [vmem:[#allocation28_spill] sm:$0xff] %v13419_v62  ;;  %13918 = vst [vmem:[#allocation60_spill] sm:$0xff] %v13423_v58  ;;  %v7195_v58 = vadd.f32 %v13925_v40, %v13310_v36  ;;  %v13448_v15 = vpop.f32.mrf.mxu0 }
 0x470   :  { %v13425_v54 = vpop.f32.mrf.mxu1 }
 0x471   :  { %13919 = vst [vmem:[#allocation34_spill] sm:$0xff] %v13425_v54  ;;  %v7193_v54 = vadd.f32 %v13923_v59, %v13304_v50 }
 0x472   :  { %v7371_v23 = vpop.f32.mrf.mxu1 }
 0x473   :  { %v13433_v13 = vadd.f32 %v7371_v23, %v7259_v31  ;;  %v7306_v61 = vadd.f32 %v13327_v17, %v7193_v54  ;;  %v7308_v31 = vadd.f32 %v13329_v39, %v7195_v58  ;;  %v13927_v58 = vld [vmem:[#allocation44_spill] sm:$0xff] }
 0x474   :  { %v7373_v52 = vpop.f32.mrf.mxu1 }
 0x475   :  { %13920 = vst [vmem:[#allocation35_spill] sm:$0xff] %v13433_v13  ;;  %v13435_v26 = vadd.f32 %v7373_v52, %v7261_v27  ;;  %v7417_v27 = vadd.f32 %v13325_v16, %v13323_v22  ;;  %v7415_v52 = vadd.f32 %v13319_v10, %v13321_v3  ;;  %v7421_v39 = vadd.f32 %v13341_v4, %v7308_v31 }
 0x476   :  { %v13439_v14 = vpop.f32.mrf.mxu1  ;;  %v7205_v22 = vadd.f32 %v13927_v58, %v13310_v36 }
 0x477   :  { %13921 = vst [vmem:[#allocation59_spill] sm:$0xff] %v13435_v26  ;;  %13922 = vst [vmem:[#allocation33_spill] sm:$0xff] %v13439_v14  ;;  %v13926_v26 = vld [vmem:[#allocation56_spill] sm:$0xff]  ;;  %v13458_v14 = vpop.f32.mrf.mxu0 }
 0x478   :  { %v13443_v62 = vpop.f32.mrf.mxu1  ;;  %v7203_v40 = vadd.f32 %v13926_v26, %v13304_v50  ;;  %v7318_v4 = vadd.f32 %v13345_v29, %v7205_v22 }
 0x479   :  { %13924 = vst [vmem:[#allocation61_spill] sm:$0xff] %v13443_v62  ;;  %v7419_v62 = vadd.f32 %v13333_v44, %v7306_v61  ;;  %v13464_v44 = vpop.f32.mrf.mxu0 }
 0x47a   :  { %v7527_v23 = vpop.f32.mrf.mxu1  ;;  %v7316_v16 = vadd.f32 %v13343_v20, %v7203_v40  ;;  %v7425_v20 = vadd.f32 %v13349_v57, %v13337_v55  ;;  %v13928_v55 = vld [vmem:[#allocation58_spill] sm:$0xff] }
 0x47b   :  { %v7528_v17 = vadd.f32 %v7527_v23, %v7415_v52  ;;  %v13474_v42 = vpop.f32.mrf.mxu0  ;;  %v7215_v57 = vadd.f32 %v13928_v55, %v13310_v36 }
 0x47c   :  { %v7529_v13 = vpop.f32.mrf.mxu1 }
 0x47d   :  { %v7530_v59 = vadd.f32 %v7529_v13, %v7417_v27  ;;  %v7672_v26 = vmul.f32 0.2, %v7528_v17  ;;  %vm7608_vm6 = vcmp.gt.f32.partialorder %v7528_v17, 0.0 }
 0x47e   :  { %v7531_v54 = vpop.f32.mrf.mxu1 }
 0x47f   :  { %v7532_v51 = vadd.f32 %v7531_v54, %v7419_v62  ;;  %v7673_v3 = vmul.f32 0.2, %v7530_v59  ;;  %vm7609_vm5 = vcmp.gt.f32.partialorder %v7530_v59, 0.0  ;;  %v7427_v62 = vadd.f32 %v13357_v7, %v13339_v9 }
 0x480   :  { %v7533_v10 = vpop.f32.mrf.mxu1  ;;  %v7429_v54 = vadd.f32 %v13365_v63, %v7316_v16  ;;  %v7736_v9 = vsel %vm7608_vm6, %v7528_v17, %v7672_v26  ;;  %v7223_v17 = vadd.f32 %v13205_v33, %v13304_v50  ;;  %v7435_v33 = vadd.f32 %v13381_v19, %v13353_v6  ;;  %v10585_v6 = vld [vmem:[#allocation14 + $0x68] sm:$0xff]  }
 0x481   :  { %vm7612_vm0 = vcmp.gt.f32.partialorder %v7532_v51, 0.0  ;;  %v7676_v13 = vmul.f32 0.2, %v7532_v51  ;;  %v7534_v61 = vadd.f32 %v7533_v10, %v7421_v39  ;;  %v7737_v39 = vsel %vm7609_vm5, %v7530_v59, %v7673_v3 }
 0x482   :  { %v7537_v27 = vpop.f32.mrf.mxu1  ;;  %v7213_v10 = vadd.f32 %v13187_v0, %v13304_v50 }
 0x483   :  { %vm7613_vm7 = vcmp.gt.f32.partialorder %v7534_v61, 0.0  ;;  %v7677_v23 = vmul.f32 0.2, %v7534_v61  ;;  %v7740_v31 = vsel %vm7612_vm0, %v7532_v51, %v7676_v13  ;;  %v7538_v29 = vadd.f32 %v7537_v27, %v7425_v20 }
 0x484   :  { %v7539_v52 = vpop.f32.mrf.mxu1  ;;  %v7800_v5 = vpack.c.bf16 %v7740_v31, %v7736_v9  ;;  %v7431_v13 = vadd.f32 %v13373_v12, %v7318_v4  ;;  %v7326_v63 = vadd.f32 %v13359_v45, %v7213_v10  ;;  %v7437_v27 = vadd.f32 %v13389_v30, %v13355_v21  ;;  %v10582_v45 = vld [vmem:[#allocation14 + $0x38] sm:$0xff]   ;;  %v10583_v4 = vld [vmem:[#allocation14 + $0x70] sm:$0xff]  }
 0x485   :  { %v7540_v40 = vadd.f32 %v7539_v52, %v7427_v62  ;;  %v7741_v58 = vsel %vm7613_vm7, %v7534_v61, %v7677_v23  ;;  %v13482_v61 = vpop.f32.mrf.mxu0  ;;  %v7680_v26 = vmul.f32 0.2, %v7538_v29  ;;  %v10581_v62 = vld [vmem:[#allocation14 + $0x78] sm:$0xff]   ;;  %v7328_v23 = vadd.f32 %v13361_v18, %v7215_v57  ;;  %v10584_v18 = vld [vmem:[#allocation14 + $0x30] sm:$0xff]  }
 0x486   :  { %v7541_v7 = vpop.f32.mrf.mxu1  ;;  %v7801_v22 = vpack.c.bf16 %v7741_v58, %v7737_v39  ;;  %vm7616_vm10 = vcmp.gt.f32.partialorder %v7538_v29, 0.0  ;;  %v7439_v52 = vadd.f32 %v13397_v46, %v7326_v63  ;;  %9923 = vmatprep.subr.bf16.mxu0 %v10581_v62  ;;  %9987 = vmatprep.subr.bf16.mxu1 %v10581_v62  ;;  %v10586_v63 = vld [vmem:[#allocation14 + $0x28] sm:$0xff]  }
 0x487   :  { %v7542_v51 = vadd.f32 %v7541_v7, %v7429_v54  ;;  %v7681_v16 = vmul.f32 0.2, %v7540_v40  ;;  %vm7617_vm9 = vcmp.gt.f32.partialorder %v7540_v40, 0.0  ;;  %9924 = vmatpush3.bf16.msra.mxu0 %v10582_v45  ;;  %v13492_v39 = vpop.f32.mrf.mxu0  ;;  %v7744_v58 = vsel %vm7616_vm10, %v7538_v29, %v7680_v26 }
 0x488   :  { %v7543_v59 = vpop.f32.mrf.mxu1  ;;  %8371 = vmatprep.mubr.bf16.mxu1 %v7801_v22  ;;  %9925 = vmatprep.subr.bf16.mxu0 %v10583_v4  ;;  %v7441_v22 = vadd.f32 %v13405_v24, %v7328_v23  ;;  %v7447_v24 = vadd.f32 %v13421_v8, %v13371_v25 }
 0x489   :  { %vm7620_vm8 = vcmp.gt.f32.partialorder %v7542_v51, 0.0  ;;  %v7684_v0 = vmul.f32 0.2, %v7542_v51  ;;  %v7544_v3 = vadd.f32 %v7543_v59, %v7431_v13  ;;  %8372 = vmatmul.mubr.bf16.vlgmr.msra.gmra.mxu1 %v7800_v5  ;;  %v7745_v21 = vsel %vm7617_vm9, %v7540_v40, %v7681_v16  ;;  %v13499_v59 = vpop.f32.mrf.mxu0 }
 0x48a   :  { %v7547_v12 = vpop.f32.mrf.mxu1  ;;  %9995 = vmatpush3.bf16.msra.mxu1 %v10582_v45  ;;  %v7225_v40 = vadd.f32 %v13210_v47, %v13310_v36  ;;  %v10587_v47 = vld [vmem:[#allocation14 + $0x60] sm:$0xff]  }
 0x48b   :  { %vm7621_vm11 = vcmp.gt.f32.partialorder %v7544_v3, 0.0  ;;  %v7685_v31 = vmul.f32 0.2, %v7544_v3  ;;  %v7748_v5 = vsel %vm7620_vm8, %v7542_v51, %v7684_v0  ;;  %v7548_v10 = vadd.f32 %v7547_v12, %v7435_v33  ;;  %9988 = vmatprep.subr.bf16.mxu1 %v10583_v4  ;;  %9926 = vmatpush3.bf16.msra.mxu0 %v10584_v18  ;;  %v13511_v4 = vpop.f32.mrf.mxu0  ;;  %v10589_v33 = vld [vmem:[#allocation14 + $0x58] sm:$0xff]  }
 0x48c   :  { %v7549_v20 = vpop.f32.mrf.mxu1  ;;  %v7804_v19 = vpack.c.bf16 %v7748_v5, %v7744_v58  ;;  %v7336_v51 = vadd.f32 %v13375_v37, %v7223_v17  ;;  %9927 = vmatprep.subr.bf16.mxu0 %v10585_v6  ;;  %v7338_v37 = vadd.f32 %v13377_v35, %v7225_v40  ;;  %v7233_v17 = vadd.f32 %v13225_v49, %v13304_v50  ;;  %v10588_v35 = vld [vmem:[#allocation14 + $0x20] sm:$0xff]  }
 0x48d   :  { %v7550_v54 = vadd.f32 %v7549_v20, %v7437_v27  ;;  %v7749_v30 = vsel %vm7621_vm11, %v7544_v3, %v7685_v31  ;;  %v7688_v16 = vmul.f32 0.2, %v7548_v10  ;;  %vm7624_vm14 = vcmp.gt.f32.partialorder %v7548_v10, 0.0  ;;  %v13517_v58 = vpop.f32.mrf.mxu0 }
 0x48e   :  { %v7551_v9 = vpop.f32.mrf.mxu1  ;;  %v7805_v7 = vpack.c.bf16 %v7749_v30, %v7745_v21  ;;  %9996 = vmatpush3.bf16.msra.mxu1 %v10584_v18  ;;  %v7445_v12 = vadd.f32 %v13413_v53, %v13369_v32  ;;  %v7449_v25 = vadd.f32 %v13429_v41, %v7336_v51  ;;  %v7451_v53 = vadd.f32 %v13437_v56, %v7338_v37 }
 0x48f   :  { %v7552_v46 = vadd.f32 %v7551_v9, %v7439_v52  ;;  %v7689_v55 = vmul.f32 0.2, %v7550_v54  ;;  %vm7625_vm13 = vcmp.gt.f32.partialorder %v7550_v54, 0.0  ;;  %9989 = vmatprep.subr.bf16.mxu1 %v10585_v6  ;;  %9928 = vmatpush3.bf16.msra.mxu0 %v10586_v63  ;;  %v7752_v23 = vsel %vm7624_vm14, %v7548_v10, %v7688_v16 }
 0x490   :  { %v7553_v13 = vpop.f32.mrf.mxu1  ;;  %8381 = vmatprep.mubr.bf16.mxu1 %v7805_v7  ;;  %9929 = vmatprep.subr.bf16.mxu0 %v10587_v47  ;;  %v7235_v41 = vadd.f32 %v13230_v38, %v13310_v36  ;;  %v7346_v52 = vadd.f32 %v13391_v60, %v7233_v17  ;;  %v7457_v56 = vadd.f32 %v13458_v14, %v13387_v1  ;;  %v7476_v1 = vpop.f32.mrf.mxu0 }
 0x491   :  { %vm7628_vm12 = vcmp.gt.f32.partialorder %v7552_v46, 0.0  ;;  %v7692_v29 = vmul.f32 0.2, %v7552_v46  ;;  %v7554_v57 = vadd.f32 %v7553_v13, %v7441_v22  ;;  %8382 = vmatmul.mubr.bf16.gmra.mxu1 %v7804_v19  ;;  %v7753_v8 = vsel %vm7625_vm13, %v7550_v54, %v7689_v55 }
 0x492   :  { %v7557_v0 = vpop.f32.mrf.mxu1  ;;  %9997 = vmatpush3.bf16.msra.mxu1 %v10586_v63  ;;  %v7348_v38 = vadd.f32 %v13393_v28, %v7235_v41  ;;  %v7455_v6 = vadd.f32 %v13448_v15, %v13385_v2  ;;  %v7459_v22 = vadd.f32 %v13464_v44, %v7346_v52  ;;  %v7243_v14 = vadd.f32 %v13243_v11, %v13304_v50  ;;  %v13933_v52 = vld [vmem:[#allocation60_spill] sm:$0xff] }
 0x493   :  { %vm7629_vm15 = vcmp.gt.f32.partialorder %v7554_v57, 0.0  ;;  %v7693_v3 = vmul.f32 0.2, %v7554_v57  ;;  %v7756_v26 = vsel %vm7628_vm12, %v7552_v46, %v7692_v29  ;;  %v7558_v31 = vadd.f32 %v7557_v0, %v7445_v12  ;;  %9990 = vmatprep.subr.bf16.mxu1 %v10587_v47  ;;  %9930 = vmatpush3.bf16.msra.mxu0 %v10588_v35  ;;  %v7478_v47 = vpop.f32.mrf.mxu0  ;;  %v13930_v12 = vld [vmem:[#allocation47_spill] sm:$0xff] }
 0x494   :  { %v7559_v27 = vpop.f32.mrf.mxu1  ;;  %v7808_v20 = vpack.c.bf16 %v7756_v26, %v7752_v23  ;;  %9931 = vmatprep.subr.bf16.mxu0 %v10589_v33  ;;  %v7461_v16 = vadd.f32 %v13474_v42, %v7348_v38  ;;  %v7245_v2 = vadd.f32 %v13248_v34, %v13310_v36  ;;  %v7356_v15 = vadd.f32 %v13407_v48, %v7243_v14  ;;  %v13929_v42 = vld [vmem:[#allocation50_spill] sm:$0xff]  ;;  %v13934_v38 = vld [vmem:[#allocation28_spill] sm:$0xff] }
 0x495   :  { %v7560_v62 = vadd.f32 %v7559_v27, %v7447_v24  ;;  %v7757_v45 = vsel %vm7629_vm15, %v7554_v57, %v7693_v3  ;;  %v7696_v10 = vmul.f32 0.2, %v7558_v31  ;;  %vm7632_vm3 = vcmp.gt.f32.partialorder %v7558_v31, 0.0  ;;  %v13931_v23 = vld [vmem:[#allocation46_spill] sm:$0xff] }
 0x496   :  { %v7561_v5 = vpop.f32.mrf.mxu1  ;;  %v7809_v49 = vpack.c.bf16 %v7757_v45, %v7753_v8  ;;  %9998 = vmatpush3.bf16.msra.mxu1 %v10588_v35  ;;  %v7467_v17 = vadd.f32 %v13492_v39, %v13403_v43  ;;  %v7358_v26 = vadd.f32 %v13929_v42, %v7245_v2  ;;  %v7465_v27 = vadd.f32 %v13482_v61, %v13930_v12  ;;  %v13932_v61 = vld [vmem:[#allocation57_spill] sm:$0xff] }
 0x497   :  { %v7562_v32 = vadd.f32 %v7561_v5, %v7449_v25  ;;  %v7697_v21 = vmul.f32 0.2, %v7560_v62  ;;  %vm7633_vm2 = vcmp.gt.f32.partialorder %v7560_v62, 0.0  ;;  %9991 = vmatprep.subr.bf16.mxu1 %v10589_v33  ;;  %v7760_v28 = vsel %vm7632_vm3, %v7558_v31, %v7696_v10  ;;  %v7480_v5 = vpop.f32.mrf.mxu0 }
 0x498   :  { %v7563_v54 = vpop.f32.mrf.mxu1  ;;  %8391 = vmatprep.mubr.bf16.mxu1 %v7809_v49  ;;  %v7469_v8 = vadd.f32 %v13499_v59, %v7356_v15  ;;  %v7253_v31 = vadd.f32 %v13931_v23, %v13304_v50  ;;  %v7255_v41 = vadd.f32 %v13932_v61, %v13310_v36 }
 0x499   :  { %vm7636_vm1 = vcmp.gt.f32.partialorder %v7562_v32, 0.0  ;;  %v7700_v30 = vmul.f32 0.2, %v7562_v32  ;;  %v7564_v18 = vadd.f32 %v7563_v54, %v7451_v53  ;;  %8392 = vmatmul.mubr.bf16.gmra.mxu1 %v7808_v20  ;;  %v7761_v40 = vsel %vm7633_vm2, %v7560_v62, %v7697_v21  ;;  %v7484_v10 = vpop.f32.mrf.mxu0 }
 0x49a   :  { %v7567_v9 = vpop.f32.mrf.mxu1  ;;  %v7471_v53 = vadd.f32 %v13511_v4, %v7358_v26  ;;  %v7366_v54 = vadd.f32 %v13933_v52, %v7253_v31 }
 0x49b   :  { %vm7637_vm4 = vcmp.gt.f32.partialorder %v7564_v18, 0.0  ;;  %v7701_v60 = vmul.f32 0.2, %v7564_v18  ;;  %v7764_v7 = vsel %vm7636_vm1, %v7562_v32, %v7700_v30  ;;  %v7568_v13 = vadd.f32 %v7567_v9, %v7455_v6 }
 0x49c   :  { %v7569_v19 = vpop.f32.mrf.mxu1  ;;  %v7812_v57 = vpack.c.bf16 %v7764_v7, %v7760_v28  ;;  %v13935_v7 = vld [vmem:[#allocation34_spill] sm:$0xff]  ;;  %v7479_v14 = vadd.f32 %v7478_v47, %v7366_v54 }
 0x49d   :  { %v7570_v46 = vadd.f32 %v7569_v19, %v7457_v56  ;;  %v7765_v51 = vsel %vm7637_vm4, %v7564_v18, %v7701_v60  ;;  %v7704_v37 = vmul.f32 0.2, %v7568_v13  ;;  %vm7640_vm6 = vcmp.gt.f32.partialorder %v7568_v13, 0.0 }
 0x49e   :  { %v7571_v55 = vpop.f32.mrf.mxu1  ;;  %v7813_v29 = vpack.c.bf16 %v7765_v51, %v7761_v40  ;;  %v7477_v60 = vadd.f32 %v7476_v1, %v13934_v38  ;;  %v7368_v4 = vadd.f32 %v13935_v7, %v7255_v41 }
 0x49f   :  { %v7572_v63 = vadd.f32 %v7571_v55, %v7459_v22  ;;  %v7705_v0 = vmul.f32 0.2, %v7570_v46  ;;  %vm7641_vm5 = vcmp.gt.f32.partialorder %v7570_v46, 0.0  ;;  %v7768_v43 = vsel %vm7640_vm6, %v7568_v13, %v7704_v37  ;;  %v13937_v55 = vld [vmem:[#allocation45_spill] sm:$0xff] }
 0x4a0   :  { %v7573_v44 = vpop.f32.mrf.mxu1  ;;  %8401 = vmatprep.mubr.bf16.mxu1 %v7813_v29  ;;  %v7263_v29 = vadd.f32 %v13937_v55, %v13304_v50  ;;  %v9811_v55 = vld [vmem:[#allocation2] ss:$0 sm:$0xff] }
 0x4a1   :  { %vm7644_vm0 = vcmp.gt.f32.partialorder %v7572_v63, 0.0  ;;  %v7708_v24 = vmul.f32 0.2, %v7572_v63  ;;  %v7574_v11 = vadd.f32 %v7573_v44, %v7461_v16  ;;  %8402 = vmatmul.mubr.bf16.gmra.mxu1 %v7812_v57  ;;  %v7769_v45 = vsel %vm7641_vm5, %v7570_v46, %v7705_v0  ;;  %v13936_v46 = vld [vmem:[#allocation49_spill] sm:$0xff]  ;;  %v7486_v57 = vpop.f32.mrf.mxu0  ;;  %8603 = vperm.xlu0 %10020, %v9811_v55  }
 0x4a2   :  { %v7577_v3 = vpop.f32.mrf.mxu1  ;;  %v7475_v22 = vadd.f32 %v13517_v58, %v13936_v46  ;;  %v7481_v0 = vadd.f32 %v7480_v5, %v7368_v4  ;;  %v13939_v58 = vld [vmem:[#allocation33_spill] sm:$0xff]  ;;  %v10590_v4 = vld [vmem:[#allocation14 + $0x18] sm:$0xff]   ;;  %v10593_v46 = vld [vmem:[#allocation14 + $0x48] sm:$0xff]  }
 0x4a3   :  { %vm7645_vm7 = vcmp.gt.f32.partialorder %v7574_v11, 0.0  ;;  %v7709_v34 = vmul.f32 0.2, %v7574_v11  ;;  %v7772_v48 = vsel %vm7644_vm0, %v7572_v63, %v7708_v24  ;;  %v7578_v39 = vadd.f32 %v7577_v3, %v7465_v27  ;;  %v13938_v24 = vld [vmem:[#allocation48_spill] sm:$0xff]  ;;  %v7488_v50 = vpop.f32.mrf.mxu0  ;;  %v13941_v27 = vld [vmem:[#allocation61_spill] sm:$0xff]  ;;  %9932 = vmatpush3.bf16.msra.mxu0 %v10590_v4  ;;  %9999 = vmatpush3.bf16.msra.mxu1 %v10590_v4 }
 0x4a4   :  { %v7579_v62 = vpop.f32.mrf.mxu1  ;;  %v7816_v20 = vpack.c.bf16 %v7772_v48, %v7768_v43  ;;  %v7376_v37 = vadd.f32 %v13939_v58, %v7263_v29  ;;  %v13940_v48 = vld [vmem:[#allocation59_spill] sm:$0xff] }
 0x4a5   :  { %v7580_v25 = vadd.f32 %v7579_v62, %v7467_v17  ;;  %v7773_v35 = vsel %vm7645_vm7, %v7574_v11, %v7709_v34  ;;  %v7712_v9 = vmul.f32 0.2, %v7578_v39  ;;  %vm7648_vm10 = vcmp.gt.f32.partialorder %v7578_v39, 0.0 }
 0x4a6   :  { %v7581_v49 = vpop.f32.mrf.mxu1  ;;  %v7817_v33 = vpack.c.bf16 %v7773_v35, %v7769_v45  ;;  %v7265_v11 = vadd.f32 %v13938_v24, %v13310_v36  ;;  %v7487_v12 = vadd.f32 %v7486_v57, %v13940_v48  ;;  %v7489_v31 = vadd.f32 %v7488_v50, %v7376_v37 }
 0x4a7   :  { %v7582_v32 = vadd.f32 %v7581_v49, %v7469_v8  ;;  %v7713_v21 = vmul.f32 0.2, %v7580_v25  ;;  %vm7649_vm9 = vcmp.gt.f32.partialorder %v7580_v25, 0.0  ;;  %v7776_v63 = vsel %vm7648_vm10, %v7578_v39, %v7712_v9  ;;  %v13942_v8 = vld [vmem:[#allocation35_spill] sm:$0xff]  ;;  %v7490_v39 = vpop.f32.mrf.mxu0 }
 0x4a8   :  { %v7583_v59 = vpop.f32.mrf.mxu1  ;;  %8411 = vmatprep.mubr.bf16.mxu1 %v7817_v33  ;;  %v7378_v62 = vadd.f32 %v13941_v27, %v7265_v11  ;;  %v7485_v45 = vadd.f32 %v7484_v10, %v13942_v8 }
 0x4a9   :  { %vm7652_vm8 = vcmp.gt.f32.partialorder %v7582_v32, 0.0  ;;  %v7716_v30 = vmul.f32 0.2, %v7582_v32  ;;  %v7584_v18 = vadd.f32 %v7583_v59, %v7471_v53  ;;  %8412 = vmatmul.mubr.bf16.gmra.mxu1 %v7816_v20  ;;  %v7777_v28 = vsel %vm7649_vm9, %v7580_v25, %v7713_v21 }
 0x4aa   :  { %v7587_v56 = vpop.f32.mrf.mxu1  ;;  %v7491_v41 = vadd.f32 %v7490_v39, %v7378_v62 }
 0x4ab   :  { %vm7653_vm11 = vcmp.gt.f32.partialorder %v7584_v18, 0.0  ;;  %v7717_v6 = vmul.f32 0.2, %v7584_v18  ;;  %v7780_v19 = vsel %vm7652_vm8, %v7582_v32, %v7716_v30  ;;  %v7588_v1 = vadd.f32 %v7587_v56, %v7475_v22  ;;  %v10594_v22 = vld [vmem:[#allocation14 + $0x8] sm:$0xff]  }
 0x4ac   :  { %v7589_v40 = vpop.f32.mrf.mxu1  ;;  %v7820_v15 = vpack.c.bf16 %v7780_v19, %v7776_v63  ;;  %v10592_v19 = vld [vmem:[#allocation14 + $0x10] sm:$0xff]  }
 0x4ad   :  { %v7590_v51 = vadd.f32 %v7589_v40, %v7477_v60  ;;  %v7781_v13 = vsel %vm7653_vm11, %v7584_v18, %v7717_v6  ;;  %v7720_v26 = vmul.f32 0.2, %v7588_v1  ;;  %vm7656_vm14 = vcmp.gt.f32.partialorder %v7588_v1, 0.0  ;;  %v10591_v6 = vld [vmem:[#allocation14 + $0x50] sm:$0xff]   ;;  %v10595_v40 = vld [vmem:[#allocation14 + $0x40] sm:$0xff]  }
 0x4ae   :  { %v7591_v16 = vpop.f32.mrf.mxu1  ;;  %v7821_v2 = vpack.c.bf16 %v7781_v13, %v7777_v28  ;;  %9933 = vmatprep.subr.bf16.mxu0 %v10591_v6  ;;  %9992 = vmatprep.subr.bf16.mxu1 %v10591_v6 }
 0x4af   :  { %v7592_v44 = vadd.f32 %v7591_v16, %v7479_v14  ;;  %v7721_v47 = vmul.f32 0.2, %v7590_v51  ;;  %vm7657_vm13 = vcmp.gt.f32.partialorder %v7590_v51, 0.0  ;;  %v7784_v49 = vsel %vm7656_vm14, %v7588_v1, %v7720_v26  ;;  %9934 = vmatpush3.bf16.msra.mxu0 %v10592_v19  ;;  %10000 = vmatpush3.bf16.msra.mxu1 %v10592_v19 }
 0x4b0   :  { %v7593_v3 = vpop.f32.mrf.mxu1  ;;  %8421 = vmatprep.mubr.bf16.mxu1 %v7821_v2  ;;  %9935 = vmatprep.subr.bf16.mxu0 %v10593_v46 }
 0x4b1   :  { %vm7660_vm12 = vcmp.gt.f32.partialorder %v7592_v44, 0.0  ;;  %v7724_v17 = vmul.f32 0.2, %v7592_v44  ;;  %v7594_v42 = vadd.f32 %v7593_v3, %v7481_v0  ;;  %8422 = vmatmul.mubr.bf16.gmra.mxu1 %v7820_v15  ;;  %v7785_v5 = vsel %vm7657_vm13, %v7590_v51, %v7721_v47  ;;  %9993 = vmatprep.subr.bf16.mxu1 %v10593_v46  ;;  %v10596_v51 = vld [vmem:[#allocation14] sm:$0xff]   ;;  %v7894_v3 = vld [vmem:[#allocation12] sm:$0x3] }
 0x4b2   :  { %v7597_v34 = vpop.f32.mrf.mxu1  ;;  %v13943_v47 = vld [vmem:[#allocation23_spill] sm:$0xff] }
 0x4b3   :  { %vm7661_vm15 = vcmp.gt.f32.partialorder %v7594_v42, 0.0  ;;  %v7725_v36 = vmul.f32 0.2, %v7594_v42  ;;  %v7788_v25 = vsel %vm7660_vm12, %v7592_v44, %v7724_v17  ;;  %v7598_v33 = vadd.f32 %v7597_v34, %v7485_v45  ;;  %9936 = vmatpush3.bf16.msra.mxu0 %v10594_v22  ;;  %10001 = vmatpush3.bf16.msra.mxu1 %v10594_v22 }
 0x4b4   :  { %v7599_v35 = vpop.f32.mrf.mxu1  ;;  %v7824_v53 = vpack.c.bf16 %v7788_v25, %v7784_v49  ;;  %9937 = vmatprep.subr.bf16.mxu0 %v10595_v40  ;;  %9994 = vmatprep.subr.bf16.mxu1 %v10595_v40  ;;  %v13571_v17 = vrot.slane %v7894_v3, %v13943_v47 }
 0x4b5   :  { %v7600_v23 = vadd.f32 %v7599_v35, %v7487_v12  ;;  %v7789_v43 = vsel %vm7661_vm15, %v7594_v42, %v7725_v36  ;;  %v7728_v30 = vmul.f32 0.2, %v7598_v33  ;;  %vm7664_vm3 = vcmp.gt.f32.partialorder %v7598_v33, 0.0  ;;  %v13944_v42 = vld [vmem:[#allocation22_spill] sm:$0xff] }
 0x4b6   :  { %v7601_v20 = vpop.f32.mrf.mxu1  ;;  %v7825_v32 = vpack.c.bf16 %v7789_v43, %v7785_v5  ;;  %v13574_v50 = vrot.slane %v7894_v3, %v13944_v42 }
 0x4b7   :  { %v7602_v61 = vadd.f32 %v7601_v20, %v7489_v31  ;;  %v7729_v54 = vmul.f32 0.2, %v7600_v23  ;;  %vm7665_vm2 = vcmp.gt.f32.partialorder %v7600_v23, 0.0  ;;  %v7792_v38 = vsel %vm7664_vm3, %v7598_v33, %v7728_v30  ;;  %9938 = vmatpush3.bf16.msra.mxu0 %v10596_v51  ;;  %10002 = vmatpush3.bf16.msra.mxu1 %v10596_v51 }
 0x4b8   :  { %v7603_v52 = vpop.f32.mrf.mxu1  ;;  %8431 = vmatprep.mubr.bf16.mxu1 %v7825_v32 }
 0x4b9   :  { %vm7668_vm1 = vcmp.gt.f32.partialorder %v7602_v61, 0.0  ;;  %v7732_v59 = vmul.f32 0.2, %v7602_v61  ;;  %v7604_v21 = vadd.f32 %v7603_v52, %v7491_v41  ;;  %8432 = vmatmul.mubr.bf16.gmra.mxu1 %v7824_v53  ;;  %v7793_v9 = vsel %vm7665_vm2, %v7600_v23, %v7729_v54 }
 0x4bb   :  { %vm7669_vm4 = vcmp.gt.f32.partialorder %v7604_v21, 0.0  ;;  %v7733_v18 = vmul.f32 0.2, %v7604_v21  ;;  %v7796_v10 = vsel %vm7668_vm1, %v7602_v61, %v7732_v59 }
 0x4bc   :  { %v7828_v7 = vpack.c.bf16 %v7796_v10, %v7792_v38 }
 0x4bd   :  { %v7797_v56 = vsel %vm7669_vm4, %v7604_v21, %v7733_v18 }
 0x4be   :  { %v7829_v60 = vpack.c.bf16 %v7797_v56, %v7793_v9 }
 0x4c0   :  { %8441 = vmatprep.mubr.bf16.mxu1 %v7829_v60 }
 0x4c1   :  { %8442 = vmatmul.mubr.bf16.gmra.mxu1 %v7828_v7 }
 0x4c8   :  { %v8260_v14 = vpop.f32.mrf.mxu0 }
 0x4c9   :  { %v8261_v12 = vadd.f32 %v8260_v14, %v13574_v50 }
 0x4ca   :  { %v8262_v28 = vpop.f32.mrf.mxu0 }
 0x4cb   :  { %v8263_v48 = vadd.f32 %v8262_v28, %v13571_v17 }
 0x4cc   :  { %v8264_v13 = vpop.f32.mrf.mxu0 }
 0x4cd   :  { %v8265_v36 = vadd.f32 %v8264_v13, %v13574_v50 }
 0x4ce   :  { %v8266_v29 = vpop.f32.mrf.mxu0 }
 0x4cf   :  { %v8267_v35 = vadd.f32 %v8266_v29, %v13571_v17 }
 0x4d0   :  { %v8270_v57 = vpop.f32.mrf.mxu0 }
 0x4d1   :  { %v8271_v61 = vadd.f32 %v8270_v57, %v13574_v50 }
 0x4d2   :  { %v8272_v63 = vpop.f32.mrf.mxu0 }
 0x4d3   :  { %v8273_v32 = vadd.f32 %v8272_v63, %v13571_v17 }
 0x4d4   :  { %v8274_v1 = vpop.f32.mrf.mxu0 }
 0x4d5   :  { %v8275_v59 = vadd.f32 %v8274_v1, %v13574_v50 }
 0x4d6   :  { %v8276_v16 = vpop.f32.mrf.mxu0 }
 0x4d7   :  { %v8277_v60 = vadd.f32 %v8276_v16, %v13571_v17 }
 0x4d8   :  { %v13556_v2 = vpop.f32.mrf.mxu0 }
 0x4d9   :  { %v8281_v55 = vadd.f32 %v13556_v2, %v13574_v50 }
 0x4da   :  { %v8282_v15 = vpop.f32.mrf.mxu0 }
 0x4db   :  { %v8283_v28 = vadd.f32 %v8282_v15, %v13571_v17 }
 0x4dc   :  { %v13558_v44 = vpop.f32.mrf.mxu0 }
 0x4dd   :  { %v8285_v1 = vadd.f32 %v13558_v44, %v13574_v50 }
 0x4de   :  { %v13560_v0 = vpop.f32.mrf.mxu0 }
 0x4e0   :  { %v13562_v24 = vpop.f32.mrf.mxu0 }
 0x4e2   :  { %v13564_v11 = vpop.f32.mrf.mxu0 }
 0x4e4   :  { %v13566_v58 = vpop.f32.mrf.mxu0 }
 0x4e6   :  { %v13568_v37 = vpop.f32.mrf.mxu0 }
 0x4e8   :  { %v13576_v26 = vpop.f32.mrf.mxu0 }
 0x4ea   :  { %v13580_v27 = vpop.f32.mrf.mxu0 }
 0x4ec   :  { %v13584_v31 = vpop.f32.mrf.mxu0 }
 0x4ee   :  { %v13588_v41 = vpop.f32.mrf.mxu0 }
 0x4f0   :  { %v13592_v6 = vpop.f32.mrf.mxu0 }
 0x4f2   :  { %v13597_v29 = vpop.f32.mrf.mxu0 }
 0x4f4   :  { %v13603_v2 = vpop.f32.mrf.mxu0 }
 0x549   :  { %v8373_v34 = vpop.f32.mrf.mxu1 }
 0x54a   :  { %v8374_v8 = vadd.f32 %v8373_v34, %v8261_v12  ;;  %v8287_v12 = vadd.f32 %v13560_v0, %v13571_v17 }
 0x54b   :  { %v8375_v62 = vpop.f32.mrf.mxu1 }
 0x54c   :  { %v8376_v25 = vadd.f32 %v8375_v62, %v8263_v48  ;;  %v8484_v33 = vmul.f32 0.2, %v8374_v8  ;;  %vm8452_vm6 = vcmp.gt.f32.partialorder %v8374_v8, 0.0 }
 0x54d   :  { %v8377_v45 = vpop.f32.mrf.mxu1 }
 0x54e   :  { %v8378_v23 = vadd.f32 %v8377_v45, %v8265_v36  ;;  %v8485_v43 = vmul.f32 0.2, %v8376_v25  ;;  %vm8453_vm5 = vcmp.gt.f32.partialorder %v8376_v25, 0.0  ;;  %v8516_v10 = vsel %vm8452_vm6, %v8374_v8, %v8484_v33 }
 0x54f   :  { %v8379_v5 = vpop.f32.mrf.mxu1 }
 0x550   :  { %vm8454_vm0 = vcmp.gt.f32.partialorder %v8378_v23, 0.0  ;;  %v8486_v39 = vmul.f32 0.2, %v8378_v23  ;;  %v8380_v49 = vadd.f32 %v8379_v5, %v8267_v35  ;;  %v8517_v30 = vsel %vm8453_vm5, %v8376_v25, %v8485_v43 }
 0x551   :  { %v8383_v20 = vpop.f32.mrf.mxu1  ;;  %v8293_v5 = vadd.f32 %v13564_v11, %v13571_v17  ;;  %v8291_v43 = vadd.f32 %v13562_v24, %v13574_v50 }
 0x552   :  { %vm8455_vm7 = vcmp.gt.f32.partialorder %v8380_v49, 0.0  ;;  %v8487_v53 = vmul.f32 0.2, %v8380_v49  ;;  %v8518_v52 = vsel %vm8454_vm0, %v8378_v23, %v8486_v39  ;;  %v8384_v9 = vadd.f32 %v8383_v20, %v8271_v61  ;;  %v13609_v39 = vpop.f32.mrf.mxu0 }
 0x553   :  { %v8385_v54 = vpop.f32.mrf.mxu1  ;;  %v8548_v7 = vpack.c.bf16 %v8518_v52, %v8516_v10  ;;  %v8295_v20 = vadd.f32 %v13566_v58, %v13574_v50 }
 0x554   :  { %v8386_v21 = vadd.f32 %v8385_v54, %v8273_v32  ;;  %v8519_v18 = vsel %vm8455_vm7, %v8380_v49, %v8487_v53  ;;  %v8488_v51 = vmul.f32 0.2, %v8384_v9  ;;  %vm8456_vm10 = vcmp.gt.f32.partialorder %v8384_v9, 0.0  ;;  %v13615_v24 = vpop.f32.mrf.mxu0 }
 0x555   :  { %v8387_v56 = vpop.f32.mrf.mxu1  ;;  %v8549_v38 = vpack.c.bf16 %v8519_v18, %v8517_v30 }
 0x556   :  { %v8388_v4 = vadd.f32 %v8387_v56, %v8275_v59  ;;  %v8489_v46 = vmul.f32 0.2, %v8386_v21  ;;  %vm8457_vm9 = vcmp.gt.f32.partialorder %v8386_v21, 0.0  ;;  %v8520_v42 = vsel %vm8456_vm10, %v8384_v9, %v8488_v51 }
 0x557   :  { %v8389_v19 = vpop.f32.mrf.mxu1  ;;  %8734 = vmatprep.mubr.bf16.mxu0 %v8549_v38 }
 0x558   :  { %vm8458_vm8 = vcmp.gt.f32.partialorder %v8388_v4, 0.0  ;;  %v8490_v22 = vmul.f32 0.2, %v8388_v4  ;;  %v8390_v40 = vadd.f32 %v8389_v19, %v8277_v60  ;;  %8735 = vmatmul.mubr.bf16.vlgmr.msra.gmra.mxu0 %v8548_v7  ;;  %v8521_v3 = vsel %vm8457_vm9, %v8386_v21, %v8489_v46  ;;  %v8322_v19 = vpop.f32.mrf.mxu0 }
 0x559   :  { %v8393_v14 = vpop.f32.mrf.mxu1  ;;  %v8297_v21 = vadd.f32 %v13568_v37, %v13571_v17  ;;  %v8303_v7 = vadd.f32 %v13580_v27, %v13571_v17  ;;  %v8307_v27 = vadd.f32 %v13588_v41, %v13571_v17  ;;  %v8311_v41 = vadd.f32 %v13592_v6, %v13574_v50 }
 0x55a   :  { %vm8459_vm11 = vcmp.gt.f32.partialorder %v8390_v40, 0.0  ;;  %v8491_v13 = vmul.f32 0.2, %v8390_v40  ;;  %v8522_v57 = vsel %vm8458_vm8, %v8388_v4, %v8490_v22  ;;  %v8394_v34 = vadd.f32 %v8393_v14, %v8281_v55 }
 0x55b   :  { %v8395_v63 = vpop.f32.mrf.mxu1  ;;  %v8550_v62 = vpack.c.bf16 %v8522_v57, %v8520_v42  ;;  %v8301_v4 = vadd.f32 %v13576_v26, %v13574_v50 }
 0x55c   :  { %v8396_v16 = vadd.f32 %v8395_v63, %v8283_v28  ;;  %v8523_v47 = vsel %vm8459_vm11, %v8390_v40, %v8491_v13  ;;  %v8492_v35 = vmul.f32 0.2, %v8394_v34  ;;  %vm8460_vm14 = vcmp.gt.f32.partialorder %v8394_v34, 0.0 }
 0x55d   :  { %v8397_v48 = vpop.f32.mrf.mxu1  ;;  %v8551_v15 = vpack.c.bf16 %v8523_v47, %v8521_v3  ;;  %v8305_v40 = vadd.f32 %v13584_v31, %v13574_v50  ;;  %v8324_v3 = vpop.f32.mrf.mxu0 }
 0x55e   :  { %v8398_v36 = vadd.f32 %v8397_v48, %v8285_v1  ;;  %v8493_v8 = vmul.f32 0.2, %v8396_v16  ;;  %vm8461_vm13 = vcmp.gt.f32.partialorder %v8396_v16, 0.0  ;;  %v8524_v52 = vsel %vm8460_vm14, %v8394_v34, %v8492_v35 }
 0x55f   :  { %v8399_v25 = vpop.f32.mrf.mxu1  ;;  %8742 = vmatprep.mubr.bf16.mxu0 %v8551_v15  ;;  %v8313_v15 = vadd.f32 %v13597_v29, %v13571_v17  ;;  %v8317_v29 = vadd.f32 %v13609_v39, %v13571_v17  ;;  %v8321_v39 = vadd.f32 %v13615_v24, %v13574_v50 }
 0x560   :  { %vm8462_vm12 = vcmp.gt.f32.partialorder %v8398_v36, 0.0  ;;  %v8494_v45 = vmul.f32 0.2, %v8398_v36  ;;  %v8400_v44 = vadd.f32 %v8399_v25, %v8287_v12  ;;  %8743 = vmatmul.mubr.bf16.gmra.mxu0 %v8550_v62  ;;  %v8525_v53 = vsel %vm8461_vm13, %v8396_v16, %v8493_v8  ;;  %v8326_v62 = vpop.f32.mrf.mxu0 }
 0x561   :  { %v8403_v23 = vpop.f32.mrf.mxu1  ;;  %v8315_v8 = vadd.f32 %v13603_v2, %v13574_v50 }
 0x562   :  { %vm8463_vm15 = vcmp.gt.f32.partialorder %v8400_v44, 0.0  ;;  %v8495_v0 = vmul.f32 0.2, %v8400_v44  ;;  %v8526_v49 = vsel %vm8462_vm12, %v8398_v36, %v8494_v45  ;;  %v8404_v54 = vadd.f32 %v8403_v23, %v8291_v43 }
 0x563   :  { %v8405_v33 = vpop.f32.mrf.mxu1  ;;  %v8552_v30 = vpack.c.bf16 %v8526_v49, %v8524_v52 }
 0x564   :  { %v8406_v32 = vadd.f32 %v8405_v33, %v8293_v5  ;;  %v8527_v61 = vsel %vm8463_vm15, %v8400_v44, %v8495_v0  ;;  %v8496_v38 = vmul.f32 0.2, %v8404_v54  ;;  %vm8464_vm3 = vcmp.gt.f32.partialorder %v8404_v54, 0.0 }
 0x565   :  { %v8407_v59 = vpop.f32.mrf.mxu1  ;;  %v8553_v11 = vpack.c.bf16 %v8527_v61, %v8525_v53 }
 0x566   :  { %v8408_v18 = vadd.f32 %v8407_v59, %v8295_v20  ;;  %v8497_v9 = vmul.f32 0.2, %v8406_v32  ;;  %vm8465_vm2 = vcmp.gt.f32.partialorder %v8406_v32, 0.0  ;;  %v8528_v13 = vsel %vm8464_vm3, %v8404_v54, %v8496_v38  ;;  %v8330_v20 = vpop.f32.mrf.mxu0 }
 0x567   :  { %v8409_v10 = vpop.f32.mrf.mxu1  ;;  %8750 = vmatprep.mubr.bf16.mxu0 %v8553_v11  ;;  %v8323_v54 = vadd.f32 %v8322_v19, %v13571_v17 }
 0x568   :  { %vm8466_vm1 = vcmp.gt.f32.partialorder %v8408_v18, 0.0  ;;  %v8498_v56 = vmul.f32 0.2, %v8408_v18  ;;  %v8410_v58 = vadd.f32 %v8409_v10, %v8297_v21  ;;  %8751 = vmatmul.mubr.bf16.gmra.mxu0 %v8552_v30  ;;  %v8529_v14 = vsel %vm8465_vm2, %v8406_v32, %v8497_v9  ;;  %v8332_v11 = vpop.f32.mrf.mxu0 }
 0x569   :  { %v8413_v60 = vpop.f32.mrf.mxu1 }
 0x56a   :  { %vm8467_vm4 = vcmp.gt.f32.partialorder %v8410_v58, 0.0  ;;  %v8499_v37 = vmul.f32 0.2, %v8410_v58  ;;  %v8530_v46 = vsel %vm8466_vm1, %v8408_v18, %v8498_v56  ;;  %v8414_v55 = vadd.f32 %v8413_v60, %v8301_v4 }
 0x56b   :  { %v8415_v22 = vpop.f32.mrf.mxu1  ;;  %v8554_v1 = vpack.c.bf16 %v8530_v46, %v8528_v13  ;;  %v8325_v18 = vadd.f32 %v8324_v3, %v13574_v50  ;;  %v8334_v46 = vpop.f32.mrf.mxu0  ;;  %v8333_v13 = vadd.f32 %v8332_v11, %v13571_v17 }
 0x56c   :  { %v8416_v51 = vadd.f32 %v8415_v22, %v8303_v7  ;;  %v8531_v28 = vsel %vm8467_vm4, %v8410_v58, %v8499_v37  ;;  %v8500_v31 = vmul.f32 0.2, %v8414_v55  ;;  %vm8468_vm6 = vcmp.gt.f32.partialorder %v8414_v55, 0.0 }
 0x56d   :  { %v8417_v57 = vpop.f32.mrf.mxu1  ;;  %v8555_v63 = vpack.c.bf16 %v8531_v28, %v8529_v14  ;;  %v8327_v37 = vadd.f32 %v8326_v62, %v13571_v17 }
 0x56e   :  { %v8418_v16 = vadd.f32 %v8417_v57, %v8305_v40  ;;  %v8501_v47 = vmul.f32 0.2, %v8416_v51  ;;  %vm8469_vm5 = vcmp.gt.f32.partialorder %v8416_v51, 0.0  ;;  %v8532_v23 = vsel %vm8468_vm6, %v8414_v55, %v8500_v31 }
 0x56f   :  { %v8419_v26 = vpop.f32.mrf.mxu1  ;;  %8758 = vmatprep.mubr.bf16.mxu0 %v8555_v63  ;;  %v8331_v57 = vadd.f32 %v8330_v20, %v13574_v50  ;;  %v8336_v63 = vpop.f32.mrf.mxu0 }
 0x570   :  { %vm8470_vm0 = vcmp.gt.f32.partialorder %v8418_v16, 0.0  ;;  %v8502_v42 = vmul.f32 0.2, %v8418_v16  ;;  %v8420_v34 = vadd.f32 %v8419_v26, %v8307_v27  ;;  %8759 = vmatmul.mubr.bf16.gmra.mxu0 %v8554_v1  ;;  %v8533_v44 = vsel %vm8469_vm5, %v8416_v51, %v8501_v47 }
 0x571   :  { %v8423_v48 = vpop.f32.mrf.mxu1 }
 0x572   :  { %vm8471_vm7 = vcmp.gt.f32.partialorder %v8420_v34, 0.0  ;;  %v8503_v12 = vmul.f32 0.2, %v8420_v34  ;;  %v8534_v36 = vsel %vm8470_vm0, %v8418_v16, %v8502_v42  ;;  %v8424_v5 = vadd.f32 %v8423_v48, %v8311_v41 }
 0x573   :  { %v8425_v25 = vpop.f32.mrf.mxu1  ;;  %v8556_v49 = vpack.c.bf16 %v8534_v36, %v8532_v23  ;;  %v8335_v16 = vadd.f32 %v8334_v46, %v13574_v50 }
 0x574   :  { %v8426_v45 = vadd.f32 %v8425_v25, %v8313_v15  ;;  %v8535_v35 = vsel %vm8471_vm7, %v8420_v34, %v8503_v12  ;;  %v8504_v2 = vmul.f32 0.2, %v8424_v5  ;;  %vm8472_vm10 = vcmp.gt.f32.partialorder %v8424_v5, 0.0 }
 0x575   :  { %v8427_v0 = vpop.f32.mrf.mxu1  ;;  %v8557_v43 = vpack.c.bf16 %v8535_v35, %v8533_v44  ;;  %v8337_v15 = vadd.f32 %v8336_v63, %v13571_v17 }
 0x576   :  { %v8428_v33 = vadd.f32 %v8427_v0, %v8315_v8  ;;  %v8505_v32 = vmul.f32 0.2, %v8426_v45  ;;  %vm8473_vm9 = vcmp.gt.f32.partialorder %v8426_v45, 0.0  ;;  %v8536_v58 = vsel %vm8472_vm10, %v8424_v5, %v8504_v2 }
 0x577   :  { %v8429_v6 = vpop.f32.mrf.mxu1  ;;  %8766 = vmatprep.mubr.bf16.mxu1 %v8557_v43 }
 0x578   :  { %vm8474_vm8 = vcmp.gt.f32.partialorder %v8428_v33, 0.0  ;;  %v8506_v53 = vmul.f32 0.2, %v8428_v33  ;;  %v8430_v61 = vadd.f32 %v8429_v6, %v8317_v29  ;;  %8767 = vmatmul.mubr.bf16.vlgmr.msra.gmra.mxu1 %v8556_v49  ;;  %v8537_v9 = vsel %vm8473_vm9, %v8426_v45, %v8505_v32  ;;  %v13642_v49 = vpop.permute.xlu0 %8603 }
 0x579   :  { %v8433_v52 = vpop.f32.mrf.mxu1 }
 0x57a   :  { %vm8475_vm11 = vcmp.gt.f32.partialorder %v8430_v61, 0.0  ;;  %v8507_v59 = vmul.f32 0.2, %v8430_v61  ;;  %v8538_v21 = vsel %vm8474_vm8, %v8428_v33, %v8506_v53  ;;  %v8434_v38 = vadd.f32 %v8433_v52, %v8321_v39 }
 0x57b   :  { %v8435_v30 = vpop.f32.mrf.mxu1  ;;  %v8558_v4 = vpack.c.bf16 %v8538_v21, %v8536_v58 }
 0x57c   :  { %v8436_v10 = vadd.f32 %v8435_v30, %v8323_v54  ;;  %v8539_v56 = vsel %vm8475_vm11, %v8430_v61, %v8507_v59  ;;  %v8508_v14 = vmul.f32 0.2, %v8434_v38  ;;  %vm8476_vm14 = vcmp.gt.f32.partialorder %v8434_v38, 0.0 }
 0x57d   :  { %v8437_v60 = vpop.f32.mrf.mxu1  ;;  %v8559_v7 = vpack.c.bf16 %v8539_v56, %v8537_v9 }
 0x57e   :  { %v8438_v19 = vadd.f32 %v8437_v60, %v8325_v18  ;;  %v8509_v24 = vmul.f32 0.2, %v8436_v10  ;;  %vm8477_vm13 = vcmp.gt.f32.partialorder %v8436_v10, 0.0  ;;  %v8540_v42 = vsel %vm8476_vm14, %v8434_v38, %v8508_v14 }
 0x57f   :  { %v8439_v22 = vpop.f32.mrf.mxu1  ;;  %8774 = vmatprep.mubr.bf16.mxu1 %v8559_v7 }
 0x580   :  { %vm8478_vm12 = vcmp.gt.f32.partialorder %v8438_v19, 0.0  ;;  %v8510_v40 = vmul.f32 0.2, %v8438_v19  ;;  %v8440_v51 = vadd.f32 %v8439_v22, %v8327_v37  ;;  %8775 = vmatmul.mubr.bf16.gmra.mxu1 %v8558_v4  ;;  %v8541_v26 = vsel %vm8477_vm13, %v8436_v10, %v8509_v24 }
 0x581   :  { %v8443_v28 = vpop.f32.mrf.mxu1 }
 0x582   :  { %vm8479_vm15 = vcmp.gt.f32.partialorder %v8440_v51, 0.0  ;;  %v8511_v55 = vmul.f32 0.2, %v8440_v51  ;;  %v8542_v27 = vsel %vm8478_vm12, %v8438_v19, %v8510_v40  ;;  %v8444_v34 = vadd.f32 %v8443_v28, %v8331_v57 }
 0x583   :  { %v8445_v1 = vpop.f32.mrf.mxu1  ;;  %v8560_v12 = vpack.c.bf16 %v8542_v27, %v8540_v42 }
 0x584   :  { %v8446_v3 = vadd.f32 %v8445_v1, %v8333_v13  ;;  %v8543_v47 = vsel %vm8479_vm15, %v8440_v51, %v8511_v55  ;;  %v8512_v45 = vmul.f32 0.2, %v8444_v34  ;;  %vm8480_vm3 = vcmp.gt.f32.partialorder %v8444_v34, 0.0 }
 0x585   :  { %v8447_v31 = vpop.f32.mrf.mxu1  ;;  %v8561_v48 = vpack.c.bf16 %v8543_v47, %v8541_v26 }
 0x586   :  { %v8448_v41 = vadd.f32 %v8447_v31, %v8335_v16  ;;  %v8513_v36 = vmul.f32 0.2, %v8446_v3  ;;  %vm8481_vm2 = vcmp.gt.f32.partialorder %v8446_v3, 0.0  ;;  %v8544_v5 = vsel %vm8480_vm3, %v8444_v34, %v8512_v45 }
 0x587   :  { %v8449_v62 = vpop.f32.mrf.mxu1  ;;  %8782 = vmatprep.mubr.bf16.mxu1 %v8561_v48 }
 0x588   :  { %vm8482_vm1 = vcmp.gt.f32.partialorder %v8448_v41, 0.0  ;;  %v8514_v25 = vmul.f32 0.2, %v8448_v41  ;;  %v8450_v8 = vadd.f32 %v8449_v62, %v8337_v15  ;;  %8783 = vmatmul.mubr.bf16.gmra.mxu1 %v8560_v12  ;;  %v8545_v35 = vsel %vm8481_vm2, %v8446_v3, %v8513_v36 }
 0x58a   :  { %vm8483_vm4 = vcmp.gt.f32.partialorder %v8450_v8, 0.0  ;;  %v8515_v50 = vmul.f32 0.2, %v8450_v8  ;;  %v8546_v44 = vsel %vm8482_vm1, %v8448_v41, %v8514_v25 }
 0x58b   :  { %v8562_v17 = vpack.c.bf16 %v8546_v44, %v8544_v5 }
 0x58c   :  { %v8547_v23 = vsel %vm8483_vm4, %v8450_v8, %v8515_v50 }
 0x58d   :  { %v8563_v0 = vpack.c.bf16 %v8547_v23, %v8545_v35 }
 0x58f   :  { %8790 = vmatprep.mubr.bf16.mxu1 %v8563_v0 }
 0x590   :  { %8791 = vmatmul.mubr.bf16.gmra.mxu1 %v8562_v17 }
 0x618   :  { %v9939_v43 = vpop.f32.mrf.mxu0 }
 0x61a   :  { %v9940_v29 = vpop.f32.mrf.mxu0 }
 0x61b   :  { %v9941_v33 = vadd.f32 %v9940_v29, %v9939_v43 }
 0x61c   :  { %v9942_v20 = vpop.f32.mrf.mxu0 }
 0x61d   :  { %v8737_v6 = vadd.f32 %v9941_v33, %v13642_v49 }
 0x61e   :  { %v9943_v32 = vpop.f32.mrf.mxu0 }
 0x61f   :  { %v9944_v53 = vadd.f32 %v9943_v32, %v9942_v20  ;;  %v9828_v61 = vclamps-f32 %v8737_v6, 30.0 }
 0x620   :  { %v9945_v2 = vpop.f32.mrf.mxu0 }
 0x621   :  { %v8740_v52 = vadd.f32 %v9944_v53, %v13642_v49  ;;  %v8831_v54 = vsub.f32 0.0, %v9828_v61 }
 0x622   :  { %v9946_v59 = vpop.f32.mrf.mxu0 }
 0x623   :  { %v9829_v39 = vclamps-f32 %v8740_v52, 30.0  ;;  %v8847_v11 = vmul.f32 1.442695, %v8831_v54  ;;  %v9947_v21 = vadd.f32 %v9946_v59, %v9945_v2 }
 0x624   :  { %v9948_v30 = vpop.f32.mrf.mxu0 }
 0x625   :  { %v8832_v18 = vsub.f32 0.0, %v9829_v39  ;;  %10597 = vpow2.f32 %v8847_v11  ;;  %v8745_v10 = vadd.f32 %v9947_v21, %v13642_v49 }
 0x626   :  { %v9949_v9 = vpop.f32.mrf.mxu0 }
 0x627   :  { %v8849_v56 = vmul.f32 1.442695, %v8832_v18  ;;  %v9830_v58 = vclamps-f32 %v8745_v10, 30.0  ;;  %v9950_v38 = vadd.f32 %v9949_v9, %v9948_v30 }
 0x628   :  { %v9951_v60 = vpop.f32.mrf.mxu0 }
 0x629   :  { %10599 = vpow2.f32 %v8849_v56  ;;  %v8833_v7 = vsub.f32 0.0, %v9830_v58  ;;  %v8748_v37 = vadd.f32 %v9950_v38, %v13642_v49 }
 0x62a   :  { %v9952_v4 = vpop.f32.mrf.mxu0 }
 0x62b   :  { %v8851_v19 = vmul.f32 1.442695, %v8833_v7  ;;  %v9831_v46 = vclamps-f32 %v8748_v37, 30.0  ;;  %v9953_v22 = vadd.f32 %v9952_v4, %v9951_v60 }
 0x62c   :  { %v9954_v24 = vpop.f32.mrf.mxu0 }
 0x62d   :  { %10601 = vpow2.f32 %v8851_v19  ;;  %v8834_v40 = vsub.f32 0.0, %v9831_v46  ;;  %v8753_v51 = vadd.f32 %v9953_v22, %v13642_v49 }
 0x62e   :  { %v9955_v14 = vpop.f32.mrf.mxu0 }
 0x62f   :  { %v8853_v28 = vmul.f32 1.442695, %v8834_v40  ;;  %v9832_v13 = vclamps-f32 %v8753_v51, 30.0  ;;  %v9956_v55 = vadd.f32 %v9955_v14, %v9954_v24 }
 0x630   :  { %v9957_v57 = vpop.f32.mrf.mxu0 }
 0x631   :  { %10603 = vpow2.f32 %v8853_v28  ;;  %v8835_v63 = vsub.f32 0.0, %v9832_v13  ;;  %v8756_v27 = vadd.f32 %v9956_v55, %v13642_v49 }
 0x632   :  { %v10598_v1 = vpop.eup %10597  ;;  %v9958_v16 = vpop.f32.mrf.mxu0 }
 0x633   :  { %v8855_v3 = vmul.f32 1.442695, %v8835_v63  ;;  %v9833_v26 = vclamps-f32 %v8756_v27, 30.0  ;;  %v9959_v47 = vadd.f32 %v9958_v16, %v9957_v57  ;;  %v8879_v42 = vadd.f32 1.0, %v10598_v1 }
 0x634   :  { %v9960_v34 = vpop.f32.mrf.mxu0 }
 0x635   :  { %v8836_v31 = vsub.f32 0.0, %v9833_v26  ;;  %v8761_v48 = vadd.f32 %v9959_v47, %v13642_v49  ;;  %10605 = vpow2.f32 %v8855_v3 }
 0x636   :  { %v10600_v15 = vpop.eup %10599  ;;  %v9961_v12 = vpop.f32.mrf.mxu0  ;;  %10607 = vrcp.f32 %v8879_v42 }
 0x637   :  { %v8880_v41 = vadd.f32 1.0, %v10600_v15  ;;  %v8857_v62 = vmul.f32 1.442695, %v8836_v31  ;;  %v9834_v36 = vclamps-f32 %v8761_v48, 30.0  ;;  %v9962_v25 = vadd.f32 %v9961_v12, %v9960_v34 }
 0x638   :  { %v9963_v8 = vpop.f32.mrf.mxu1 }
 0x639   :  { %10609 = vrcp.f32 %v8880_v41  ;;  %v8837_v45 = vsub.f32 0.0, %v9834_v36  ;;  %v8764_v50 = vadd.f32 %v9962_v25, %v13642_v49 }
 0x63a   :  { %v10602_v44 = vpop.eup %10601  ;;  %10611 = vpow2.f32 %v8857_v62  ;;  %v9964_v35 = vpop.f32.mrf.mxu1 }
 0x63b   :  { %v8859_v23 = vmul.f32 1.442695, %v8837_v45  ;;  %v9835_v5 = vclamps-f32 %v8764_v50, 30.0  ;;  %v9965_v0 = vadd.f32 %v9964_v35, %v9963_v8  ;;  %v8881_v17 = vadd.f32 1.0, %v10602_v44 }
 0x63c   :  { %v9966_v43 = vpop.f32.mrf.mxu1 }
 0x63d   :  { %v8838_v29 = vsub.f32 0.0, %v9835_v5  ;;  %v8769_v33 = vadd.f32 %v9965_v0, %v13642_v49  ;;  %10613 = vpow2.f32 %v8859_v23 }
 0x63e   :  { %v10604_v20 = vpop.eup %10603  ;;  %v9967_v6 = vpop.f32.mrf.mxu1  ;;  %10615 = vrcp.f32 %v8881_v17 }
 0x63f   :  { %v8882_v32 = vadd.f32 1.0, %v10604_v20  ;;  %v8861_v53 = vmul.f32 1.442695, %v8838_v29  ;;  %v9836_v61 = vclamps-f32 %v8769_v33, 30.0  ;;  %v9968_v2 = vadd.f32 %v9967_v6, %v9966_v43 }
 0x640   :  { %v9969_v52 = vpop.f32.mrf.mxu1 }
 0x641   :  { %10617 = vrcp.f32 %v8882_v32  ;;  %v8839_v54 = vsub.f32 0.0, %v9836_v61  ;;  %v8772_v59 = vadd.f32 %v9968_v2, %v13642_v49 }
 0x642   :  { %10619 = vpow2.f32 %v8861_v53  ;;  %v9970_v39 = vpop.f32.mrf.mxu1  ;;  %v10606_v11 = vpop.eup %10605 }
 0x643   :  { %v8863_v21 = vmul.f32 1.442695, %v8839_v54  ;;  %v9837_v30 = vclamps-f32 %v8772_v59, 30.0  ;;  %v9971_v18 = vadd.f32 %v9970_v39, %v9969_v52  ;;  %v8883_v10 = vadd.f32 1.0, %v10606_v11  ;;  %v10608_v56 = vpop.eup %10607 }
 0x644   :  { %v9972_v9 = vpop.f32.mrf.mxu1 }
 0x645   :  { %10621 = vpow2.f32 %v8863_v21  ;;  %v8840_v58 = vsub.f32 0.0, %v9837_v30  ;;  %v8777_v38 = vadd.f32 %v9971_v18, %v13642_v49 }
 0x646   :  { %v10610_v60 = vpop.eup %10609  ;;  %v9973_v7 = vpop.f32.mrf.mxu1  ;;  %10623 = vrcp.f32 %v8883_v10 }
 0x647   :  { %v10612_v37 = vpop.eup %10611  ;;  %v9879_v4 = vpack.c.bf16 %v10610_v60, %v10608_v56  ;;  %v8865_v19 = vmul.f32 1.442695, %v8840_v58  ;;  %v9838_v46 = vclamps-f32 %v8777_v38, 30.0  ;;  %v9974_v22 = vadd.f32 %v9973_v7, %v9972_v9 }
 0x648   :  { %v8884_v24 = vadd.f32 1.0, %v10612_v37  ;;  %v9975_v40 = vpop.f32.mrf.mxu1 }
 0x649   :  { %9880 = vst [vmem:[#allocation15] sm:$0xff] %v9879_v4   ;;  %10625 = vpow2.f32 %v8865_v19  ;;  %v8841_v51 = vsub.f32 0.0, %v9838_v46  ;;  %v8780_v14 = vadd.f32 %v9974_v22, %v13642_v49 }
 0x64a   :  { %10627 = vrcp.f32 %v8884_v24  ;;  %v9976_v28 = vpop.f32.mrf.mxu1  ;;  %v10614_v13 = vpop.eup %10613 }
 0x64b   :  { %v8867_v55 = vmul.f32 1.442695, %v8841_v51  ;;  %v9839_v57 = vclamps-f32 %v8780_v14, 30.0  ;;  %v9977_v63 = vadd.f32 %v9976_v28, %v9975_v40  ;;  %v8885_v27 = vadd.f32 1.0, %v10614_v13  ;;  %v10616_v16 = vpop.eup %10615 }
 0x64c   :  { %v9978_v1 = vpop.f32.mrf.mxu1 }
 0x64d   :  { %10629 = vpow2.f32 %v8867_v55  ;;  %v8842_v3 = vsub.f32 0.0, %v9839_v57  ;;  %v8785_v26 = vadd.f32 %v9977_v63, %v13642_v49 }
 0x64e   :  { %v10618_v47 = vpop.eup %10617  ;;  %v9979_v42 = vpop.f32.mrf.mxu1  ;;  %10631 = vrcp.f32 %v8885_v27 }
 0x64f   :  { %v10620_v34 = vpop.eup %10619  ;;  %v9884_v31 = vpack.c.bf16 %v10618_v47, %v10616_v16  ;;  %v8869_v48 = vmul.f32 1.442695, %v8842_v3  ;;  %v9840_v15 = vclamps-f32 %v8785_v26, 30.0  ;;  %v9980_v12 = vadd.f32 %v9979_v42, %v9978_v1 }
 0x650   :  { %v8886_v41 = vadd.f32 1.0, %v10620_v34  ;;  %v9981_v62 = vpop.f32.mrf.mxu1 }
 0x651   :  { %9916 = vst [vmem:[#allocation15 + $0x8] sm:$0xff] %v9884_v31   ;;  %10633 = vpow2.f32 %v8869_v48  ;;  %v8843_v36 = vsub.f32 0.0, %v9840_v15  ;;  %v8788_v25 = vadd.f32 %v9980_v12, %v13642_v49 }
 0x652   :  { %v10622_v8 = vpop.eup %10621  ;;  %10635 = vrcp.f32 %v8886_v41  ;;  %v9982_v45 = vpop.f32.mrf.mxu1 }
 0x653   :  { %v8871_v50 = vmul.f32 1.442695, %v8843_v36  ;;  %v9841_v44 = vclamps-f32 %v8788_v25, 30.0  ;;  %v9983_v35 = vadd.f32 %v9982_v45, %v9981_v62  ;;  %v8887_v23 = vadd.f32 1.0, %v10622_v8  ;;  %v10624_v0 = vpop.eup %10623 }
 0x654   :  { %v9984_v5 = vpop.f32.mrf.mxu1 }
 0x655   :  { %v8844_v17 = vsub.f32 0.0, %v9841_v44  ;;  %v8793_v43 = vadd.f32 %v9983_v35, %v13642_v49  ;;  %10637 = vpow2.f32 %v8871_v50 }
 0x656   :  { %v10626_v29 = vpop.eup %10625  ;;  %v9985_v33 = vpop.f32.mrf.mxu1  ;;  %10639 = vrcp.f32 %v8887_v23 }
 0x657   :  { %v10628_v20 = vpop.eup %10627  ;;  %v8888_v6 = vadd.f32 1.0, %v10626_v29  ;;  %v8873_v32 = vmul.f32 1.442695, %v8844_v17  ;;  %v9842_v53 = vclamps-f32 %v8793_v43, 30.0  ;;  %v9986_v61 = vadd.f32 %v9985_v33, %v9984_v5 }
 0x658   :  { %v9889_v2 = vpack.c.bf16 %v10628_v20, %v10624_v0 }
 0x659   :  { %10641 = vrcp.f32 %v8888_v6  ;;  %v8845_v52 = vsub.f32 0.0, %v9842_v53  ;;  %v8796_v54 = vadd.f32 %v9986_v61, %v13642_v49 }
 0x65a   :  { %v10630_v59 = vpop.eup %10629  ;;  %9917 = vst [vmem:[#allocation15 + $0x10] sm:$0xff] %v9889_v2   ;;  %10643 = vpow2.f32 %v8873_v32 }
 0x65b   :  { %v8875_v39 = vmul.f32 1.442695, %v8845_v52  ;;  %v9843_v11 = vclamps-f32 %v8796_v54, 30.0  ;;  %v8889_v21 = vadd.f32 1.0, %v10630_v59  ;;  %v10632_v30 = vpop.eup %10631 }
 0x65d   :  { %v8846_v18 = vsub.f32 0.0, %v9843_v11  ;;  %10645 = vpow2.f32 %v8875_v39 }
 0x65e   :  { %v10634_v10 = vpop.eup %10633  ;;  %10647 = vrcp.f32 %v8889_v21 }
 0x65f   :  { %v10636_v9 = vpop.eup %10635  ;;  %v8890_v56 = vadd.f32 1.0, %v10634_v10  ;;  %v8877_v58 = vmul.f32 1.442695, %v8846_v18 }
 0x660   :  { %v9894_v38 = vpack.c.bf16 %v10636_v9, %v10632_v30 }
 0x661   :  { %10649 = vrcp.f32 %v8890_v56 }
 0x662   :  { %9918 = vst [vmem:[#allocation15 + $0x18] sm:$0xff] %v9894_v38   ;;  %10651 = vpow2.f32 %v8877_v58  ;;  %v10638_v60 = vpop.eup %10637 }
 0x663   :  { %v10640_v49 = vpop.eup %10639  ;;  %v8891_v7 = vadd.f32 1.0, %v10638_v60 }
 0x665   :  { %10653 = vrcp.f32 %v8891_v7 }
 0x666   :  { %v10642_v37 = vpop.eup %10641 }
 0x667   :  { %v10644_v4 = vpop.eup %10643  ;;  %v9899_v19 = vpack.c.bf16 %v10642_v37, %v10640_v49 }
 0x668   :  { %v8892_v46 = vadd.f32 1.0, %v10644_v4 }
 0x669   :  { %9919 = vst [vmem:[#allocation15 + $0x20] sm:$0xff] %v9899_v19  }
 0x66a   :  { %10655 = vrcp.f32 %v8892_v46  ;;  %v10646_v22 = vpop.eup %10645 }
 0x66b   :  { %v10648_v24 = vpop.eup %10647  ;;  %v8893_v40 = vadd.f32 1.0, %v10646_v22 }
 0x66d   :  { %10657 = vrcp.f32 %v8893_v40 }
 0x66e   :  { %v10650_v51 = vpop.eup %10649 }
 0x66f   :  { %v10652_v14 = vpop.eup %10651  ;;  %v9904_v28 = vpack.c.bf16 %v10650_v51, %v10648_v24 }
 0x670   :  { %v8894_v13 = vadd.f32 1.0, %v10652_v14 }
 0x671   :  { %9920 = vst [vmem:[#allocation15 + $0x28] sm:$0xff] %v9904_v28  }
 0x672   :  { %10659 = vrcp.f32 %v8894_v13  ;;  %v10654_v55 = vpop.eup %10653 }
 0x677   :  { %v10656_v57 = vpop.eup %10655 }
 0x678   :  { %v9909_v63 = vpack.c.bf16 %v10656_v57, %v10654_v55 }
 0x67a   :  { %9921 = vst [vmem:[#allocation15 + $0x30] sm:$0xff] %v9909_v63   ;;  %v10658_v27 = vpop.eup %10657 }
 0x67f   :  { %v10660_v1 = vpop.eup %10659 }
 0x680   :  { %v9914_v16 = vpack.c.bf16 %v10660_v1, %v10658_v27 }
 0x682   :  { %9922 = vst [vmem:[#allocation15 + $0x38] sm:$0xff] %v9914_v16  }
 0x683   :  { %10984 = shalt.err (!%p10981_p11)
}
 0x684   :  { %9002 = dma.vmem_to_hbm [thread:$0]  %s8997_s8, 1024, %s13675_s9, [#allocation5], %s11016_s22, %s11016_s22, %s11017_s23  }
 0x685   :  { %11001 = dma.done.wait [#allocation5], 1024  }
 0x686   :  { %11002 = vsyncadd [#allocation5], 4294966272 }
 0x687   :  { %9006 = vsyncpa [#allocation4], 1 }
 0x688   :  { %9007 = vsyncpa [#allocation7], 1 }
 0x689   :  { %9008 = vsyncpa [#allocation10], 1 }
 0x68a   :  { %9009 = vsyncpa [#allocation13], 1 }
 0x68b   :  { %9010 = vsyncpa [#allocation5], 1 }

</bundles_post_ra>
